<compile_context>
chip_gen: v7x
topology: tpu7x:2x2x1
jax: 0.10.0
libtpu: 0.0.40
codegen_flags: <defaults>
</compile_context>

<pallas_src>
import math

import numpy as np
import jax
import jax.numpy as jnp
from jax.experimental import pallas as pl
from jax.experimental.pallas import tpu as pltpu


# ----------------------------------------------------------------------------
# Parameter init (matches the PyTorch module's __init__)
# ----------------------------------------------------------------------------
def init_resblock_params(key, in_channels, out_channels, resolution):
    k = jax.random.split(key, 5)
    return dict(
        conv0_w=jax.random.normal(k[0], (out_channels, in_channels, 3, 3), jnp.float32),
        conv0_b=jnp.zeros((out_channels,), jnp.float32),
        conv0_noise_const=jax.random.normal(k[1], (resolution, resolution), jnp.float32),
        conv0_noise_strength=0.0,
        conv1_w=jax.random.normal(k[2], (out_channels, out_channels, 3, 3), jnp.float32),
        conv1_b=jnp.zeros((out_channels,), jnp.float32),
        conv1_noise_const=jax.random.normal(k[3], (resolution, resolution), jnp.float32),
        conv1_noise_strength=0.0,
        skip_w=jax.random.normal(k[4], (out_channels, in_channels, 1, 1), jnp.float32),
    )


# ----------------------------------------------------------------------------
# Host-side (XLA) weight folding - pure layout / linear-algebra plumbing
# ----------------------------------------------------------------------------
def _folded_kernels(params, Cin, Cout):
    """Fold (mod. transposed conv + FIR), (1x1 conv + FIR) and the plain 3x3
    conv into dense correlation kernels:
      k0     (6, 6, Cin, Cout)  - conv0 on the zero-inserted input
      k_skip (4, 4, Cin, Cout)  - skip  on the zero-inserted input
      k1     (3, 3, Cout, Cout) - conv1 on h
    """
    f = jnp.array([1.0, 3.0, 3.0, 1.0], jnp.float32)
    f2 = jnp.outer(f, f)
    f2 = f2 / jnp.sum(f2)                                # upfirdn2d.setup_filter

    s0 = 1.0 / math.sqrt(Cin * 9)                        # conv0 style (demod=False)
    f_pad = jnp.pad(f2, ((2, 2), (2, 2)))
    w0 = params["conv0_w"]                               # (Cout, Cin, 3, 3)
    k0 = jnp.zeros((6, 6, Cin, Cout), jnp.float32)
    for p in range(3):
        for q in range(3):
            k0 = k0 + (f_pad[p:p + 6, q:q + 6][:, :, None, None]
                       * jnp.transpose(w0[:, :, p, q])[None, None, :, :])
    k0 = k0 * (4.0 * s0)                                 # upfirdn gain up**2 * style

    k_skip = (4.0 / math.sqrt(Cin)) * (                  # weight_gain * up**2
        f2[:, :, None, None]
        * jnp.transpose(params["skip_w"][:, :, 0, 0])[None, None, :, :])

    s1 = 1.0 / math.sqrt(Cout * 9)                       # conv1 style
    k1 = jnp.transpose(params["conv1_w"], (2, 3, 1, 0)) * s1
    return k0, k_skip, k1


def _build_stage_a_weights(k0, k_skip, Cin, Cout):
    """Polyphase 3x3 kernels for conv0 and skip.

    Row index  = (a*3 + b)*Cin + ci   (tap-major)
    Col index  = (p*2 + q)*Cout + co  (output phase-major)
    """
    zero = jnp.zeros((Cin, Cout), jnp.float32)
    conv0_blocks, skip_blocks = [], []
    for a in range(3):
        for b in range(3):
            c0_cols, sk_cols = [], []
            for p in range(2):
                for q in range(2):
                    c0_cols.append(k0[2 * a + 1 - p, 2 * b + 1 - q])
                    A, B = 2 * a - p, 2 * b - q
                    if 0 <= A < 4 and 0 <= B < 4:
                        sk_cols.append(k_skip[A, B])
                    else:
                        sk_cols.append(zero)
            conv0_blocks.append(jnp.concatenate(c0_cols, axis=1))   # (Cin, 4*Cout)
            skip_blocks.append(jnp.concatenate(sk_cols, axis=1))
    wa_conv0 = jnp.concatenate(conv0_blocks, axis=0)                # (9*Cin, 4*Cout)
    wa_skip = jnp.concatenate(skip_blocks, axis=0)                  # (9*Cin, 4*Cout)
    return wa_conv0, wa_skip


def _noise_phase(noise_const, r):
    """noise_const (2r, 2r) -> (r*r, 4); row = s*r + t, col = p*2 + q."""
    n = noise_const.astype(jnp.float32).reshape(r, 2, r, 2)
    n = jnp.transpose(n, (0, 2, 1, 3)).reshape(r * r, 4)
    return n


def _build_additive(noise_a, strength_a, bias_a, noise_b, strength_b, bias_b,
                    r, Cout):
    """Rank-1 additive terms in factored form.

    planes (r*r, 9): cols 0-3 conv0 noise phases, 4-7 conv1 noise phases, 8 ones
    ea/eb  (9, 4*Cout): strength * block-diag expansion + bias row, so that
    planes @ ea == noise0*strength0 + bias0 (phase-major columns), etc.
    """
    C4 = 4 * Cout
    na = _noise_phase(noise_a, r)
    nb = _noise_phase(noise_b, r)
    ones = jnp.ones((r * r, 1), jnp.float32)
    planes = jnp.concatenate([na, nb, ones], axis=1)                # (r*r, 9)

    expand = jnp.kron(jnp.eye(4, dtype=jnp.float32),
                      jnp.ones((1, Cout), jnp.float32))             # (4, 4*Cout)
    zero4 = jnp.zeros((4, C4), jnp.float32)
    ea = jnp.concatenate(
        [float(strength_a) * expand, zero4,
         jnp.tile(bias_a.astype(jnp.float32), 4)[None, :]], axis=0)  # (9, 4*Cout)
    eb = jnp.concatenate(
        [zero4, float(strength_b) * expand,
         jnp.tile(bias_b.astype(jnp.float32), 4)[None, :]], axis=0)  # (9, 4*Cout)
    return planes, ea, eb


def _pick_batch_tile(n_batch, r):
    """Batch images per grid step: aim for matmul M = TB*r*r >= ~128, but keep
    at least 2 grid steps when the batch allows it (2 TensorCores on v7x)."""
    target = max(1, -(-128 // (r * r)))          # ceil(128 / r^2)
    tb = 1
    for cand in range(1, n_batch + 1):
        if n_batch % cand == 0 and cand <= target:
            tb = cand
    while tb > 1 and n_batch // tb < 2:
        nxt = tb - 1
        while nxt > 1 and n_batch % nxt != 0:
            nxt -= 1
        tb = nxt
    return tb


def _vmem_limit_bytes():
    """Per-generation scoped VMEM budget (v7x has only 64 MiB physical)."""
    cap = 96 * 1024 * 1024
    try:
        kind = jax.devices()[0].device_kind.lower()
        if "v7" in kind:
            cap = 48 * 1024 * 1024
    except Exception:
        pass
    return cap


# ----------------------------------------------------------------------------
# The fused Pallas kernel
# ----------------------------------------------------------------------------
def _make_fused_kernel(r, Cin, Cout, TB, conv_clamp, use_bf16):
    gain_lrelu = math.sqrt(2.0)                  # lrelu def_gain, gain=1 (conv0)
    gain_skip = math.sqrt(0.5)                   # linear, gain=sqrt(0.5) (skip)
    gain1 = math.sqrt(2.0) * math.sqrt(0.5)      # conv1: def_gain * sqrt(0.5)
    clamp0 = float(conv_clamp)
    clamp1 = float(conv_clamp) * math.sqrt(0.5)
    C4 = 4 * Cout
    M = TB * r * r

    def mm(a, b):
        if use_bf16:
            a = a.astype(jnp.bfloat16)
            b = b.astype(jnp.bfloat16)
        return jnp.dot(a, b, preferred_element_type=jnp.float32)

    def kernel(x_ref, w0_ref, ws_ref, w1_ref, pln_ref, ea_ref, eb_ref,
               out_ref, hpad_ref):
        # ---- stage A: polyphase conv0 + skip, 9 dense per-tap matmuls -------
        acc0 = jnp.zeros((M, C4), jnp.float32)
        accs = jnp.zeros((M, C4), jnp.float32)
        for a in range(3):
            for b in range(3):
                t = a * 3 + b
                xs = x_ref[:, pl.ds(a, r), pl.ds(b, r), :].reshape(M, Cin)
                acc0 = acc0 + mm(xs, w0_ref[t])
                accs = accs + mm(xs, ws_ref[t])

        # rank-1 additive (noise*strength + bias), expanded by a tiny matmul
        add_a = mm(pln_ref[...], ea_ref[...])                    # (r*r, C4)
        h = acc0.reshape(TB, r * r, C4) + add_a[None, :, :]
        h = jnp.where(h >= 0.0, h, 0.2 * h) * gain_lrelu
        h = jnp.clip(h, -clamp0, clamp0)                         # (TB, r*r, C4)
        y = accs * gain_skip                                     # (M, C4)

        # ---- stage B: conv1 in phase space, dense per-term matmuls ----------
        # Zero only the 1-pixel border (interior is fully overwritten below).
        # Done every step so the grid axis can stay "parallel" (each core owns
        # its own scratch and steps may run in any order).
        hpad_ref[:, pl.ds(0, 1), :, :] = jnp.zeros((TB, 1, r + 2, C4), jnp.float32)
        hpad_ref[:, pl.ds(r + 1, 1), :, :] = jnp.zeros((TB, 1, r + 2, C4), jnp.float32)
        hpad_ref[:, pl.ds(1, r), pl.ds(0, 1), :] = jnp.zeros((TB, r, 1, C4), jnp.float32)
        hpad_ref[:, pl.ds(1, r), pl.ds(r + 1, 1), :] = jnp.zeros((TB, r, 1, C4), jnp.float32)
        hpad_ref[:, pl.ds(1, r), pl.ds(1, r), :] = h.reshape(TB, r, r, C4)

        # Output phase (p,q), spatial (s,t) = full-res pixel (2s+p, 2t+q):
        #   out += h_phase[(p+da)%2, (q+db)%2][s + (p+da)//2, t + (q+db)//2]
        #          @ k1[da+1, db+1]
        outs = []
        for p in range(2):
            for q in range(2):
                acc = jnp.zeros((M, Cout), jnp.float32)
                for da in (-1, 0, 1):
                    pp = (p + da) % 2
                    sh_s = (p + da) // 2                 # in {-1, 0, 1}
                    for db in (-1, 0, 1):
                        qq = (q + db) % 2
                        sh_t = (q + db) // 2
                        t = (da + 1) * 3 + (db + 1)
                        ip = pp * 2 + qq
                        hp = hpad_ref[:, pl.ds(1 + sh_s, r), pl.ds(1 + sh_t, r),
                                      pl.ds(ip * Cout, Cout)]
                        acc = acc + mm(hp.reshape(M, Cout), w1_ref[t])
                outs.append(acc)
        o = jnp.concatenate(outs, axis=1)                        # (M, C4)

        add_b = mm(pln_ref[...], eb_ref[...])                    # (r*r, C4)
        o = o.reshape(TB, r * r, C4) + add_b[None, :, :]
        o = jnp.where(o >= 0.0, o, 0.2 * o) * gain1
        o = jnp.clip(o, -clamp1, clamp1)

        res = o + y.reshape(TB, r * r, C4)                       # residual add
        out_ref[...] = res.astype(out_ref.dtype)

    return kernel


def resblock_forward_pallas(params, x_nchw, *, in_channels, out_channels,
                            resolution, up=2, conv_clamp=256.0,
                            use_bf16_matmul=False):
    assert up == 2
    N = x_nchw.shape[0]
    R = resolution
    r = R // up
    Cin, Cout = in_channels, out_channels
    C4 = 4 * Cout
    assert x_nchw.shape == (N, Cin, r, r)

    x = jnp.transpose(x_nchw.astype(jnp.float32), (0, 2, 3, 1))     # NHWC
    x_pad = jnp.pad(x, ((0, 0), (1, 1), (1, 1), (0, 0)))            # (N, r+2, r+2, Cin)

    k0, k_skip, k1 = _folded_kernels(params, Cin, Cout)
    wa0, was = _build_stage_a_weights(k0, k_skip, Cin, Cout)
    w0 = wa0.reshape(9, Cin, C4)                                    # tap-major
    ws = was.reshape(9, Cin, C4)
    w1 = k1.reshape(9, Cout, Cout)                                  # dense taps only
    planes, ea, eb = _build_additive(
        params["conv0_noise_const"], params["conv0_noise_strength"], params["conv0_b"],
        params["conv1_noise_const"], params["conv1_noise_strength"], params["conv1_b"],
        r, Cout)

    TB = _pick_batch_tile(N, r)
    kernel = _make_fused_kernel(r, Cin, Cout, TB, float(conv_clamp), use_bf16_matmul)

    m_total = N * r * r
    flops = (2 * m_total * 9 * Cin * C4 * 2          # stage A: conv0 + skip per-tap
             + 2 * m_total * 36 * Cout * Cout        # stage B: 36 dense per-term matmuls
             + 2 * (N // TB) * (r * r) * 9 * (2 * C4))  # additive expansions
    bytes_accessed = 4 * (int(x_pad.size) + int(w0.size) + int(ws.size)
                          + int(w1.size) + int(planes.size) + int(ea.size)
                          + int(eb.size) + N * r * r * C4)

    def _make_call(single_buffer_invariants):
        def const_spec(shape):
            kwargs = {}
            if single_buffer_invariants and hasattr(pl, "Buffered"):
                kwargs["pipeline_mode"] = pl.Buffered(1)
            return pl.BlockSpec(shape, lambda *idx: (0,) * len(shape), **kwargs)

        in_specs = [
            pl.BlockSpec((TB, r + 2, r + 2, Cin), lambda n: (n, 0, 0, 0)),
            const_spec((9, Cin, C4)),
            const_spec((9, Cin, C4)),
            const_spec((9, Cout, Cout)),
            const_spec((r * r, 9)),
            const_spec((9, C4)),
            const_spec((9, C4)),
        ]
        return pl.pallas_call(
            kernel,
            out_shape=jax.ShapeDtypeStruct((N, r * r, C4), jnp.float32),
            grid=(N // TB,),
            in_specs=in_specs,
            out_specs=pl.BlockSpec((TB, r * r, C4), lambda n: (n, 0, 0)),
            scratch_shapes=[pltpu.VMEM((TB, r + 2, r + 2, C4), jnp.float32)],
            compiler_params=pltpu.CompilerParams(
                dimension_semantics=("parallel",),
                vmem_limit_bytes=_vmem_limit_bytes()),
            cost_estimate=pl.CostEstimate(flops=flops, transcendentals=0,
                                          bytes_accessed=bytes_accessed),
        )

    args = (x_pad, w0, ws, w1, planes, ea, eb)
    try:
        out_flat = _make_call(True)(*args)
    except Exception:
        # Fallback if this Pallas build rejects pipeline_mode=pl.Buffered(1).
        out_flat = _make_call(False)(*args)

    # Decode phase-major output (layout plumbing in the wrapper): col index is
    # (p*2+q)*Cout + c, row index is s*r + t  ->  NHWC full resolution -> NCHW.
    # (At production widths 4*Cout is a multiple of 128, so the in-kernel
    #  store is already lane-dense; no extra repacking is done here.)
    out = out_flat.reshape(N, r, r, 2, 2, Cout)
    out = jnp.transpose(out, (0, 1, 3, 2, 4, 5)).reshape(N, R, R, Cout)
    return jnp.transpose(out, (0, 3, 1, 2))


# ----------------------------------------------------------------------------
# Independent pure-JAX reference (original zero-insertion + folded-kernel
# formulation, validated previously) - used only to check the Pallas kernel.
# ----------------------------------------------------------------------------
def _conv2d_ref(x_pad, w, bias, noise2d, residual, *, act, act_gain, clamp,
                noise_strength):
    N, Hp, Wp, Cin = x_pad.shape
    KH, KW, _, Cout = w.shape
    H, W = Hp - KH + 1, Wp - KW + 1
    acc = jnp.zeros((N, H, W, Cout), jnp.float32)
    for kh in range(KH):
        for kw in range(KW):
            acc = acc + jnp.einsum("nhwc,cd->nhwd",
                                   x_pad[:, kh:kh + H, kw:kw + W, :], w[kh, kw],
                                   precision=jax.lax.Precision.HIGHEST)
    y = acc + noise2d[None, :, :, None] * noise_strength
    y = y + bias.reshape(1, 1, 1, Cout)
    if act == "lrelu":
        y = jnp.where(y >= 0.0, y, 0.2 * y)
    y = y * act_gain
    if clamp is not None:
        y = jnp.clip(y, -clamp, clamp)
    return y + residual


def resblock_forward_ref(params, x_nchw, *, in_channels, out_channels,
                         resolution, up=2, conv_clamp=256.0):
    N = x_nchw.shape[0]
    R = resolution
    r = R // up
    Cin, Cout = in_channels, out_channels

    x = jnp.transpose(x_nchw.astype(jnp.float32), (0, 2, 3, 1))
    k0, k_skip, k1 = _folded_kernels(params, Cin, Cout)

    x_up = jnp.zeros((N, 2 * r, 2 * r, Cin), jnp.float32).at[:, ::2, ::2, :].set(x)
    zeros_res = jnp.zeros((N, R, R, Cout), jnp.float32)
    zero_noise = jnp.zeros((R, R), jnp.float32)
    zero_bias = jnp.zeros((Cout,), jnp.float32)

    y = _conv2d_ref(jnp.pad(x_up, ((0, 0), (2, 1), (2, 1), (0, 0))), k_skip,
                    zero_bias, zero_noise, zeros_res,
                    act="linear", act_gain=math.sqrt(0.5), clamp=None,
                    noise_strength=0.0)
    h = _conv2d_ref(jnp.pad(x_up, ((0, 0), (3, 2), (3, 2), (0, 0))), k0,
                    params["conv0_b"], params["conv0_noise_const"], zeros_res,
                    act="lrelu", act_gain=math.sqrt(2.0), clamp=conv_clamp,
                    noise_strength=params["conv0_noise_strength"])
    out = _conv2d_ref(jnp.pad(h, ((0, 0), (1, 1), (1, 1), (0, 0))), k1,
                      params["conv1_b"], params["conv1_noise_const"], y,
                      act="lrelu", act_gain=math.sqrt(2.0) * math.sqrt(0.5),
                      clamp=conv_clamp * math.sqrt(0.5),
                      noise_strength=params["conv1_noise_strength"])
    return jnp.transpose(out, (0, 3, 1, 2))


if __name__ == "__main__":
    in_channels, out_channels, resolution, up = 4, 8, 16, 2
    batch = 2

    key = jax.random.PRNGKey(0)
    kp, kx = jax.random.split(key)
    params = init_resblock_params(kp, in_channels, out_channels, resolution)
    x = jax.random.normal(
        kx, (batch, in_channels, resolution // up, resolution // up), jnp.float32)

    out = resblock_forward_pallas(params, x, in_channels=in_channels,
                                  out_channels=out_channels,
                                  resolution=resolution, up=up)
    out = jax.block_until_ready(out)
    assert out.shape == (batch, out_channels, resolution, resolution)
    assert out.dtype == jnp.float32

    ref = resblock_forward_ref(params, x, in_channels=in_channels,
                               out_channels=out_channels,
                               resolution=resolution, up=up)
    ref = jax.block_until_ready(ref)
    np.testing.assert_allclose(np.asarray(out), np.asarray(ref),
                               rtol=1e-5, atol=1e-5)
    print("KERNEL_OK")
</pallas_src>

<mosaic_0001>
module attributes {stable_mosaic.version = 11 : i64} {
  func.func @kernel(%arg0: i32, %arg1: memref<1x10x10x4xf32, #tpu.memory_space<vmem>>, %arg2: memref<9x4x32xf32, #tpu.memory_space<vmem>>, %arg3: memref<9x4x32xf32, #tpu.memory_space<vmem>>, %arg4: memref<9x8x8xf32, #tpu.memory_space<vmem>>, %arg5: memref<64x9xf32, #tpu.memory_space<vmem>>, %arg6: memref<9x32xf32, #tpu.memory_space<vmem>>, %arg7: memref<9x32xf32, #tpu.memory_space<vmem>>, %arg8: memref<1x64x32xf32, #tpu.memory_space<vmem>>, %arg9: memref<1x10x10x32xf32, #tpu.memory_space<vmem>>) attributes {dimension_semantics = [#tpu.dimension_semantics<parallel>], iteration_bounds = array<i64: 2>, scalar_prefetch = 0 : i64, scratch_operands = 1 : i64, tpu.core_type = #tpu.core_type<tc>, window_params = [{transform_indices = @transform_0, window_bounds = array<i64: 1, 10, 10, 4>}, {pipeline_mode = #tpu.pipeline_mode<synchronous>, transform_indices = @transform_1, window_bounds = array<i64: 9, 4, 32>}, {pipeline_mode = #tpu.pipeline_mode<synchronous>, transform_indices = @transform_2, window_bounds = array<i64: 9, 4, 32>}, {pipeline_mode = #tpu.pipeline_mode<synchronous>, transform_indices = @transform_3, window_bounds = array<i64: 9, 8, 8>}, {pipeline_mode = #tpu.pipeline_mode<synchronous>, transform_indices = @transform_4, window_bounds = array<i64: 64, 9>}, {pipeline_mode = #tpu.pipeline_mode<synchronous>, transform_indices = @transform_5, window_bounds = array<i64: 9, 32>}, {pipeline_mode = #tpu.pipeline_mode<synchronous>, transform_indices = @transform_6, window_bounds = array<i64: 9, 32>}, {transform_indices = @transform_7, window_bounds = array<i64: 1, 64, 32>}]} {
    %cst = arith.constant 0.000000e+00 : f32
    %0 = vector.broadcast %cst : f32 to vector<64x32xf32>
    %cst_0 = arith.constant 0.000000e+00 : f32
    %1 = vector.broadcast %cst_0 : f32 to vector<64x32xf32>
    %c0 = arith.constant 0 : index
    %c0_1 = arith.constant 0 : index
    %c0_2 = arith.constant 0 : index
    %c0_3 = arith.constant 0 : index
    %2 = vector.load %arg1[%c0, %c0_1, %c0_2, %c0_3] : memref<1x10x10x4xf32, #tpu.memory_space<vmem>>, vector<1x8x8x4xf32>
    %3 = vector.shape_cast %2 : vector<1x8x8x4xf32> to vector<64x4xf32>
    %c0_4 = arith.constant 0 : index
    %c0_5 = arith.constant 0 : index
    %c0_6 = arith.constant 0 : index
    %4 = vector.load %arg2[%c0_4, %c0_5, %c0_6] : memref<9x4x32xf32, #tpu.memory_space<vmem>>, vector<1x4x32xf32>
    %5 = vector.shape_cast %4 : vector<1x4x32xf32> to vector<4x32xf32>
    %cst_7 = arith.constant dense<0.000000e+00> : vector<64x32xf32>
    %6 = tpu.matmul %3, %5, %cst_7 {dimension_numbers = #tpu.dot_dimension_numbers<[1], [0], [0], [1], [0, 0, 1, 1], [], []>} : vector<64x4xf32>, vector<4x32xf32>, vector<64x32xf32> -> vector<64x32xf32>
    %7 = arith.addf %0, %6 : vector<64x32xf32>
    %c0_8 = arith.constant 0 : index
    %c0_9 = arith.constant 0 : index
    %c0_10 = arith.constant 0 : index
    %8 = vector.load %arg3[%c0_8, %c0_9, %c0_10] : memref<9x4x32xf32, #tpu.memory_space<vmem>>, vector<1x4x32xf32>
    %9 = vector.shape_cast %8 : vector<1x4x32xf32> to vector<4x32xf32>
    %cst_11 = arith.constant dense<0.000000e+00> : vector<64x32xf32>
    %10 = tpu.matmul %3, %9, %cst_11 {dimension_numbers = #tpu.dot_dimension_numbers<[1], [0], [0], [1], [0, 0, 1, 1], [], []>} : vector<64x4xf32>, vector<4x32xf32>, vector<64x32xf32> -> vector<64x32xf32>
    %11 = arith.addf %1, %10 : vector<64x32xf32>
    %c0_12 = arith.constant 0 : index
    %c0_13 = arith.constant 0 : index
    %c1 = arith.constant 1 : index
    %c0_14 = arith.constant 0 : index
    %12 = vector.load %arg1[%c0_12, %c0_13, %c1, %c0_14] : memref<1x10x10x4xf32, #tpu.memory_space<vmem>>, vector<1x8x8x4xf32>
    %13 = vector.shape_cast %12 : vector<1x8x8x4xf32> to vector<64x4xf32>
    %c1_15 = arith.constant 1 : index
    %c0_16 = arith.constant 0 : index
    %c0_17 = arith.constant 0 : index
    %14 = vector.load %arg2[%c1_15, %c0_16, %c0_17] : memref<9x4x32xf32, #tpu.memory_space<vmem>>, vector<1x4x32xf32>
    %15 = vector.shape_cast %14 : vector<1x4x32xf32> to vector<4x32xf32>
    %cst_18 = arith.constant dense<0.000000e+00> : vector<64x32xf32>
    %16 = tpu.matmul %13, %15, %cst_18 {dimension_numbers = #tpu.dot_dimension_numbers<[1], [0], [0], [1], [0, 0, 1, 1], [], []>} : vector<64x4xf32>, vector<4x32xf32>, vector<64x32xf32> -> vector<64x32xf32>
    %17 = arith.addf %7, %16 : vector<64x32xf32>
    %c1_19 = arith.constant 1 : index
    %c0_20 = arith.constant 0 : index
    %c0_21 = arith.constant 0 : index
    %18 = vector.load %arg3[%c1_19, %c0_20, %c0_21] : memref<9x4x32xf32, #tpu.memory_space<vmem>>, vector<1x4x32xf32>
    %19 = vector.shape_cast %18 : vector<1x4x32xf32> to vector<4x32xf32>
    %cst_22 = arith.constant dense<0.000000e+00> : vector<64x32xf32>
    %20 = tpu.matmul %13, %19, %cst_22 {dimension_numbers = #tpu.dot_dimension_numbers<[1], [0], [0], [1], [0, 0, 1, 1], [], []>} : vector<64x4xf32>, vector<4x32xf32>, vector<64x32xf32> -> vector<64x32xf32>
    %21 = arith.addf %11, %20 : vector<64x32xf32>
    %c0_23 = arith.constant 0 : index
    %c0_24 = arith.constant 0 : index
    %c2 = arith.constant 2 : index
    %c0_25 = arith.constant 0 : index
    %22 = vector.load %arg1[%c0_23, %c0_24, %c2, %c0_25] : memref<1x10x10x4xf32, #tpu.memory_space<vmem>>, vector<1x8x8x4xf32>
    %23 = vector.shape_cast %22 : vector<1x8x8x4xf32> to vector<64x4xf32>
    %c2_26 = arith.constant 2 : index
    %c0_27 = arith.constant 0 : index
    %c0_28 = arith.constant 0 : index
    %24 = vector.load %arg2[%c2_26, %c0_27, %c0_28] : memref<9x4x32xf32, #tpu.memory_space<vmem>>, vector<1x4x32xf32>
    %25 = vector.shape_cast %24 : vector<1x4x32xf32> to vector<4x32xf32>
    %cst_29 = arith.constant dense<0.000000e+00> : vector<64x32xf32>
    %26 = tpu.matmul %23, %25, %cst_29 {dimension_numbers = #tpu.dot_dimension_numbers<[1], [0], [0], [1], [0, 0, 1, 1], [], []>} : vector<64x4xf32>, vector<4x32xf32>, vector<64x32xf32> -> vector<64x32xf32>
    %27 = arith.addf %17, %26 : vector<64x32xf32>
    %c2_30 = arith.constant 2 : index
    %c0_31 = arith.constant 0 : index
    %c0_32 = arith.constant 0 : index
    %28 = vector.load %arg3[%c2_30, %c0_31, %c0_32] : memref<9x4x32xf32, #tpu.memory_space<vmem>>, vector<1x4x32xf32>
    %29 = vector.shape_cast %28 : vector<1x4x32xf32> to vector<4x32xf32>
    %cst_33 = arith.constant dense<0.000000e+00> : vector<64x32xf32>
    %30 = tpu.matmul %23, %29, %cst_33 {dimension_numbers = #tpu.dot_dimension_numbers<[1], [0], [0], [1], [0, 0, 1, 1], [], []>} : vector<64x4xf32>, vector<4x32xf32>, vector<64x32xf32> -> vector<64x32xf32>
    %31 = arith.addf %21, %30 : vector<64x32xf32>
    %c0_34 = arith.constant 0 : index
    %c1_35 = arith.constant 1 : index
    %c0_36 = arith.constant 0 : index
    %c0_37 = arith.constant 0 : index
    %32 = vector.load %arg1[%c0_34, %c1_35, %c0_36, %c0_37] : memref<1x10x10x4xf32, #tpu.memory_space<vmem>>, vector<1x8x8x4xf32>
    %33 = vector.shape_cast %32 : vector<1x8x8x4xf32> to vector<64x4xf32>
    %c3 = arith.constant 3 : index
    %c0_38 = arith.constant 0 : index
    %c0_39 = arith.constant 0 : index
    %34 = vector.load %arg2[%c3, %c0_38, %c0_39] : memref<9x4x32xf32, #tpu.memory_space<vmem>>, vector<1x4x32xf32>
    %35 = vector.shape_cast %34 : vector<1x4x32xf32> to vector<4x32xf32>
    %cst_40 = arith.constant dense<0.000000e+00> : vector<64x32xf32>
    %36 = tpu.matmul %33, %35, %cst_40 {dimension_numbers = #tpu.dot_dimension_numbers<[1], [0], [0], [1], [0, 0, 1, 1], [], []>} : vector<64x4xf32>, vector<4x32xf32>, vector<64x32xf32> -> vector<64x32xf32>
    %37 = arith.addf %27, %36 : vector<64x32xf32>
    %c3_41 = arith.constant 3 : index
    %c0_42 = arith.constant 0 : index
    %c0_43 = arith.constant 0 : index
    %38 = vector.load %arg3[%c3_41, %c0_42, %c0_43] : memref<9x4x32xf32, #tpu.memory_space<vmem>>, vector<1x4x32xf32>
    %39 = vector.shape_cast %38 : vector<1x4x32xf32> to vector<4x32xf32>
    %cst_44 = arith.constant dense<0.000000e+00> : vector<64x32xf32>
    %40 = tpu.matmul %33, %39, %cst_44 {dimension_numbers = #tpu.dot_dimension_numbers<[1], [0], [0], [1], [0, 0, 1, 1], [], []>} : vector<64x4xf32>, vector<4x32xf32>, vector<64x32xf32> -> vector<64x32xf32>
    %41 = arith.addf %31, %40 : vector<64x32xf32>
    %c0_45 = arith.constant 0 : index
    %c1_46 = arith.constant 1 : index
    %c1_47 = arith.constant 1 : index
    %c0_48 = arith.constant 0 : index
    %42 = vector.load %arg1[%c0_45, %c1_46, %c1_47, %c0_48] : memref<1x10x10x4xf32, #tpu.memory_space<vmem>>, vector<1x8x8x4xf32>
    %43 = vector.shape_cast %42 : vector<1x8x8x4xf32> to vector<64x4xf32>
    %c4 = arith.constant 4 : index
    %c0_49 = arith.constant 0 : index
    %c0_50 = arith.constant 0 : index
    %44 = vector.load %arg2[%c4, %c0_49, %c0_50] : memref<9x4x32xf32, #tpu.memory_space<vmem>>, vector<1x4x32xf32>
    %45 = vector.shape_cast %44 : vector<1x4x32xf32> to vector<4x32xf32>
    %cst_51 = arith.constant dense<0.000000e+00> : vector<64x32xf32>
    %46 = tpu.matmul %43, %45, %cst_51 {dimension_numbers = #tpu.dot_dimension_numbers<[1], [0], [0], [1], [0, 0, 1, 1], [], []>} : vector<64x4xf32>, vector<4x32xf32>, vector<64x32xf32> -> vector<64x32xf32>
    %47 = arith.addf %37, %46 : vector<64x32xf32>
    %c4_52 = arith.constant 4 : index
    %c0_53 = arith.constant 0 : index
    %c0_54 = arith.constant 0 : index
    %48 = vector.load %arg3[%c4_52, %c0_53, %c0_54] : memref<9x4x32xf32, #tpu.memory_space<vmem>>, vector<1x4x32xf32>
    %49 = vector.shape_cast %48 : vector<1x4x32xf32> to vector<4x32xf32>
    %cst_55 = arith.constant dense<0.000000e+00> : vector<64x32xf32>
    %50 = tpu.matmul %43, %49, %cst_55 {dimension_numbers = #tpu.dot_dimension_numbers<[1], [0], [0], [1], [0, 0, 1, 1], [], []>} : vector<64x4xf32>, vector<4x32xf32>, vector<64x32xf32> -> vector<64x32xf32>
    %51 = arith.addf %41, %50 : vector<64x32xf32>
    %c0_56 = arith.constant 0 : index
    %c1_57 = arith.constant 1 : index
    %c2_58 = arith.constant 2 : index
    %c0_59 = arith.constant 0 : index
    %52 = vector.load %arg1[%c0_56, %c1_57, %c2_58, %c0_59] : memref<1x10x10x4xf32, #tpu.memory_space<vmem>>, vector<1x8x8x4xf32>
    %53 = vector.shape_cast %52 : vector<1x8x8x4xf32> to vector<64x4xf32>
    %c5 = arith.constant 5 : index
    %c0_60 = arith.constant 0 : index
    %c0_61 = arith.constant 0 : index
    %54 = vector.load %arg2[%c5, %c0_60, %c0_61] : memref<9x4x32xf32, #tpu.memory_space<vmem>>, vector<1x4x32xf32>
    %55 = vector.shape_cast %54 : vector<1x4x32xf32> to vector<4x32xf32>
    %cst_62 = arith.constant dense<0.000000e+00> : vector<64x32xf32>
    %56 = tpu.matmul %53, %55, %cst_62 {dimension_numbers = #tpu.dot_dimension_numbers<[1], [0], [0], [1], [0, 0, 1, 1], [], []>} : vector<64x4xf32>, vector<4x32xf32>, vector<64x32xf32> -> vector<64x32xf32>
    %57 = arith.addf %47, %56 : vector<64x32xf32>
    %c5_63 = arith.constant 5 : index
    %c0_64 = arith.constant 0 : index
    %c0_65 = arith.constant 0 : index
    %58 = vector.load %arg3[%c5_63, %c0_64, %c0_65] : memref<9x4x32xf32, #tpu.memory_space<vmem>>, vector<1x4x32xf32>
    %59 = vector.shape_cast %58 : vector<1x4x32xf32> to vector<4x32xf32>
    %cst_66 = arith.constant dense<0.000000e+00> : vector<64x32xf32>
    %60 = tpu.matmul %53, %59, %cst_66 {dimension_numbers = #tpu.dot_dimension_numbers<[1], [0], [0], [1], [0, 0, 1, 1], [], []>} : vector<64x4xf32>, vector<4x32xf32>, vector<64x32xf32> -> vector<64x32xf32>
    %61 = arith.addf %51, %60 : vector<64x32xf32>
    %c0_67 = arith.constant 0 : index
    %c2_68 = arith.constant 2 : index
    %c0_69 = arith.constant 0 : index
    %c0_70 = arith.constant 0 : index
    %62 = vector.load %arg1[%c0_67, %c2_68, %c0_69, %c0_70] : memref<1x10x10x4xf32, #tpu.memory_space<vmem>>, vector<1x8x8x4xf32>
    %63 = vector.shape_cast %62 : vector<1x8x8x4xf32> to vector<64x4xf32>
    %c6 = arith.constant 6 : index
    %c0_71 = arith.constant 0 : index
    %c0_72 = arith.constant 0 : index
    %64 = vector.load %arg2[%c6, %c0_71, %c0_72] : memref<9x4x32xf32, #tpu.memory_space<vmem>>, vector<1x4x32xf32>
    %65 = vector.shape_cast %64 : vector<1x4x32xf32> to vector<4x32xf32>
    %cst_73 = arith.constant dense<0.000000e+00> : vector<64x32xf32>
    %66 = tpu.matmul %63, %65, %cst_73 {dimension_numbers = #tpu.dot_dimension_numbers<[1], [0], [0], [1], [0, 0, 1, 1], [], []>} : vector<64x4xf32>, vector<4x32xf32>, vector<64x32xf32> -> vector<64x32xf32>
    %67 = arith.addf %57, %66 : vector<64x32xf32>
    %c6_74 = arith.constant 6 : index
    %c0_75 = arith.constant 0 : index
    %c0_76 = arith.constant 0 : index
    %68 = vector.load %arg3[%c6_74, %c0_75, %c0_76] : memref<9x4x32xf32, #tpu.memory_space<vmem>>, vector<1x4x32xf32>
    %69 = vector.shape_cast %68 : vector<1x4x32xf32> to vector<4x32xf32>
    %cst_77 = arith.constant dense<0.000000e+00> : vector<64x32xf32>
    %70 = tpu.matmul %63, %69, %cst_77 {dimension_numbers = #tpu.dot_dimension_numbers<[1], [0], [0], [1], [0, 0, 1, 1], [], []>} : vector<64x4xf32>, vector<4x32xf32>, vector<64x32xf32> -> vector<64x32xf32>
    %71 = arith.addf %61, %70 : vector<64x32xf32>
    %c0_78 = arith.constant 0 : index
    %c2_79 = arith.constant 2 : index
    %c1_80 = arith.constant 1 : index
    %c0_81 = arith.constant 0 : index
    %72 = vector.load %arg1[%c0_78, %c2_79, %c1_80, %c0_81] : memref<1x10x10x4xf32, #tpu.memory_space<vmem>>, vector<1x8x8x4xf32>
    %73 = vector.shape_cast %72 : vector<1x8x8x4xf32> to vector<64x4xf32>
    %c7 = arith.constant 7 : index
    %c0_82 = arith.constant 0 : index
    %c0_83 = arith.constant 0 : index
    %74 = vector.load %arg2[%c7, %c0_82, %c0_83] : memref<9x4x32xf32, #tpu.memory_space<vmem>>, vector<1x4x32xf32>
    %75 = vector.shape_cast %74 : vector<1x4x32xf32> to vector<4x32xf32>
    %cst_84 = arith.constant dense<0.000000e+00> : vector<64x32xf32>
    %76 = tpu.matmul %73, %75, %cst_84 {dimension_numbers = #tpu.dot_dimension_numbers<[1], [0], [0], [1], [0, 0, 1, 1], [], []>} : vector<64x4xf32>, vector<4x32xf32>, vector<64x32xf32> -> vector<64x32xf32>
    %77 = arith.addf %67, %76 : vector<64x32xf32>
    %c7_85 = arith.constant 7 : index
    %c0_86 = arith.constant 0 : index
    %c0_87 = arith.constant 0 : index
    %78 = vector.load %arg3[%c7_85, %c0_86, %c0_87] : memref<9x4x32xf32, #tpu.memory_space<vmem>>, vector<1x4x32xf32>
    %79 = vector.shape_cast %78 : vector<1x4x32xf32> to vector<4x32xf32>
    %cst_88 = arith.constant dense<0.000000e+00> : vector<64x32xf32>
    %80 = tpu.matmul %73, %79, %cst_88 {dimension_numbers = #tpu.dot_dimension_numbers<[1], [0], [0], [1], [0, 0, 1, 1], [], []>} : vector<64x4xf32>, vector<4x32xf32>, vector<64x32xf32> -> vector<64x32xf32>
    %81 = arith.addf %71, %80 : vector<64x32xf32>
    %c0_89 = arith.constant 0 : index
    %c2_90 = arith.constant 2 : index
    %c2_91 = arith.constant 2 : index
    %c0_92 = arith.constant 0 : index
    %82 = vector.load %arg1[%c0_89, %c2_90, %c2_91, %c0_92] : memref<1x10x10x4xf32, #tpu.memory_space<vmem>>, vector<1x8x8x4xf32>
    %83 = vector.shape_cast %82 : vector<1x8x8x4xf32> to vector<64x4xf32>
    %c8 = arith.constant 8 : index
    %c0_93 = arith.constant 0 : index
    %c0_94 = arith.constant 0 : index
    %84 = vector.load %arg2[%c8, %c0_93, %c0_94] : memref<9x4x32xf32, #tpu.memory_space<vmem>>, vector<1x4x32xf32>
    %85 = vector.shape_cast %84 : vector<1x4x32xf32> to vector<4x32xf32>
    %cst_95 = arith.constant dense<0.000000e+00> : vector<64x32xf32>
    %86 = tpu.matmul %83, %85, %cst_95 {dimension_numbers = #tpu.dot_dimension_numbers<[1], [0], [0], [1], [0, 0, 1, 1], [], []>} : vector<64x4xf32>, vector<4x32xf32>, vector<64x32xf32> -> vector<64x32xf32>
    %87 = arith.addf %77, %86 : vector<64x32xf32>
    %c8_96 = arith.constant 8 : index
    %c0_97 = arith.constant 0 : index
    %c0_98 = arith.constant 0 : index
    %88 = vector.load %arg3[%c8_96, %c0_97, %c0_98] : memref<9x4x32xf32, #tpu.memory_space<vmem>>, vector<1x4x32xf32>
    %89 = vector.shape_cast %88 : vector<1x4x32xf32> to vector<4x32xf32>
    %cst_99 = arith.constant dense<0.000000e+00> : vector<64x32xf32>
    %90 = tpu.matmul %83, %89, %cst_99 {dimension_numbers = #tpu.dot_dimension_numbers<[1], [0], [0], [1], [0, 0, 1, 1], [], []>} : vector<64x4xf32>, vector<4x32xf32>, vector<64x32xf32> -> vector<64x32xf32>
    %91 = arith.addf %81, %90 : vector<64x32xf32>
    %c0_100 = arith.constant 0 : index
    %c0_101 = arith.constant 0 : index
    %92 = vector.load %arg5[%c0_100, %c0_101] : memref<64x9xf32, #tpu.memory_space<vmem>>, vector<64x9xf32>
    %c0_102 = arith.constant 0 : index
    %c0_103 = arith.constant 0 : index
    %93 = vector.load %arg6[%c0_102, %c0_103] : memref<9x32xf32, #tpu.memory_space<vmem>>, vector<9x32xf32>
    %cst_104 = arith.constant dense<0.000000e+00> : vector<64x32xf32>
    %94 = tpu.matmul %92, %93, %cst_104 {dimension_numbers = #tpu.dot_dimension_numbers<[1], [0], [0], [1], [0, 0, 1, 1], [], []>} : vector<64x9xf32>, vector<9x32xf32>, vector<64x32xf32> -> vector<64x32xf32>
    %95 = vector.shape_cast %87 : vector<64x32xf32> to vector<1x64x32xf32>
    %96 = vector.shape_cast %94 : vector<64x32xf32> to vector<1x64x32xf32>
    %97 = arith.addf %95, %96 : vector<1x64x32xf32>
    %cst_105 = arith.constant 0.000000e+00 : f32
    %98 = vector.broadcast %cst_105 : f32 to vector<1x64x32xf32>
    %99 = arith.cmpf oge, %97, %98 : vector<1x64x32xf32>
    %cst_106 = arith.constant 2.000000e-01 : f32
    %100 = vector.broadcast %cst_106 : f32 to vector<1x64x32xf32>
    %101 = arith.mulf %100, %97 : vector<1x64x32xf32>
    %102 = arith.select %99, %97, %101 : vector<1x64x32xi1>, vector<1x64x32xf32>
    %cst_107 = arith.constant 1.41421354 : f32
    %103 = vector.broadcast %cst_107 : f32 to vector<1x64x32xf32>
    %104 = arith.mulf %102, %103 : vector<1x64x32xf32>
    %cst_108 = arith.constant -2.560000e+02 : f32
    %cst_109 = arith.constant 2.560000e+02 : f32
    %105 = vector.broadcast %cst_108 : f32 to vector<1x64x32xf32>
    %106 = arith.maximumf %105, %104 : vector<1x64x32xf32>
    %107 = vector.broadcast %cst_109 : f32 to vector<1x64x32xf32>
    %108 = arith.minimumf %107, %106 : vector<1x64x32xf32>
    %cst_110 = arith.constant 0.707106769 : f32
    %109 = vector.broadcast %cst_110 : f32 to vector<64x32xf32>
    %110 = arith.mulf %91, %109 : vector<64x32xf32>
    %cst_111 = arith.constant 0.000000e+00 : f32
    %111 = vector.broadcast %cst_111 : f32 to vector<1x1x10x32xf32>
    %c0_112 = arith.constant 0 : index
    %c0_113 = arith.constant 0 : index
    %c0_114 = arith.constant 0 : index
    %c0_115 = arith.constant 0 : index
    %112 = vector.load %arg9[%c0_112, %c0_113, %c0_114, %c0_115] : memref<1x10x10x32xf32, #tpu.memory_space<vmem>>, vector<1x1x10x32xf32>
    tpu.vector_store %arg9[%c0_112, %c0_113, %c0_114, %c0_115], %111 {strides = array<i32>} : memref<1x10x10x32xf32, #tpu.memory_space<vmem>>, vector<1x1x10x32xf32>,
    %cst_116 = arith.constant 0.000000e+00 : f32
    %113 = vector.broadcast %cst_116 : f32 to vector<1x1x10x32xf32>
    %c0_117 = arith.constant 0 : index
    %c9 = arith.constant 9 : index
    %c0_118 = arith.constant 0 : index
    %c0_119 = arith.constant 0 : index
    %114 = vector.load %arg9[%c0_117, %c9, %c0_118, %c0_119] : memref<1x10x10x32xf32, #tpu.memory_space<vmem>>, vector<1x1x10x32xf32>
    tpu.vector_store %arg9[%c0_117, %c9, %c0_118, %c0_119], %113 {strides = array<i32>} : memref<1x10x10x32xf32, #tpu.memory_space<vmem>>, vector<1x1x10x32xf32>,
    %cst_120 = arith.constant 0.000000e+00 : f32
    %115 = vector.broadcast %cst_120 : f32 to vector<1x8x1x32xf32>
    %c0_121 = arith.constant 0 : index
    %c1_122 = arith.constant 1 : index
    %c0_123 = arith.constant 0 : index
    %c0_124 = arith.constant 0 : index
    %116 = vector.load %arg9[%c0_121, %c1_122, %c0_123, %c0_124] : memref<1x10x10x32xf32, #tpu.memory_space<vmem>>, vector<1x8x1x32xf32>
    tpu.vector_store %arg9[%c0_121, %c1_122, %c0_123, %c0_124], %115 {strides = array<i32>} : memref<1x10x10x32xf32, #tpu.memory_space<vmem>>, vector<1x8x1x32xf32>,
    %cst_125 = arith.constant 0.000000e+00 : f32
    %117 = vector.broadcast %cst_125 : f32 to vector<1x8x1x32xf32>
    %c0_126 = arith.constant 0 : index
    %c1_127 = arith.constant 1 : index
    %c9_128 = arith.constant 9 : index
    %c0_129 = arith.constant 0 : index
    %118 = vector.load %arg9[%c0_126, %c1_127, %c9_128, %c0_129] : memref<1x10x10x32xf32, #tpu.memory_space<vmem>>, vector<1x8x1x32xf32>
    tpu.vector_store %arg9[%c0_126, %c1_127, %c9_128, %c0_129], %117 {strides = array<i32>} : memref<1x10x10x32xf32, #tpu.memory_space<vmem>>, vector<1x8x1x32xf32>,
    %119 = vector.shape_cast %108 : vector<1x64x32xf32> to vector<1x8x8x32xf32>
    %c0_130 = arith.constant 0 : index
    %c1_131 = arith.constant 1 : index
    %c1_132 = arith.constant 1 : index
    %c0_133 = arith.constant 0 : index
    %120 = vector.load %arg9[%c0_130, %c1_131, %c1_132, %c0_133] : memref<1x10x10x32xf32, #tpu.memory_space<vmem>>, vector<1x8x8x32xf32>
    tpu.vector_store %arg9[%c0_130, %c1_131, %c1_132, %c0_133], %119 {strides = array<i32>} : memref<1x10x10x32xf32, #tpu.memory_space<vmem>>, vector<1x8x8x32xf32>,
    %cst_134 = arith.constant 0.000000e+00 : f32
    %121 = vector.broadcast %cst_134 : f32 to vector<64x8xf32>
    %c0_135 = arith.constant 0 : index
    %c0_136 = arith.constant 0 : index
    %c0_137 = arith.constant 0 : index
    %c24 = arith.constant 24 : index
    %122 = vector.load %arg9[%c0_135, %c0_136, %c0_137, %c24] : memref<1x10x10x32xf32, #tpu.memory_space<vmem>>, vector<1x8x8x8xf32>
    %123 = vector.shape_cast %122 : vector<1x8x8x8xf32> to vector<64x8xf32>
    %c0_138 = arith.constant 0 : index
    %c0_139 = arith.constant 0 : index
    %c0_140 = arith.constant 0 : index
    %124 = vector.load %arg4[%c0_138, %c0_139, %c0_140] : memref<9x8x8xf32, #tpu.memory_space<vmem>>, vector<1x8x8xf32>
    %125 = vector.shape_cast %124 : vector<1x8x8xf32> to vector<8x8xf32>
    %cst_141 = arith.constant dense<0.000000e+00> : vector<64x8xf32>
    %126 = tpu.matmul %123, %125, %cst_141 {dimension_numbers = #tpu.dot_dimension_numbers<[1], [0], [0], [1], [0, 0, 1, 1], [], []>} : vector<64x8xf32>, vector<8x8xf32>, vector<64x8xf32> -> vector<64x8xf32>
    %127 = arith.addf %121, %126 : vector<64x8xf32>
    %c0_142 = arith.constant 0 : index
    %c0_143 = arith.constant 0 : index
    %c1_144 = arith.constant 1 : index
    %c16 = arith.constant 16 : index
    %128 = vector.load %arg9[%c0_142, %c0_143, %c1_144, %c16] : memref<1x10x10x32xf32, #tpu.memory_space<vmem>>, vector<1x8x8x8xf32>
    %129 = vector.shape_cast %128 : vector<1x8x8x8xf32> to vector<64x8xf32>
    %c1_145 = arith.constant 1 : index
    %c0_146 = arith.constant 0 : index
    %c0_147 = arith.constant 0 : index
    %130 = vector.load %arg4[%c1_145, %c0_146, %c0_147] : memref<9x8x8xf32, #tpu.memory_space<vmem>>, vector<1x8x8xf32>
    %131 = vector.shape_cast %130 : vector<1x8x8xf32> to vector<8x8xf32>
    %cst_148 = arith.constant dense<0.000000e+00> : vector<64x8xf32>
    %132 = tpu.matmul %129, %131, %cst_148 {dimension_numbers = #tpu.dot_dimension_numbers<[1], [0], [0], [1], [0, 0, 1, 1], [], []>} : vector<64x8xf32>, vector<8x8xf32>, vector<64x8xf32> -> vector<64x8xf32>
    %133 = arith.addf %127, %132 : vector<64x8xf32>
    %c0_149 = arith.constant 0 : index
    %c0_150 = arith.constant 0 : index
    %c1_151 = arith.constant 1 : index
    %c24_152 = arith.constant 24 : index
    %134 = vector.load %arg9[%c0_149, %c0_150, %c1_151, %c24_152] : memref<1x10x10x32xf32, #tpu.memory_space<vmem>>, vector<1x8x8x8xf32>
    %135 = vector.shape_cast %134 : vector<1x8x8x8xf32> to vector<64x8xf32>
    %c2_153 = arith.constant 2 : index
    %c0_154 = arith.constant 0 : index
    %c0_155 = arith.constant 0 : index
    %136 = vector.load %arg4[%c2_153, %c0_154, %c0_155] : memref<9x8x8xf32, #tpu.memory_space<vmem>>, vector<1x8x8xf32>
    %137 = vector.shape_cast %136 : vector<1x8x8xf32> to vector<8x8xf32>
    %cst_156 = arith.constant dense<0.000000e+00> : vector<64x8xf32>
    %138 = tpu.matmul %135, %137, %cst_156 {dimension_numbers = #tpu.dot_dimension_numbers<[1], [0], [0], [1], [0, 0, 1, 1], [], []>} : vector<64x8xf32>, vector<8x8xf32>, vector<64x8xf32> -> vector<64x8xf32>
    %139 = arith.addf %133, %138 : vector<64x8xf32>
    %c0_157 = arith.constant 0 : index
    %c1_158 = arith.constant 1 : index
    %c0_159 = arith.constant 0 : index
    %c8_160 = arith.constant 8 : index
    %140 = vector.load %arg9[%c0_157, %c1_158, %c0_159, %c8_160] : memref<1x10x10x32xf32, #tpu.memory_space<vmem>>, vector<1x8x8x8xf32>
    %141 = vector.shape_cast %140 : vector<1x8x8x8xf32> to vector<64x8xf32>
    %c3_161 = arith.constant 3 : index
    %c0_162 = arith.constant 0 : index
    %c0_163 = arith.constant 0 : index
    %142 = vector.load %arg4[%c3_161, %c0_162, %c0_163] : memref<9x8x8xf32, #tpu.memory_space<vmem>>, vector<1x8x8xf32>
    %143 = vector.shape_cast %142 : vector<1x8x8xf32> to vector<8x8xf32>
    %cst_164 = arith.constant dense<0.000000e+00> : vector<64x8xf32>
    %144 = tpu.matmul %141, %143, %cst_164 {dimension_numbers = #tpu.dot_dimension_numbers<[1], [0], [0], [1], [0, 0, 1, 1], [], []>} : vector<64x8xf32>, vector<8x8xf32>, vector<64x8xf32> -> vector<64x8xf32>
    %145 = arith.addf %139, %144 : vector<64x8xf32>
    %c0_165 = arith.constant 0 : index
    %c1_166 = arith.constant 1 : index
    %c1_167 = arith.constant 1 : index
    %c0_168 = arith.constant 0 : index
    %146 = vector.load %arg9[%c0_165, %c1_166, %c1_167, %c0_168] : memref<1x10x10x32xf32, #tpu.memory_space<vmem>>, vector<1x8x8x8xf32>
    %147 = vector.shape_cast %146 : vector<1x8x8x8xf32> to vector<64x8xf32>
    %c4_169 = arith.constant 4 : index
    %c0_170 = arith.constant 0 : index
    %c0_171 = arith.constant 0 : index
    %148 = vector.load %arg4[%c4_169, %c0_170, %c0_171] : memref<9x8x8xf32, #tpu.memory_space<vmem>>, vector<1x8x8xf32>
    %149 = vector.shape_cast %148 : vector<1x8x8xf32> to vector<8x8xf32>
    %cst_172 = arith.constant dense<0.000000e+00> : vector<64x8xf32>
    %150 = tpu.matmul %147, %149, %cst_172 {dimension_numbers = #tpu.dot_dimension_numbers<[1], [0], [0], [1], [0, 0, 1, 1], [], []>} : vector<64x8xf32>, vector<8x8xf32>, vector<64x8xf32> -> vector<64x8xf32>
    %151 = arith.addf %145, %150 : vector<64x8xf32>
    %c0_173 = arith.constant 0 : index
    %c1_174 = arith.constant 1 : index
    %c1_175 = arith.constant 1 : index
    %c8_176 = arith.constant 8 : index
    %152 = vector.load %arg9[%c0_173, %c1_174, %c1_175, %c8_176] : memref<1x10x10x32xf32, #tpu.memory_space<vmem>>, vector<1x8x8x8xf32>
    %153 = vector.shape_cast %152 : vector<1x8x8x8xf32> to vector<64x8xf32>
    %c5_177 = arith.constant 5 : index
    %c0_178 = arith.constant 0 : index
    %c0_179 = arith.constant 0 : index
    %154 = vector.load %arg4[%c5_177, %c0_178, %c0_179] : memref<9x8x8xf32, #tpu.memory_space<vmem>>, vector<1x8x8xf32>
    %155 = vector.shape_cast %154 : vector<1x8x8xf32> to vector<8x8xf32>
    %cst_180 = arith.constant dense<0.000000e+00> : vector<64x8xf32>
    %156 = tpu.matmul %153, %155, %cst_180 {dimension_numbers = #tpu.dot_dimension_numbers<[1], [0], [0], [1], [0, 0, 1, 1], [], []>} : vector<64x8xf32>, vector<8x8xf32>, vector<64x8xf32> -> vector<64x8xf32>
    %157 = arith.addf %151, %156 : vector<64x8xf32>
    %c0_181 = arith.constant 0 : index
    %c1_182 = arith.constant 1 : index
    %c0_183 = arith.constant 0 : index
    %c24_184 = arith.constant 24 : index
    %158 = vector.load %arg9[%c0_181, %c1_182, %c0_183, %c24_184] : memref<1x10x10x32xf32, #tpu.memory_space<vmem>>, vector<1x8x8x8xf32>
    %159 = vector.shape_cast %158 : vector<1x8x8x8xf32> to vector<64x8xf32>
    %c6_185 = arith.constant 6 : index
    %c0_186 = arith.constant 0 : index
    %c0_187 = arith.constant 0 : index
    %160 = vector.load %arg4[%c6_185, %c0_186, %c0_187] : memref<9x8x8xf32, #tpu.memory_space<vmem>>, vector<1x8x8xf32>
    %161 = vector.shape_cast %160 : vector<1x8x8xf32> to vector<8x8xf32>
    %cst_188 = arith.constant dense<0.000000e+00> : vector<64x8xf32>
    %162 = tpu.matmul %159, %161, %cst_188 {dimension_numbers = #tpu.dot_dimension_numbers<[1], [0], [0], [1], [0, 0, 1, 1], [], []>} : vector<64x8xf32>, vector<8x8xf32>, vector<64x8xf32> -> vector<64x8xf32>
    %163 = arith.addf %157, %162 : vector<64x8xf32>
    %c0_189 = arith.constant 0 : index
    %c1_190 = arith.constant 1 : index
    %c1_191 = arith.constant 1 : index
    %c16_192 = arith.constant 16 : index
    %164 = vector.load %arg9[%c0_189, %c1_190, %c1_191, %c16_192] : memref<1x10x10x32xf32, #tpu.memory_space<vmem>>, vector<1x8x8x8xf32>
    %165 = vector.shape_cast %164 : vector<1x8x8x8xf32> to vector<64x8xf32>
    %c7_193 = arith.constant 7 : index
    %c0_194 = arith.constant 0 : index
    %c0_195 = arith.constant 0 : index
    %166 = vector.load %arg4[%c7_193, %c0_194, %c0_195] : memref<9x8x8xf32, #tpu.memory_space<vmem>>, vector<1x8x8xf32>
    %167 = vector.shape_cast %166 : vector<1x8x8xf32> to vector<8x8xf32>
    %cst_196 = arith.constant dense<0.000000e+00> : vector<64x8xf32>
    %168 = tpu.matmul %165, %167, %cst_196 {dimension_numbers = #tpu.dot_dimension_numbers<[1], [0], [0], [1], [0, 0, 1, 1], [], []>} : vector<64x8xf32>, vector<8x8xf32>, vector<64x8xf32> -> vector<64x8xf32>
    %169 = arith.addf %163, %168 : vector<64x8xf32>
    %c0_197 = arith.constant 0 : index
    %c1_198 = arith.constant 1 : index
    %c1_199 = arith.constant 1 : index
    %c24_200 = arith.constant 24 : index
    %170 = vector.load %arg9[%c0_197, %c1_198, %c1_199, %c24_200] : memref<1x10x10x32xf32, #tpu.memory_space<vmem>>, vector<1x8x8x8xf32>
    %171 = vector.shape_cast %170 : vector<1x8x8x8xf32> to vector<64x8xf32>
    %c8_201 = arith.constant 8 : index
    %c0_202 = arith.constant 0 : index
    %c0_203 = arith.constant 0 : index
    %172 = vector.load %arg4[%c8_201, %c0_202, %c0_203] : memref<9x8x8xf32, #tpu.memory_space<vmem>>, vector<1x8x8xf32>
    %173 = vector.shape_cast %172 : vector<1x8x8xf32> to vector<8x8xf32>
    %cst_204 = arith.constant dense<0.000000e+00> : vector<64x8xf32>
    %174 = tpu.matmul %171, %173, %cst_204 {dimension_numbers = #tpu.dot_dimension_numbers<[1], [0], [0], [1], [0, 0, 1, 1], [], []>} : vector<64x8xf32>, vector<8x8xf32>, vector<64x8xf32> -> vector<64x8xf32>
    %175 = arith.addf %169, %174 : vector<64x8xf32>
    %cst_205 = arith.constant 0.000000e+00 : f32
    %176 = vector.broadcast %cst_205 : f32 to vector<64x8xf32>
    %c0_206 = arith.constant 0 : index
    %c0_207 = arith.constant 0 : index
    %c1_208 = arith.constant 1 : index
    %c16_209 = arith.constant 16 : index
    %177 = vector.load %arg9[%c0_206, %c0_207, %c1_208, %c16_209] : memref<1x10x10x32xf32, #tpu.memory_space<vmem>>, vector<1x8x8x8xf32>
    %178 = vector.shape_cast %177 : vector<1x8x8x8xf32> to vector<64x8xf32>
    %c0_210 = arith.constant 0 : index
    %c0_211 = arith.constant 0 : index
    %c0_212 = arith.constant 0 : index
    %179 = vector.load %arg4[%c0_210, %c0_211, %c0_212] : memref<9x8x8xf32, #tpu.memory_space<vmem>>, vector<1x8x8xf32>
    %180 = vector.shape_cast %179 : vector<1x8x8xf32> to vector<8x8xf32>
    %cst_213 = arith.constant dense<0.000000e+00> : vector<64x8xf32>
    %181 = tpu.matmul %178, %180, %cst_213 {dimension_numbers = #tpu.dot_dimension_numbers<[1], [0], [0], [1], [0, 0, 1, 1], [], []>} : vector<64x8xf32>, vector<8x8xf32>, vector<64x8xf32> -> vector<64x8xf32>
    %182 = arith.addf %176, %181 : vector<64x8xf32>
    %c0_214 = arith.constant 0 : index
    %c0_215 = arith.constant 0 : index
    %c1_216 = arith.constant 1 : index
    %c24_217 = arith.constant 24 : index
    %183 = vector.load %arg9[%c0_214, %c0_215, %c1_216, %c24_217] : memref<1x10x10x32xf32, #tpu.memory_space<vmem>>, vector<1x8x8x8xf32>
    %184 = vector.shape_cast %183 : vector<1x8x8x8xf32> to vector<64x8xf32>
    %c1_218 = arith.constant 1 : index
    %c0_219 = arith.constant 0 : index
    %c0_220 = arith.constant 0 : index
    %185 = vector.load %arg4[%c1_218, %c0_219, %c0_220] : memref<9x8x8xf32, #tpu.memory_space<vmem>>, vector<1x8x8xf32>
    %186 = vector.shape_cast %185 : vector<1x8x8xf32> to vector<8x8xf32>
    %cst_221 = arith.constant dense<0.000000e+00> : vector<64x8xf32>
    %187 = tpu.matmul %184, %186, %cst_221 {dimension_numbers = #tpu.dot_dimension_numbers<[1], [0], [0], [1], [0, 0, 1, 1], [], []>} : vector<64x8xf32>, vector<8x8xf32>, vector<64x8xf32> -> vector<64x8xf32>
    %188 = arith.addf %182, %187 : vector<64x8xf32>
    %c0_222 = arith.constant 0 : index
    %c0_223 = arith.constant 0 : index
    %c2_224 = arith.constant 2 : index
    %c16_225 = arith.constant 16 : index
    %189 = vector.load %arg9[%c0_222, %c0_223, %c2_224, %c16_225] : memref<1x10x10x32xf32, #tpu.memory_space<vmem>>, vector<1x8x8x8xf32>
    %190 = vector.shape_cast %189 : vector<1x8x8x8xf32> to vector<64x8xf32>
    %c2_226 = arith.constant 2 : index
    %c0_227 = arith.constant 0 : index
    %c0_228 = arith.constant 0 : index
    %191 = vector.load %arg4[%c2_226, %c0_227, %c0_228] : memref<9x8x8xf32, #tpu.memory_space<vmem>>, vector<1x8x8xf32>
    %192 = vector.shape_cast %191 : vector<1x8x8xf32> to vector<8x8xf32>
    %cst_229 = arith.constant dense<0.000000e+00> : vector<64x8xf32>
    %193 = tpu.matmul %190, %192, %cst_229 {dimension_numbers = #tpu.dot_dimension_numbers<[1], [0], [0], [1], [0, 0, 1, 1], [], []>} : vector<64x8xf32>, vector<8x8xf32>, vector<64x8xf32> -> vector<64x8xf32>
    %194 = arith.addf %188, %193 : vector<64x8xf32>
    %c0_230 = arith.constant 0 : index
    %c1_231 = arith.constant 1 : index
    %c1_232 = arith.constant 1 : index
    %c0_233 = arith.constant 0 : index
    %195 = vector.load %arg9[%c0_230, %c1_231, %c1_232, %c0_233] : memref<1x10x10x32xf32, #tpu.memory_space<vmem>>, vector<1x8x8x8xf32>
    %196 = vector.shape_cast %195 : vector<1x8x8x8xf32> to vector<64x8xf32>
    %c3_234 = arith.constant 3 : index
    %c0_235 = arith.constant 0 : index
    %c0_236 = arith.constant 0 : index
    %197 = vector.load %arg4[%c3_234, %c0_235, %c0_236] : memref<9x8x8xf32, #tpu.memory_space<vmem>>, vector<1x8x8xf32>
    %198 = vector.shape_cast %197 : vector<1x8x8xf32> to vector<8x8xf32>
    %cst_237 = arith.constant dense<0.000000e+00> : vector<64x8xf32>
    %199 = tpu.matmul %196, %198, %cst_237 {dimension_numbers = #tpu.dot_dimension_numbers<[1], [0], [0], [1], [0, 0, 1, 1], [], []>} : vector<64x8xf32>, vector<8x8xf32>, vector<64x8xf32> -> vector<64x8xf32>
    %200 = arith.addf %194, %199 : vector<64x8xf32>
    %c0_238 = arith.constant 0 : index
    %c1_239 = arith.constant 1 : index
    %c1_240 = arith.constant 1 : index
    %c8_241 = arith.constant 8 : index
    %201 = vector.load %arg9[%c0_238, %c1_239, %c1_240, %c8_241] : memref<1x10x10x32xf32, #tpu.memory_space<vmem>>, vector<1x8x8x8xf32>
    %202 = vector.shape_cast %201 : vector<1x8x8x8xf32> to vector<64x8xf32>
    %c4_242 = arith.constant 4 : index
    %c0_243 = arith.constant 0 : index
    %c0_244 = arith.constant 0 : index
    %203 = vector.load %arg4[%c4_242, %c0_243, %c0_244] : memref<9x8x8xf32, #tpu.memory_space<vmem>>, vector<1x8x8xf32>
    %204 = vector.shape_cast %203 : vector<1x8x8xf32> to vector<8x8xf32>
    %cst_245 = arith.constant dense<0.000000e+00> : vector<64x8xf32>
    %205 = tpu.matmul %202, %204, %cst_245 {dimension_numbers = #tpu.dot_dimension_numbers<[1], [0], [0], [1], [0, 0, 1, 1], [], []>} : vector<64x8xf32>, vector<8x8xf32>, vector<64x8xf32> -> vector<64x8xf32>
    %206 = arith.addf %200, %205 : vector<64x8xf32>
    %c0_246 = arith.constant 0 : index
    %c1_247 = arith.constant 1 : index
    %c2_248 = arith.constant 2 : index
    %c0_249 = arith.constant 0 : index
    %207 = vector.load %arg9[%c0_246, %c1_247, %c2_248, %c0_249] : memref<1x10x10x32xf32, #tpu.memory_space<vmem>>, vector<1x8x8x8xf32>
    %208 = vector.shape_cast %207 : vector<1x8x8x8xf32> to vector<64x8xf32>
    %c5_250 = arith.constant 5 : index
    %c0_251 = arith.constant 0 : index
    %c0_252 = arith.constant 0 : index
    %209 = vector.load %arg4[%c5_250, %c0_251, %c0_252] : memref<9x8x8xf32, #tpu.memory_space<vmem>>, vector<1x8x8xf32>
    %210 = vector.shape_cast %209 : vector<1x8x8xf32> to vector<8x8xf32>
    %cst_253 = arith.constant dense<0.000000e+00> : vector<64x8xf32>
    %211 = tpu.matmul %208, %210, %cst_253 {dimension_numbers = #tpu.dot_dimension_numbers<[1], [0], [0], [1], [0, 0, 1, 1], [], []>} : vector<64x8xf32>, vector<8x8xf32>, vector<64x8xf32> -> vector<64x8xf32>
    %212 = arith.addf %206, %211 : vector<64x8xf32>
    %c0_254 = arith.constant 0 : index
    %c1_255 = arith.constant 1 : index
    %c1_256 = arith.constant 1 : index
    %c16_257 = arith.constant 16 : index
    %213 = vector.load %arg9[%c0_254, %c1_255, %c1_256, %c16_257] : memref<1x10x10x32xf32, #tpu.memory_space<vmem>>, vector<1x8x8x8xf32>
    %214 = vector.shape_cast %213 : vector<1x8x8x8xf32> to vector<64x8xf32>
    %c6_258 = arith.constant 6 : index
    %c0_259 = arith.constant 0 : index
    %c0_260 = arith.constant 0 : index
    %215 = vector.load %arg4[%c6_258, %c0_259, %c0_260] : memref<9x8x8xf32, #tpu.memory_space<vmem>>, vector<1x8x8xf32>
    %216 = vector.shape_cast %215 : vector<1x8x8xf32> to vector<8x8xf32>
    %cst_261 = arith.constant dense<0.000000e+00> : vector<64x8xf32>
    %217 = tpu.matmul %214, %216, %cst_261 {dimension_numbers = #tpu.dot_dimension_numbers<[1], [0], [0], [1], [0, 0, 1, 1], [], []>} : vector<64x8xf32>, vector<8x8xf32>, vector<64x8xf32> -> vector<64x8xf32>
    %218 = arith.addf %212, %217 : vector<64x8xf32>
    %c0_262 = arith.constant 0 : index
    %c1_263 = arith.constant 1 : index
    %c1_264 = arith.constant 1 : index
    %c24_265 = arith.constant 24 : index
    %219 = vector.load %arg9[%c0_262, %c1_263, %c1_264, %c24_265] : memref<1x10x10x32xf32, #tpu.memory_space<vmem>>, vector<1x8x8x8xf32>
    %220 = vector.shape_cast %219 : vector<1x8x8x8xf32> to vector<64x8xf32>
    %c7_266 = arith.constant 7 : index
    %c0_267 = arith.constant 0 : index
    %c0_268 = arith.constant 0 : index
    %221 = vector.load %arg4[%c7_266, %c0_267, %c0_268] : memref<9x8x8xf32, #tpu.memory_space<vmem>>, vector<1x8x8xf32>
    %222 = vector.shape_cast %221 : vector<1x8x8xf32> to vector<8x8xf32>
    %cst_269 = arith.constant dense<0.000000e+00> : vector<64x8xf32>
    %223 = tpu.matmul %220, %222, %cst_269 {dimension_numbers = #tpu.dot_dimension_numbers<[1], [0], [0], [1], [0, 0, 1, 1], [], []>} : vector<64x8xf32>, vector<8x8xf32>, vector<64x8xf32> -> vector<64x8xf32>
    %224 = arith.addf %218, %223 : vector<64x8xf32>
    %c0_270 = arith.constant 0 : index
    %c1_271 = arith.constant 1 : index
    %c2_272 = arith.constant 2 : index
    %c16_273 = arith.constant 16 : index
    %225 = vector.load %arg9[%c0_270, %c1_271, %c2_272, %c16_273] : memref<1x10x10x32xf32, #tpu.memory_space<vmem>>, vector<1x8x8x8xf32>
    %226 = vector.shape_cast %225 : vector<1x8x8x8xf32> to vector<64x8xf32>
    %c8_274 = arith.constant 8 : index
    %c0_275 = arith.constant 0 : index
    %c0_276 = arith.constant 0 : index
    %227 = vector.load %arg4[%c8_274, %c0_275, %c0_276] : memref<9x8x8xf32, #tpu.memory_space<vmem>>, vector<1x8x8xf32>
    %228 = vector.shape_cast %227 : vector<1x8x8xf32> to vector<8x8xf32>
    %cst_277 = arith.constant dense<0.000000e+00> : vector<64x8xf32>
    %229 = tpu.matmul %226, %228, %cst_277 {dimension_numbers = #tpu.dot_dimension_numbers<[1], [0], [0], [1], [0, 0, 1, 1], [], []>} : vector<64x8xf32>, vector<8x8xf32>, vector<64x8xf32> -> vector<64x8xf32>
    %230 = arith.addf %224, %229 : vector<64x8xf32>
    %cst_278 = arith.constant 0.000000e+00 : f32
    %231 = vector.broadcast %cst_278 : f32 to vector<64x8xf32>
    %c0_279 = arith.constant 0 : index
    %c1_280 = arith.constant 1 : index
    %c0_281 = arith.constant 0 : index
    %c8_282 = arith.constant 8 : index
    %232 = vector.load %arg9[%c0_279, %c1_280, %c0_281, %c8_282] : memref<1x10x10x32xf32, #tpu.memory_space<vmem>>, vector<1x8x8x8xf32>
    %233 = vector.shape_cast %232 : vector<1x8x8x8xf32> to vector<64x8xf32>
    %c0_283 = arith.constant 0 : index
    %c0_284 = arith.constant 0 : index
    %c0_285 = arith.constant 0 : index
    %234 = vector.load %arg4[%c0_283, %c0_284, %c0_285] : memref<9x8x8xf32, #tpu.memory_space<vmem>>, vector<1x8x8xf32>
    %235 = vector.shape_cast %234 : vector<1x8x8xf32> to vector<8x8xf32>
    %cst_286 = arith.constant dense<0.000000e+00> : vector<64x8xf32>
    %236 = tpu.matmul %233, %235, %cst_286 {dimension_numbers = #tpu.dot_dimension_numbers<[1], [0], [0], [1], [0, 0, 1, 1], [], []>} : vector<64x8xf32>, vector<8x8xf32>, vector<64x8xf32> -> vector<64x8xf32>
    %237 = arith.addf %231, %236 : vector<64x8xf32>
    %c0_287 = arith.constant 0 : index
    %c1_288 = arith.constant 1 : index
    %c1_289 = arith.constant 1 : index
    %c0_290 = arith.constant 0 : index
    %238 = vector.load %arg9[%c0_287, %c1_288, %c1_289, %c0_290] : memref<1x10x10x32xf32, #tpu.memory_space<vmem>>, vector<1x8x8x8xf32>
    %239 = vector.shape_cast %238 : vector<1x8x8x8xf32> to vector<64x8xf32>
    %c1_291 = arith.constant 1 : index
    %c0_292 = arith.constant 0 : index
    %c0_293 = arith.constant 0 : index
    %240 = vector.load %arg4[%c1_291, %c0_292, %c0_293] : memref<9x8x8xf32, #tpu.memory_space<vmem>>, vector<1x8x8xf32>
    %241 = vector.shape_cast %240 : vector<1x8x8xf32> to vector<8x8xf32>
    %cst_294 = arith.constant dense<0.000000e+00> : vector<64x8xf32>
    %242 = tpu.matmul %239, %241, %cst_294 {dimension_numbers = #tpu.dot_dimension_numbers<[1], [0], [0], [1], [0, 0, 1, 1], [], []>} : vector<64x8xf32>, vector<8x8xf32>, vector<64x8xf32> -> vector<64x8xf32>
    %243 = arith.addf %237, %242 : vector<64x8xf32>
    %c0_295 = arith.constant 0 : index
    %c1_296 = arith.constant 1 : index
    %c1_297 = arith.constant 1 : index
    %c8_298 = arith.constant 8 : index
    %244 = vector.load %arg9[%c0_295, %c1_296, %c1_297, %c8_298] : memref<1x10x10x32xf32, #tpu.memory_space<vmem>>, vector<1x8x8x8xf32>
    %245 = vector.shape_cast %244 : vector<1x8x8x8xf32> to vector<64x8xf32>
    %c2_299 = arith.constant 2 : index
    %c0_300 = arith.constant 0 : index
    %c0_301 = arith.constant 0 : index
    %246 = vector.load %arg4[%c2_299, %c0_300, %c0_301] : memref<9x8x8xf32, #tpu.memory_space<vmem>>, vector<1x8x8xf32>
    %247 = vector.shape_cast %246 : vector<1x8x8xf32> to vector<8x8xf32>
    %cst_302 = arith.constant dense<0.000000e+00> : vector<64x8xf32>
    %248 = tpu.matmul %245, %247, %cst_302 {dimension_numbers = #tpu.dot_dimension_numbers<[1], [0], [0], [1], [0, 0, 1, 1], [], []>} : vector<64x8xf32>, vector<8x8xf32>, vector<64x8xf32> -> vector<64x8xf32>
    %249 = arith.addf %243, %248 : vector<64x8xf32>
    %c0_303 = arith.constant 0 : index
    %c1_304 = arith.constant 1 : index
    %c0_305 = arith.constant 0 : index
    %c24_306 = arith.constant 24 : index
    %250 = vector.load %arg9[%c0_303, %c1_304, %c0_305, %c24_306] : memref<1x10x10x32xf32, #tpu.memory_space<vmem>>, vector<1x8x8x8xf32>
    %251 = vector.shape_cast %250 : vector<1x8x8x8xf32> to vector<64x8xf32>
    %c3_307 = arith.constant 3 : index
    %c0_308 = arith.constant 0 : index
    %c0_309 = arith.constant 0 : index
    %252 = vector.load %arg4[%c3_307, %c0_308, %c0_309] : memref<9x8x8xf32, #tpu.memory_space<vmem>>, vector<1x8x8xf32>
    %253 = vector.shape_cast %252 : vector<1x8x8xf32> to vector<8x8xf32>
    %cst_310 = arith.constant dense<0.000000e+00> : vector<64x8xf32>
    %254 = tpu.matmul %251, %253, %cst_310 {dimension_numbers = #tpu.dot_dimension_numbers<[1], [0], [0], [1], [0, 0, 1, 1], [], []>} : vector<64x8xf32>, vector<8x8xf32>, vector<64x8xf32> -> vector<64x8xf32>
    %255 = arith.addf %249, %254 : vector<64x8xf32>
    %c0_311 = arith.constant 0 : index
    %c1_312 = arith.constant 1 : index
    %c1_313 = arith.constant 1 : index
    %c16_314 = arith.constant 16 : index
    %256 = vector.load %arg9[%c0_311, %c1_312, %c1_313, %c16_314] : memref<1x10x10x32xf32, #tpu.memory_space<vmem>>, vector<1x8x8x8xf32>
    %257 = vector.shape_cast %256 : vector<1x8x8x8xf32> to vector<64x8xf32>
    %c4_315 = arith.constant 4 : index
    %c0_316 = arith.constant 0 : index
    %c0_317 = arith.constant 0 : index
    %258 = vector.load %arg4[%c4_315, %c0_316, %c0_317] : memref<9x8x8xf32, #tpu.memory_space<vmem>>, vector<1x8x8xf32>
    %259 = vector.shape_cast %258 : vector<1x8x8xf32> to vector<8x8xf32>
    %cst_318 = arith.constant dense<0.000000e+00> : vector<64x8xf32>
    %260 = tpu.matmul %257, %259, %cst_318 {dimension_numbers = #tpu.dot_dimension_numbers<[1], [0], [0], [1], [0, 0, 1, 1], [], []>} : vector<64x8xf32>, vector<8x8xf32>, vector<64x8xf32> -> vector<64x8xf32>
    %261 = arith.addf %255, %260 : vector<64x8xf32>
    %c0_319 = arith.constant 0 : index
    %c1_320 = arith.constant 1 : index
    %c1_321 = arith.constant 1 : index
    %c24_322 = arith.constant 24 : index
    %262 = vector.load %arg9[%c0_319, %c1_320, %c1_321, %c24_322] : memref<1x10x10x32xf32, #tpu.memory_space<vmem>>, vector<1x8x8x8xf32>
    %263 = vector.shape_cast %262 : vector<1x8x8x8xf32> to vector<64x8xf32>
    %c5_323 = arith.constant 5 : index
    %c0_324 = arith.constant 0 : index
    %c0_325 = arith.constant 0 : index
    %264 = vector.load %arg4[%c5_323, %c0_324, %c0_325] : memref<9x8x8xf32, #tpu.memory_space<vmem>>, vector<1x8x8xf32>
    %265 = vector.shape_cast %264 : vector<1x8x8xf32> to vector<8x8xf32>
    %cst_326 = arith.constant dense<0.000000e+00> : vector<64x8xf32>
    %266 = tpu.matmul %263, %265, %cst_326 {dimension_numbers = #tpu.dot_dimension_numbers<[1], [0], [0], [1], [0, 0, 1, 1], [], []>} : vector<64x8xf32>, vector<8x8xf32>, vector<64x8xf32> -> vector<64x8xf32>
    %267 = arith.addf %261, %266 : vector<64x8xf32>
    %c0_327 = arith.constant 0 : index
    %c2_328 = arith.constant 2 : index
    %c0_329 = arith.constant 0 : index
    %c8_330 = arith.constant 8 : index
    %268 = vector.load %arg9[%c0_327, %c2_328, %c0_329, %c8_330] : memref<1x10x10x32xf32, #tpu.memory_space<vmem>>, vector<1x8x8x8xf32>
    %269 = vector.shape_cast %268 : vector<1x8x8x8xf32> to vector<64x8xf32>
    %c6_331 = arith.constant 6 : index
    %c0_332 = arith.constant 0 : index
    %c0_333 = arith.constant 0 : index
    %270 = vector.load %arg4[%c6_331, %c0_332, %c0_333] : memref<9x8x8xf32, #tpu.memory_space<vmem>>, vector<1x8x8xf32>
    %271 = vector.shape_cast %270 : vector<1x8x8xf32> to vector<8x8xf32>
    %cst_334 = arith.constant dense<0.000000e+00> : vector<64x8xf32>
    %272 = tpu.matmul %269, %271, %cst_334 {dimension_numbers = #tpu.dot_dimension_numbers<[1], [0], [0], [1], [0, 0, 1, 1], [], []>} : vector<64x8xf32>, vector<8x8xf32>, vector<64x8xf32> -> vector<64x8xf32>
    %273 = arith.addf %267, %272 : vector<64x8xf32>
    %c0_335 = arith.constant 0 : index
    %c2_336 = arith.constant 2 : index
    %c1_337 = arith.constant 1 : index
    %c0_338 = arith.constant 0 : index
    %274 = vector.load %arg9[%c0_335, %c2_336, %c1_337, %c0_338] : memref<1x10x10x32xf32, #tpu.memory_space<vmem>>, vector<1x8x8x8xf32>
    %275 = vector.shape_cast %274 : vector<1x8x8x8xf32> to vector<64x8xf32>
    %c7_339 = arith.constant 7 : index
    %c0_340 = arith.constant 0 : index
    %c0_341 = arith.constant 0 : index
    %276 = vector.load %arg4[%c7_339, %c0_340, %c0_341] : memref<9x8x8xf32, #tpu.memory_space<vmem>>, vector<1x8x8xf32>
    %277 = vector.shape_cast %276 : vector<1x8x8xf32> to vector<8x8xf32>
    %cst_342 = arith.constant dense<0.000000e+00> : vector<64x8xf32>
    %278 = tpu.matmul %275, %277, %cst_342 {dimension_numbers = #tpu.dot_dimension_numbers<[1], [0], [0], [1], [0, 0, 1, 1], [], []>} : vector<64x8xf32>, vector<8x8xf32>, vector<64x8xf32> -> vector<64x8xf32>
    %279 = arith.addf %273, %278 : vector<64x8xf32>
    %c0_343 = arith.constant 0 : index
    %c2_344 = arith.constant 2 : index
    %c1_345 = arith.constant 1 : index
    %c8_346 = arith.constant 8 : index
    %280 = vector.load %arg9[%c0_343, %c2_344, %c1_345, %c8_346] : memref<1x10x10x32xf32, #tpu.memory_space<vmem>>, vector<1x8x8x8xf32>
    %281 = vector.shape_cast %280 : vector<1x8x8x8xf32> to vector<64x8xf32>
    %c8_347 = arith.constant 8 : index
    %c0_348 = arith.constant 0 : index
    %c0_349 = arith.constant 0 : index
    %282 = vector.load %arg4[%c8_347, %c0_348, %c0_349] : memref<9x8x8xf32, #tpu.memory_space<vmem>>, vector<1x8x8xf32>
    %283 = vector.shape_cast %282 : vector<1x8x8xf32> to vector<8x8xf32>
    %cst_350 = arith.constant dense<0.000000e+00> : vector<64x8xf32>
    %284 = tpu.matmul %281, %283, %cst_350 {dimension_numbers = #tpu.dot_dimension_numbers<[1], [0], [0], [1], [0, 0, 1, 1], [], []>} : vector<64x8xf32>, vector<8x8xf32>, vector<64x8xf32> -> vector<64x8xf32>
    %285 = arith.addf %279, %284 : vector<64x8xf32>
    %cst_351 = arith.constant 0.000000e+00 : f32
    %286 = vector.broadcast %cst_351 : f32 to vector<64x8xf32>
    %c0_352 = arith.constant 0 : index
    %c1_353 = arith.constant 1 : index
    %c1_354 = arith.constant 1 : index
    %c0_355 = arith.constant 0 : index
    %287 = vector.load %arg9[%c0_352, %c1_353, %c1_354, %c0_355] : memref<1x10x10x32xf32, #tpu.memory_space<vmem>>, vector<1x8x8x8xf32>
    %288 = vector.shape_cast %287 : vector<1x8x8x8xf32> to vector<64x8xf32>
    %c0_356 = arith.constant 0 : index
    %c0_357 = arith.constant 0 : index
    %c0_358 = arith.constant 0 : index
    %289 = vector.load %arg4[%c0_356, %c0_357, %c0_358] : memref<9x8x8xf32, #tpu.memory_space<vmem>>, vector<1x8x8xf32>
    %290 = vector.shape_cast %289 : vector<1x8x8xf32> to vector<8x8xf32>
    %cst_359 = arith.constant dense<0.000000e+00> : vector<64x8xf32>
    %291 = tpu.matmul %288, %290, %cst_359 {dimension_numbers = #tpu.dot_dimension_numbers<[1], [0], [0], [1], [0, 0, 1, 1], [], []>} : vector<64x8xf32>, vector<8x8xf32>, vector<64x8xf32> -> vector<64x8xf32>
    %292 = arith.addf %286, %291 : vector<64x8xf32>
    %c0_360 = arith.constant 0 : index
    %c1_361 = arith.constant 1 : index
    %c1_362 = arith.constant 1 : index
    %c8_363 = arith.constant 8 : index
    %293 = vector.load %arg9[%c0_360, %c1_361, %c1_362, %c8_363] : memref<1x10x10x32xf32, #tpu.memory_space<vmem>>, vector<1x8x8x8xf32>
    %294 = vector.shape_cast %293 : vector<1x8x8x8xf32> to vector<64x8xf32>
    %c1_364 = arith.constant 1 : index
    %c0_365 = arith.constant 0 : index
    %c0_366 = arith.constant 0 : index
    %295 = vector.load %arg4[%c1_364, %c0_365, %c0_366] : memref<9x8x8xf32, #tpu.memory_space<vmem>>, vector<1x8x8xf32>
    %296 = vector.shape_cast %295 : vector<1x8x8xf32> to vector<8x8xf32>
    %cst_367 = arith.constant dense<0.000000e+00> : vector<64x8xf32>
    %297 = tpu.matmul %294, %296, %cst_367 {dimension_numbers = #tpu.dot_dimension_numbers<[1], [0], [0], [1], [0, 0, 1, 1], [], []>} : vector<64x8xf32>, vector<8x8xf32>, vector<64x8xf32> -> vector<64x8xf32>
    %298 = arith.addf %292, %297 : vector<64x8xf32>
    %c0_368 = arith.constant 0 : index
    %c1_369 = arith.constant 1 : index
    %c2_370 = arith.constant 2 : index
    %c0_371 = arith.constant 0 : index
    %299 = vector.load %arg9[%c0_368, %c1_369, %c2_370, %c0_371] : memref<1x10x10x32xf32, #tpu.memory_space<vmem>>, vector<1x8x8x8xf32>
    %300 = vector.shape_cast %299 : vector<1x8x8x8xf32> to vector<64x8xf32>
    %c2_372 = arith.constant 2 : index
    %c0_373 = arith.constant 0 : index
    %c0_374 = arith.constant 0 : index
    %301 = vector.load %arg4[%c2_372, %c0_373, %c0_374] : memref<9x8x8xf32, #tpu.memory_space<vmem>>, vector<1x8x8xf32>
    %302 = vector.shape_cast %301 : vector<1x8x8xf32> to vector<8x8xf32>
    %cst_375 = arith.constant dense<0.000000e+00> : vector<64x8xf32>
    %303 = tpu.matmul %300, %302, %cst_375 {dimension_numbers = #tpu.dot_dimension_numbers<[1], [0], [0], [1], [0, 0, 1, 1], [], []>} : vector<64x8xf32>, vector<8x8xf32>, vector<64x8xf32> -> vector<64x8xf32>
    %304 = arith.addf %298, %303 : vector<64x8xf32>
    %c0_376 = arith.constant 0 : index
    %c1_377 = arith.constant 1 : index
    %c1_378 = arith.constant 1 : index
    %c16_379 = arith.constant 16 : index
    %305 = vector.load %arg9[%c0_376, %c1_377, %c1_378, %c16_379] : memref<1x10x10x32xf32, #tpu.memory_space<vmem>>, vector<1x8x8x8xf32>
    %306 = vector.shape_cast %305 : vector<1x8x8x8xf32> to vector<64x8xf32>
    %c3_380 = arith.constant 3 : index
    %c0_381 = arith.constant 0 : index
    %c0_382 = arith.constant 0 : index
    %307 = vector.load %arg4[%c3_380, %c0_381, %c0_382] : memref<9x8x8xf32, #tpu.memory_space<vmem>>, vector<1x8x8xf32>
    %308 = vector.shape_cast %307 : vector<1x8x8xf32> to vector<8x8xf32>
    %cst_383 = arith.constant dense<0.000000e+00> : vector<64x8xf32>
    %309 = tpu.matmul %306, %308, %cst_383 {dimension_numbers = #tpu.dot_dimension_numbers<[1], [0], [0], [1], [0, 0, 1, 1], [], []>} : vector<64x8xf32>, vector<8x8xf32>, vector<64x8xf32> -> vector<64x8xf32>
    %310 = arith.addf %304, %309 : vector<64x8xf32>
    %c0_384 = arith.constant 0 : index
    %c1_385 = arith.constant 1 : index
    %c1_386 = arith.constant 1 : index
    %c24_387 = arith.constant 24 : index
    %311 = vector.load %arg9[%c0_384, %c1_385, %c1_386, %c24_387] : memref<1x10x10x32xf32, #tpu.memory_space<vmem>>, vector<1x8x8x8xf32>
    %312 = vector.shape_cast %311 : vector<1x8x8x8xf32> to vector<64x8xf32>
    %c4_388 = arith.constant 4 : index
    %c0_389 = arith.constant 0 : index
    %c0_390 = arith.constant 0 : index
    %313 = vector.load %arg4[%c4_388, %c0_389, %c0_390] : memref<9x8x8xf32, #tpu.memory_space<vmem>>, vector<1x8x8xf32>
    %314 = vector.shape_cast %313 : vector<1x8x8xf32> to vector<8x8xf32>
    %cst_391 = arith.constant dense<0.000000e+00> : vector<64x8xf32>
    %315 = tpu.matmul %312, %314, %cst_391 {dimension_numbers = #tpu.dot_dimension_numbers<[1], [0], [0], [1], [0, 0, 1, 1], [], []>} : vector<64x8xf32>, vector<8x8xf32>, vector<64x8xf32> -> vector<64x8xf32>
    %316 = arith.addf %310, %315 : vector<64x8xf32>
    %c0_392 = arith.constant 0 : index
    %c1_393 = arith.constant 1 : index
    %c2_394 = arith.constant 2 : index
    %c16_395 = arith.constant 16 : index
    %317 = vector.load %arg9[%c0_392, %c1_393, %c2_394, %c16_395] : memref<1x10x10x32xf32, #tpu.memory_space<vmem>>, vector<1x8x8x8xf32>
    %318 = vector.shape_cast %317 : vector<1x8x8x8xf32> to vector<64x8xf32>
    %c5_396 = arith.constant 5 : index
    %c0_397 = arith.constant 0 : index
    %c0_398 = arith.constant 0 : index
    %319 = vector.load %arg4[%c5_396, %c0_397, %c0_398] : memref<9x8x8xf32, #tpu.memory_space<vmem>>, vector<1x8x8xf32>
    %320 = vector.shape_cast %319 : vector<1x8x8xf32> to vector<8x8xf32>
    %cst_399 = arith.constant dense<0.000000e+00> : vector<64x8xf32>
    %321 = tpu.matmul %318, %320, %cst_399 {dimension_numbers = #tpu.dot_dimension_numbers<[1], [0], [0], [1], [0, 0, 1, 1], [], []>} : vector<64x8xf32>, vector<8x8xf32>, vector<64x8xf32> -> vector<64x8xf32>
    %322 = arith.addf %316, %321 : vector<64x8xf32>
    %c0_400 = arith.constant 0 : index
    %c2_401 = arith.constant 2 : index
    %c1_402 = arith.constant 1 : index
    %c0_403 = arith.constant 0 : index
    %323 = vector.load %arg9[%c0_400, %c2_401, %c1_402, %c0_403] : memref<1x10x10x32xf32, #tpu.memory_space<vmem>>, vector<1x8x8x8xf32>
    %324 = vector.shape_cast %323 : vector<1x8x8x8xf32> to vector<64x8xf32>
    %c6_404 = arith.constant 6 : index
    %c0_405 = arith.constant 0 : index
    %c0_406 = arith.constant 0 : index
    %325 = vector.load %arg4[%c6_404, %c0_405, %c0_406] : memref<9x8x8xf32, #tpu.memory_space<vmem>>, vector<1x8x8xf32>
    %326 = vector.shape_cast %325 : vector<1x8x8xf32> to vector<8x8xf32>
    %cst_407 = arith.constant dense<0.000000e+00> : vector<64x8xf32>
    %327 = tpu.matmul %324, %326, %cst_407 {dimension_numbers = #tpu.dot_dimension_numbers<[1], [0], [0], [1], [0, 0, 1, 1], [], []>} : vector<64x8xf32>, vector<8x8xf32>, vector<64x8xf32> -> vector<64x8xf32>
    %328 = arith.addf %322, %327 : vector<64x8xf32>
    %c0_408 = arith.constant 0 : index
    %c2_409 = arith.constant 2 : index
    %c1_410 = arith.constant 1 : index
    %c8_411 = arith.constant 8 : index
    %329 = vector.load %arg9[%c0_408, %c2_409, %c1_410, %c8_411] : memref<1x10x10x32xf32, #tpu.memory_space<vmem>>, vector<1x8x8x8xf32>
    %330 = vector.shape_cast %329 : vector<1x8x8x8xf32> to vector<64x8xf32>
    %c7_412 = arith.constant 7 : index
    %c0_413 = arith.constant 0 : index
    %c0_414 = arith.constant 0 : index
    %331 = vector.load %arg4[%c7_412, %c0_413, %c0_414] : memref<9x8x8xf32, #tpu.memory_space<vmem>>, vector<1x8x8xf32>
    %332 = vector.shape_cast %331 : vector<1x8x8xf32> to vector<8x8xf32>
    %cst_415 = arith.constant dense<0.000000e+00> : vector<64x8xf32>
    %333 = tpu.matmul %330, %332, %cst_415 {dimension_numbers = #tpu.dot_dimension_numbers<[1], [0], [0], [1], [0, 0, 1, 1], [], []>} : vector<64x8xf32>, vector<8x8xf32>, vector<64x8xf32> -> vector<64x8xf32>
    %334 = arith.addf %328, %333 : vector<64x8xf32>
    %c0_416 = arith.constant 0 : index
    %c2_417 = arith.constant 2 : index
    %c2_418 = arith.constant 2 : index
    %c0_419 = arith.constant 0 : index
    %335 = vector.load %arg9[%c0_416, %c2_417, %c2_418, %c0_419] : memref<1x10x10x32xf32, #tpu.memory_space<vmem>>, vector<1x8x8x8xf32>
    %336 = vector.shape_cast %335 : vector<1x8x8x8xf32> to vector<64x8xf32>
    %c8_420 = arith.constant 8 : index
    %c0_421 = arith.constant 0 : index
    %c0_422 = arith.constant 0 : index
    %337 = vector.load %arg4[%c8_420, %c0_421, %c0_422] : memref<9x8x8xf32, #tpu.memory_space<vmem>>, vector<1x8x8xf32>
    %338 = vector.shape_cast %337 : vector<1x8x8xf32> to vector<8x8xf32>
    %cst_423 = arith.constant dense<0.000000e+00> : vector<64x8xf32>
    %339 = tpu.matmul %336, %338, %cst_423 {dimension_numbers = #tpu.dot_dimension_numbers<[1], [0], [0], [1], [0, 0, 1, 1], [], []>} : vector<64x8xf32>, vector<8x8xf32>, vector<64x8xf32> -> vector<64x8xf32>
    %340 = arith.addf %334, %339 : vector<64x8xf32>
    %341 = tpu.concatenate %175, %230, %285, %340 in 1 : vector<64x8xf32>, vector<64x8xf32>, vector<64x8xf32>, vector<64x8xf32> -> vector<64x32xf32>
    %c0_424 = arith.constant 0 : index
    %c0_425 = arith.constant 0 : index
    %342 = vector.load %arg5[%c0_424, %c0_425] : memref<64x9xf32, #tpu.memory_space<vmem>>, vector<64x9xf32>
    %c0_426 = arith.constant 0 : index
    %c0_427 = arith.constant 0 : index
    %343 = vector.load %arg7[%c0_426, %c0_427] : memref<9x32xf32, #tpu.memory_space<vmem>>, vector<9x32xf32>
    %cst_428 = arith.constant dense<0.000000e+00> : vector<64x32xf32>
    %344 = tpu.matmul %342, %343, %cst_428 {dimension_numbers = #tpu.dot_dimension_numbers<[1], [0], [0], [1], [0, 0, 1, 1], [], []>} : vector<64x9xf32>, vector<9x32xf32>, vector<64x32xf32> -> vector<64x32xf32>
    %345 = vector.shape_cast %341 : vector<64x32xf32> to vector<1x64x32xf32>
    %346 = vector.shape_cast %344 : vector<64x32xf32> to vector<1x64x32xf32>
    %347 = arith.addf %345, %346 : vector<1x64x32xf32>
    %cst_429 = arith.constant 0.000000e+00 : f32
    %348 = vector.broadcast %cst_429 : f32 to vector<1x64x32xf32>
    %349 = arith.cmpf oge, %347, %348 : vector<1x64x32xf32>
    %cst_430 = arith.constant 2.000000e-01 : f32
    %350 = vector.broadcast %cst_430 : f32 to vector<1x64x32xf32>
    %351 = arith.mulf %350, %347 : vector<1x64x32xf32>
    %352 = arith.select %349, %347, %351 : vector<1x64x32xi1>, vector<1x64x32xf32>
    %cst_431 = arith.constant 1.000000e+00 : f32
    %353 = vector.broadcast %cst_431 : f32 to vector<1x64x32xf32>
    %354 = arith.mulf %352, %353 : vector<1x64x32xf32>
    %cst_432 = arith.constant -181.019333 : f32
    %cst_433 = arith.constant 181.019333 : f32
    %355 = vector.broadcast %cst_432 : f32 to vector<1x64x32xf32>
    %356 = arith.maximumf %355, %354 : vector<1x64x32xf32>
    %357 = vector.broadcast %cst_433 : f32 to vector<1x64x32xf32>
    %358 = arith.minimumf %357, %356 : vector<1x64x32xf32>
    %359 = vector.shape_cast %110 : vector<64x32xf32> to vector<1x64x32xf32>
    %360 = arith.addf %358, %359 : vector<1x64x32xf32>
    %c0_434 = arith.constant 0 : index
    %c0_435 = arith.constant 0 : index
    %c0_436 = arith.constant 0 : index
    %361 = vector.load %arg8[%c0_434, %c0_435, %c0_436] : memref<1x64x32xf32, #tpu.memory_space<vmem>>, vector<1x64x32xf32>
    tpu.vector_store %arg8[%c0_434, %c0_435, %c0_436], %360 {strides = array<i32>} : memref<1x64x32xf32, #tpu.memory_space<vmem>>, vector<1x64x32xf32>,
    return
  }
  func.func @transform_0(%arg0: i32) -> (i32, i32, i32, i32) {
    %c0_i32 = arith.constant 0 : i32
    %c0_i32_0 = arith.constant 0 : i32
    %c0_i32_1 = arith.constant 0 : i32
    %c0_i32_2 = arith.constant 0 : i32
    return %arg0, %c0_i32, %c0_i32_0, %c0_i32_1 : i32, i32, i32, i32
  }
  func.func @transform_1(%arg0: i32) -> (i32, i32, i32) {
    %c0_i32 = arith.constant 0 : i32
    %c0_i32_0 = arith.constant 0 : i32
    %c0_i32_1 = arith.constant 0 : i32
    %c0_i32_2 = arith.constant 0 : i32
    return %c0_i32, %c0_i32_0, %c0_i32_1 : i32, i32, i32
  }
  func.func @transform_2(%arg0: i32) -> (i32, i32, i32) {
    %c0_i32 = arith.constant 0 : i32
    %c0_i32_0 = arith.constant 0 : i32
    %c0_i32_1 = arith.constant 0 : i32
    %c0_i32_2 = arith.constant 0 : i32
    return %c0_i32, %c0_i32_0, %c0_i32_1 : i32, i32, i32
  }
  func.func @transform_3(%arg0: i32) -> (i32, i32, i32) {
    %c0_i32 = arith.constant 0 : i32
    %c0_i32_0 = arith.constant 0 : i32
    %c0_i32_1 = arith.constant 0 : i32
    %c0_i32_2 = arith.constant 0 : i32
    return %c0_i32, %c0_i32_0, %c0_i32_1 : i32, i32, i32
  }
  func.func @transform_4(%arg0: i32) -> (i32, i32) {
    %c0_i32 = arith.constant 0 : i32
    %c0_i32_0 = arith.constant 0 : i32
    %c0_i32_1 = arith.constant 0 : i32
    return %c0_i32, %c0_i32_0 : i32, i32
  }
  func.func @transform_5(%arg0: i32) -> (i32, i32) {
    %c0_i32 = arith.constant 0 : i32
    %c0_i32_0 = arith.constant 0 : i32
    %c0_i32_1 = arith.constant 0 : i32
    return %c0_i32, %c0_i32_0 : i32, i32
  }
  func.func @transform_6(%arg0: i32) -> (i32, i32) {
    %c0_i32 = arith.constant 0 : i32
    %c0_i32_0 = arith.constant 0 : i32
    %c0_i32_1 = arith.constant 0 : i32
    return %c0_i32, %c0_i32_0 : i32, i32
  }
  func.func @transform_7(%arg0: i32) -> (i32, i32, i32) {
    %c0_i32 = arith.constant 0 : i32
    %c0_i32_0 = arith.constant 0 : i32
    %c0_i32_1 = arith.constant 0 : i32
    return %arg0, %c0_i32, %c0_i32_0 : i32, i32, i32
  }
}

module attributes {stable_mosaic.version = 11 : i64} {
  func.func @kernel(%arg0: i32, %arg1: memref<1x10x10x4xf32, #tpu.memory_space<vmem>>, %arg2: memref<9x4x32xf32, #tpu.memory_space<vmem>>, %arg3: memref<9x4x32xf32, #tpu.memory_space<vmem>>, %arg4: memref<9x8x8xf32, #tpu.memory_space<vmem>>, %arg5: memref<64x9xf32, #tpu.memory_space<vmem>>, %arg6: memref<9x32xf32, #tpu.memory_space<vmem>>, %arg7: memref<9x32xf32, #tpu.memory_space<vmem>>, %arg8: memref<1x64x32xf32, #tpu.memory_space<vmem>>, %arg9: memref<1x10x10x32xf32, #tpu.memory_space<vmem>>) attributes {dimension_semantics = [#tpu.dimension_semantics<parallel>], iteration_bounds = array<i64: 2>, scalar_prefetch = 0 : i64, scratch_operands = 1 : i64, tpu.core_type = #tpu.core_type<tc>, window_params = [{transform_indices = @transform_0, window_bounds = array<i64: 1, 10, 10, 4>}, {pipeline_mode = #tpu.pipeline_mode<synchronous>, transform_indices = @transform_1, window_bounds = array<i64: 9, 4, 32>}, {pipeline_mode = #tpu.pipeline_mode<synchronous>, transform_indices = @transform_2, window_bounds = array<i64: 9, 4, 32>}, {pipeline_mode = #tpu.pipeline_mode<synchronous>, transform_indices = @transform_3, window_bounds = array<i64: 9, 8, 8>}, {pipeline_mode = #tpu.pipeline_mode<synchronous>, transform_indices = @transform_4, window_bounds = array<i64: 64, 9>}, {pipeline_mode = #tpu.pipeline_mode<synchronous>, transform_indices = @transform_5, window_bounds = array<i64: 9, 32>}, {pipeline_mode = #tpu.pipeline_mode<synchronous>, transform_indices = @transform_6, window_bounds = array<i64: 9, 32>}, {transform_indices = @transform_7, window_bounds = array<i64: 1, 64, 32>}]} {
    %cst = arith.constant 0.000000e+00 : f32
    %0 = vector.broadcast %cst : f32 to vector<64x32xf32>
    %cst_0 = arith.constant 0.000000e+00 : f32
    %1 = vector.broadcast %cst_0 : f32 to vector<64x32xf32>
    %c0 = arith.constant 0 : index
    %c0_1 = arith.constant 0 : index
    %c0_2 = arith.constant 0 : index
    %c0_3 = arith.constant 0 : index
    %2 = vector.load %arg1[%c0, %c0_1, %c0_2, %c0_3] : memref<1x10x10x4xf32, #tpu.memory_space<vmem>>, vector<1x8x8x4xf32>
    %3 = vector.shape_cast %2 : vector<1x8x8x4xf32> to vector<64x4xf32>
    %c0_4 = arith.constant 0 : index
    %c0_5 = arith.constant 0 : index
    %c0_6 = arith.constant 0 : index
    %4 = vector.load %arg2[%c0_4, %c0_5, %c0_6] : memref<9x4x32xf32, #tpu.memory_space<vmem>>, vector<1x4x32xf32>
    %5 = vector.shape_cast %4 : vector<1x4x32xf32> to vector<4x32xf32>
    %cst_7 = arith.constant dense<0.000000e+00> : vector<64x32xf32>
    %6 = tpu.matmul %3, %5, %cst_7 {dimension_numbers = #tpu.dot_dimension_numbers<[1], [0], [0], [1], [0, 0, 1, 1], [], []>} : vector<64x4xf32>, vector<4x32xf32>, vector<64x32xf32> -> vector<64x32xf32>
    %7 = arith.addf %0, %6 : vector<64x32xf32>
    %c0_8 = arith.constant 0 : index
    %c0_9 = arith.constant 0 : index
    %c0_10 = arith.constant 0 : index
    %8 = vector.load %arg3[%c0_8, %c0_9, %c0_10] : memref<9x4x32xf32, #tpu.memory_space<vmem>>, vector<1x4x32xf32>
    %9 = vector.shape_cast %8 : vector<1x4x32xf32> to vector<4x32xf32>
    %cst_11 = arith.constant dense<0.000000e+00> : vector<64x32xf32>
    %10 = tpu.matmul %3, %9, %cst_11 {dimension_numbers = #tpu.dot_dimension_numbers<[1], [0], [0], [1], [0, 0, 1, 1], [], []>} : vector<64x4xf32>, vector<4x32xf32>, vector<64x32xf32> -> vector<64x32xf32>
    %11 = arith.addf %1, %10 : vector<64x32xf32>
    %c0_12 = arith.constant 0 : index
    %c0_13 = arith.constant 0 : index
    %c1 = arith.constant 1 : index
    %c0_14 = arith.constant 0 : index
    %12 = vector.load %arg1[%c0_12, %c0_13, %c1, %c0_14] : memref<1x10x10x4xf32, #tpu.memory_space<vmem>>, vector<1x8x8x4xf32>
    %13 = vector.shape_cast %12 : vector<1x8x8x4xf32> to vector<64x4xf32>
    %c1_15 = arith.constant 1 : index
    %c0_16 = arith.constant 0 : index
    %c0_17 = arith.constant 0 : index
    %14 = vector.load %arg2[%c1_15, %c0_16, %c0_17] : memref<9x4x32xf32, #tpu.memory_space<vmem>>, vector<1x4x32xf32>
    %15 = vector.shape_cast %14 : vector<1x4x32xf32> to vector<4x32xf32>
    %cst_18 = arith.constant dense<0.000000e+00> : vector<64x32xf32>
    %16 = tpu.matmul %13, %15, %cst_18 {dimension_numbers = #tpu.dot_dimension_numbers<[1], [0], [0], [1], [0, 0, 1, 1], [], []>} : vector<64x4xf32>, vector<4x32xf32>, vector<64x32xf32> -> vector<64x32xf32>
    %17 = arith.addf %7, %16 : vector<64x32xf32>
    %c1_19 = arith.constant 1 : index
    %c0_20 = arith.constant 0 : index
    %c0_21 = arith.constant 0 : index
    %18 = vector.load %arg3[%c1_19, %c0_20, %c0_21] : memref<9x4x32xf32, #tpu.memory_space<vmem>>, vector<1x4x32xf32>
    %19 = vector.shape_cast %18 : vector<1x4x32xf32> to vector<4x32xf32>
    %cst_22 = arith.constant dense<0.000000e+00> : vector<64x32xf32>
    %20 = tpu.matmul %13, %19, %cst_22 {dimension_numbers = #tpu.dot_dimension_numbers<[1], [0], [0], [1], [0, 0, 1, 1], [], []>} : vector<64x4xf32>, vector<4x32xf32>, vector<64x32xf32> -> vector<64x32xf32>
    %21 = arith.addf %11, %20 : vector<64x32xf32>
    %c0_23 = arith.constant 0 : index
    %c0_24 = arith.constant 0 : index
    %c2 = arith.constant 2 : index
    %c0_25 = arith.constant 0 : index
    %22 = vector.load %arg1[%c0_23, %c0_24, %c2, %c0_25] : memref<1x10x10x4xf32, #tpu.memory_space<vmem>>, vector<1x8x8x4xf32>
    %23 = vector.shape_cast %22 : vector<1x8x8x4xf32> to vector<64x4xf32>
    %c2_26 = arith.constant 2 : index
    %c0_27 = arith.constant 0 : index
    %c0_28 = arith.constant 0 : index
    %24 = vector.load %arg2[%c2_26, %c0_27, %c0_28] : memref<9x4x32xf32, #tpu.memory_space<vmem>>, vector<1x4x32xf32>
    %25 = vector.shape_cast %24 : vector<1x4x32xf32> to vector<4x32xf32>
    %cst_29 = arith.constant dense<0.000000e+00> : vector<64x32xf32>
    %26 = tpu.matmul %23, %25, %cst_29 {dimension_numbers = #tpu.dot_dimension_numbers<[1], [0], [0], [1], [0, 0, 1, 1], [], []>} : vector<64x4xf32>, vector<4x32xf32>, vector<64x32xf32> -> vector<64x32xf32>
    %27 = arith.addf %17, %26 : vector<64x32xf32>
    %c2_30 = arith.constant 2 : index
    %c0_31 = arith.constant 0 : index
    %c0_32 = arith.constant 0 : index
    %28 = vector.load %arg3[%c2_30, %c0_31, %c0_32] : memref<9x4x32xf32, #tpu.memory_space<vmem>>, vector<1x4x32xf32>
    %29 = vector.shape_cast %28 : vector<1x4x32xf32> to vector<4x32xf32>
    %cst_33 = arith.constant dense<0.000000e+00> : vector<64x32xf32>
    %30 = tpu.matmul %23, %29, %cst_33 {dimension_numbers = #tpu.dot_dimension_numbers<[1], [0], [0], [1], [0, 0, 1, 1], [], []>} : vector<64x4xf32>, vector<4x32xf32>, vector<64x32xf32> -> vector<64x32xf32>
    %31 = arith.addf %21, %30 : vector<64x32xf32>
    %c0_34 = arith.constant 0 : index
    %c1_35 = arith.constant 1 : index
    %c0_36 = arith.constant 0 : index
    %c0_37 = arith.constant 0 : index
    %32 = vector.load %arg1[%c0_34, %c1_35, %c0_36, %c0_37] : memref<1x10x10x4xf32, #tpu.memory_space<vmem>>, vector<1x8x8x4xf32>
    %33 = vector.shape_cast %32 : vector<1x8x8x4xf32> to vector<64x4xf32>
    %c3 = arith.constant 3 : index
    %c0_38 = arith.constant 0 : index
    %c0_39 = arith.constant 0 : index
    %34 = vector.load %arg2[%c3, %c0_38, %c0_39] : memref<9x4x32xf32, #tpu.memory_space<vmem>>, vector<1x4x32xf32>
    %35 = vector.shape_cast %34 : vector<1x4x32xf32> to vector<4x32xf32>
    %cst_40 = arith.constant dense<0.000000e+00> : vector<64x32xf32>
    %36 = tpu.matmul %33, %35, %cst_40 {dimension_numbers = #tpu.dot_dimension_numbers<[1], [0], [0], [1], [0, 0, 1, 1], [], []>} : vector<64x4xf32>, vector<4x32xf32>, vector<64x32xf32> -> vector<64x32xf32>
    %37 = arith.addf %27, %36 : vector<64x32xf32>
    %c3_41 = arith.constant 3 : index
    %c0_42 = arith.constant 0 : index
    %c0_43 = arith.constant 0 : index
    %38 = vector.load %arg3[%c3_41, %c0_42, %c0_43] : memref<9x4x32xf32, #tpu.memory_space<vmem>>, vector<1x4x32xf32>
    %39 = vector.shape_cast %38 : vector<1x4x32xf32> to vector<4x32xf32>
    %cst_44 = arith.constant dense<0.000000e+00> : vector<64x32xf32>
    %40 = tpu.matmul %33, %39, %cst_44 {dimension_numbers = #tpu.dot_dimension_numbers<[1], [0], [0], [1], [0, 0, 1, 1], [], []>} : vector<64x4xf32>, vector<4x32xf32>, vector<64x32xf32> -> vector<64x32xf32>
    %41 = arith.addf %31, %40 : vector<64x32xf32>
    %c0_45 = arith.constant 0 : index
    %c1_46 = arith.constant 1 : index
    %c1_47 = arith.constant 1 : index
    %c0_48 = arith.constant 0 : index
    %42 = vector.load %arg1[%c0_45, %c1_46, %c1_47, %c0_48] : memref<1x10x10x4xf32, #tpu.memory_space<vmem>>, vector<1x8x8x4xf32>
    %43 = vector.shape_cast %42 : vector<1x8x8x4xf32> to vector<64x4xf32>
    %c4 = arith.constant 4 : index
    %c0_49 = arith.constant 0 : index
    %c0_50 = arith.constant 0 : index
    %44 = vector.load %arg2[%c4, %c0_49, %c0_50] : memref<9x4x32xf32, #tpu.memory_space<vmem>>, vector<1x4x32xf32>
    %45 = vector.shape_cast %44 : vector<1x4x32xf32> to vector<4x32xf32>
    %cst_51 = arith.constant dense<0.000000e+00> : vector<64x32xf32>
    %46 = tpu.matmul %43, %45, %cst_51 {dimension_numbers = #tpu.dot_dimension_numbers<[1], [0], [0], [1], [0, 0, 1, 1], [], []>} : vector<64x4xf32>, vector<4x32xf32>, vector<64x32xf32> -> vector<64x32xf32>
    %47 = arith.addf %37, %46 : vector<64x32xf32>
    %c4_52 = arith.constant 4 : index
    %c0_53 = arith.constant 0 : index
    %c0_54 = arith.constant 0 : index
    %48 = vector.load %arg3[%c4_52, %c0_53, %c0_54] : memref<9x4x32xf32, #tpu.memory_space<vmem>>, vector<1x4x32xf32>
    %49 = vector.shape_cast %48 : vector<1x4x32xf32> to vector<4x32xf32>
    %cst_55 = arith.constant dense<0.000000e+00> : vector<64x32xf32>
    %50 = tpu.matmul %43, %49, %cst_55 {dimension_numbers = #tpu.dot_dimension_numbers<[1], [0], [0], [1], [0, 0, 1, 1], [], []>} : vector<64x4xf32>, vector<4x32xf32>, vector<64x32xf32> -> vector<64x32xf32>
    %51 = arith.addf %41, %50 : vector<64x32xf32>
    %c0_56 = arith.constant 0 : index
    %c1_57 = arith.constant 1 : index
    %c2_58 = arith.constant 2 : index
    %c0_59 = arith.constant 0 : index
    %52 = vector.load %arg1[%c0_56, %c1_57, %c2_58, %c0_59] : memref<1x10x10x4xf32, #tpu.memory_space<vmem>>, vector<1x8x8x4xf32>
    %53 = vector.shape_cast %52 : vector<1x8x8x4xf32> to vector<64x4xf32>
    %c5 = arith.constant 5 : index
    %c0_60 = arith.constant 0 : index
    %c0_61 = arith.constant 0 : index
    %54 = vector.load %arg2[%c5, %c0_60, %c0_61] : memref<9x4x32xf32, #tpu.memory_space<vmem>>, vector<1x4x32xf32>
    %55 = vector.shape_cast %54 : vector<1x4x32xf32> to vector<4x32xf32>
    %cst_62 = arith.constant dense<0.000000e+00> : vector<64x32xf32>
    %56 = tpu.matmul %53, %55, %cst_62 {dimension_numbers = #tpu.dot_dimension_numbers<[1], [0], [0], [1], [0, 0, 1, 1], [], []>} : vector<64x4xf32>, vector<4x32xf32>, vector<64x32xf32> -> vector<64x32xf32>
    %57 = arith.addf %47, %56 : vector<64x32xf32>
    %c5_63 = arith.constant 5 : index
    %c0_64 = arith.constant 0 : index
    %c0_65 = arith.constant 0 : index
    %58 = vector.load %arg3[%c5_63, %c0_64, %c0_65] : memref<9x4x32xf32, #tpu.memory_space<vmem>>, vector<1x4x32xf32>
    %59 = vector.shape_cast %58 : vector<1x4x32xf32> to vector<4x32xf32>
    %cst_66 = arith.constant dense<0.000000e+00> : vector<64x32xf32>
    %60 = tpu.matmul %53, %59, %cst_66 {dimension_numbers = #tpu.dot_dimension_numbers<[1], [0], [0], [1], [0, 0, 1, 1], [], []>} : vector<64x4xf32>, vector<4x32xf32>, vector<64x32xf32> -> vector<64x32xf32>
    %61 = arith.addf %51, %60 : vector<64x32xf32>
    %c0_67 = arith.constant 0 : index
    %c2_68 = arith.constant 2 : index
    %c0_69 = arith.constant 0 : index
    %c0_70 = arith.constant 0 : index
    %62 = vector.load %arg1[%c0_67, %c2_68, %c0_69, %c0_70] : memref<1x10x10x4xf32, #tpu.memory_space<vmem>>, vector<1x8x8x4xf32>
    %63 = vector.shape_cast %62 : vector<1x8x8x4xf32> to vector<64x4xf32>
    %c6 = arith.constant 6 : index
    %c0_71 = arith.constant 0 : index
    %c0_72 = arith.constant 0 : index
    %64 = vector.load %arg2[%c6, %c0_71, %c0_72] : memref<9x4x32xf32, #tpu.memory_space<vmem>>, vector<1x4x32xf32>
    %65 = vector.shape_cast %64 : vector<1x4x32xf32> to vector<4x32xf32>
    %cst_73 = arith.constant dense<0.000000e+00> : vector<64x32xf32>
    %66 = tpu.matmul %63, %65, %cst_73 {dimension_numbers = #tpu.dot_dimension_numbers<[1], [0], [0], [1], [0, 0, 1, 1], [], []>} : vector<64x4xf32>, vector<4x32xf32>, vector<64x32xf32> -> vector<64x32xf32>
    %67 = arith.addf %57, %66 : vector<64x32xf32>
    %c6_74 = arith.constant 6 : index
    %c0_75 = arith.constant 0 : index
    %c0_76 = arith.constant 0 : index
    %68 = vector.load %arg3[%c6_74, %c0_75, %c0_76] : memref<9x4x32xf32, #tpu.memory_space<vmem>>, vector<1x4x32xf32>
    %69 = vector.shape_cast %68 : vector<1x4x32xf32> to vector<4x32xf32>
    %cst_77 = arith.constant dense<0.000000e+00> : vector<64x32xf32>
    %70 = tpu.matmul %63, %69, %cst_77 {dimension_numbers = #tpu.dot_dimension_numbers<[1], [0], [0], [1], [0, 0, 1, 1], [], []>} : vector<64x4xf32>, vector<4x32xf32>, vector<64x32xf32> -> vector<64x32xf32>
    %71 = arith.addf %61, %70 : vector<64x32xf32>
    %c0_78 = arith.constant 0 : index
    %c2_79 = arith.constant 2 : index
    %c1_80 = arith.constant 1 : index
    %c0_81 = arith.constant 0 : index
    %72 = vector.load %arg1[%c0_78, %c2_79, %c1_80, %c0_81] : memref<1x10x10x4xf32, #tpu.memory_space<vmem>>, vector<1x8x8x4xf32>
    %73 = vector.shape_cast %72 : vector<1x8x8x4xf32> to vector<64x4xf32>
    %c7 = arith.constant 7 : index
    %c0_82 = arith.constant 0 : index
    %c0_83 = arith.constant 0 : index
    %74 = vector.load %arg2[%c7, %c0_82, %c0_83] : memref<9x4x32xf32, #tpu.memory_space<vmem>>, vector<1x4x32xf32>
    %75 = vector.shape_cast %74 : vector<1x4x32xf32> to vector<4x32xf32>
    %cst_84 = arith.constant dense<0.000000e+00> : vector<64x32xf32>
    %76 = tpu.matmul %73, %75, %cst_84 {dimension_numbers = #tpu.dot_dimension_numbers<[1], [0], [0], [1], [0, 0, 1, 1], [], []>} : vector<64x4xf32>, vector<4x32xf32>, vector<64x32xf32> -> vector<64x32xf32>
    %77 = arith.addf %67, %76 : vector<64x32xf32>
    %c7_85 = arith.constant 7 : index
    %c0_86 = arith.constant 0 : index
    %c0_87 = arith.constant 0 : index
    %78 = vector.load %arg3[%c7_85, %c0_86, %c0_87] : memref<9x4x32xf32, #tpu.memory_space<vmem>>, vector<1x4x32xf32>
    %79 = vector.shape_cast %78 : vector<1x4x32xf32> to vector<4x32xf32>
    %cst_88 = arith.constant dense<0.000000e+00> : vector<64x32xf32>
    %80 = tpu.matmul %73, %79, %cst_88 {dimension_numbers = #tpu.dot_dimension_numbers<[1], [0], [0], [1], [0, 0, 1, 1], [], []>} : vector<64x4xf32>, vector<4x32xf32>, vector<64x32xf32> -> vector<64x32xf32>
    %81 = arith.addf %71, %80 : vector<64x32xf32>
    %c0_89 = arith.constant 0 : index
    %c2_90 = arith.constant 2 : index
    %c2_91 = arith.constant 2 : index
    %c0_92 = arith.constant 0 : index
    %82 = vector.load %arg1[%c0_89, %c2_90, %c2_91, %c0_92] : memref<1x10x10x4xf32, #tpu.memory_space<vmem>>, vector<1x8x8x4xf32>
    %83 = vector.shape_cast %82 : vector<1x8x8x4xf32> to vector<64x4xf32>
    %c8 = arith.constant 8 : index
    %c0_93 = arith.constant 0 : index
    %c0_94 = arith.constant 0 : index
    %84 = vector.load %arg2[%c8, %c0_93, %c0_94] : memref<9x4x32xf32, #tpu.memory_space<vmem>>, vector<1x4x32xf32>
    %85 = vector.shape_cast %84 : vector<1x4x32xf32> to vector<4x32xf32>
    %cst_95 = arith.constant dense<0.000000e+00> : vector<64x32xf32>
    %86 = tpu.matmul %83, %85, %cst_95 {dimension_numbers = #tpu.dot_dimension_numbers<[1], [0], [0], [1], [0, 0, 1, 1], [], []>} : vector<64x4xf32>, vector<4x32xf32>, vector<64x32xf32> -> vector<64x32xf32>
    %87 = arith.addf %77, %86 : vector<64x32xf32>
    %c8_96 = arith.constant 8 : index
    %c0_97 = arith.constant 0 : index
    %c0_98 = arith.constant 0 : index
    %88 = vector.load %arg3[%c8_96, %c0_97, %c0_98] : memref<9x4x32xf32, #tpu.memory_space<vmem>>, vector<1x4x32xf32>
    %89 = vector.shape_cast %88 : vector<1x4x32xf32> to vector<4x32xf32>
    %cst_99 = arith.constant dense<0.000000e+00> : vector<64x32xf32>
    %90 = tpu.matmul %83, %89, %cst_99 {dimension_numbers = #tpu.dot_dimension_numbers<[1], [0], [0], [1], [0, 0, 1, 1], [], []>} : vector<64x4xf32>, vector<4x32xf32>, vector<64x32xf32> -> vector<64x32xf32>
    %91 = arith.addf %81, %90 : vector<64x32xf32>
    %c0_100 = arith.constant 0 : index
    %c0_101 = arith.constant 0 : index
    %92 = vector.load %arg5[%c0_100, %c0_101] : memref<64x9xf32, #tpu.memory_space<vmem>>, vector<64x9xf32>
    %c0_102 = arith.constant 0 : index
    %c0_103 = arith.constant 0 : index
    %93 = vector.load %arg6[%c0_102, %c0_103] : memref<9x32xf32, #tpu.memory_space<vmem>>, vector<9x32xf32>
    %cst_104 = arith.constant dense<0.000000e+00> : vector<64x32xf32>
    %94 = tpu.matmul %92, %93, %cst_104 {dimension_numbers = #tpu.dot_dimension_numbers<[1], [0], [0], [1], [0, 0, 1, 1], [], []>} : vector<64x9xf32>, vector<9x32xf32>, vector<64x32xf32> -> vector<64x32xf32>
    %95 = vector.shape_cast %87 : vector<64x32xf32> to vector<1x64x32xf32>
    %96 = vector.shape_cast %94 : vector<64x32xf32> to vector<1x64x32xf32>
    %97 = arith.addf %95, %96 : vector<1x64x32xf32>
    %cst_105 = arith.constant 0.000000e+00 : f32
    %98 = vector.broadcast %cst_105 : f32 to vector<1x64x32xf32>
    %99 = arith.cmpf oge, %97, %98 : vector<1x64x32xf32>
    %cst_106 = arith.constant 2.000000e-01 : f32
    %100 = vector.broadcast %cst_106 : f32 to vector<1x64x32xf32>
    %101 = arith.mulf %100, %97 : vector<1x64x32xf32>
    %102 = arith.select %99, %97, %101 : vector<1x64x32xi1>, vector<1x64x32xf32>
    %cst_107 = arith.constant 1.41421354 : f32
    %103 = vector.broadcast %cst_107 : f32 to vector<1x64x32xf32>
    %104 = arith.mulf %102, %103 : vector<1x64x32xf32>
    %cst_108 = arith.constant -2.560000e+02 : f32
    %cst_109 = arith.constant 2.560000e+02 : f32
    %105 = vector.broadcast %cst_108 : f32 to vector<1x64x32xf32>
    %106 = arith.maximumf %105, %104 : vector<1x64x32xf32>
    %107 = vector.broadcast %cst_109 : f32 to vector<1x64x32xf32>
    %108 = arith.minimumf %107, %106 : vector<1x64x32xf32>
    %cst_110 = arith.constant 0.707106769 : f32
    %109 = vector.broadcast %cst_110 : f32 to vector<64x32xf32>
    %110 = arith.mulf %91, %109 : vector<64x32xf32>
    %cst_111 = arith.constant 0.000000e+00 : f32
    %111 = vector.broadcast %cst_111 : f32 to vector<1x1x10x32xf32>
    %c0_112 = arith.constant 0 : index
    %c0_113 = arith.constant 0 : index
    %c0_114 = arith.constant 0 : index
    %c0_115 = arith.constant 0 : index
    %112 = vector.load %arg9[%c0_112, %c0_113, %c0_114, %c0_115] : memref<1x10x10x32xf32, #tpu.memory_space<vmem>>, vector<1x1x10x32xf32>
    tpu.vector_store %arg9[%c0_112, %c0_113, %c0_114, %c0_115], %111 {strides = array<i32>} : memref<1x10x10x32xf32, #tpu.memory_space<vmem>>, vector<1x1x10x32xf32>,
    %cst_116 = arith.constant 0.000000e+00 : f32
    %113 = vector.broadcast %cst_116 : f32 to vector<1x1x10x32xf32>
    %c0_117 = arith.constant 0 : index
    %c9 = arith.constant 9 : index
    %c0_118 = arith.constant 0 : index
    %c0_119 = arith.constant 0 : index
    %114 = vector.load %arg9[%c0_117, %c9, %c0_118, %c0_119] : memref<1x10x10x32xf32, #tpu.memory_space<vmem>>, vector<1x1x10x32xf32>
    tpu.vector_store %arg9[%c0_117, %c9, %c0_118, %c0_119], %113 {strides = array<i32>} : memref<1x10x10x32xf32, #tpu.memory_space<vmem>>, vector<1x1x10x32xf32>,
    %cst_120 = arith.constant 0.000000e+00 : f32
    %115 = vector.broadcast %cst_120 : f32 to vector<1x8x1x32xf32>
    %c0_121 = arith.constant 0 : index
    %c1_122 = arith.constant 1 : index
    %c0_123 = arith.constant 0 : index
    %c0_124 = arith.constant 0 : index
    %116 = vector.load %arg9[%c0_121, %c1_122, %c0_123, %c0_124] : memref<1x10x10x32xf32, #tpu.memory_space<vmem>>, vector<1x8x1x32xf32>
    tpu.vector_store %arg9[%c0_121, %c1_122, %c0_123, %c0_124], %115 {strides = array<i32>} : memref<1x10x10x32xf32, #tpu.memory_space<vmem>>, vector<1x8x1x32xf32>,
    %cst_125 = arith.constant 0.000000e+00 : f32
    %117 = vector.broadcast %cst_125 : f32 to vector<1x8x1x32xf32>
    %c0_126 = arith.constant 0 : index
    %c1_127 = arith.constant 1 : index
    %c9_128 = arith.constant 9 : index
    %c0_129 = arith.constant 0 : index
    %118 = vector.load %arg9[%c0_126, %c1_127, %c9_128, %c0_129] : memref<1x10x10x32xf32, #tpu.memory_space<vmem>>, vector<1x8x1x32xf32>
    tpu.vector_store %arg9[%c0_126, %c1_127, %c9_128, %c0_129], %117 {strides = array<i32>} : memref<1x10x10x32xf32, #tpu.memory_space<vmem>>, vector<1x8x1x32xf32>,
    %119 = vector.shape_cast %108 : vector<1x64x32xf32> to vector<1x8x8x32xf32>
    %c0_130 = arith.constant 0 : index
    %c1_131 = arith.constant 1 : index
    %c1_132 = arith.constant 1 : index
    %c0_133 = arith.constant 0 : index
    %120 = vector.load %arg9[%c0_130, %c1_131, %c1_132, %c0_133] : memref<1x10x10x32xf32, #tpu.memory_space<vmem>>, vector<1x8x8x32xf32>
    tpu.vector_store %arg9[%c0_130, %c1_131, %c1_132, %c0_133], %119 {strides = array<i32>} : memref<1x10x10x32xf32, #tpu.memory_space<vmem>>, vector<1x8x8x32xf32>,
    %cst_134 = arith.constant 0.000000e+00 : f32
    %121 = vector.broadcast %cst_134 : f32 to vector<64x8xf32>
    %c0_135 = arith.constant 0 : index
    %c0_136 = arith.constant 0 : index
    %c0_137 = arith.constant 0 : index
    %c24 = arith.constant 24 : index
    %122 = vector.load %arg9[%c0_135, %c0_136, %c0_137, %c24] : memref<1x10x10x32xf32, #tpu.memory_space<vmem>>, vector<1x8x8x8xf32>
    %123 = vector.shape_cast %122 : vector<1x8x8x8xf32> to vector<64x8xf32>
    %c0_138 = arith.constant 0 : index
    %c0_139 = arith.constant 0 : index
    %c0_140 = arith.constant 0 : index
    %124 = vector.load %arg4[%c0_138, %c0_139, %c0_140] : memref<9x8x8xf32, #tpu.memory_space<vmem>>, vector<1x8x8xf32>
    %125 = vector.shape_cast %124 : vector<1x8x8xf32> to vector<8x8xf32>
    %cst_141 = arith.constant dense<0.000000e+00> : vector<64x8xf32>
    %126 = tpu.matmul %123, %125, %cst_141 {dimension_numbers = #tpu.dot_dimension_numbers<[1], [0], [0], [1], [0, 0, 1, 1], [], []>} : vector<64x8xf32>, vector<8x8xf32>, vector<64x8xf32> -> vector<64x8xf32>
    %127 = arith.addf %121, %126 : vector<64x8xf32>
    %c0_142 = arith.constant 0 : index
    %c0_143 = arith.constant 0 : index
    %c1_144 = arith.constant 1 : index
    %c16 = arith.constant 16 : index
    %128 = vector.load %arg9[%c0_142, %c0_143, %c1_144, %c16] : memref<1x10x10x32xf32, #tpu.memory_space<vmem>>, vector<1x8x8x8xf32>
    %129 = vector.shape_cast %128 : vector<1x8x8x8xf32> to vector<64x8xf32>
    %c1_145 = arith.constant 1 : index
    %c0_146 = arith.constant 0 : index
    %c0_147 = arith.constant 0 : index
    %130 = vector.load %arg4[%c1_145, %c0_146, %c0_147] : memref<9x8x8xf32, #tpu.memory_space<vmem>>, vector<1x8x8xf32>
    %131 = vector.shape_cast %130 : vector<1x8x8xf32> to vector<8x8xf32>
    %cst_148 = arith.constant dense<0.000000e+00> : vector<64x8xf32>
    %132 = tpu.matmul %129, %131, %cst_148 {dimension_numbers = #tpu.dot_dimension_numbers<[1], [0], [0], [1], [0, 0, 1, 1], [], []>} : vector<64x8xf32>, vector<8x8xf32>, vector<64x8xf32> -> vector<64x8xf32>
    %133 = arith.addf %127, %132 : vector<64x8xf32>
    %c0_149 = arith.constant 0 : index
    %c0_150 = arith.constant 0 : index
    %c1_151 = arith.constant 1 : index
    %c24_152 = arith.constant 24 : index
    %134 = vector.load %arg9[%c0_149, %c0_150, %c1_151, %c24_152] : memref<1x10x10x32xf32, #tpu.memory_space<vmem>>, vector<1x8x8x8xf32>
    %135 = vector.shape_cast %134 : vector<1x8x8x8xf32> to vector<64x8xf32>
    %c2_153 = arith.constant 2 : index
    %c0_154 = arith.constant 0 : index
    %c0_155 = arith.constant 0 : index
    %136 = vector.load %arg4[%c2_153, %c0_154, %c0_155] : memref<9x8x8xf32, #tpu.memory_space<vmem>>, vector<1x8x8xf32>
    %137 = vector.shape_cast %136 : vector<1x8x8xf32> to vector<8x8xf32>
    %cst_156 = arith.constant dense<0.000000e+00> : vector<64x8xf32>
    %138 = tpu.matmul %135, %137, %cst_156 {dimension_numbers = #tpu.dot_dimension_numbers<[1], [0], [0], [1], [0, 0, 1, 1], [], []>} : vector<64x8xf32>, vector<8x8xf32>, vector<64x8xf32> -> vector<64x8xf32>
    %139 = arith.addf %133, %138 : vector<64x8xf32>
    %c0_157 = arith.constant 0 : index
    %c1_158 = arith.constant 1 : index
    %c0_159 = arith.constant 0 : index
    %c8_160 = arith.constant 8 : index
    %140 = vector.load %arg9[%c0_157, %c1_158, %c0_159, %c8_160] : memref<1x10x10x32xf32, #tpu.memory_space<vmem>>, vector<1x8x8x8xf32>
    %141 = vector.shape_cast %140 : vector<1x8x8x8xf32> to vector<64x8xf32>
    %c3_161 = arith.constant 3 : index
    %c0_162 = arith.constant 0 : index
    %c0_163 = arith.constant 0 : index
    %142 = vector.load %arg4[%c3_161, %c0_162, %c0_163] : memref<9x8x8xf32, #tpu.memory_space<vmem>>, vector<1x8x8xf32>
    %143 = vector.shape_cast %142 : vector<1x8x8xf32> to vector<8x8xf32>
    %cst_164 = arith.constant dense<0.000000e+00> : vector<64x8xf32>
    %144 = tpu.matmul %141, %143, %cst_164 {dimension_numbers = #tpu.dot_dimension_numbers<[1], [0], [0], [1], [0, 0, 1, 1], [], []>} : vector<64x8xf32>, vector<8x8xf32>, vector<64x8xf32> -> vector<64x8xf32>
    %145 = arith.addf %139, %144 : vector<64x8xf32>
    %c0_165 = arith.constant 0 : index
    %c1_166 = arith.constant 1 : index
    %c1_167 = arith.constant 1 : index
    %c0_168 = arith.constant 0 : index
    %146 = vector.load %arg9[%c0_165, %c1_166, %c1_167, %c0_168] : memref<1x10x10x32xf32, #tpu.memory_space<vmem>>, vector<1x8x8x8xf32>
    %147 = vector.shape_cast %146 : vector<1x8x8x8xf32> to vector<64x8xf32>
    %c4_169 = arith.constant 4 : index
    %c0_170 = arith.constant 0 : index
    %c0_171 = arith.constant 0 : index
    %148 = vector.load %arg4[%c4_169, %c0_170, %c0_171] : memref<9x8x8xf32, #tpu.memory_space<vmem>>, vector<1x8x8xf32>
    %149 = vector.shape_cast %148 : vector<1x8x8xf32> to vector<8x8xf32>
    %cst_172 = arith.constant dense<0.000000e+00> : vector<64x8xf32>
    %150 = tpu.matmul %147, %149, %cst_172 {dimension_numbers = #tpu.dot_dimension_numbers<[1], [0], [0], [1], [0, 0, 1, 1], [], []>} : vector<64x8xf32>, vector<8x8xf32>, vector<64x8xf32> -> vector<64x8xf32>
    %151 = arith.addf %145, %150 : vector<64x8xf32>
    %c0_173 = arith.constant 0 : index
    %c1_174 = arith.constant 1 : index
    %c1_175 = arith.constant 1 : index
    %c8_176 = arith.constant 8 : index
    %152 = vector.load %arg9[%c0_173, %c1_174, %c1_175, %c8_176] : memref<1x10x10x32xf32, #tpu.memory_space<vmem>>, vector<1x8x8x8xf32>
    %153 = vector.shape_cast %152 : vector<1x8x8x8xf32> to vector<64x8xf32>
    %c5_177 = arith.constant 5 : index
    %c0_178 = arith.constant 0 : index
    %c0_179 = arith.constant 0 : index
    %154 = vector.load %arg4[%c5_177, %c0_178, %c0_179] : memref<9x8x8xf32, #tpu.memory_space<vmem>>, vector<1x8x8xf32>
    %155 = vector.shape_cast %154 : vector<1x8x8xf32> to vector<8x8xf32>
    %cst_180 = arith.constant dense<0.000000e+00> : vector<64x8xf32>
    %156 = tpu.matmul %153, %155, %cst_180 {dimension_numbers = #tpu.dot_dimension_numbers<[1], [0], [0], [1], [0, 0, 1, 1], [], []>} : vector<64x8xf32>, vector<8x8xf32>, vector<64x8xf32> -> vector<64x8xf32>
    %157 = arith.addf %151, %156 : vector<64x8xf32>
    %c0_181 = arith.constant 0 : index
    %c1_182 = arith.constant 1 : index
    %c0_183 = arith.constant 0 : index
    %c24_184 = arith.constant 24 : index
    %158 = vector.load %arg9[%c0_181, %c1_182, %c0_183, %c24_184] : memref<1x10x10x32xf32, #tpu.memory_space<vmem>>, vector<1x8x8x8xf32>
    %159 = vector.shape_cast %158 : vector<1x8x8x8xf32> to vector<64x8xf32>
    %c6_185 = arith.constant 6 : index
    %c0_186 = arith.constant 0 : index
    %c0_187 = arith.constant 0 : index
    %160 = vector.load %arg4[%c6_185, %c0_186, %c0_187] : memref<9x8x8xf32, #tpu.memory_space<vmem>>, vector<1x8x8xf32>
    %161 = vector.shape_cast %160 : vector<1x8x8xf32> to vector<8x8xf32>
    %cst_188 = arith.constant dense<0.000000e+00> : vector<64x8xf32>
    %162 = tpu.matmul %159, %161, %cst_188 {dimension_numbers = #tpu.dot_dimension_numbers<[1], [0], [0], [1], [0, 0, 1, 1], [], []>} : vector<64x8xf32>, vector<8x8xf32>, vector<64x8xf32> -> vector<64x8xf32>
    %163 = arith.addf %157, %162 : vector<64x8xf32>
    %c0_189 = arith.constant 0 : index
    %c1_190 = arith.constant 1 : index
    %c1_191 = arith.constant 1 : index
    %c16_192 = arith.constant 16 : index
    %164 = vector.load %arg9[%c0_189, %c1_190, %c1_191, %c16_192] : memref<1x10x10x32xf32, #tpu.memory_space<vmem>>, vector<1x8x8x8xf32>
    %165 = vector.shape_cast %164 : vector<1x8x8x8xf32> to vector<64x8xf32>
    %c7_193 = arith.constant 7 : index
    %c0_194 = arith.constant 0 : index
    %c0_195 = arith.constant 0 : index
    %166 = vector.load %arg4[%c7_193, %c0_194, %c0_195] : memref<9x8x8xf32, #tpu.memory_space<vmem>>, vector<1x8x8xf32>
    %167 = vector.shape_cast %166 : vector<1x8x8xf32> to vector<8x8xf32>
    %cst_196 = arith.constant dense<0.000000e+00> : vector<64x8xf32>
    %168 = tpu.matmul %165, %167, %cst_196 {dimension_numbers = #tpu.dot_dimension_numbers<[1], [0], [0], [1], [0, 0, 1, 1], [], []>} : vector<64x8xf32>, vector<8x8xf32>, vector<64x8xf32> -> vector<64x8xf32>
    %169 = arith.addf %163, %168 : vector<64x8xf32>
    %c0_197 = arith.constant 0 : index
    %c1_198 = arith.constant 1 : index
    %c1_199 = arith.constant 1 : index
    %c24_200 = arith.constant 24 : index
    %170 = vector.load %arg9[%c0_197, %c1_198, %c1_199, %c24_200] : memref<1x10x10x32xf32, #tpu.memory_space<vmem>>, vector<1x8x8x8xf32>
    %171 = vector.shape_cast %170 : vector<1x8x8x8xf32> to vector<64x8xf32>
    %c8_201 = arith.constant 8 : index
    %c0_202 = arith.constant 0 : index
    %c0_203 = arith.constant 0 : index
    %172 = vector.load %arg4[%c8_201, %c0_202, %c0_203] : memref<9x8x8xf32, #tpu.memory_space<vmem>>, vector<1x8x8xf32>
    %173 = vector.shape_cast %172 : vector<1x8x8xf32> to vector<8x8xf32>
    %cst_204 = arith.constant dense<0.000000e+00> : vector<64x8xf32>
    %174 = tpu.matmul %171, %173, %cst_204 {dimension_numbers = #tpu.dot_dimension_numbers<[1], [0], [0], [1], [0, 0, 1, 1], [], []>} : vector<64x8xf32>, vector<8x8xf32>, vector<64x8xf32> -> vector<64x8xf32>
    %175 = arith.addf %169, %174 : vector<64x8xf32>
    %cst_205 = arith.constant 0.000000e+00 : f32
    %176 = vector.broadcast %cst_205 : f32 to vector<64x8xf32>
    %c0_206 = arith.constant 0 : index
    %c0_207 = arith.constant 0 : index
    %c1_208 = arith.constant 1 : index
    %c16_209 = arith.constant 16 : index
    %177 = vector.load %arg9[%c0_206, %c0_207, %c1_208, %c16_209] : memref<1x10x10x32xf32, #tpu.memory_space<vmem>>, vector<1x8x8x8xf32>
    %178 = vector.shape_cast %177 : vector<1x8x8x8xf32> to vector<64x8xf32>
    %c0_210 = arith.constant 0 : index
    %c0_211 = arith.constant 0 : index
    %c0_212 = arith.constant 0 : index
    %179 = vector.load %arg4[%c0_210, %c0_211, %c0_212] : memref<9x8x8xf32, #tpu.memory_space<vmem>>, vector<1x8x8xf32>
    %180 = vector.shape_cast %179 : vector<1x8x8xf32> to vector<8x8xf32>
    %cst_213 = arith.constant dense<0.000000e+00> : vector<64x8xf32>
    %181 = tpu.matmul %178, %180, %cst_213 {dimension_numbers = #tpu.dot_dimension_numbers<[1], [0], [0], [1], [0, 0, 1, 1], [], []>} : vector<64x8xf32>, vector<8x8xf32>, vector<64x8xf32> -> vector<64x8xf32>
    %182 = arith.addf %176, %181 : vector<64x8xf32>
    %c0_214 = arith.constant 0 : index
    %c0_215 = arith.constant 0 : index
    %c1_216 = arith.constant 1 : index
    %c24_217 = arith.constant 24 : index
    %183 = vector.load %arg9[%c0_214, %c0_215, %c1_216, %c24_217] : memref<1x10x10x32xf32, #tpu.memory_space<vmem>>, vector<1x8x8x8xf32>
    %184 = vector.shape_cast %183 : vector<1x8x8x8xf32> to vector<64x8xf32>
    %c1_218 = arith.constant 1 : index
    %c0_219 = arith.constant 0 : index
    %c0_220 = arith.constant 0 : index
    %185 = vector.load %arg4[%c1_218, %c0_219, %c0_220] : memref<9x8x8xf32, #tpu.memory_space<vmem>>, vector<1x8x8xf32>
    %186 = vector.shape_cast %185 : vector<1x8x8xf32> to vector<8x8xf32>
    %cst_221 = arith.constant dense<0.000000e+00> : vector<64x8xf32>
    %187 = tpu.matmul %184, %186, %cst_221 {dimension_numbers = #tpu.dot_dimension_numbers<[1], [0], [0], [1], [0, 0, 1, 1], [], []>} : vector<64x8xf32>, vector<8x8xf32>, vector<64x8xf32> -> vector<64x8xf32>
    %188 = arith.addf %182, %187 : vector<64x8xf32>
    %c0_222 = arith.constant 0 : index
    %c0_223 = arith.constant 0 : index
    %c2_224 = arith.constant 2 : index
    %c16_225 = arith.constant 16 : index
    %189 = vector.load %arg9[%c0_222, %c0_223, %c2_224, %c16_225] : memref<1x10x10x32xf32, #tpu.memory_space<vmem>>, vector<1x8x8x8xf32>
    %190 = vector.shape_cast %189 : vector<1x8x8x8xf32> to vector<64x8xf32>
    %c2_226 = arith.constant 2 : index
    %c0_227 = arith.constant 0 : index
    %c0_228 = arith.constant 0 : index
    %191 = vector.load %arg4[%c2_226, %c0_227, %c0_228] : memref<9x8x8xf32, #tpu.memory_space<vmem>>, vector<1x8x8xf32>
    %192 = vector.shape_cast %191 : vector<1x8x8xf32> to vector<8x8xf32>
    %cst_229 = arith.constant dense<0.000000e+00> : vector<64x8xf32>
    %193 = tpu.matmul %190, %192, %cst_229 {dimension_numbers = #tpu.dot_dimension_numbers<[1], [0], [0], [1], [0, 0, 1, 1], [], []>} : vector<64x8xf32>, vector<8x8xf32>, vector<64x8xf32> -> vector<64x8xf32>
    %194 = arith.addf %188, %193 : vector<64x8xf32>
    %c0_230 = arith.constant 0 : index
    %c1_231 = arith.constant 1 : index
    %c1_232 = arith.constant 1 : index
    %c0_233 = arith.constant 0 : index
    %195 = vector.load %arg9[%c0_230, %c1_231, %c1_232, %c0_233] : memref<1x10x10x32xf32, #tpu.memory_space<vmem>>, vector<1x8x8x8xf32>
    %196 = vector.shape_cast %195 : vector<1x8x8x8xf32> to vector<64x8xf32>
    %c3_234 = arith.constant 3 : index
    %c0_235 = arith.constant 0 : index
    %c0_236 = arith.constant 0 : index
    %197 = vector.load %arg4[%c3_234, %c0_235, %c0_236] : memref<9x8x8xf32, #tpu.memory_space<vmem>>, vector<1x8x8xf32>
    %198 = vector.shape_cast %197 : vector<1x8x8xf32> to vector<8x8xf32>
    %cst_237 = arith.constant dense<0.000000e+00> : vector<64x8xf32>
    %199 = tpu.matmul %196, %198, %cst_237 {dimension_numbers = #tpu.dot_dimension_numbers<[1], [0], [0], [1], [0, 0, 1, 1], [], []>} : vector<64x8xf32>, vector<8x8xf32>, vector<64x8xf32> -> vector<64x8xf32>
    %200 = arith.addf %194, %199 : vector<64x8xf32>
    %c0_238 = arith.constant 0 : index
    %c1_239 = arith.constant 1 : index
    %c1_240 = arith.constant 1 : index
    %c8_241 = arith.constant 8 : index
    %201 = vector.load %arg9[%c0_238, %c1_239, %c1_240, %c8_241] : memref<1x10x10x32xf32, #tpu.memory_space<vmem>>, vector<1x8x8x8xf32>
    %202 = vector.shape_cast %201 : vector<1x8x8x8xf32> to vector<64x8xf32>
    %c4_242 = arith.constant 4 : index
    %c0_243 = arith.constant 0 : index
    %c0_244 = arith.constant 0 : index
    %203 = vector.load %arg4[%c4_242, %c0_243, %c0_244] : memref<9x8x8xf32, #tpu.memory_space<vmem>>, vector<1x8x8xf32>
    %204 = vector.shape_cast %203 : vector<1x8x8xf32> to vector<8x8xf32>
    %cst_245 = arith.constant dense<0.000000e+00> : vector<64x8xf32>
    %205 = tpu.matmul %202, %204, %cst_245 {dimension_numbers = #tpu.dot_dimension_numbers<[1], [0], [0], [1], [0, 0, 1, 1], [], []>} : vector<64x8xf32>, vector<8x8xf32>, vector<64x8xf32> -> vector<64x8xf32>
    %206 = arith.addf %200, %205 : vector<64x8xf32>
    %c0_246 = arith.constant 0 : index
    %c1_247 = arith.constant 1 : index
    %c2_248 = arith.constant 2 : index
    %c0_249 = arith.constant 0 : index
    %207 = vector.load %arg9[%c0_246, %c1_247, %c2_248, %c0_249] : memref<1x10x10x32xf32, #tpu.memory_space<vmem>>, vector<1x8x8x8xf32>
    %208 = vector.shape_cast %207 : vector<1x8x8x8xf32> to vector<64x8xf32>
    %c5_250 = arith.constant 5 : index
    %c0_251 = arith.constant 0 : index
    %c0_252 = arith.constant 0 : index
    %209 = vector.load %arg4[%c5_250, %c0_251, %c0_252] : memref<9x8x8xf32, #tpu.memory_space<vmem>>, vector<1x8x8xf32>
    %210 = vector.shape_cast %209 : vector<1x8x8xf32> to vector<8x8xf32>
    %cst_253 = arith.constant dense<0.000000e+00> : vector<64x8xf32>
    %211 = tpu.matmul %208, %210, %cst_253 {dimension_numbers = #tpu.dot_dimension_numbers<[1], [0], [0], [1], [0, 0, 1, 1], [], []>} : vector<64x8xf32>, vector<8x8xf32>, vector<64x8xf32> -> vector<64x8xf32>
    %212 = arith.addf %206, %211 : vector<64x8xf32>
    %c0_254 = arith.constant 0 : index
    %c1_255 = arith.constant 1 : index
    %c1_256 = arith.constant 1 : index
    %c16_257 = arith.constant 16 : index
    %213 = vector.load %arg9[%c0_254, %c1_255, %c1_256, %c16_257] : memref<1x10x10x32xf32, #tpu.memory_space<vmem>>, vector<1x8x8x8xf32>
    %214 = vector.shape_cast %213 : vector<1x8x8x8xf32> to vector<64x8xf32>
    %c6_258 = arith.constant 6 : index
    %c0_259 = arith.constant 0 : index
    %c0_260 = arith.constant 0 : index
    %215 = vector.load %arg4[%c6_258, %c0_259, %c0_260] : memref<9x8x8xf32, #tpu.memory_space<vmem>>, vector<1x8x8xf32>
    %216 = vector.shape_cast %215 : vector<1x8x8xf32> to vector<8x8xf32>
    %cst_261 = arith.constant dense<0.000000e+00> : vector<64x8xf32>
    %217 = tpu.matmul %214, %216, %cst_261 {dimension_numbers = #tpu.dot_dimension_numbers<[1], [0], [0], [1], [0, 0, 1, 1], [], []>} : vector<64x8xf32>, vector<8x8xf32>, vector<64x8xf32> -> vector<64x8xf32>
    %218 = arith.addf %212, %217 : vector<64x8xf32>
    %c0_262 = arith.constant 0 : index
    %c1_263 = arith.constant 1 : index
    %c1_264 = arith.constant 1 : index
    %c24_265 = arith.constant 24 : index
    %219 = vector.load %arg9[%c0_262, %c1_263, %c1_264, %c24_265] : memref<1x10x10x32xf32, #tpu.memory_space<vmem>>, vector<1x8x8x8xf32>
    %220 = vector.shape_cast %219 : vector<1x8x8x8xf32> to vector<64x8xf32>
    %c7_266 = arith.constant 7 : index
    %c0_267 = arith.constant 0 : index
    %c0_268 = arith.constant 0 : index
    %221 = vector.load %arg4[%c7_266, %c0_267, %c0_268] : memref<9x8x8xf32, #tpu.memory_space<vmem>>, vector<1x8x8xf32>
    %222 = vector.shape_cast %221 : vector<1x8x8xf32> to vector<8x8xf32>
    %cst_269 = arith.constant dense<0.000000e+00> : vector<64x8xf32>
    %223 = tpu.matmul %220, %222, %cst_269 {dimension_numbers = #tpu.dot_dimension_numbers<[1], [0], [0], [1], [0, 0, 1, 1], [], []>} : vector<64x8xf32>, vector<8x8xf32>, vector<64x8xf32> -> vector<64x8xf32>
    %224 = arith.addf %218, %223 : vector<64x8xf32>
    %c0_270 = arith.constant 0 : index
    %c1_271 = arith.constant 1 : index
    %c2_272 = arith.constant 2 : index
    %c16_273 = arith.constant 16 : index
    %225 = vector.load %arg9[%c0_270, %c1_271, %c2_272, %c16_273] : memref<1x10x10x32xf32, #tpu.memory_space<vmem>>, vector<1x8x8x8xf32>
    %226 = vector.shape_cast %225 : vector<1x8x8x8xf32> to vector<64x8xf32>
    %c8_274 = arith.constant 8 : index
    %c0_275 = arith.constant 0 : index
    %c0_276 = arith.constant 0 : index
    %227 = vector.load %arg4[%c8_274, %c0_275, %c0_276] : memref<9x8x8xf32, #tpu.memory_space<vmem>>, vector<1x8x8xf32>
    %228 = vector.shape_cast %227 : vector<1x8x8xf32> to vector<8x8xf32>
    %cst_277 = arith.constant dense<0.000000e+00> : vector<64x8xf32>
    %229 = tpu.matmul %226, %228, %cst_277 {dimension_numbers = #tpu.dot_dimension_numbers<[1], [0], [0], [1], [0, 0, 1, 1], [], []>} : vector<64x8xf32>, vector<8x8xf32>, vector<64x8xf32> -> vector<64x8xf32>
    %230 = arith.addf %224, %229 : vector<64x8xf32>
    %cst_278 = arith.constant 0.000000e+00 : f32
    %231 = vector.broadcast %cst_278 : f32 to vector<64x8xf32>
    %c0_279 = arith.constant 0 : index
    %c1_280 = arith.constant 1 : index
    %c0_281 = arith.constant 0 : index
    %c8_282 = arith.constant 8 : index
    %232 = vector.load %arg9[%c0_279, %c1_280, %c0_281, %c8_282] : memref<1x10x10x32xf32, #tpu.memory_space<vmem>>, vector<1x8x8x8xf32>
    %233 = vector.shape_cast %232 : vector<1x8x8x8xf32> to vector<64x8xf32>
    %c0_283 = arith.constant 0 : index
    %c0_284 = arith.constant 0 : index
    %c0_285 = arith.constant 0 : index
    %234 = vector.load %arg4[%c0_283, %c0_284, %c0_285] : memref<9x8x8xf32, #tpu.memory_space<vmem>>, vector<1x8x8xf32>
    %235 = vector.shape_cast %234 : vector<1x8x8xf32> to vector<8x8xf32>
    %cst_286 = arith.constant dense<0.000000e+00> : vector<64x8xf32>
    %236 = tpu.matmul %233, %235, %cst_286 {dimension_numbers = #tpu.dot_dimension_numbers<[1], [0], [0], [1], [0, 0, 1, 1], [], []>} : vector<64x8xf32>, vector<8x8xf32>, vector<64x8xf32> -> vector<64x8xf32>
    %237 = arith.addf %231, %236 : vector<64x8xf32>
    %c0_287 = arith.constant 0 : index
    %c1_288 = arith.constant 1 : index
    %c1_289 = arith.constant 1 : index
    %c0_290 = arith.constant 0 : index
    %238 = vector.load %arg9[%c0_287, %c1_288, %c1_289, %c0_290] : memref<1x10x10x32xf32, #tpu.memory_space<vmem>>, vector<1x8x8x8xf32>
    %239 = vector.shape_cast %238 : vector<1x8x8x8xf32> to vector<64x8xf32>
    %c1_291 = arith.constant 1 : index
    %c0_292 = arith.constant 0 : index
    %c0_293 = arith.constant 0 : index
    %240 = vector.load %arg4[%c1_291, %c0_292, %c0_293] : memref<9x8x8xf32, #tpu.memory_space<vmem>>, vector<1x8x8xf32>
    %241 = vector.shape_cast %240 : vector<1x8x8xf32> to vector<8x8xf32>
    %cst_294 = arith.constant dense<0.000000e+00> : vector<64x8xf32>
    %242 = tpu.matmul %239, %241, %cst_294 {dimension_numbers = #tpu.dot_dimension_numbers<[1], [0], [0], [1], [0, 0, 1, 1], [], []>} : vector<64x8xf32>, vector<8x8xf32>, vector<64x8xf32> -> vector<64x8xf32>
    %243 = arith.addf %237, %242 : vector<64x8xf32>
    %c0_295 = arith.constant 0 : index
    %c1_296 = arith.constant 1 : index
    %c1_297 = arith.constant 1 : index
    %c8_298 = arith.constant 8 : index
    %244 = vector.load %arg9[%c0_295, %c1_296, %c1_297, %c8_298] : memref<1x10x10x32xf32, #tpu.memory_space<vmem>>, vector<1x8x8x8xf32>
    %245 = vector.shape_cast %244 : vector<1x8x8x8xf32> to vector<64x8xf32>
    %c2_299 = arith.constant 2 : index
    %c0_300 = arith.constant 0 : index
    %c0_301 = arith.constant 0 : index
    %246 = vector.load %arg4[%c2_299, %c0_300, %c0_301] : memref<9x8x8xf32, #tpu.memory_space<vmem>>, vector<1x8x8xf32>
    %247 = vector.shape_cast %246 : vector<1x8x8xf32> to vector<8x8xf32>
    %cst_302 = arith.constant dense<0.000000e+00> : vector<64x8xf32>
    %248 = tpu.matmul %245, %247, %cst_302 {dimension_numbers = #tpu.dot_dimension_numbers<[1], [0], [0], [1], [0, 0, 1, 1], [], []>} : vector<64x8xf32>, vector<8x8xf32>, vector<64x8xf32> -> vector<64x8xf32>
    %249 = arith.addf %243, %248 : vector<64x8xf32>
    %c0_303 = arith.constant 0 : index
    %c1_304 = arith.constant 1 : index
    %c0_305 = arith.constant 0 : index
    %c24_306 = arith.constant 24 : index
    %250 = vector.load %arg9[%c0_303, %c1_304, %c0_305, %c24_306] : memref<1x10x10x32xf32, #tpu.memory_space<vmem>>, vector<1x8x8x8xf32>
    %251 = vector.shape_cast %250 : vector<1x8x8x8xf32> to vector<64x8xf32>
    %c3_307 = arith.constant 3 : index
    %c0_308 = arith.constant 0 : index
    %c0_309 = arith.constant 0 : index
    %252 = vector.load %arg4[%c3_307, %c0_308, %c0_309] : memref<9x8x8xf32, #tpu.memory_space<vmem>>, vector<1x8x8xf32>
    %253 = vector.shape_cast %252 : vector<1x8x8xf32> to vector<8x8xf32>
    %cst_310 = arith.constant dense<0.000000e+00> : vector<64x8xf32>
    %254 = tpu.matmul %251, %253, %cst_310 {dimension_numbers = #tpu.dot_dimension_numbers<[1], [0], [0], [1], [0, 0, 1, 1], [], []>} : vector<64x8xf32>, vector<8x8xf32>, vector<64x8xf32> -> vector<64x8xf32>
    %255 = arith.addf %249, %254 : vector<64x8xf32>
    %c0_311 = arith.constant 0 : index
    %c1_312 = arith.constant 1 : index
    %c1_313 = arith.constant 1 : index
    %c16_314 = arith.constant 16 : index
    %256 = vector.load %arg9[%c0_311, %c1_312, %c1_313, %c16_314] : memref<1x10x10x32xf32, #tpu.memory_space<vmem>>, vector<1x8x8x8xf32>
    %257 = vector.shape_cast %256 : vector<1x8x8x8xf32> to vector<64x8xf32>
    %c4_315 = arith.constant 4 : index
    %c0_316 = arith.constant 0 : index
    %c0_317 = arith.constant 0 : index
    %258 = vector.load %arg4[%c4_315, %c0_316, %c0_317] : memref<9x8x8xf32, #tpu.memory_space<vmem>>, vector<1x8x8xf32>
    %259 = vector.shape_cast %258 : vector<1x8x8xf32> to vector<8x8xf32>
    %cst_318 = arith.constant dense<0.000000e+00> : vector<64x8xf32>
    %260 = tpu.matmul %257, %259, %cst_318 {dimension_numbers = #tpu.dot_dimension_numbers<[1], [0], [0], [1], [0, 0, 1, 1], [], []>} : vector<64x8xf32>, vector<8x8xf32>, vector<64x8xf32> -> vector<64x8xf32>
    %261 = arith.addf %255, %260 : vector<64x8xf32>
    %c0_319 = arith.constant 0 : index
    %c1_320 = arith.constant 1 : index
    %c1_321 = arith.constant 1 : index
    %c24_322 = arith.constant 24 : index
    %262 = vector.load %arg9[%c0_319, %c1_320, %c1_321, %c24_322] : memref<1x10x10x32xf32, #tpu.memory_space<vmem>>, vector<1x8x8x8xf32>
    %263 = vector.shape_cast %262 : vector<1x8x8x8xf32> to vector<64x8xf32>
    %c5_323 = arith.constant 5 : index
    %c0_324 = arith.constant 0 : index
    %c0_325 = arith.constant 0 : index
    %264 = vector.load %arg4[%c5_323, %c0_324, %c0_325] : memref<9x8x8xf32, #tpu.memory_space<vmem>>, vector<1x8x8xf32>
    %265 = vector.shape_cast %264 : vector<1x8x8xf32> to vector<8x8xf32>
    %cst_326 = arith.constant dense<0.000000e+00> : vector<64x8xf32>
    %266 = tpu.matmul %263, %265, %cst_326 {dimension_numbers = #tpu.dot_dimension_numbers<[1], [0], [0], [1], [0, 0, 1, 1], [], []>} : vector<64x8xf32>, vector<8x8xf32>, vector<64x8xf32> -> vector<64x8xf32>
    %267 = arith.addf %261, %266 : vector<64x8xf32>
    %c0_327 = arith.constant 0 : index
    %c2_328 = arith.constant 2 : index
    %c0_329 = arith.constant 0 : index
    %c8_330 = arith.constant 8 : index
    %268 = vector.load %arg9[%c0_327, %c2_328, %c0_329, %c8_330] : memref<1x10x10x32xf32, #tpu.memory_space<vmem>>, vector<1x8x8x8xf32>
    %269 = vector.shape_cast %268 : vector<1x8x8x8xf32> to vector<64x8xf32>
    %c6_331 = arith.constant 6 : index
    %c0_332 = arith.constant 0 : index
    %c0_333 = arith.constant 0 : index
    %270 = vector.load %arg4[%c6_331, %c0_332, %c0_333] : memref<9x8x8xf32, #tpu.memory_space<vmem>>, vector<1x8x8xf32>
    %271 = vector.shape_cast %270 : vector<1x8x8xf32> to vector<8x8xf32>
    %cst_334 = arith.constant dense<0.000000e+00> : vector<64x8xf32>
    %272 = tpu.matmul %269, %271, %cst_334 {dimension_numbers = #tpu.dot_dimension_numbers<[1], [0], [0], [1], [0, 0, 1, 1], [], []>} : vector<64x8xf32>, vector<8x8xf32>, vector<64x8xf32> -> vector<64x8xf32>
    %273 = arith.addf %267, %272 : vector<64x8xf32>
    %c0_335 = arith.constant 0 : index
    %c2_336 = arith.constant 2 : index
    %c1_337 = arith.constant 1 : index
    %c0_338 = arith.constant 0 : index
    %274 = vector.load %arg9[%c0_335, %c2_336, %c1_337, %c0_338] : memref<1x10x10x32xf32, #tpu.memory_space<vmem>>, vector<1x8x8x8xf32>
    %275 = vector.shape_cast %274 : vector<1x8x8x8xf32> to vector<64x8xf32>
    %c7_339 = arith.constant 7 : index
    %c0_340 = arith.constant 0 : index
    %c0_341 = arith.constant 0 : index
    %276 = vector.load %arg4[%c7_339, %c0_340, %c0_341] : memref<9x8x8xf32, #tpu.memory_space<vmem>>, vector<1x8x8xf32>
    %277 = vector.shape_cast %276 : vector<1x8x8xf32> to vector<8x8xf32>
    %cst_342 = arith.constant dense<0.000000e+00> : vector<64x8xf32>
    %278 = tpu.matmul %275, %277, %cst_342 {dimension_numbers = #tpu.dot_dimension_numbers<[1], [0], [0], [1], [0, 0, 1, 1], [], []>} : vector<64x8xf32>, vector<8x8xf32>, vector<64x8xf32> -> vector<64x8xf32>
    %279 = arith.addf %273, %278 : vector<64x8xf32>
    %c0_343 = arith.constant 0 : index
    %c2_344 = arith.constant 2 : index
    %c1_345 = arith.constant 1 : index
    %c8_346 = arith.constant 8 : index
    %280 = vector.load %arg9[%c0_343, %c2_344, %c1_345, %c8_346] : memref<1x10x10x32xf32, #tpu.memory_space<vmem>>, vector<1x8x8x8xf32>
    %281 = vector.shape_cast %280 : vector<1x8x8x8xf32> to vector<64x8xf32>
    %c8_347 = arith.constant 8 : index
    %c0_348 = arith.constant 0 : index
    %c0_349 = arith.constant 0 : index
    %282 = vector.load %arg4[%c8_347, %c0_348, %c0_349] : memref<9x8x8xf32, #tpu.memory_space<vmem>>, vector<1x8x8xf32>
    %283 = vector.shape_cast %282 : vector<1x8x8xf32> to vector<8x8xf32>
    %cst_350 = arith.constant dense<0.000000e+00> : vector<64x8xf32>
    %284 = tpu.matmul %281, %283, %cst_350 {dimension_numbers = #tpu.dot_dimension_numbers<[1], [0], [0], [1], [0, 0, 1, 1], [], []>} : vector<64x8xf32>, vector<8x8xf32>, vector<64x8xf32> -> vector<64x8xf32>
    %285 = arith.addf %279, %284 : vector<64x8xf32>
    %cst_351 = arith.constant 0.000000e+00 : f32
    %286 = vector.broadcast %cst_351 : f32 to vector<64x8xf32>
    %c0_352 = arith.constant 0 : index
    %c1_353 = arith.constant 1 : index
    %c1_354 = arith.constant 1 : index
    %c0_355 = arith.constant 0 : index
    %287 = vector.load %arg9[%c0_352, %c1_353, %c1_354, %c0_355] : memref<1x10x10x32xf32, #tpu.memory_space<vmem>>, vector<1x8x8x8xf32>
    %288 = vector.shape_cast %287 : vector<1x8x8x8xf32> to vector<64x8xf32>
    %c0_356 = arith.constant 0 : index
    %c0_357 = arith.constant 0 : index
    %c0_358 = arith.constant 0 : index
    %289 = vector.load %arg4[%c0_356, %c0_357, %c0_358] : memref<9x8x8xf32, #tpu.memory_space<vmem>>, vector<1x8x8xf32>
    %290 = vector.shape_cast %289 : vector<1x8x8xf32> to vector<8x8xf32>
    %cst_359 = arith.constant dense<0.000000e+00> : vector<64x8xf32>
    %291 = tpu.matmul %288, %290, %cst_359 {dimension_numbers = #tpu.dot_dimension_numbers<[1], [0], [0], [1], [0, 0, 1, 1], [], []>} : vector<64x8xf32>, vector<8x8xf32>, vector<64x8xf32> -> vector<64x8xf32>
    %292 = arith.addf %286, %291 : vector<64x8xf32>
    %c0_360 = arith.constant 0 : index
    %c1_361 = arith.constant 1 : index
    %c1_362 = arith.constant 1 : index
    %c8_363 = arith.constant 8 : index
    %293 = vector.load %arg9[%c0_360, %c1_361, %c1_362, %c8_363] : memref<1x10x10x32xf32, #tpu.memory_space<vmem>>, vector<1x8x8x8xf32>
    %294 = vector.shape_cast %293 : vector<1x8x8x8xf32> to vector<64x8xf32>
    %c1_364 = arith.constant 1 : index
    %c0_365 = arith.constant 0 : index
    %c0_366 = arith.constant 0 : index
    %295 = vector.load %arg4[%c1_364, %c0_365, %c0_366] : memref<9x8x8xf32, #tpu.memory_space<vmem>>, vector<1x8x8xf32>
    %296 = vector.shape_cast %295 : vector<1x8x8xf32> to vector<8x8xf32>
    %cst_367 = arith.constant dense<0.000000e+00> : vector<64x8xf32>
    %297 = tpu.matmul %294, %296, %cst_367 {dimension_numbers = #tpu.dot_dimension_numbers<[1], [0], [0], [1], [0, 0, 1, 1], [], []>} : vector<64x8xf32>, vector<8x8xf32>, vector<64x8xf32> -> vector<64x8xf32>
    %298 = arith.addf %292, %297 : vector<64x8xf32>
    %c0_368 = arith.constant 0 : index
    %c1_369 = arith.constant 1 : index
    %c2_370 = arith.constant 2 : index
    %c0_371 = arith.constant 0 : index
    %299 = vector.load %arg9[%c0_368, %c1_369, %c2_370, %c0_371] : memref<1x10x10x32xf32, #tpu.memory_space<vmem>>, vector<1x8x8x8xf32>
    %300 = vector.shape_cast %299 : vector<1x8x8x8xf32> to vector<64x8xf32>
    %c2_372 = arith.constant 2 : index
    %c0_373 = arith.constant 0 : index
    %c0_374 = arith.constant 0 : index
    %301 = vector.load %arg4[%c2_372, %c0_373, %c0_374] : memref<9x8x8xf32, #tpu.memory_space<vmem>>, vector<1x8x8xf32>
    %302 = vector.shape_cast %301 : vector<1x8x8xf32> to vector<8x8xf32>
    %cst_375 = arith.constant dense<0.000000e+00> : vector<64x8xf32>
    %303 = tpu.matmul %300, %302, %cst_375 {dimension_numbers = #tpu.dot_dimension_numbers<[1], [0], [0], [1], [0, 0, 1, 1], [], []>} : vector<64x8xf32>, vector<8x8xf32>, vector<64x8xf32> -> vector<64x8xf32>
    %304 = arith.addf %298, %303 : vector<64x8xf32>
    %c0_376 = arith.constant 0 : index
    %c1_377 = arith.constant 1 : index
    %c1_378 = arith.constant 1 : index
    %c16_379 = arith.constant 16 : index
    %305 = vector.load %arg9[%c0_376, %c1_377, %c1_378, %c16_379] : memref<1x10x10x32xf32, #tpu.memory_space<vmem>>, vector<1x8x8x8xf32>
    %306 = vector.shape_cast %305 : vector<1x8x8x8xf32> to vector<64x8xf32>
    %c3_380 = arith.constant 3 : index
    %c0_381 = arith.constant 0 : index
    %c0_382 = arith.constant 0 : index
    %307 = vector.load %arg4[%c3_380, %c0_381, %c0_382] : memref<9x8x8xf32, #tpu.memory_space<vmem>>, vector<1x8x8xf32>
    %308 = vector.shape_cast %307 : vector<1x8x8xf32> to vector<8x8xf32>
    %cst_383 = arith.constant dense<0.000000e+00> : vector<64x8xf32>
    %309 = tpu.matmul %306, %308, %cst_383 {dimension_numbers = #tpu.dot_dimension_numbers<[1], [0], [0], [1], [0, 0, 1, 1], [], []>} : vector<64x8xf32>, vector<8x8xf32>, vector<64x8xf32> -> vector<64x8xf32>
    %310 = arith.addf %304, %309 : vector<64x8xf32>
    %c0_384 = arith.constant 0 : index
    %c1_385 = arith.constant 1 : index
    %c1_386 = arith.constant 1 : index
    %c24_387 = arith.constant 24 : index
    %311 = vector.load %arg9[%c0_384, %c1_385, %c1_386, %c24_387] : memref<1x10x10x32xf32, #tpu.memory_space<vmem>>, vector<1x8x8x8xf32>
    %312 = vector.shape_cast %311 : vector<1x8x8x8xf32> to vector<64x8xf32>
    %c4_388 = arith.constant 4 : index
    %c0_389 = arith.constant 0 : index
    %c0_390 = arith.constant 0 : index
    %313 = vector.load %arg4[%c4_388, %c0_389, %c0_390] : memref<9x8x8xf32, #tpu.memory_space<vmem>>, vector<1x8x8xf32>
    %314 = vector.shape_cast %313 : vector<1x8x8xf32> to vector<8x8xf32>
    %cst_391 = arith.constant dense<0.000000e+00> : vector<64x8xf32>
    %315 = tpu.matmul %312, %314, %cst_391 {dimension_numbers = #tpu.dot_dimension_numbers<[1], [0], [0], [1], [0, 0, 1, 1], [], []>} : vector<64x8xf32>, vector<8x8xf32>, vector<64x8xf32> -> vector<64x8xf32>
    %316 = arith.addf %310, %315 : vector<64x8xf32>
    %c0_392 = arith.constant 0 : index
    %c1_393 = arith.constant 1 : index
    %c2_394 = arith.constant 2 : index
    %c16_395 = arith.constant 16 : index
    %317 = vector.load %arg9[%c0_392, %c1_393, %c2_394, %c16_395] : memref<1x10x10x32xf32, #tpu.memory_space<vmem>>, vector<1x8x8x8xf32>
    %318 = vector.shape_cast %317 : vector<1x8x8x8xf32> to vector<64x8xf32>
    %c5_396 = arith.constant 5 : index
    %c0_397 = arith.constant 0 : index
    %c0_398 = arith.constant 0 : index
    %319 = vector.load %arg4[%c5_396, %c0_397, %c0_398] : memref<9x8x8xf32, #tpu.memory_space<vmem>>, vector<1x8x8xf32>
    %320 = vector.shape_cast %319 : vector<1x8x8xf32> to vector<8x8xf32>
    %cst_399 = arith.constant dense<0.000000e+00> : vector<64x8xf32>
    %321 = tpu.matmul %318, %320, %cst_399 {dimension_numbers = #tpu.dot_dimension_numbers<[1], [0], [0], [1], [0, 0, 1, 1], [], []>} : vector<64x8xf32>, vector<8x8xf32>, vector<64x8xf32> -> vector<64x8xf32>
    %322 = arith.addf %316, %321 : vector<64x8xf32>
    %c0_400 = arith.constant 0 : index
    %c2_401 = arith.constant 2 : index
    %c1_402 = arith.constant 1 : index
    %c0_403 = arith.constant 0 : index
    %323 = vector.load %arg9[%c0_400, %c2_401, %c1_402, %c0_403] : memref<1x10x10x32xf32, #tpu.memory_space<vmem>>, vector<1x8x8x8xf32>
    %324 = vector.shape_cast %323 : vector<1x8x8x8xf32> to vector<64x8xf32>
    %c6_404 = arith.constant 6 : index
    %c0_405 = arith.constant 0 : index
    %c0_406 = arith.constant 0 : index
    %325 = vector.load %arg4[%c6_404, %c0_405, %c0_406] : memref<9x8x8xf32, #tpu.memory_space<vmem>>, vector<1x8x8xf32>
    %326 = vector.shape_cast %325 : vector<1x8x8xf32> to vector<8x8xf32>
    %cst_407 = arith.constant dense<0.000000e+00> : vector<64x8xf32>
    %327 = tpu.matmul %324, %326, %cst_407 {dimension_numbers = #tpu.dot_dimension_numbers<[1], [0], [0], [1], [0, 0, 1, 1], [], []>} : vector<64x8xf32>, vector<8x8xf32>, vector<64x8xf32> -> vector<64x8xf32>
    %328 = arith.addf %322, %327 : vector<64x8xf32>
    %c0_408 = arith.constant 0 : index
    %c2_409 = arith.constant 2 : index
    %c1_410 = arith.constant 1 : index
    %c8_411 = arith.constant 8 : index
    %329 = vector.load %arg9[%c0_408, %c2_409, %c1_410, %c8_411] : memref<1x10x10x32xf32, #tpu.memory_space<vmem>>, vector<1x8x8x8xf32>
    %330 = vector.shape_cast %329 : vector<1x8x8x8xf32> to vector<64x8xf32>
    %c7_412 = arith.constant 7 : index
    %c0_413 = arith.constant 0 : index
    %c0_414 = arith.constant 0 : index
    %331 = vector.load %arg4[%c7_412, %c0_413, %c0_414] : memref<9x8x8xf32, #tpu.memory_space<vmem>>, vector<1x8x8xf32>
    %332 = vector.shape_cast %331 : vector<1x8x8xf32> to vector<8x8xf32>
    %cst_415 = arith.constant dense<0.000000e+00> : vector<64x8xf32>
    %333 = tpu.matmul %330, %332, %cst_415 {dimension_numbers = #tpu.dot_dimension_numbers<[1], [0], [0], [1], [0, 0, 1, 1], [], []>} : vector<64x8xf32>, vector<8x8xf32>, vector<64x8xf32> -> vector<64x8xf32>
    %334 = arith.addf %328, %333 : vector<64x8xf32>
    %c0_416 = arith.constant 0 : index
    %c2_417 = arith.constant 2 : index
    %c2_418 = arith.constant 2 : index
    %c0_419 = arith.constant 0 : index
    %335 = vector.load %arg9[%c0_416, %c2_417, %c2_418, %c0_419] : memref<1x10x10x32xf32, #tpu.memory_space<vmem>>, vector<1x8x8x8xf32>
    %336 = vector.shape_cast %335 : vector<1x8x8x8xf32> to vector<64x8xf32>
    %c8_420 = arith.constant 8 : index
    %c0_421 = arith.constant 0 : index
    %c0_422 = arith.constant 0 : index
    %337 = vector.load %arg4[%c8_420, %c0_421, %c0_422] : memref<9x8x8xf32, #tpu.memory_space<vmem>>, vector<1x8x8xf32>
    %338 = vector.shape_cast %337 : vector<1x8x8xf32> to vector<8x8xf32>
    %cst_423 = arith.constant dense<0.000000e+00> : vector<64x8xf32>
    %339 = tpu.matmul %336, %338, %cst_423 {dimension_numbers = #tpu.dot_dimension_numbers<[1], [0], [0], [1], [0, 0, 1, 1], [], []>} : vector<64x8xf32>, vector<8x8xf32>, vector<64x8xf32> -> vector<64x8xf32>
    %340 = arith.addf %334, %339 : vector<64x8xf32>
    %341 = tpu.concatenate %175, %230, %285, %340 in 1 : vector<64x8xf32>, vector<64x8xf32>, vector<64x8xf32>, vector<64x8xf32> -> vector<64x32xf32>
    %c0_424 = arith.constant 0 : index
    %c0_425 = arith.constant 0 : index
    %342 = vector.load %arg5[%c0_424, %c0_425] : memref<64x9xf32, #tpu.memory_space<vmem>>, vector<64x9xf32>
    %c0_426 = arith.constant 0 : index
    %c0_427 = arith.constant 0 : index
    %343 = vector.load %arg7[%c0_426, %c0_427] : memref<9x32xf32, #tpu.memory_space<vmem>>, vector<9x32xf32>
    %cst_428 = arith.constant dense<0.000000e+00> : vector<64x32xf32>
    %344 = tpu.matmul %342, %343, %cst_428 {dimension_numbers = #tpu.dot_dimension_numbers<[1], [0], [0], [1], [0, 0, 1, 1], [], []>} : vector<64x9xf32>, vector<9x32xf32>, vector<64x32xf32> -> vector<64x32xf32>
    %345 = vector.shape_cast %341 : vector<64x32xf32> to vector<1x64x32xf32>
    %346 = vector.shape_cast %344 : vector<64x32xf32> to vector<1x64x32xf32>
    %347 = arith.addf %345, %346 : vector<1x64x32xf32>
    %cst_429 = arith.constant 0.000000e+00 : f32
    %348 = vector.broadcast %cst_429 : f32 to vector<1x64x32xf32>
    %349 = arith.cmpf oge, %347, %348 : vector<1x64x32xf32>
    %cst_430 = arith.constant 2.000000e-01 : f32
    %350 = vector.broadcast %cst_430 : f32 to vector<1x64x32xf32>
    %351 = arith.mulf %350, %347 : vector<1x64x32xf32>
    %352 = arith.select %349, %347, %351 : vector<1x64x32xi1>, vector<1x64x32xf32>
    %cst_431 = arith.constant 1.000000e+00 : f32
    %353 = vector.broadcast %cst_431 : f32 to vector<1x64x32xf32>
    %354 = arith.mulf %352, %353 : vector<1x64x32xf32>
    %cst_432 = arith.constant -181.019333 : f32
    %cst_433 = arith.constant 181.019333 : f32
    %355 = vector.broadcast %cst_432 : f32 to vector<1x64x32xf32>
    %356 = arith.maximumf %355, %354 : vector<1x64x32xf32>
    %357 = vector.broadcast %cst_433 : f32 to vector<1x64x32xf32>
    %358 = arith.minimumf %357, %356 : vector<1x64x32xf32>
    %359 = vector.shape_cast %110 : vector<64x32xf32> to vector<1x64x32xf32>
    %360 = arith.addf %358, %359 : vector<1x64x32xf32>
    %c0_434 = arith.constant 0 : index
    %c0_435 = arith.constant 0 : index
    %c0_436 = arith.constant 0 : index
    %361 = vector.load %arg8[%c0_434, %c0_435, %c0_436] : memref<1x64x32xf32, #tpu.memory_space<vmem>>, vector<1x64x32xf32>
    tpu.vector_store %arg8[%c0_434, %c0_435, %c0_436], %360 {strides = array<i32>} : memref<1x64x32xf32, #tpu.memory_space<vmem>>, vector<1x64x32xf32>,
    return
  }
  func.func @transform_0(%arg0: i32) -> (i32, i32, i32, i32) {
    %c0_i32 = arith.constant 0 : i32
    %c0_i32_0 = arith.constant 0 : i32
    %c0_i32_1 = arith.constant 0 : i32
    %c0_i32_2 = arith.constant 0 : i32
    return %arg0, %c0_i32, %c0_i32_0, %c0_i32_1 : i32, i32, i32, i32
  }
  func.func @transform_1(%arg0: i32) -> (i32, i32, i32) {
    %c0_i32 = arith.constant 0 : i32
    %c0_i32_0 = arith.constant 0 : i32
    %c0_i32_1 = arith.constant 0 : i32
    %c0_i32_2 = arith.constant 0 : i32
    return %c0_i32, %c0_i32_0, %c0_i32_1 : i32, i32, i32
  }
  func.func @transform_2(%arg0: i32) -> (i32, i32, i32) {
    %c0_i32 = arith.constant 0 : i32
    %c0_i32_0 = arith.constant 0 : i32
    %c0_i32_1 = arith.constant 0 : i32
    %c0_i32_2 = arith.constant 0 : i32
    return %c0_i32, %c0_i32_0, %c0_i32_1 : i32, i32, i32
  }
  func.func @transform_3(%arg0: i32) -> (i32, i32, i32) {
    %c0_i32 = arith.constant 0 : i32
    %c0_i32_0 = arith.constant 0 : i32
    %c0_i32_1 = arith.constant 0 : i32
    %c0_i32_2 = arith.constant 0 : i32
    return %c0_i32, %c0_i32_0, %c0_i32_1 : i32, i32, i32
  }
  func.func @transform_4(%arg0: i32) -> (i32, i32) {
    %c0_i32 = arith.constant 0 : i32
    %c0_i32_0 = arith.constant 0 : i32
    %c0_i32_1 = arith.constant 0 : i32
    return %c0_i32, %c0_i32_0 : i32, i32
  }
  func.func @transform_5(%arg0: i32) -> (i32, i32) {
    %c0_i32 = arith.constant 0 : i32
    %c0_i32_0 = arith.constant 0 : i32
    %c0_i32_1 = arith.constant 0 : i32
    return %c0_i32, %c0_i32_0 : i32, i32
  }
  func.func @transform_6(%arg0: i32) -> (i32, i32) {
    %c0_i32 = arith.constant 0 : i32
    %c0_i32_0 = arith.constant 0 : i32
    %c0_i32_1 = arith.constant 0 : i32
    return %c0_i32, %c0_i32_0 : i32, i32
  }
  func.func @transform_7(%arg0: i32) -> (i32, i32, i32) {
    %c0_i32 = arith.constant 0 : i32
    %c0_i32_0 = arith.constant 0 : i32
    %c0_i32_1 = arith.constant 0 : i32
    return %arg0, %c0_i32, %c0_i32_0 : i32, i32, i32
  }
}

</mosaic_0001>

<bundles_post_ra>
// kernel: tpu_custom_call.1
= control target key start
LH: loop header
LB: loop body
LE: loop exit
PB: predicated region body
PF: predicated region fallthrough
CT: control target
= control target key end

     0   :  { %s12672_s0 = inlined_call_operand.hbm [shape: f32[2,10,10,4], index: 0, kind: input, shape index: {}]   ;;  %s12673_s1 = inlined_call_operand.hbm [shape: f32[9,4,32], index: 1, kind: input, shape index: {}]   ;;  %s12674_s2 = inlined_call_operand.hbm [shape: f32[9,4,32], index: 2, kind: input, shape index: {}]   ;;  %s12675_s3 = inlined_call_operand.hbm [shape: f32[9,8,8], index: 3, kind: input, shape index: {}]   ;;  %s12676_s4 = inlined_call_operand.hbm [shape: f32[64,9], index: 4, kind: input, shape index: {}]   ;;  %s12677_s5 = inlined_call_operand.hbm [shape: f32[9,32], index: 5, kind: input, shape index: {}]   ;;  %s12678_s6 = inlined_call_operand.hbm [shape: f32[9,32], index: 6, kind: input, shape index: {}]   ;;  %s12679_s7 = inlined_call_operand.hbm [shape: f32[2,64,32], index: 7, kind: output, shape index: {}]  }
   0x1   :  { %12703 = sst [smem:[#allocation39_spill]] %s12673_s1 }
   0x2   :  { %12 = vsyncpa [#allocation4], 0 }
   0x3   :  { %14 = vsyncpa [#allocation4 + $0x1], 0 }
   0x4   :  { %15 = vsyncpa [#allocation7], 0 }
   0x5   :  { %16 = vsyncpa [#allocation10], 0 }
   0x6   :  { %17 = vsyncpa [#allocation13], 0 }
   0x7   :  { %18 = vsyncpa [#allocation5], 0 }
   0x8   :  { %20 = vsyncpa [#allocation5 + $0x1], 0  ;;  %s10816_s24 = smov 0   ;;  %s10818_s25 = smov 0  }
   0x9   :  { %s10820_s26 = smov 0   ;;  %s10822_s27 = smov 0  }
   0xa LB: > { %s10755_s28 = smov [#allocation6]   ;;  %s10837_s30 = sadd.s32 4294967295, %s10753_s27   ;;  %s10753_s27 = sphi %s10822_s27, %s12768_s27   ;;  %s10749_s26 = sphi %s10820_s26, %s12767_s26   ;;  %s10745_s25 = sphi %s10818_s25, %s12766_s25   ;;  %s10741_s24 = sphi %s10816_s24, %s12765_s24  }
   0xb   : > { %s221_s29 = sshll.u32 %s10755_s28, 4  ;;  %p8095_p0 = scmp.ge.s32.totalorder %s10753_s27, 1  ;;  %s10842_s29 = int_to_ptr.vmem [resolvable:$true] %s221_s29 }
   0xc   : > { %p12680_p1 = scmp.eq.s32.totalorder %s10837_s30, 0  ;;  %p209_p2 = scmp.lt.s32.totalorder %s10753_s27, 3 }
   0xd   : > { %s10756_s9 = smov [#allocation9]   ;;  %s10757_s12 = smov [#allocation12]  }
   0xe   : > { %p10844_p3 = pnand %p8095_p0, %p209_p2  ;;  %s247_s10 = sshll.u32 %s10756_s9, 4  ;;  %s10857_s10 = int_to_ptr.vmem [resolvable:$true] %s247_s10 }
   0xf   : > { %s10859_s13 = sshll.u32 %s10757_s12, 4  ;;  %s12706_s1 = sld [smem:[#allocation39_spill]]  ;;  %s274_s13 = int_to_ptr.vmem [resolvable:$true] %s10859_s13 }
  0x10   : > { %s12704_s8 = scalar_select %p10844_p3, 1, 0 }
  0x11   : > { %p10379_p5 = pneg %p10844_p3 }
  0x13   : > { %p10853_p6 = pnand %p10379_p5, %p12680_p1 }
  0x15   : > { %s10477_s16 = scalar_lea.hbm %s12706_s1, 576  ;;  %p10869_p8 = pneg %p10853_p6 }
  0x16   : > { %p10478_p7 = scmp.ne.s32.totalorder %s12706_s1, %s10477_s16  ;;  %p10484_p11 = scmp.lt.u32.totalorder %s10477_s16, %s12706_s1 }
  0x18   : > { %p10480_p9 = pnand %p10869_p8, %p10478_p7 }
  0x1a   : > { %p10481_p10 = pneg %p10480_p9 }
  0x1c   : > { %p10486_p12 = pnand %p10484_p11, %p10481_p10 }
  0x1e   : > { %10489 = shalt.err (!%p10486_p12)
}
  0x1f   : > { %s10490_s22 = scalar_lea.vmem %s10842_s29, 576  ;;  %p10498_p5 = scmp.lt.s32.totalorder %s10842_s29, %s10842_s29 }
  0x20   : > { %p10491_p13 = scmp.ne.s32.totalorder %s10842_s29, %s10490_s22  ;;  %p10499_p4 = scmp.lt.s32.totalorder %s10490_s22, %s10490_s22 }
  0x22   : > { %p10493_p0 = pnand %p10491_p13, %p10869_p8  ;;  %p10500_p7 = por %p10499_p4, %p10498_p5 }
  0x24   : > { %p10494_p2 = pneg %p10493_p0 }
  0x26   : > { %p10501_p9 = pnand %p10500_p7, %p10494_p2 }
  0x28   : > { %10504 = shalt.err (!%p10501_p9)
}
  0x29   : > { %s12682_s23 = smov 64   ;;  %s12683_s28 = smov 4  }
  0x2a   : > { %10382 = dma.hbm_to_vmem [thread:$0]  (!%p10853_p6), %s12706_s1, 576, %s10842_s29, [#allocation7], %s12682_s23, %s12682_s23, %s12683_s28  }
  0x2b   : > { %s10505_s16 = scalar_lea.hbm %s12675_s3, 1152 }
  0x2c   : > { %p10506_p4 = scmp.ne.s32.totalorder %s12675_s3, %s10505_s16  ;;  %p10512_p12 = scmp.lt.u32.totalorder %s10505_s16, %s12675_s3 }
  0x2e   : > { %p10508_p10 = pnand %p10506_p4, %p10869_p8 }
  0x30   : > { %p10509_p11 = pneg %p10508_p10 }
  0x32   : > { %p10514_p13 = pnand %p10512_p12, %p10509_p11 }
  0x34   : > { %10517 = shalt.err (!%p10514_p13)
}
  0x35   : > { %s10518_s29 = scalar_lea.vmem %s10857_s10, 1152  ;;  %p10526_p7 = scmp.lt.s32.totalorder %s10857_s10, %s10857_s10 }
  0x36   : > { %p10519_p0 = scmp.ne.s32.totalorder %s10857_s10, %s10518_s29  ;;  %p10527_p9 = scmp.lt.s32.totalorder %s10518_s29, %s10518_s29 }
  0x38   : > { %p10521_p2 = pnand %p10519_p0, %p10869_p8  ;;  %p10528_p4 = por %p10527_p9, %p10526_p7 }
  0x3a   : > { %p10522_p5 = pneg %p10521_p2 }
  0x3c   : > { %p10529_p10 = pnand %p10528_p4, %p10522_p5 }
  0x3e   : > { %10532 = shalt.err (!%p10529_p10)
}
  0x3f   : > { %s12684_s22 = smov 128   ;;  %s12685_s9 = smov 8  }
  0x40   : > { %10388 = dma.hbm_to_vmem [thread:$0]  (!%p10853_p6), %s12675_s3, 1152, %s10857_s10, [#allocation10], %s12684_s22, %s12684_s22, %s12685_s9  }
  0x41   : > { %s10533_s17 = scalar_lea.hbm %s12677_s5, 256 }
  0x42   : > { %p10534_p11 = scmp.ne.s32.totalorder %s12677_s5, %s10533_s17  ;;  %p10540_p0 = scmp.lt.u32.totalorder %s10533_s17, %s12677_s5 }
  0x44   : > { %p10536_p12 = pnand %p10534_p11, %p10869_p8 }
  0x46   : > { %p10537_p13 = pneg %p10536_p12 }
  0x48   : > { %p10542_p2 = pnand %p10540_p0, %p10537_p13 }
  0x4a   : > { %10545 = shalt.err (!%p10542_p2)
}
  0x4b   : > { %s10546_s12 = scalar_lea.vmem %s274_s13, 256  ;;  %p10554_p4 = scmp.lt.s32.totalorder %s274_s13, %s274_s13 }
  0x4c   : > { %p10547_p5 = scmp.ne.s32.totalorder %s274_s13, %s10546_s12  ;;  %p10555_p10 = scmp.lt.s32.totalorder %s10546_s12, %s10546_s12 }
  0x4e   : > { %p10549_p7 = pnand %p10547_p5, %p10869_p8  ;;  %p10556_p1 = por %p10555_p10, %p10554_p4 }
  0x50   : > { %p10550_p9 = pneg %p10549_p7 }
  0x52   : > { %p10557_p3 = pnand %p10556_p1, %p10550_p9 }
  0x54   : > { %10560 = shalt.err (!%p10557_p3)
}
  0x55   : > { %10394 = dma.hbm_to_vmem [thread:$0]  (!%p10853_p6), %s12677_s5, 256, %s274_s13, [#allocation13], %s12684_s22, %s12684_s22, %s12685_s9  }
  0x56   : > { %s10762_s15 = smov [#allocation8]   ;;  %s10763_s17 = smov [#allocation11]  }
  0x57   : > { %s234_s16 = sshll.u32 %s10762_s15, 4  ;;  %s260_s18 = sshll.u32 %s10763_s17, 4  ;;  %s235_s16 = int_to_ptr.vmem [resolvable:$true] %s234_s16  ;;  %s261_s18 = int_to_ptr.vmem [resolvable:$true] %s260_s18 }
  0x58   : > { %s10561_s29 = scalar_lea.hbm %s12674_s2, 576 }
  0x59   : > { %p10562_p1 = scmp.ne.s32.totalorder %s12674_s2, %s10561_s29  ;;  %p10568_p12 = scmp.lt.u32.totalorder %s10561_s29, %s12674_s2 }
  0x5b   : > { %p10564_p3 = pnand %p10562_p1, %p10869_p8 }
  0x5d   : > { %p10565_p11 = pneg %p10564_p3 }
  0x5f   : > { %p10570_p13 = pnand %p10568_p12, %p10565_p11 }
  0x61   : > { %10573 = shalt.err (!%p10570_p13)
}
  0x62   : > { %s10574_s13 = scalar_lea.vmem %s235_s16, 576  ;;  %p10582_p7 = scmp.lt.s32.totalorder %s235_s16, %s235_s16 }
  0x63   : > { %p10575_p0 = scmp.ne.s32.totalorder %s235_s16, %s10574_s13  ;;  %p10583_p9 = scmp.lt.s32.totalorder %s10574_s13, %s10574_s13 }
  0x65   : > { %p10577_p2 = pnand %p10575_p0, %p10869_p8  ;;  %p10584_p4 = por %p10583_p9, %p10582_p7 }
  0x67   : > { %p10578_p5 = pneg %p10577_p2 }
  0x69   : > { %p10585_p10 = pnand %p10584_p4, %p10578_p5 }
  0x6b   : > { %10588 = shalt.err (!%p10585_p10)
}
  0x6c   : > { %s12708_s23 = smov 4   ;;  %s12709_s14 = smov 64  }
  0x6d   : > { %10385 = dma.hbm_to_vmem [thread:$0]  (!%p10853_p6), %s12674_s2, 576, %s235_s16, [#allocation7], %s12709_s14, %s12709_s14, %s12708_s23  }
  0x6e   : > { %s10589_s21 = scalar_lea.hbm %s12676_s4, 1024 }
  0x6f   : > { %p10590_p1 = scmp.ne.s32.totalorder %s12676_s4, %s10589_s21  ;;  %p10596_p12 = scmp.lt.u32.totalorder %s10589_s21, %s12676_s4 }
  0x71   : > { %p10592_p3 = pnand %p10590_p1, %p10869_p8 }
  0x73   : > { %p10593_p11 = pneg %p10592_p3 }
  0x75   : > { %p10598_p13 = pnand %p10596_p12, %p10593_p11 }
  0x77   : > { %10601 = shalt.err (!%p10598_p13)
}
  0x78   : > { %s10602_s28 = scalar_lea.vmem %s261_s18, 1024  ;;  %p10610_p7 = scmp.lt.s32.totalorder %s261_s18, %s261_s18 }
  0x79   : > { %p10603_p0 = scmp.ne.s32.totalorder %s261_s18, %s10602_s28  ;;  %p10611_p9 = scmp.lt.s32.totalorder %s10602_s28, %s10602_s28 }
  0x7b   : > { %p10605_p2 = pnand %p10603_p0, %p10869_p8  ;;  %p10612_p4 = por %p10611_p9, %p10610_p7 }
  0x7d   : > { %p10606_p5 = pneg %p10605_p2 }
  0x7f   : > { %p10613_p10 = pnand %p10612_p4, %p10606_p5 }
  0x81   : > { %10616 = shalt.err (!%p10613_p10)
}
  0x82   : > { %10391 = dma.hbm_to_vmem [thread:$0]  (!%p10853_p6), %s12676_s4, 1024, %s261_s18, [#allocation10], %s12684_s22, %s12684_s22, %s12685_s9  }
  0x83   : > { %s10764_s14 = smov [#allocation14]   ;;  %s10617_s21 = scalar_lea.hbm %s12678_s6, 256 }
  0x84   : > { %s286_s15 = sshll.u32 %s10764_s14, 4  ;;  %p10618_p1 = scmp.ne.s32.totalorder %s12678_s6, %s10617_s21  ;;  %s287_s15 = int_to_ptr.vmem [resolvable:$true] %s286_s15 }
  0x85   : > { %p10624_p12 = scmp.lt.u32.totalorder %s10617_s21, %s12678_s6 }
  0x86   : > { %p10620_p3 = pnand %p10618_p1, %p10869_p8 }
  0x88   : > { %p10621_p11 = pneg %p10620_p3 }
  0x8a   : > { %p10626_p13 = pnand %p10624_p12, %p10621_p11 }
  0x8c   : > { %10629 = shalt.err (!%p10626_p13)
}
  0x8d   : > { %s10630_s18 = scalar_lea.vmem %s287_s15, 256  ;;  %p10638_p7 = scmp.lt.s32.totalorder %s287_s15, %s287_s15 }
  0x8e   : > { %p10631_p0 = scmp.ne.s32.totalorder %s287_s15, %s10630_s18  ;;  %p10639_p9 = scmp.lt.s32.totalorder %s10630_s18, %s10630_s18 }
  0x90   : > { %p10633_p2 = pnand %p10631_p0, %p10869_p8  ;;  %p10640_p4 = por %p10639_p9, %p10638_p7 }
  0x92   : > { %p10634_p5 = pneg %p10633_p2 }
  0x94   : > { %p10641_p10 = pnand %p10640_p4, %p10634_p5 }
  0x96   : > { %10644 = shalt.err (!%p10641_p10)
}
  0x97   : > { %10397 = dma.hbm_to_vmem [thread:$0]  (!%p10853_p6), %s12678_s6, 256, %s287_s15, [#allocation13], %s12684_s22, %s12684_s22, %s12685_s9  }
  0x98   : > { %s8094_s11 = sadd.s32 4294967294, %s10753_s27   ;;  %s11006_s19 = sadd.s32 1, %s10753_s27  }
  0x99   : > { %s30_s23 = ssub.s32 %s10753_s27, %s11006_s19  ;;  %s33_s14 = sadd.s32 1, %s10749_s26 }
  0x9a   : > { %p31_p8 = scmp.eq.s32.totalorder %s30_s23, 0  ;;  %p40_p1 = scmp.ne.s32.totalorder %s10749_s26, %s10745_s25 }
  0x9b   : > { %p41_p3 = scmp.eq.s32.totalorder %s10753_s27, 0  ;;  %p46_p11 = scmp.ne.s32.totalorder %s10745_s25, %s10741_s24 }
  0x9c   : > { %s11017_s17 = scalar_select %p31_p8, %s10749_s26, %s33_s14  }
  0x9d   : > { %p42_p12 = por %p41_p3, %p40_p1  ;;  %p12710_p13 = scmp.eq.s32.totalorder %s10837_s30, 0 }
  0x9e   : > { %p196_p6 = scmp.eq.s32.totalorder %s10837_s30, 1  ;;  %p202_p2 = scmp.eq.s32.totalorder %s8094_s11, 1 }
  0x9f   : > { %p11021_p0 = por %p12710_p13, %p46_p11  ;;  %p10412_p5 = scmp.lt.s32.totalorder %s10753_s27, 2 }
  0xa0   : > { %s300_s15 = sand.u32 1, %s10749_s26   ;;  %p11028_p7 = por %p196_p6, %p40_p1 }
  0xa1   : > { %p11032_p9 = por %p202_p2, %p46_p11  ;;  %s10348_s12 = smul.u32 160, %s300_s15 }
  0xa2   : > { %s12712_s21 = scalar_select %p11028_p7, 1, 0 }
  0xa3   : > { %s12713_s29 = scalar_select %p11032_p9, 1, 0 }
  0xa4   : > { %s10349_s10 = smul.u32 2560, %s10753_s27  ;;  %p11037_p4 = pnand %p10412_p5, %p42_p12 }
  0xa5   : > { %s304_s11 = scalar_lea.vmem [#allocation3], %s10348_s12  ;;  %s11048_s14 = scalar_lea.sflag [#allocation4], %s300_s15 }
  0xa6   : > { %s11044_s16 = scalar_lea.hbm %s12672_s0, %s10349_s10  ;;  %s311_s23 = sshll.u32 %s304_s11, 4  ;;  %s11046_s23 = int_to_ptr.vmem [resolvable:$true] %s311_s23 }
  0xa7   : > { %s10645_s22 = scalar_lea.hbm %s11044_s16, 2560  ;;  %p10647_p8 = pneg %p11037_p4 }
  0xa8   : > { %p10646_p10 = scmp.ne.s32.totalorder %s11044_s16, %s10645_s22  ;;  %s10650_s28 = scalar_lea.hbm %s12672_s0, 5120 }
  0xa9   : > { %p10651_p11 = scmp.lt.u32.totalorder %s11044_s16, %s12672_s0  ;;  %p10652_p12 = scmp.lt.u32.totalorder %s10650_s28, %s10645_s22 }
  0xaa   : > { %p10648_p1 = pnand %p10647_p8, %p10646_p10  ;;  %p10654_p6 = scmp.lt.u32.totalorder %s10645_s22, %s11044_s16 }
  0xab   : > { %p10653_p13 = por %p10652_p12, %p10651_p11 }
  0xac   : > { %p10649_p3 = pneg %p10648_p1 }
  0xad   : > { %p10655_p2 = por %p10654_p6, %p10653_p13 }
  0xaf   : > { %p10656_p5 = pnand %p10655_p2, %p10649_p3 }
  0xb1   : > { %10659 = shalt.err (!%p10656_p5)
}
  0xb2   : > { %s10660_s15 = scalar_lea.vmem %s11046_s23, 2560  ;;  %s10765_s12 = smov [#allocation3]  }
  0xb3   : > { %p10661_p10 = scmp.ne.s32.totalorder %s11046_s23, %s10660_s15  ;;  %s10665_s11 = sshll.u32 %s10765_s12, 4  ;;  %s10666_s11 = int_to_ptr.vmem [resolvable:$false] %s10665_s11 }
  0xb4   : > { %s10667_s1 = scalar_lea.vmem %s10666_s11, 5120  ;;  %p10668_p7 = scmp.lt.s32.totalorder %s11046_s23, %s10666_s11 }
  0xb5   : > { %p10663_p1 = pnand %p10661_p10, %p10647_p8  ;;  %p10669_p11 = scmp.lt.s32.totalorder %s10667_s1, %s10660_s15 }
  0xb7   : > { %p10664_p9 = pneg %p10663_p1  ;;  %p10670_p12 = por %p10669_p11, %p10668_p7 }
  0xb9   : > { %p10671_p13 = pnand %p10670_p12, %p10664_p9 }
  0xbb   : > { %10674 = shalt.err (!%p10671_p13)
}
  0xbc   : > { %s12715_s22 = smov 8   ;;  %s12716_s9 = smov 128  }
  0xbd   : > { %10401 = dma.hbm_to_vmem [thread:$0]  (!%p11037_p4), %s11044_s16, 2560, %s11046_s23, %s11048_s14, %s12716_s9, %s12716_s9, %s12715_s22  }
  0xbe   : > { %p12717_p8 = scmp.ne.s32.totalorder %s12704_s8, 0 }
  0xc0   : > { %323 = sbr.rel (%p12717_p8) target bundleno = 1369 (0x559), region = 48 }
  0xc7   : > { %s11082_s10 = sand.u32 1, %s10745_s25  }
  0xc8   : > { %s10350_s18 = smul.u32 160, %s11082_s10  ;;  %s326_s28 = scalar_lea.sflag [#allocation4], %s11082_s10 }
  0xca   : > { %s11086_s15 = scalar_lea.vmem [#allocation3], %s10350_s18 }
  0xcb   : > { %10720 = dma.done.wait (%p11021_p0), %s326_s28, 2560  }
  0xcc   : > { %10722 = vsyncadd (%p11021_p0), %s326_s28, 4294964736  ;;  %p12718_p7 = scmp.eq.s32.totalorder %s10837_s30, 0 }
  0xce   : > { %10724 = dma.done.wait (%p12718_p7), [#allocation7], 1152   ;;  %p12719_p9 = pmov %p12718_p7 }
  0xcf   : > { %p12720_p4 = pmov %p12718_p7 }
  0xd0   : > { %10726 = vsyncadd (%p12719_p9), [#allocation7], 4294966144 }
  0xd1   : > { %10728 = dma.done.wait (%p12720_p4), [#allocation10], 2176   ;;  %p12721_p3 = pmov %p12720_p4 }
  0xd3   : > { %10730 = vsyncadd (%p12721_p3), [#allocation10], 4294965120  ;;  %p12722_p6 = pmov %p12721_p3 }
  0xd4   : > { %p12723_p2 = pmov %p12721_p3 }
  0xd5   : > { %10732 = dma.done.wait (%p12722_p6), [#allocation13], 512  }
  0xd6   : > { %10734 = vsyncadd (%p12723_p2), [#allocation13], 4294966784  ;;  %vm429_vm0 = vcmask 1043456   ;;  %vm404_vm1 = vcmask 31744   ;;  %v403_v0 = vld [vmem:[#allocation6 + $0x4] sm:$0xf] }
  0xd7   : > { %v394_v1 = vld [vmem:[%s11086_s15 + $0x1] sm:$0xff]  ;;  %v11106_v2 = vld [vmem:[%s11086_s15 + $0x11] sm:$0xff]  ;;  %9156 = vmatprep.subr.msk.mxu0 %vm429_vm0, %v403_v0  ;;  %v1166_v14 = vld [vmem:[#allocation6 + $0xc] sm:$0xf]  ;;  %vm2801_vm2 = vcmask 1040384   ;;  %vm10766_vm3 = vmmov 1  }
  0xd8   : > { %9158 = vmatprep.mubr.msk.f32.mxu0 %vm404_vm1, %v394_v1  ;;  %v392_v3 = vld [vmem:[#allocation6] sm:$0xf]  ;;  %9157 = vmatpush3.msk.msra.mxu0 %vm429_vm0, %v403_v0  ;;  %v11122_v5 = vld [vmem:[%s11086_s15 + $0x31] sm:$0xff]  ;;  %v897_v6 = vld [vmem:[#allocation6 + $0x8] sm:$0xf]  ;;  %v12724_v47 = vmov 0 }
  0xd9   : > { %v11111_v4 = vld [vmem:[%s11086_s15 + $0x21] sm:$0xff]  ;;  %9186 = vmatprep.mubr.msk.f32.mxu1 %vm404_vm1, %v394_v1  ;;  %9159 = vmatmul.mubr.msk.f32.vlgmr.msra.gmra.mrb[0].mxu0 %vm404_vm1, %v11106_v2  ;;  %v11133_v8 = vld [vmem:[%s11086_s15 + $0x51] sm:$0xff]  ;;  %v1039_v26 = vld [vmem:[#allocation8 + $0x8] sm:$0xf]  ;;  %vm2776_vm5 = vcmask 72704   ;;  %vm2974_vm6 = vcmask 261120  }
  0xda   : > { %9170 = vmatprep.subr.msk.mxu0 %vm429_vm0, %v392_v3  ;;  %9161 = vmatprep.mubr.msk.f32.mxu0 %vm404_vm1, %v11111_v4  ;;  %v11125_v7 = vld [vmem:[%s11086_s15 + $0x41] sm:$0xff]  ;;  %v11143_v10 = vld [vmem:[%s11086_s15 + $0x71] sm:$0xff]  ;;  %v2239_v38 = vld [vmem:[#allocation6 + $0x1c] sm:$0xf]  ;;  %vm2976_vm7 = vcmask 254976   ;;  %v10767_v60 = vmov 0.0  }
  0xdb   : > { %9171 = vmatpush3.msk.msra.mxu0 %vm429_vm0, %v392_v3  ;;  %v11136_v9 = vld [vmem:[%s11086_s15 + $0x61] sm:$0xff]  ;;  %v11150_v12 = vld [vmem:[%s11086_s15 + $0x10] sm:$0xff]  ;;  %v1971_v35 = vld [vmem:[#allocation6 + $0x18] sm:$0xf]  ;;  %2975 = vst.msk [vmem:[#allocation2] sm:$0xff] %vm2974_vm6, %v10767_v60  ;;  %vm2982_vm8 = vcmask 253952  }
  0xdc   : > { %9212 = vmatprep.subr.msk.mxu0 %vm429_vm0, %v897_v6  ;;  %v384_v11 = vld [vmem:[%s11086_s15] sm:$0xff]  ;;  %v11161_v15 = vld [vmem:[%s11086_s15 + $0x30] sm:$0xff]  ;;  %v671_v21 = vld [vmem:[#allocation8 + $0x4] sm:$0xf]  ;;  %2977 = vst.msk [vmem:[#allocation2 + $0x8] sm:$0x3] %vm2976_vm7, %v10767_v60 }
  0xdd   : > { %9162 = vmatmul.mubr.msk.f32.gmra.mrb[2].mxu0 %vm404_vm1, %v11122_v5  ;;  %v11153_v13 = vld [vmem:[%s11086_s15 + $0x20] sm:$0xff]  ;;  %v11172_v17 = vld [vmem:[%s11086_s15 + $0x50] sm:$0xff]  ;;  %9184 = vmatprep.subr.msk.mxu1 %vm429_vm0, %v671_v21  ;;  %v1844_v39 = vld [vmem:[#allocation8 + $0x14] sm:$0xf]  ;;  %2979 = vst.msk [vmem:[#allocation2 + $0x90] sm:$0xff] %vm2974_vm6, %v10767_v60  ;;  %s10768_s8 = smov 112  }
  0xde   : > { %9164 = vmatprep.mubr.msk.f32.mxu0 %vm404_vm1, %v11125_v7  ;;  %v11164_v16 = vld [vmem:[%s11086_s15 + $0x40] sm:$0xff]  ;;  %v11182_v19 = vld [vmem:[%s11086_s15 + $0x70] sm:$0xff]  ;;  %9185 = vmatpush3.msk.msra.mxu1 %vm429_vm0, %v671_v21  ;;  %v2113_v42 = vld [vmem:[#allocation8 + $0x18] sm:$0xf]  ;;  %2980 = vst.msk [vmem:[#allocation2 + $0x98] sm:$0x3] %vm2976_vm7, %v10767_v60 }
  0xdf   : > { %v11175_v18 = vld [vmem:[%s11086_s15 + $0x60] sm:$0xff]  ;;  %v11189_v23 = vld [vmem:[%s11086_s15 + $0x12] sm:$0xff]  ;;  %9187 = vmatmul.mubr.msk.f32.vlgmr.msra.gmra.mrb[0].mxu1 %vm404_vm1, %v11106_v2  ;;  %vm11399_vm4 = vmpackc.low %vm2801_vm2, %vm10766_vm3  ;;  %2983 = vst.msk [vmem:[#allocation2 + $0x10] sm:$0x1] %vm2982_vm8, %v10767_v60  ;;  %s10769_s20 = smov 104   ;;  %vm3050_vm9 = vcmask 64512  }
  0xe0   : > { %v888_v20 = vld [vmem:[%s11086_s15 + $0x2] sm:$0xff]  ;;  %v1434_v25 = vld [vmem:[#allocation6 + $0x10] sm:$0xf]  ;;  %9189 = vmatprep.mubr.msk.f32.mxu1 %vm404_vm1, %v11111_v4  ;;  %v1702_v32 = vld [vmem:[#allocation6 + $0x14] sm:$0xf]  ;;  %v12725_v47 = vsel %vm11399_vm4, 4294967295, %v12724_v47 }
  0xe1   : > { %9165 = vmatmul.mubr.msk.f32.gmra.mrb[4].mxu0 %vm404_vm1, %v11133_v8  ;;  %v393_v22 = vld [vmem:[#allocation8] sm:$0xf]  ;;  %v11207_v27 = vld [vmem:[%s11086_s15 + $0x32] sm:$0xff]  ;;  %v2507_v41 = vld [vmem:[#allocation6 + $0x20] sm:$0xf]  ;;  %12726 = vst [vmem:[#allocation21_spill] sm:$0xff] %v12725_v47 }
  0xe2   : > { %9167 = vmatprep.mubr.msk.f32.mxu0 %vm404_vm1, %v11136_v9  ;;  %v11193_v24 = vld [vmem:[%s11086_s15 + $0x22] sm:$0xff]  ;;  %9198 = vmatprep.subr.msk.mxu1 %vm429_vm0, %v393_v22  ;;  %v11224_v29 = vld [vmem:[%s11086_s15 + $0x52] sm:$0xff]  ;;  %2984 = vst.msk [vmem:[#allocation2 + $0x20] sm:$0x1] %vm2982_vm8, %v10767_v60  ;;  %2985 = vst.msk [vmem:[#allocation2 + $0x30] sm:$0x1] %vm2982_vm8, %v10767_v60 }
  0xe3   : > { %v11210_v28 = vld [vmem:[%s11086_s15 + $0x42] sm:$0xff]  ;;  %9199 = vmatpush3.msk.msra.mxu1 %vm429_vm0, %v393_v22  ;;  %v11238_v31 = vld [vmem:[%s11086_s15 + $0x72] sm:$0xff]  ;;  %2986 = vst.msk [vmem:[#allocation2 + $0x40] sm:$0x1] %vm2982_vm8, %v10767_v60  ;;  %2987 = vst.msk [vmem:[#allocation2 + $0x50] sm:$0x1] %vm2982_vm8, %v10767_v60 }
  0xe4   : > { %9190 = vmatmul.mubr.msk.f32.gmra.mrb[2].mxu1 %vm404_vm1, %v11122_v5  ;;  %9226 = vmatprep.subr.msk.mxu1 %vm429_vm0, %v1039_v26  ;;  %v11227_v30 = vld [vmem:[%s11086_s15 + $0x62] sm:$0xff]  ;;  %v1308_v33 = vld [vmem:[#allocation8 + $0xc] sm:$0xf]  ;;  %v1576_v36 = vld [vmem:[#allocation8 + $0x10] sm:$0xf]  ;;  %s10770_s13 = smov 120  }
  0xe5   : > { %9168 = vmatmul.mubr.msk.f32.gmra.mrb[6].mxu0 %vm404_vm1, %v11143_v10  ;;  %9192 = vmatprep.mubr.msk.f32.mxu1 %vm404_vm1, %v11125_v7  ;;  %v11276_v34 = vld [vmem:[%s11086_s15 + $0x80] sm:$0xff]  ;;  %v8251_v43 = vld [vmem:[%s11086_s15 + $0x90] sm:$0xff]  ;;  %v2775_v45 = vld [vmem:[#allocation12 + $0x8] sm:$0x1]  ;;  %2988 = vst.msk [vmem:[#allocation2 + $0x60] sm:$0x1] %vm2982_vm8, %v10767_v60 }
  0xe6   : > { %9172 = vmatprep.mubr.msk.f32.mxu0 %vm404_vm1, %v384_v11  ;;  %v11314_v37 = vld [vmem:[%s11086_s15 + $0x81] sm:$0xff]  ;;  %v2774_v44 = vld [vmem:[#allocation12] sm:$0xff]  ;;  %v2767_v53 = vld [vmem:[#allocation11 + $0x8] sm:$0xff]  ;;  %2989 = vst.msk [vmem:[#allocation2 + $0x70] sm:$0x1] %vm2982_vm8, %v10767_v60  ;;  %s10771_s16 = smov 8  }
  0xe7   : > { %v11353_v40 = vld [vmem:[%s11086_s15 + $0x82] sm:$0xff]  ;;  %v9944_v46 = vpack.c.bf16 %v2775_v45, %v2774_v44  ;;  %v8277_v49 = vld [vmem:[%s11086_s15 + $0x91] sm:$0xff]  ;;  %2990 = vst.msk [vmem:[#allocation2 + $0x80] sm:$0x1] %vm2982_vm8, %v10767_v60  ;;  %2991 = vst.msk [vmem:[#allocation2 + $0x19] sm:$0x1] %vm2982_vm8, %v10767_v60 }
  0xe8   : > { %9193 = vmatmul.mubr.msk.f32.gmra.mrb[4].mxu1 %vm404_vm1, %v11133_v8  ;;  %v2381_v48 = vld [vmem:[#allocation8 + $0x1c] sm:$0xf]  ;;  %v2649_v50 = vld [vmem:[#allocation8 + $0x20] sm:$0xf]  ;;  %v8303_v51 = vld [vmem:[%s11086_s15 + $0x92] sm:$0xff]  ;;  %s10772_s23 = smov 16  }
  0xe9   : > { %9173 = vmatmul.mubr.msk.f32.vlgmr.msra.gmra.mrb[0].mxu0 %vm404_vm1, %v11150_v12  ;;  %9195 = vmatprep.mubr.msk.f32.mxu1 %vm404_vm1, %v11136_v9  ;;  %v2766_v52 = vld [vmem:[#allocation11] sm:$0xff]  ;;  %v2768_v54 = vld [vmem:[#allocation11 + $0x10] sm:$0xff]  ;;  %v2769_v55 = vld [vmem:[#allocation11 + $0x18] sm:$0xff]  ;;  %2992 = vst.msk [vmem:[#allocation2 + $0x29] sm:$0x1] %vm2982_vm8, %v10767_v60  ;;  %s10773_s14 = smov 24  }
  0xea   : > { %9213 = vmatpush3.msk.msra.mxu0 %vm429_vm0, %v897_v6  ;;  %9175 = vmatprep.mubr.msk.f32.mxu0 %vm404_vm1, %v11153_v13  ;;  %v2770_v56 = vld [vmem:[#allocation11 + $0x20] sm:$0xff]  ;;  %v2771_v57 = vld [vmem:[#allocation11 + $0x28] sm:$0xff]  ;;  %v2772_v58 = vld [vmem:[#allocation11 + $0x30] sm:$0xff]  ;;  %2993 = vst.msk [vmem:[#allocation2 + $0x39] sm:$0x1] %vm2982_vm8, %v10767_v60  ;;  %vm7726_vm2 = vcmask 130048  }
  0xeb   : > { %9240 = vmatprep.subr.msk.mxu0 %vm429_vm0, %v1166_v14  ;;  %v2773_v59 = vld [vmem:[#allocation11 + $0x38] sm:$0xff]  ;;  %2994 = vst.msk [vmem:[#allocation2 + $0x49] sm:$0x1] %vm2982_vm8, %v10767_v60  ;;  %2995 = vst.msk [vmem:[#allocation2 + $0x59] sm:$0x1] %vm2982_vm8, %v10767_v60  ;;  %v11530_v62 = vld [vmem:[#allocation9 + $0x8] sm:$0xff] }
  0xec   : > { %9196 = vmatmul.mubr.msk.f32.gmra.mrb[6].mxu1 %vm404_vm1, %v11143_v10  ;;  %2996 = vst.msk [vmem:[#allocation2 + $0x69] sm:$0x1] %vm2982_vm8, %v10767_v60  ;;  %2997 = vst.msk [vmem:[#allocation2 + $0x79] sm:$0x1] %vm2982_vm8, %v10767_v60  ;;  %v3016_v61 = vld [vmem:[#allocation2 + $0x1] sm:$0xff]  ;;  %vm7735_vm3 = vcmask 195584  }
  0xed   : > { %9176 = vmatmul.mubr.msk.f32.gmra.mrb[2].mxu0 %vm404_vm1, %v11161_v15  ;;  %9200 = vmatprep.mubr.msk.f32.mxu1 %vm404_vm1, %v384_v11  ;;  %2998 = vst.msk [vmem:[#allocation2 + $0x89] sm:$0x1] %vm2982_vm8, %v10767_v60  ;;  %s8111_s12 = sshll.u32 %s11082_s10, 6  ;;  %s8649_s1 = sshll.u32 %s10837_s30, 10 }
  0xee   : > { %9178 = vmatprep.mubr.msk.f32.mxu0 %vm404_vm1, %v11164_v16  ;;  %3034 = vrot.lane.b32.xlu0 %v3016_v61, %s10768_s8  ;;  %s12574_s11 = scalar_lea.vmem [#allocation15], %s8111_s12  ;;  %s12621_s28 = scalar_lea.hbm %s12679_s7, %s8649_s1 }
  0xef   : > { %3319 = vrot.lane.b32.xlu1 %v3016_v61, %s10769_s20  ;;  %s7964_s22 = sshll.u32 %s12574_s11, 4  ;;  %s7951_s30 = scalar_lea.sflag [#allocation5], %s11082_s10  ;;  %s12623_s22 = int_to_ptr.vmem [resolvable:$true] %s7964_s22 }
  0xf0   : > { %9201 = vmatmul.mubr.msk.f32.vlgmr.msra.gmra.mrb[0].mxu1 %vm404_vm1, %v11150_v12  ;;  %s10675_s15 = scalar_lea.vmem %s12623_s22, 1024  ;;  %p12762_p5 = scmp.ne.s32.totalorder %s12712_s21, 0 }
  0xf1   : > { %9179 = vmatmul.mubr.msk.f32.gmra.mrb[4].mxu0 %vm404_vm1, %v11172_v17  ;;  %9203 = vmatprep.mubr.msk.f32.mxu1 %vm404_vm1, %v11153_v13  ;;  %p10676_p0 = scmp.ne.s32.totalorder %s12623_s22, %s10675_s15 }
  0xf2   : > { %9181 = vmatprep.mubr.msk.f32.mxu0 %vm404_vm1, %v11175_v18  ;;  %9227 = vmatpush3.msk.msra.mxu1 %vm429_vm0, %v1039_v26 }
  0xf3   : > { %9254 = vmatprep.subr.msk.mxu1 %vm429_vm0, %v1308_v33  ;;  %p10677_p10 = pnand %p10676_p0, %p12762_p5 }
  0xf4   : > { %9204 = vmatmul.mubr.msk.f32.gmra.mrb[2].mxu1 %vm404_vm1, %v11161_v15 }
  0xf5   : > { %9182 = vmatmul.mubr.msk.f32.gmra.mrb[6].mxu0 %vm404_vm1, %v11182_v19  ;;  %9206 = vmatprep.mubr.msk.f32.mxu1 %vm404_vm1, %v11164_v16  ;;  %p10678_p1 = pneg %p10677_p10 }
  0xf6   : > { %9214 = vmatprep.mubr.msk.f32.mxu0 %vm404_vm1, %v888_v20 }
  0xf8   : > { %9207 = vmatmul.mubr.msk.f32.gmra.mrb[4].mxu1 %vm404_vm1, %v11172_v17 }
  0xf9   : > { %9215 = vmatmul.mubr.msk.f32.vlgmr.msra.gmra.mrb[0].mxu0 %vm404_vm1, %v11189_v23  ;;  %9209 = vmatprep.mubr.msk.f32.mxu1 %vm404_vm1, %v11175_v18 }
  0xfa   : > { %9241 = vmatpush3.msk.msra.mxu0 %vm429_vm0, %v1166_v14  ;;  %9217 = vmatprep.mubr.msk.f32.mxu0 %vm404_vm1, %v11193_v24 }
  0xfb   : > { %9268 = vmatprep.subr.msk.mxu0 %vm429_vm0, %v1434_v25 }
  0xfc   : > { %9210 = vmatmul.mubr.msk.f32.gmra.mrb[6].mxu1 %vm404_vm1, %v11182_v19 }
  0xfd   : > { %9218 = vmatmul.mubr.msk.f32.gmra.mrb[2].mxu0 %vm404_vm1, %v11207_v27  ;;  %9228 = vmatprep.mubr.msk.f32.mxu1 %vm404_vm1, %v888_v20 }
  0xfe   : > { %9220 = vmatprep.mubr.msk.f32.mxu0 %vm404_vm1, %v11210_v28 }
 0x100   : > { %9229 = vmatmul.mubr.msk.f32.vlgmr.msra.gmra.mrb[0].mxu1 %vm404_vm1, %v11189_v23 }
 0x101   : > { %9221 = vmatmul.mubr.msk.f32.gmra.mrb[4].mxu0 %vm404_vm1, %v11224_v29  ;;  %9231 = vmatprep.mubr.msk.f32.mxu1 %vm404_vm1, %v11193_v24 }
 0x102   : > { %9223 = vmatprep.mubr.msk.f32.mxu0 %vm404_vm1, %v11227_v30  ;;  %9255 = vmatpush3.msk.msra.mxu1 %vm429_vm0, %v1308_v33 }
 0x103   : > { %9282 = vmatprep.subr.msk.mxu1 %vm429_vm0, %v1576_v36 }
 0x104   : > { %9232 = vmatmul.mubr.msk.f32.gmra.mrb[2].mxu1 %vm404_vm1, %v11207_v27 }
 0x105   : > { %9224 = vmatmul.mubr.msk.f32.gmra.mrb[6].mxu0 %vm404_vm1, %v11238_v31  ;;  %9234 = vmatprep.mubr.msk.f32.mxu1 %vm404_vm1, %v11210_v28 }
 0x106   : > { %9242 = vmatprep.mubr.msk.f32.mxu0 %vm404_vm1, %v11150_v12 }
 0x108   : > { %9235 = vmatmul.mubr.msk.f32.gmra.mrb[4].mxu1 %vm404_vm1, %v11224_v29 }
 0x109   : > { %9243 = vmatmul.mubr.msk.f32.vlgmr.msra.gmra.mrb[0].mxu0 %vm404_vm1, %v11153_v13  ;;  %9237 = vmatprep.mubr.msk.f32.mxu1 %vm404_vm1, %v11227_v30 }
 0x10a   : > { %9269 = vmatpush3.msk.msra.mxu0 %vm429_vm0, %v1434_v25  ;;  %9245 = vmatprep.mubr.msk.f32.mxu0 %vm404_vm1, %v11161_v15 }
 0x10b   : > { %9296 = vmatprep.subr.msk.mxu0 %vm429_vm0, %v1702_v32 }
 0x10c   : > { %9238 = vmatmul.mubr.msk.f32.gmra.mrb[6].mxu1 %vm404_vm1, %v11238_v31 }
 0x10d   : > { %9246 = vmatmul.mubr.msk.f32.gmra.mrb[2].mxu0 %vm404_vm1, %v11164_v16  ;;  %9256 = vmatprep.mubr.msk.f32.mxu1 %vm404_vm1, %v11150_v12 }
 0x10e   : > { %9248 = vmatprep.mubr.msk.f32.mxu0 %vm404_vm1, %v11172_v17 }
 0x110   : > { %9257 = vmatmul.mubr.msk.f32.vlgmr.msra.gmra.mrb[0].mxu1 %vm404_vm1, %v11153_v13 }
 0x111   : > { %9249 = vmatmul.mubr.msk.f32.gmra.mrb[4].mxu0 %vm404_vm1, %v11175_v18  ;;  %9259 = vmatprep.mubr.msk.f32.mxu1 %vm404_vm1, %v11161_v15 }
 0x112   : > { %9251 = vmatprep.mubr.msk.f32.mxu0 %vm404_vm1, %v11182_v19  ;;  %9283 = vmatpush3.msk.msra.mxu1 %vm429_vm0, %v1576_v36 }
 0x113   : > { %9310 = vmatprep.subr.msk.mxu1 %vm429_vm0, %v1844_v39 }
 0x114   : > { %9260 = vmatmul.mubr.msk.f32.gmra.mrb[2].mxu1 %vm404_vm1, %v11164_v16 }
 0x115   : > { %9252 = vmatmul.mubr.msk.f32.gmra.mrb[6].mxu0 %vm404_vm1, %v11276_v34  ;;  %9262 = vmatprep.mubr.msk.f32.mxu1 %vm404_vm1, %v11172_v17 }
 0x116   : > { %9270 = vmatprep.mubr.msk.f32.mxu0 %vm404_vm1, %v11106_v2 }
 0x118   : > { %9263 = vmatmul.mubr.msk.f32.gmra.mrb[4].mxu1 %vm404_vm1, %v11175_v18 }
 0x119   : > { %9271 = vmatmul.mubr.msk.f32.vlgmr.msra.gmra.mrb[0].mxu0 %vm404_vm1, %v11111_v4  ;;  %9265 = vmatprep.mubr.msk.f32.mxu1 %vm404_vm1, %v11182_v19 }
 0x11a   : > { %9297 = vmatpush3.msk.msra.mxu0 %vm429_vm0, %v1702_v32  ;;  %9273 = vmatprep.mubr.msk.f32.mxu0 %vm404_vm1, %v11122_v5 }
 0x11b   : > { %9324 = vmatprep.subr.msk.mxu0 %vm429_vm0, %v1971_v35 }
 0x11c   : > { %9266 = vmatmul.mubr.msk.f32.gmra.mrb[6].mxu1 %vm404_vm1, %v11276_v34 }
 0x11d   : > { %9274 = vmatmul.mubr.msk.f32.gmra.mrb[2].mxu0 %vm404_vm1, %v11125_v7  ;;  %9284 = vmatprep.mubr.msk.f32.mxu1 %vm404_vm1, %v11106_v2 }
 0x11e   : > { %9276 = vmatprep.mubr.msk.f32.mxu0 %vm404_vm1, %v11133_v8 }
 0x120   : > { %9285 = vmatmul.mubr.msk.f32.vlgmr.msra.gmra.mrb[0].mxu1 %vm404_vm1, %v11111_v4 }
 0x121   : > { %9277 = vmatmul.mubr.msk.f32.gmra.mrb[4].mxu0 %vm404_vm1, %v11136_v9  ;;  %9287 = vmatprep.mubr.msk.f32.mxu1 %vm404_vm1, %v11122_v5 }
 0x122   : > { %9279 = vmatprep.mubr.msk.f32.mxu0 %vm404_vm1, %v11143_v10  ;;  %9311 = vmatpush3.msk.msra.mxu1 %vm429_vm0, %v1844_v39 }
 0x123   : > { %9338 = vmatprep.subr.msk.mxu1 %vm429_vm0, %v2113_v42 }
 0x124   : > { %9288 = vmatmul.mubr.msk.f32.gmra.mrb[2].mxu1 %vm404_vm1, %v11125_v7 }
 0x125   : > { %9280 = vmatmul.mubr.msk.f32.gmra.mrb[6].mxu0 %vm404_vm1, %v11314_v37  ;;  %9290 = vmatprep.mubr.msk.f32.mxu1 %vm404_vm1, %v11133_v8 }
 0x126   : > { %9298 = vmatprep.mubr.msk.f32.mxu0 %vm404_vm1, %v11189_v23 }
 0x128   : > { %9291 = vmatmul.mubr.msk.f32.gmra.mrb[4].mxu1 %vm404_vm1, %v11136_v9 }
 0x129   : > { %9299 = vmatmul.mubr.msk.f32.vlgmr.msra.gmra.mrb[0].mxu0 %vm404_vm1, %v11193_v24  ;;  %9293 = vmatprep.mubr.msk.f32.mxu1 %vm404_vm1, %v11143_v10 }
 0x12a   : > { %9325 = vmatpush3.msk.msra.mxu0 %vm429_vm0, %v1971_v35  ;;  %9301 = vmatprep.mubr.msk.f32.mxu0 %vm404_vm1, %v11207_v27 }
 0x12b   : > { %9352 = vmatprep.subr.msk.mxu0 %vm429_vm0, %v2239_v38 }
 0x12c   : > { %9294 = vmatmul.mubr.msk.f32.gmra.mrb[6].mxu1 %vm404_vm1, %v11314_v37 }
 0x12d   : > { %9302 = vmatmul.mubr.msk.f32.gmra.mrb[2].mxu0 %vm404_vm1, %v11210_v28  ;;  %9312 = vmatprep.mubr.msk.f32.mxu1 %vm404_vm1, %v11189_v23 }
 0x12e   : > { %9304 = vmatprep.mubr.msk.f32.mxu0 %vm404_vm1, %v11224_v29 }
 0x130   : > { %9313 = vmatmul.mubr.msk.f32.vlgmr.msra.gmra.mrb[0].mxu1 %vm404_vm1, %v11193_v24 }
 0x131   : > { %9305 = vmatmul.mubr.msk.f32.gmra.mrb[4].mxu0 %vm404_vm1, %v11227_v30  ;;  %9315 = vmatprep.mubr.msk.f32.mxu1 %vm404_vm1, %v11207_v27 }
 0x132   : > { %9307 = vmatprep.mubr.msk.f32.mxu0 %vm404_vm1, %v11238_v31  ;;  %9339 = vmatpush3.msk.msra.mxu1 %vm429_vm0, %v2113_v42 }
 0x133   : > { %9366 = vmatprep.subr.msk.mxu1 %vm429_vm0, %v2381_v48 }
 0x134   : > { %9316 = vmatmul.mubr.msk.f32.gmra.mrb[2].mxu1 %vm404_vm1, %v11210_v28 }
 0x135   : > { %9308 = vmatmul.mubr.msk.f32.gmra.mrb[6].mxu0 %vm404_vm1, %v11353_v40  ;;  %9318 = vmatprep.mubr.msk.f32.mxu1 %vm404_vm1, %v11224_v29 }
 0x136   : > { %9326 = vmatprep.mubr.msk.f32.mxu0 %vm404_vm1, %v11153_v13 }
 0x138   : > { %9319 = vmatmul.mubr.msk.f32.gmra.mrb[4].mxu1 %vm404_vm1, %v11227_v30 }
 0x139   : > { %9327 = vmatmul.mubr.msk.f32.vlgmr.msra.gmra.mrb[0].mxu0 %vm404_vm1, %v11161_v15  ;;  %9321 = vmatprep.mubr.msk.f32.mxu1 %vm404_vm1, %v11238_v31 }
 0x13a   : > { %9353 = vmatpush3.msk.msra.mxu0 %vm429_vm0, %v2239_v38  ;;  %9329 = vmatprep.mubr.msk.f32.mxu0 %vm404_vm1, %v11164_v16 }
 0x13b   : > { %9380 = vmatprep.subr.msk.mxu0 %vm429_vm0, %v2507_v41 }
 0x13c   : > { %9322 = vmatmul.mubr.msk.f32.gmra.mrb[6].mxu1 %vm404_vm1, %v11353_v40 }
 0x13d   : > { %9330 = vmatmul.mubr.msk.f32.gmra.mrb[2].mxu0 %vm404_vm1, %v11172_v17  ;;  %9340 = vmatprep.mubr.msk.f32.mxu1 %vm404_vm1, %v11153_v13 }
 0x13e   : > { %9332 = vmatprep.mubr.msk.f32.mxu0 %vm404_vm1, %v11175_v18 }
 0x140   : > { %9341 = vmatmul.mubr.msk.f32.vlgmr.msra.gmra.mrb[0].mxu1 %vm404_vm1, %v11161_v15 }
 0x141   : > { %9333 = vmatmul.mubr.msk.f32.gmra.mrb[4].mxu0 %vm404_vm1, %v11182_v19  ;;  %9343 = vmatprep.mubr.msk.f32.mxu1 %vm404_vm1, %v11164_v16 }
 0x142   : > { %9335 = vmatprep.mubr.msk.f32.mxu0 %vm404_vm1, %v11276_v34  ;;  %9367 = vmatpush3.msk.msra.mxu1 %vm429_vm0, %v2381_v48 }
 0x143   : > { %9394 = vmatprep.subr.msk.mxu1 %vm429_vm0, %v2649_v50 }
 0x144   : > { %9344 = vmatmul.mubr.msk.f32.gmra.mrb[2].mxu1 %vm404_vm1, %v11172_v17 }
 0x145   : > { %9336 = vmatmul.mubr.msk.f32.gmra.mrb[6].mxu0 %vm404_vm1, %v8251_v43  ;;  %9346 = vmatprep.mubr.msk.f32.mxu1 %vm404_vm1, %v11175_v18 }
 0x146   : > { %9354 = vmatprep.mubr.msk.f32.mxu0 %vm404_vm1, %v11111_v4 }
 0x148   : > { %9347 = vmatmul.mubr.msk.f32.gmra.mrb[4].mxu1 %vm404_vm1, %v11182_v19 }
 0x149   : > { %9355 = vmatmul.mubr.msk.f32.vlgmr.msra.gmra.mrb[0].mxu0 %vm404_vm1, %v11122_v5  ;;  %9349 = vmatprep.mubr.msk.f32.mxu1 %vm404_vm1, %v11276_v34 }
 0x14a   : > { %9381 = vmatpush3.msk.msra.mxu0 %vm429_vm0, %v2507_v41  ;;  %9357 = vmatprep.mubr.msk.f32.mxu0 %vm404_vm1, %v11125_v7  ;;  %v11558_v41 = vld [vmem:[#allocation9] sm:$0xff] }
 0x14b   : > { %9946 = vmatprep.subr.msk.bf16.mxu0 %vm11399_vm4, %v9944_v46 }
 0x14c   : > { %9350 = vmatmul.mubr.msk.f32.gmra.mrb[6].mxu1 %vm404_vm1, %v8251_v43 }
 0x14d   : > { %9358 = vmatmul.mubr.msk.f32.gmra.mrb[2].mxu0 %vm404_vm1, %v11133_v8  ;;  %9368 = vmatprep.mubr.msk.f32.mxu1 %vm404_vm1, %v11111_v4 }
 0x14e   : > { %9360 = vmatprep.mubr.msk.f32.mxu0 %vm404_vm1, %v11136_v9 }
 0x150   : > { %9369 = vmatmul.mubr.msk.f32.vlgmr.msra.gmra.mrb[0].mxu1 %vm404_vm1, %v11122_v5 }
 0x151   : > { %9361 = vmatmul.mubr.msk.f32.gmra.mrb[4].mxu0 %vm404_vm1, %v11143_v10  ;;  %9371 = vmatprep.mubr.msk.f32.mxu1 %vm404_vm1, %v11125_v7 }
 0x152   : > { %9363 = vmatprep.mubr.msk.f32.mxu0 %vm404_vm1, %v11314_v37  ;;  %9395 = vmatpush3.msk.msra.mxu1 %vm429_vm0, %v2649_v50  ;;  %v3007_v50 = vld [vmem:[#allocation2] sm:$0xff] }
 0x153   : > { %9424 = vmatprep.subr.mxu1 %v11530_v62 }
 0x154   : > { %9372 = vmatmul.mubr.msk.f32.gmra.mrb[2].mxu1 %vm404_vm1, %v11133_v8 }
 0x155   : > { %9364 = vmatmul.mubr.msk.f32.gmra.mrb[6].mxu0 %vm404_vm1, %v8277_v49  ;;  %9374 = vmatprep.mubr.msk.f32.mxu1 %vm404_vm1, %v11136_v9 }
 0x156   : > { %9382 = vmatprep.mubr.msk.f32.mxu0 %vm404_vm1, %v11193_v24 }
 0x158   : > { %9375 = vmatmul.mubr.msk.f32.gmra.mrb[4].mxu1 %vm404_vm1, %v11143_v10 }
 0x159   : > { %9383 = vmatmul.mubr.msk.f32.vlgmr.msra.gmra.mrb[0].mxu0 %vm404_vm1, %v11207_v27  ;;  %9377 = vmatprep.mubr.msk.f32.mxu1 %vm404_vm1, %v11314_v37 }
 0x15a   : > { %9949 = vmatpush3.bf16.msk.msra.mxu0 %vm11399_vm4, %v9944_v46  ;;  %9385 = vmatprep.mubr.msk.f32.mxu0 %vm404_vm1, %v11210_v28 }
 0x15b   : > { %9550 = vmatprep.subr.mxu0 %v11530_v62 }
 0x15c   : > { %9378 = vmatmul.mubr.msk.f32.gmra.mrb[6].mxu1 %vm404_vm1, %v8277_v49 }
 0x15d   : > { %9386 = vmatmul.mubr.msk.f32.gmra.mrb[2].mxu0 %vm404_vm1, %v11224_v29  ;;  %9396 = vmatprep.mubr.msk.f32.mxu1 %vm404_vm1, %v11193_v24 }
 0x15e   : > { %9388 = vmatprep.mubr.msk.f32.mxu0 %vm404_vm1, %v11227_v30 }
 0x160   : > { %9397 = vmatmul.mubr.msk.f32.vlgmr.msra.gmra.mrb[0].mxu1 %vm404_vm1, %v11207_v27  ;;  %v11532_v63 = vpop.permute.xlu0 %3034 }
 0x161   : > { %9389 = vmatmul.mubr.msk.f32.gmra.mrb[4].mxu0 %vm404_vm1, %v11238_v31  ;;  %9399 = vmatprep.mubr.msk.f32.mxu1 %vm404_vm1, %v11210_v28  ;;  %v11536_v0 = vpop.permute.xlu1 %3319 }
 0x162   : > { %9391 = vmatprep.mubr.msk.f32.mxu0 %vm404_vm1, %v11353_v40  ;;  %9425 = vmatpush3.msra.mxu1 %v11530_v62 }
 0x163   : > { %9438 = vmatprep.subr.mxu1 %v11558_v41 }
 0x164   : > { %9400 = vmatmul.mubr.msk.f32.gmra.mrb[2].mxu1 %vm404_vm1, %v11224_v29 }
 0x165   : > { %9392 = vmatmul.mubr.msk.f32.gmra.mrb[6].mxu0 %vm404_vm1, %v8303_v51  ;;  %9402 = vmatprep.mubr.msk.f32.mxu1 %vm404_vm1, %v11227_v30 }
 0x166   : > { %9412 = vmatprep.mubr.msk.f32.mxu0 %vm2776_vm5, %v2766_v52 }
 0x168   : > { %9403 = vmatmul.mubr.msk.f32.gmra.mrb[4].mxu1 %vm404_vm1, %v11238_v31 }
 0x169   : > { %9413 = vmatmul.mubr.msk.f32.vlgmr.msra.gmra.mrb[0].mxu0 %vm2776_vm5, %v2767_v53  ;;  %9405 = vmatprep.mubr.msk.f32.mxu1 %vm404_vm1, %v11353_v40 }
 0x16a   : > { %9415 = vmatprep.mubr.msk.f32.mxu0 %vm2776_vm5, %v2768_v54  ;;  %9551 = vmatpush3.msra.mxu0 %v11530_v62 }
 0x16b   : > { %9564 = vmatprep.subr.mxu0 %v11558_v41 }
 0x16c   : > { %9406 = vmatmul.mubr.msk.f32.gmra.mrb[6].mxu1 %vm404_vm1, %v8303_v51 }
 0x16d   : > { %9416 = vmatmul.mubr.msk.f32.gmra.mrb[2].mxu0 %vm2776_vm5, %v2769_v55  ;;  %9426 = vmatprep.mubr.msk.f32.mxu1 %vm3050_vm9, %v11532_v63 }
 0x16e   : > { %9418 = vmatprep.mubr.msk.f32.mxu0 %vm2776_vm5, %v2770_v56 }
 0x171   : > { %9419 = vmatmul.mubr.msk.f32.gmra.mrb[4].mxu0 %vm2776_vm5, %v2771_v57 }
 0x172   : > { %9421 = vmatprep.mubr.msk.f32.mxu0 %vm2776_vm5, %v2772_v58  ;;  %v4572_v58 = vld [vmem:[#allocation2 + $0x2] sm:$0xff] }
 0x175   : > { %9422 = vmatmul.mubr.msk.f32.gmra.mrb[6].mxu0 %vm2776_vm5, %v2773_v59 }
 0x176   : > { %9552 = vmatprep.mubr.msk.f32.mxu0 %vm3050_vm9, %v11536_v0 }
 0x23c   : > { %v9414_v1 = vpop.f32.mrb[0].mxu0 }
 0x23d   : > { %vm2919_vm10 = vcmp.ge.f32.partialorder %v9414_v1, 0.0  ;;  %v2927_v2 = vmul.f32 0.2, %v9414_v1  ;;  %v2871_v3 = vpop.f32.mrb[1].mxu0 }
 0x23e   : > { %vm2918_vm11 = vcmp.ge.f32.partialorder %v2871_v3, 0.0  ;;  %v2926_v4 = vmul.f32 0.2, %v2871_v3 }
 0x23f   : > { %v2935_v5 = vsel %vm2919_vm10, %v9414_v1, %v2927_v2 }
 0x240   : > { %v2943_v6 = vmul.f32 1.4142135, %v2935_v5  ;;  %v2934_v7 = vsel %vm2918_vm11, %v2871_v3, %v2926_v4  ;;  %v9417_v8 = vpop.f32.mrb[2].mxu0  ;;  %v11660_v5 = vpop.f32.mrb[0].mxu1 }
 0x241   : > { %v2942_v9 = vmul.f32 1.4142135, %v2934_v7  ;;  %vm2921_vm12 = vcmp.ge.f32.partialorder %v9417_v8, 0.0  ;;  %v2929_v10 = vmul.f32 0.2, %v9417_v8  ;;  %v2881_v11 = vpop.f32.mrb[3].mxu0 }
 0x242   : > { %v8332_v12 = vclamps-f32 %v2943_v6, 256.0  ;;  %vm2920_vm13 = vcmp.ge.f32.partialorder %v2881_v11, 0.0  ;;  %v2928_v13 = vmul.f32 0.2, %v2881_v11  ;;  %12727 = vst [vmem:[#allocation22_spill] sm:$0xff] %v11660_v5  ;;  %v11662_v6 = vpop.f32.mrb[1].mxu1 }
 0x243   : > { %v8331_v14 = vclamps-f32 %v2942_v9, 256.0  ;;  %v2937_v15 = vsel %vm2921_vm12, %v9417_v8, %v2929_v10  ;;  %12728 = vst [vmem:[#allocation23_spill] sm:$0xff] %v11662_v6  ;;  %v11668_v7 = vpop.f32.mrb[2].mxu1 }
 0x244   : > { %3000 = vst.msk [vmem:[#allocation2 + $0x21] sm:$0xff] %vm2974_vm6, %v8332_v12  ;;  %v2945_v16 = vmul.f32 1.4142135, %v2937_v15  ;;  %v2936_v17 = vsel %vm2920_vm13, %v2881_v11, %v2928_v13  ;;  %v9420_v18 = vpop.f32.mrb[4].mxu0  ;;  %12729 = vst [vmem:[#allocation24_spill] sm:$0xff] %v11668_v7  ;;  %v11670_v8 = vpop.f32.mrb[3].mxu1 }
 0x245   : > { %2999 = vst.msk [vmem:[#allocation2 + $0x11] sm:$0xff] %vm2974_vm6, %v8331_v14  ;;  %v2944_v19 = vmul.f32 1.4142135, %v2936_v17  ;;  %vm2923_vm14 = vcmp.ge.f32.partialorder %v9420_v18, 0.0  ;;  %v2931_v20 = vmul.f32 0.2, %v9420_v18 }
 0x246   : > { %v2891_v21 = vpop.f32.mrb[5].mxu0  ;;  %v8334_v22 = vclamps-f32 %v2945_v16, 256.0  ;;  %12730 = vst [vmem:[#allocation25_spill] sm:$0xff] %v11670_v8  ;;  %v11678_v10 = vpop.f32.mrb[4].mxu1  ;;  %v11729_v17 = vld [vmem:[#allocation9 + $0x10] sm:$0xff] }
 0x247   : > { %vm2922_vm15 = vcmp.ge.f32.partialorder %v2891_v21, 0.0  ;;  %v2930_v23 = vmul.f32 0.2, %v2891_v21  ;;  %v8333_v24 = vclamps-f32 %v2944_v19, 256.0  ;;  %v2939_v25 = vsel %vm2923_vm14, %v9420_v18, %v2931_v20  ;;  %12731 = vst [vmem:[#allocation26_spill] sm:$0xff] %v11678_v10  ;;  %v11680_v11 = vpop.f32.mrb[5].mxu1 }
 0x248   : > { %3002 = vst.msk [vmem:[#allocation2 + $0x41] sm:$0xff] %vm2974_vm6, %v8334_v22  ;;  %v2947_v26 = vmul.f32 1.4142135, %v2939_v25  ;;  %v9423_v28 = vpop.f32.mrb[6].mxu0  ;;  %12732 = vst [vmem:[#allocation27_spill] sm:$0xff] %v11680_v11  ;;  %v11686_v12 = vpop.f32.mrb[6].mxu1 }
 0x249   : > { %v2938_v27 = vsel %vm2922_vm15, %v2891_v21, %v2930_v23  ;;  %3001 = vst.msk [vmem:[#allocation2 + $0x31] sm:$0xff] %vm2974_vm6, %v8333_v24  ;;  %vm2925_vm0 = vcmp.ge.f32.partialorder %v9423_v28, 0.0  ;;  %v2933_v30 = vmul.f32 0.2, %v9423_v28  ;;  %v2901_v31 = vpop.f32.mrb[7].mxu0  ;;  %12733 = vst [vmem:[#allocation28_spill] sm:$0xff] %v11686_v12 }
 0x24a   : > { %v2946_v29 = vmul.f32 1.4142135, %v2938_v27  ;;  %v8336_v32 = vclamps-f32 %v2947_v26, 256.0  ;;  %vm2924_vm1 = vcmp.ge.f32.partialorder %v2901_v31, 0.0  ;;  %v2932_v33 = vmul.f32 0.2, %v2901_v31 }
 0x24b   : > { %v2941_v35 = vsel %vm2925_vm0, %v9423_v28, %v2933_v30  ;;  %v11548_v36 = vld [vmem:[#allocation2 + $0x21] sm:$0xff]  ;;  %v11688_v13 = vpop.f32.mrb[7].mxu1 }
 0x24c   : > { %v8335_v34 = vclamps-f32 %v2946_v29, 256.0  ;;  %3004 = vst.msk [vmem:[#allocation2 + $0x61] sm:$0xff] %vm2974_vm6, %v8336_v32  ;;  %v2949_v37 = vmul.f32 1.4142135, %v2941_v35  ;;  %v2940_v38 = vsel %vm2924_vm1, %v2901_v31, %v2932_v33  ;;  %3038 = vrot.lane.b32.xlu0 %v11548_v36, %s10768_s8  ;;  %v11553_v39 = vld [vmem:[#allocation2 + $0x11] sm:$0xff]  ;;  %v11600_v52 = vld [vmem:[#allocation2 + $0x20] sm:$0xff] }
 0x24d   : > { %v2948_v40 = vmul.f32 1.4142135, %v2940_v38  ;;  %3321 = vrot.lane.b32.xlu1 %v11553_v39, %s10769_s20  ;;  %v3008_v51 = vld [vmem:[#allocation2 + $0x10] sm:$0xff]  ;;  %v11629_v60 = vld [vmem:[#allocation2 + $0x22] sm:$0xff]  ;;  %12734 = vst [vmem:[#allocation29_spill] sm:$0xff] %v11688_v13 }
 0x24e   : > { %3003 = vst.msk [vmem:[#allocation2 + $0x51] sm:$0xff] %vm2974_vm6, %v8335_v34  ;;  %v8338_v42 = vclamps-f32 %v2949_v37, 256.0  ;;  %v11625_v59 = vld [vmem:[#allocation2 + $0x12] sm:$0xff]  ;;  %v11809_v33 = vld [vmem:[#allocation9 + $0x18] sm:$0xff] }
 0x24f   : > { %v8337_v43 = vclamps-f32 %v2948_v40, 256.0  ;;  %v11574_v45 = vld [vmem:[#allocation2 + $0x41] sm:$0xff] }
 0x250   : > { %3006 = vst.msk [vmem:[#allocation2 + $0x81] sm:$0xff] %vm2974_vm6, %v8338_v42  ;;  %3323 = vrot.lane.b32.xlu0 %v11548_v36, %s10769_s20  ;;  %v11565_v44 = vld [vmem:[#allocation2 + $0x31] sm:$0xff]  ;;  %v11608_v54 = vld [vmem:[#allocation2 + $0x40] sm:$0xff] }
 0x251   : > { %3005 = vst.msk [vmem:[#allocation2 + $0x71] sm:$0xff] %vm2974_vm6, %v8337_v43  ;;  %3040 = vrot.lane.b32.xlu1 %v11565_v44, %s10768_s8  ;;  %v11604_v53 = vld [vmem:[#allocation2 + $0x30] sm:$0xff]  ;;  %v11637_v1 = vld [vmem:[#allocation2 + $0x42] sm:$0xff] }
 0x252   : > { %v11633_v61 = vld [vmem:[#allocation2 + $0x32] sm:$0xff] }
 0x253   : > { %v11586_v48 = vld [vmem:[#allocation2 + $0x61] sm:$0xff] }
 0x254   : > { %3036 = vrot.lane.b32.xlu0 %v11553_v39, %s10768_s8  ;;  %v11616_v56 = vld [vmem:[#allocation2 + $0x60] sm:$0xff] }
 0x255   : > { %3325 = vrot.lane.b32.xlu1 %v11565_v44, %s10769_s20  ;;  %v11578_v46 = vld [vmem:[#allocation2 + $0x51] sm:$0xff]  ;;  %v11645_v3 = vld [vmem:[#allocation2 + $0x62] sm:$0xff] }
 0x256   : > { %v11612_v55 = vld [vmem:[#allocation2 + $0x50] sm:$0xff] }
 0x257   : > { %v11641_v2 = vld [vmem:[#allocation2 + $0x52] sm:$0xff]  ;;  %v11674_v9 = vld [vmem:[#allocation2 + $0x80] sm:$0xff] }
 0x258   : > { %3042 = vrot.lane.b32.xlu0 %v11574_v45, %s10768_s8  ;;  %v11590_v49 = vld [vmem:[#allocation2 + $0x71] sm:$0xff]  ;;  %v11700_v14 = vld [vmem:[#allocation2 + $0x81] sm:$0xff] }
 0x259   : > { %3044 = vrot.lane.b32.xlu1 %v11578_v46, %s10768_s8  ;;  %v11620_v57 = vld [vmem:[#allocation2 + $0x70] sm:$0xff]  ;;  %v11826_v37 = vld [vmem:[#allocation2 + $0x82] sm:$0xff] }
 0x25a   : > { %v11649_v4 = vld [vmem:[#allocation2 + $0x72] sm:$0xff] }
 0x25c   : > { %3327 = vrot.lane.b32.xlu0 %v11574_v45, %s10769_s20 }
 0x25d   : > { %3329 = vrot.lane.b32.xlu1 %v11578_v46, %s10769_s20 }
 0x260   : > { %3046 = vrot.lane.b32.xlu0 %v11586_v48, %s10768_s8 }
 0x261   : > { %3048 = vrot.lane.b32.xlu1 %v11590_v49, %s10768_s8 }
 0x264   : > { %3331 = vrot.lane.b32.xlu0 %v11586_v48, %s10769_s20 }
 0x265   : > { %3333 = vrot.lane.b32.xlu1 %v11590_v49, %s10769_s20 }
 0x268   : > { %3180 = vrot.lane.b32.xlu0 %v3007_v50, %s10769_s20 }
 0x269   : > { %3182 = vrot.lane.b32.xlu1 %v3008_v51, %s10769_s20 }
 0x26c   : > { %3184 = vrot.lane.b32.xlu0 %v11600_v52, %s10769_s20 }
 0x26d   : > { %3186 = vrot.lane.b32.xlu1 %v11604_v53, %s10769_s20 }
 0x270   : > { %3188 = vrot.lane.b32.xlu0 %v11608_v54, %s10769_s20 }
 0x271   : > { %3190 = vrot.lane.b32.xlu1 %v11612_v55, %s10769_s20 }
 0x274   : > { %3192 = vrot.lane.b32.xlu0 %v11616_v56, %s10769_s20 }
 0x275   : > { %3194 = vrot.lane.b32.xlu1 %v11620_v57, %s10769_s20 }
 0x278   : > { %4588 = vrot.lane.b32.xlu0 %v4572_v58, %s10768_s8 }
 0x279   : > { %4590 = vrot.lane.b32.xlu1 %v11625_v59, %s10768_s8 }
 0x27c   : > { %4592 = vrot.lane.b32.xlu0 %v11629_v60, %s10768_s8 }
 0x27d   : > { %4594 = vrot.lane.b32.xlu1 %v11633_v61, %s10768_s8 }
 0x280   : > { %4596 = vrot.lane.b32.xlu0 %v11637_v1, %s10768_s8 }
 0x281   : > { %4598 = vrot.lane.b32.xlu1 %v11641_v2, %s10768_s8 }
 0x284   : > { %4600 = vrot.lane.b32.xlu0 %v11645_v3, %s10768_s8 }
 0x285   : > { %4602 = vrot.lane.b32.xlu1 %v11649_v4, %s10768_s8 }
 0x288   : > { %3482 = vrot.lane.b32.xlu0 %v3008_v51, %s10770_s13 }
 0x289   : > { %3484 = vrot.lane.b32.xlu1 %v11600_v52, %s10770_s13 }
 0x28c   : > { %3486 = vrot.lane.b32.xlu0 %v11604_v53, %s10770_s13 }
 0x28d   : > { %3488 = vrot.lane.b32.xlu1 %v11608_v54, %s10770_s13 }
 0x290   : > { %3490 = vrot.lane.b32.xlu0 %v11612_v55, %s10770_s13 }
 0x291   : > { %3492 = vrot.lane.b32.xlu1 %v11616_v56, %s10770_s13 }
 0x294   : > { %3494 = vrot.lane.b32.xlu0 %v11620_v57, %s10770_s13 }
 0x295   : > { %3496 = vrot.lane.b32.xlu1 %v11674_v9, %s10770_s13 }
 0x298   : > { %3776 = vrot.lane.b32.xlu0 %v11553_v39, %s10770_s13 }
 0x299   : > { %3778 = vrot.lane.b32.xlu1 %v11548_v36, %s10770_s13 }
 0x29c   : > { %3780 = vrot.lane.b32.xlu0 %v11565_v44, %s10770_s13 }
 0x29d   : > { %3782 = vrot.lane.b32.xlu1 %v11574_v45, %s10770_s13 }
 0x2a0   : > { %3784 = vrot.lane.b32.xlu0 %v11578_v46, %s10770_s13 }
 0x2a1   : > { %3786 = vrot.lane.b32.xlu1 %v11586_v48, %s10770_s13 }
 0x2a4   : > { %3788 = vrot.lane.b32.xlu0 %v11590_v49, %s10770_s13 }
 0x2a5   : > { %3790 = vrot.lane.b32.xlu1 %v11700_v14, %s10770_s13 }
 0x2a8   : > { %3923 = vrot.lane.b32.xlu0 %v3008_v51, %s10769_s20  ;;  %v11852_v51 = vld [vmem:[#allocation9 + $0x20] sm:$0xff] }
 0x2a9   : > { %3925 = vrot.lane.b32.xlu1 %v11600_v52, %s10769_s20 }
 0x2ac   : > { %4070 = vrot.lane.b32.xlu0 %v11553_v39, %s10768_s8 }
 0x2ad   : > { %4072 = vrot.lane.b32.xlu1 %v11548_v36, %s10768_s8 }
 0x2b0   : > { %3927 = vrot.lane.b32.xlu0 %v11604_v53, %s10769_s20 }
 0x2b1   : > { %3929 = vrot.lane.b32.xlu1 %v11608_v54, %s10769_s20 }
 0x2b4   : > { %4074 = vrot.lane.b32.xlu0 %v11565_v44, %s10768_s8 }
 0x2b5   : > { %4076 = vrot.lane.b32.xlu1 %v11574_v45, %s10768_s8 }
 0x2b8   : > { %3931 = vrot.lane.b32.xlu0 %v11612_v55, %s10769_s20 }
 0x2b9   : > { %3933 = vrot.lane.b32.xlu1 %v11616_v56, %s10769_s20 }
 0x2bc   : > { %4078 = vrot.lane.b32.xlu0 %v11578_v46, %s10768_s8 }
 0x2bd   : > { %4080 = vrot.lane.b32.xlu1 %v11586_v48, %s10768_s8 }
 0x2be   : > { %v3039_v15 = vpop.permute.xlu0 %3038 }
 0x2bf   : > { %v11727_v16 = vpop.permute.xlu1 %3321 }
 0x2c0   : > { %9553 = vmatmul.mubr.msk.f32.vlgmr.msra.gmra.mrb[8].mxu0 %vm3050_vm9, %v11727_v16  ;;  %3935 = vrot.lane.b32.xlu0 %v11620_v57, %s10769_s20 }
 0x2c1   : > { %3937 = vrot.lane.b32.xlu1 %v11674_v9, %s10769_s20  ;;  %9565 = vmatpush3.msra.mxu0 %v11558_v41 }
 0x2c2   : > { %v11738_v18 = vpop.permute.xlu0 %3323  ;;  %9578 = vmatprep.subr.mxu0 %v11729_v17 }
 0x2c3   : > { %9555 = vmatprep.mubr.msk.f32.mxu0 %vm3050_vm9, %v11738_v18  ;;  %v3041_v19 = vpop.permute.xlu1 %3040 }
 0x2c4   : > { %4082 = vrot.lane.b32.xlu0 %v11590_v49, %s10768_s8 }
 0x2c5   : > { %4084 = vrot.lane.b32.xlu1 %v11700_v14, %s10768_s8 }
 0x2c6   : > { %v3037_v20 = vpop.permute.xlu0 %3036 }
 0x2c7   : > { %9427 = vmatmul.mubr.msk.f32.vlgmr.msra.gmra.mrb[8].mxu1 %vm3050_vm9, %v3037_v20  ;;  %v11748_v21 = vpop.permute.xlu1 %3325 }
 0x2c8   : > { %9429 = vmatprep.mubr.msk.f32.mxu1 %vm3050_vm9, %v3039_v15  ;;  %9556 = vmatmul.mubr.msk.f32.gmra.mrb[10].mxu0 %vm3050_vm9, %v11748_v21 }
 0x2c9   : > { %4217 = vrot.lane.b32.xlu0 %v11553_v39, %s10769_s20  ;;  %4219 = vrot.lane.b32.xlu1 %v11548_v36, %s10769_s20 }
 0x2ca   : > { %v3043_v22 = vpop.permute.xlu0 %3042  ;;  %9439 = vmatpush3.msra.mxu1 %v11558_v41 }
 0x2cb   : > { %9430 = vmatmul.mubr.msk.f32.gmra.mrb[10].mxu1 %vm3050_vm9, %v3041_v19  ;;  %v3045_v23 = vpop.permute.xlu1 %3044  ;;  %9452 = vmatprep.subr.mxu1 %v11729_v17 }
 0x2cc   : > { %9432 = vmatprep.mubr.msk.f32.mxu1 %vm3050_vm9, %v3043_v22 }
 0x2cd   : > { %4221 = vrot.lane.b32.xlu0 %v11565_v44, %s10769_s20  ;;  %4223 = vrot.lane.b32.xlu1 %v11574_v45, %s10769_s20 }
 0x2ce   : > { %v11765_v24 = vpop.permute.xlu0 %3327 }
 0x2cf   : > { %9433 = vmatmul.mubr.msk.f32.gmra.mrb[12].mxu1 %vm3050_vm9, %v3045_v23  ;;  %9558 = vmatprep.mubr.msk.f32.mxu0 %vm3050_vm9, %v11765_v24  ;;  %v11770_v25 = vpop.permute.xlu1 %3329 }
 0x2d0   : > { %9559 = vmatmul.mubr.msk.f32.gmra.mrb[12].mxu0 %vm3050_vm9, %v11770_v25 }
 0x2d1   : > { %4225 = vrot.lane.b32.xlu0 %v11578_v46, %s10769_s20  ;;  %4227 = vrot.lane.b32.xlu1 %v11586_v48, %s10769_s20 }
 0x2d2   : > { %v3047_v26 = vpop.permute.xlu0 %3046 }
 0x2d3   : > { %9435 = vmatprep.mubr.msk.f32.mxu1 %vm3050_vm9, %v3047_v26  ;;  %v3049_v27 = vpop.permute.xlu1 %3048 }
 0x2d4   : > { %9436 = vmatmul.mubr.msk.f32.gmra.mrb[14].mxu1 %vm3050_vm9, %v3049_v27 }
 0x2d5   : > { %4229 = vrot.lane.b32.xlu0 %v11590_v49, %s10769_s20  ;;  %4231 = vrot.lane.b32.xlu1 %v11700_v14, %s10769_s20 }
 0x2d6   : > { %v11784_v28 = vpop.permute.xlu0 %3331 }
 0x2d7   : > { %9561 = vmatprep.mubr.msk.f32.mxu0 %vm3050_vm9, %v11784_v28  ;;  %v11788_v29 = vpop.permute.xlu1 %3333 }
 0x2d8   : > { %9562 = vmatmul.mubr.msk.f32.gmra.mrb[14].mxu0 %vm3050_vm9, %v11788_v29 }
 0x2d9   : > { %5330 = vrot.lane.b32.xlu0 %v11625_v59, %s10768_s8  ;;  %9566 = vmatprep.mubr.msk.f32.mxu0 %vm3050_vm9, %v11532_v63 }
 0x2da   : > { %5332 = vrot.lane.b32.xlu1 %v11629_v60, %s10768_s8  ;;  %v3181_v30 = vpop.permute.xlu0 %3180 }
 0x2db   : > { %9440 = vmatprep.mubr.msk.f32.mxu1 %vm3050_vm9, %v3181_v30  ;;  %v3183_v31 = vpop.permute.xlu1 %3182 }
 0x2dc   : > { %9441 = vmatmul.mubr.msk.f32.vlgmr.msra.gmra.mrb[8].mxu1 %vm3050_vm9, %v3183_v31  ;;  %9567 = vmatmul.mubr.msk.f32.vlgmr.msra.gmra.mrb[8].mxu0 %vm3050_vm9, %v3037_v20  ;;  %v11928_v20 = vld [vmem:[#allocation2 + $0x91] sm:$0xff] }
 0x2dd   : > { %5334 = vrot.lane.b32.xlu0 %v11633_v61, %s10768_s8  ;;  %9453 = vmatpush3.msra.mxu1 %v11729_v17  ;;  %12735 = vst [vmem:[#allocation30_spill] sm:$0xff] %v11928_v20 }
 0x2de   : > { %9569 = vmatprep.mubr.msk.f32.mxu0 %vm3050_vm9, %v3039_v15  ;;  %5336 = vrot.lane.b32.xlu1 %v11637_v1, %s10768_s8  ;;  %v3185_v63 = vpop.permute.xlu0 %3184 }
 0x2df   : > { %9443 = vmatprep.mubr.msk.f32.mxu1 %vm3050_vm9, %v3185_v63  ;;  %v3187_v32 = vpop.permute.xlu1 %3186  ;;  %9579 = vmatpush3.msra.mxu0 %v11729_v17 }
 0x2e0   : > { %9444 = vmatmul.mubr.msk.f32.gmra.mrb[10].mxu1 %vm3050_vm9, %v3187_v32  ;;  %9570 = vmatmul.mubr.msk.f32.gmra.mrb[10].mxu0 %vm3050_vm9, %v3041_v19 }
 0x2e1   : > { %5338 = vrot.lane.b32.xlu0 %v11641_v2, %s10768_s8  ;;  %9572 = vmatprep.mubr.msk.f32.mxu0 %vm3050_vm9, %v3043_v22 }
 0x2e2   : > { %5340 = vrot.lane.b32.xlu1 %v11645_v3, %s10768_s8  ;;  %v3189_v34 = vpop.permute.xlu0 %3188  ;;  %9466 = vmatprep.subr.mxu1 %v11809_v33 }
 0x2e3   : > { %9446 = vmatprep.mubr.msk.f32.mxu1 %vm3050_vm9, %v3189_v34  ;;  %v3191_v35 = vpop.permute.xlu1 %3190  ;;  %9592 = vmatprep.subr.mxu0 %v11809_v33  ;;  %v12016_v34 = vld [vmem:[#allocation9 + $0x38] sm:$0xff] }
 0x2e4   : > { %9447 = vmatmul.mubr.msk.f32.gmra.mrb[12].mxu1 %vm3050_vm9, %v3191_v35  ;;  %9573 = vmatmul.mubr.msk.f32.gmra.mrb[12].mxu0 %vm3050_vm9, %v3045_v23  ;;  %12737 = vst [vmem:[#allocation32_spill] sm:$0xff] %v12016_v34 }
 0x2e5   : > { %5342 = vrot.lane.b32.xlu0 %v11649_v4, %s10768_s8  ;;  %9575 = vmatprep.mubr.msk.f32.mxu0 %vm3050_vm9, %v3047_v26 }
 0x2e6   : > { %5344 = vrot.lane.b32.xlu1 %v11826_v37, %s10768_s8  ;;  %v3193_v38 = vpop.permute.xlu0 %3192  ;;  %s10774_s8 = smov [#allocation15]  }
 0x2e7   : > { %9449 = vmatprep.mubr.msk.f32.mxu1 %vm3050_vm9, %v3193_v38  ;;  %v3195_v40 = vpop.permute.xlu1 %3194  ;;  %s10679_s20 = sshll.u32 %s10774_s8, 4  ;;  %s10680_s20 = int_to_ptr.vmem [resolvable:$false] %s10679_s20 }
 0x2e8   : > { %9450 = vmatmul.mubr.msk.f32.gmra.mrb[14].mxu1 %vm3050_vm9, %v3195_v40  ;;  %9576 = vmatmul.mubr.msk.f32.gmra.mrb[14].mxu0 %vm3050_vm9, %v3049_v27  ;;  %p10682_p11 = scmp.lt.s32.totalorder %s12623_s22, %s10680_s20 }
 0x2e9   : > { %6154 = vrot.lane.b32.xlu0 %v11600_v52, %s10770_s13  ;;  %9454 = vmatprep.mubr.msk.f32.mxu1 %vm3050_vm9, %v11536_v0 }
 0x2ea   : > { %6156 = vrot.lane.b32.xlu1 %v11604_v53, %s10770_s13  ;;  %v4589_v42 = vpop.permute.xlu0 %4588 }
 0x2eb   : > { %9580 = vmatprep.mubr.msk.f32.mxu0 %vm3050_vm9, %v4589_v42  ;;  %v4591_v43 = vpop.permute.xlu1 %4590 }
 0x2ec   : > { %9455 = vmatmul.mubr.msk.f32.vlgmr.msra.gmra.mrb[8].mxu1 %vm3050_vm9, %v11727_v16  ;;  %9581 = vmatmul.mubr.msk.f32.vlgmr.msra.gmra.mrb[8].mxu0 %vm3050_vm9, %v4591_v43  ;;  %v11908_v16 = vld [vmem:[#allocation9 + $0x28] sm:$0xff] }
 0x2ed   : > { %6158 = vrot.lane.b32.xlu0 %v11608_v54, %s10770_s13  ;;  %9457 = vmatprep.mubr.msk.f32.mxu1 %vm3050_vm9, %v11738_v18  ;;  %v6145_v54 = vld [vmem:[#allocation2 + $0x90] sm:$0xff] }
 0x2ee   : > { %6160 = vrot.lane.b32.xlu1 %v11612_v55, %s10770_s13  ;;  %9467 = vmatpush3.msra.mxu1 %v11809_v33  ;;  %v4593_v0 = vpop.permute.xlu0 %4592 }
 0x2ef   : > { %9583 = vmatprep.mubr.msk.f32.mxu0 %vm3050_vm9, %v4593_v0  ;;  %v4595_v50 = vpop.permute.xlu1 %4594  ;;  %9593 = vmatpush3.msra.mxu0 %v11809_v33 }
 0x2f0   : > { %9458 = vmatmul.mubr.msk.f32.gmra.mrb[10].mxu1 %vm3050_vm9, %v11748_v21  ;;  %9584 = vmatmul.mubr.msk.f32.gmra.mrb[10].mxu0 %vm3050_vm9, %v4595_v50 }
 0x2f1   : > { %6162 = vrot.lane.b32.xlu0 %v11616_v56, %s10770_s13  ;;  %9460 = vmatprep.mubr.msk.f32.mxu1 %vm3050_vm9, %v11765_v24 }
 0x2f2   : > { %6164 = vrot.lane.b32.xlu1 %v11620_v57, %s10770_s13  ;;  %v4597_v52 = vpop.permute.xlu0 %4596  ;;  %9480 = vmatprep.subr.mxu1 %v11852_v51 }
 0x2f3   : > { %9586 = vmatprep.mubr.msk.f32.mxu0 %vm3050_vm9, %v4597_v52  ;;  %v4599_v53 = vpop.permute.xlu1 %4598  ;;  %9606 = vmatprep.subr.mxu0 %v11852_v51 }
 0x2f4   : > { %9461 = vmatmul.mubr.msk.f32.gmra.mrb[12].mxu1 %vm3050_vm9, %v11770_v25  ;;  %9587 = vmatmul.mubr.msk.f32.gmra.mrb[12].mxu0 %vm3050_vm9, %v4599_v53  ;;  %v11958_v25 = vld [vmem:[#allocation9 + $0x30] sm:$0xff]  ;;  %v12070_v53 = vld [vmem:[#allocation9 + $0x40] sm:$0xff] }
 0x2f5   : > { %6166 = vrot.lane.b32.xlu0 %v11674_v9, %s10770_s13  ;;  %9463 = vmatprep.mubr.msk.f32.mxu1 %vm3050_vm9, %v11784_v28  ;;  %12736 = vst [vmem:[#allocation31_spill] sm:$0xff] %v11958_v25  ;;  %12738 = vst [vmem:[#allocation33_spill] sm:$0xff] %v12070_v53 }
 0x2f6   : > { %6168 = vrot.lane.b32.xlu1 %v6145_v54, %s10770_s13  ;;  %v4601_v55 = vpop.permute.xlu0 %4600 }
 0x2f7   : > { %9589 = vmatprep.mubr.msk.f32.mxu0 %vm3050_vm9, %v4601_v55  ;;  %v4603_v56 = vpop.permute.xlu1 %4602 }
 0x2f8   : > { %9464 = vmatmul.mubr.msk.f32.gmra.mrb[14].mxu1 %vm3050_vm9, %v11788_v29  ;;  %9590 = vmatmul.mubr.msk.f32.gmra.mrb[14].mxu0 %vm3050_vm9, %v4603_v56 }
 0x2f9   : > { %6444 = vrot.lane.b32.xlu0 %v11548_v36, %s10770_s13  ;;  %9594 = vmatprep.mubr.msk.f32.mxu0 %vm3050_vm9, %v11553_v39 }
 0x2fa   : > { %6446 = vrot.lane.b32.xlu1 %v11565_v44, %s10770_s13  ;;  %v11884_v57 = vpop.permute.xlu0 %3482 }
 0x2fb   : > { %9468 = vmatprep.mubr.msk.f32.mxu1 %vm3050_vm9, %v11884_v57  ;;  %v11888_v58 = vpop.permute.xlu1 %3484 }
 0x2fc   : > { %9469 = vmatmul.mubr.msk.f32.vlgmr.msra.gmra.mrb[8].mxu1 %vm3050_vm9, %v11888_v58  ;;  %9595 = vmatmul.mubr.msk.f32.vlgmr.msra.gmra.mrb[8].mxu0 %vm3050_vm9, %v11548_v36 }
 0x2fd   : > { %6448 = vrot.lane.b32.xlu0 %v11574_v45, %s10770_s13  ;;  %9481 = vmatpush3.msra.mxu1 %v11852_v51 }
 0x2fe   : > { %6450 = vrot.lane.b32.xlu1 %v11578_v46, %s10770_s13  ;;  %9597 = vmatprep.mubr.msk.f32.mxu0 %vm3050_vm9, %v11565_v44  ;;  %v11901_v9 = vpop.permute.xlu0 %3486 }
 0x2ff   : > { %9471 = vmatprep.mubr.msk.f32.mxu1 %vm3050_vm9, %v11901_v9  ;;  %v11905_v15 = vpop.permute.xlu1 %3488  ;;  %9607 = vmatpush3.msra.mxu0 %v11852_v51 }
 0x300   : > { %9472 = vmatmul.mubr.msk.f32.gmra.mrb[10].mxu1 %vm3050_vm9, %v11905_v15  ;;  %9598 = vmatmul.mubr.msk.f32.gmra.mrb[10].mxu0 %vm3050_vm9, %v11574_v45 }
 0x301   : > { %6452 = vrot.lane.b32.xlu0 %v11586_v48, %s10770_s13  ;;  %9600 = vmatprep.mubr.msk.f32.mxu0 %vm3050_vm9, %v11578_v46 }
 0x302   : > { %6454 = vrot.lane.b32.xlu1 %v11590_v49, %s10770_s13  ;;  %v11920_v18 = vpop.permute.xlu0 %3490  ;;  %9494 = vmatprep.subr.mxu1 %v11908_v16 }
 0x303   : > { %9474 = vmatprep.mubr.msk.f32.mxu1 %vm3050_vm9, %v11920_v18  ;;  %v11925_v19 = vpop.permute.xlu1 %3492  ;;  %9620 = vmatprep.subr.mxu0 %v11908_v16 }
 0x304   : > { %9475 = vmatmul.mubr.msk.f32.gmra.mrb[12].mxu1 %vm3050_vm9, %v11925_v19  ;;  %9601 = vmatmul.mubr.msk.f32.gmra.mrb[12].mxu0 %vm3050_vm9, %v11586_v48 }
 0x305   : > { %6456 = vrot.lane.b32.xlu0 %v11700_v14, %s10770_s13  ;;  %9603 = vmatprep.mubr.msk.f32.mxu0 %vm3050_vm9, %v11590_v49 }
 0x306   : > { %v11938_v21 = vpop.permute.xlu0 %3494  ;;  %6458 = vrot.lane.b32.xlu1 %v11928_v20, %s10770_s13  ;;  %s10681_s13 = scalar_lea.vmem %s10680_s20, 2048 }
 0x307   : > { %9477 = vmatprep.mubr.msk.f32.mxu1 %vm3050_vm9, %v11938_v21  ;;  %v11944_v22 = vpop.permute.xlu1 %3496  ;;  %p10683_p12 = scmp.lt.s32.totalorder %s10681_s13, %s10675_s15 }
 0x308   : > { %9478 = vmatmul.mubr.msk.f32.gmra.mrb[14].mxu1 %vm3050_vm9, %v11944_v22  ;;  %9604 = vmatmul.mubr.msk.f32.gmra.mrb[14].mxu0 %vm3050_vm9, %v11700_v14 }
 0x309   : > { %9482 = vmatprep.mubr.msk.f32.mxu1 %vm3050_vm9, %v11553_v39  ;;  %p10684_p13 = por %p10683_p12, %p10682_p11 }
 0x30a   : > { %v11952_v23 = vpop.permute.xlu0 %3776 }
 0x30b   : > { %9608 = vmatprep.mubr.msk.f32.mxu0 %vm3050_vm9, %v11952_v23  ;;  %v11956_v24 = vpop.permute.xlu1 %3778  ;;  %p10685_p8 = pnand %p10684_p13, %p10678_p1 }
 0x30c   : > { %9483 = vmatmul.mubr.msk.f32.vlgmr.msra.gmra.mrb[8].mxu1 %vm3050_vm9, %v11548_v36  ;;  %9609 = vmatmul.mubr.msk.f32.vlgmr.msra.gmra.mrb[8].mxu0 %vm3050_vm9, %v11956_v24 }
 0x30d   : > { %9485 = vmatprep.mubr.msk.f32.mxu1 %vm3050_vm9, %v11565_v44  ;;  %9495 = vmatpush3.msra.mxu1 %v11908_v16 }
 0x30e   : > { %v11967_v26 = vpop.permute.xlu0 %3780  ;;  %9621 = vmatpush3.msra.mxu0 %v11908_v16  ;;  %9508 = vmatprep.subr.mxu1 %v11958_v25 }
 0x30f   : > { %9611 = vmatprep.mubr.msk.f32.mxu0 %vm3050_vm9, %v11967_v26  ;;  %v11973_v27 = vpop.permute.xlu1 %3782  ;;  %9634 = vmatprep.subr.mxu0 %v11958_v25 }
 0x310   : > { %9486 = vmatmul.mubr.msk.f32.gmra.mrb[10].mxu1 %vm3050_vm9, %v11574_v45  ;;  %9612 = vmatmul.mubr.msk.f32.gmra.mrb[10].mxu0 %vm3050_vm9, %v11973_v27 }
 0x311   : > { %9488 = vmatprep.mubr.msk.f32.mxu1 %vm3050_vm9, %v11578_v46 }
 0x312   : > { %v11982_v28 = vpop.permute.xlu0 %3784 }
 0x313   : > { %9614 = vmatprep.mubr.msk.f32.mxu0 %vm3050_vm9, %v11982_v28  ;;  %v11986_v29 = vpop.permute.xlu1 %3786 }
 0x314   : > { %9489 = vmatmul.mubr.msk.f32.gmra.mrb[12].mxu1 %vm3050_vm9, %v11586_v48  ;;  %9615 = vmatmul.mubr.msk.f32.gmra.mrb[12].mxu0 %vm3050_vm9, %v11986_v29 }
 0x315   : > { %9491 = vmatprep.mubr.msk.f32.mxu1 %vm3050_vm9, %v11590_v49 }
 0x316   : > { %v11994_v30 = vpop.permute.xlu0 %3788 }
 0x317   : > { %9617 = vmatprep.mubr.msk.f32.mxu0 %vm3050_vm9, %v11994_v30  ;;  %v11998_v31 = vpop.permute.xlu1 %3790 }
 0x318   : > { %9492 = vmatmul.mubr.msk.f32.gmra.mrb[14].mxu1 %vm3050_vm9, %v11700_v14  ;;  %9618 = vmatmul.mubr.msk.f32.gmra.mrb[14].mxu0 %vm3050_vm9, %v11998_v31 }
 0x319   : > { %9496 = vmatprep.mubr.msk.f32.mxu1 %vm3050_vm9, %v11952_v23  ;;  %9622 = vmatprep.mubr.msk.f32.mxu0 %vm3050_vm9, %v11625_v59 }
 0x31a   : > { %v12008_v63 = vpop.permute.xlu0 %3923 }
 0x31b   : > { %v12010_v32 = vpop.permute.xlu1 %3925 }
 0x31c   : > { %9497 = vmatmul.mubr.msk.f32.vlgmr.msra.gmra.mrb[8].mxu1 %vm3050_vm9, %v11956_v24  ;;  %9623 = vmatmul.mubr.msk.f32.vlgmr.msra.gmra.mrb[8].mxu0 %vm3050_vm9, %v11629_v60 }
 0x31d   : > { %9499 = vmatprep.mubr.msk.f32.mxu1 %vm3050_vm9, %v11967_v26  ;;  %9509 = vmatpush3.msra.mxu1 %v11958_v25 }
 0x31e   : > { %9625 = vmatprep.mubr.msk.f32.mxu0 %vm3050_vm9, %v11633_v61  ;;  %v12023_v35 = vpop.permute.xlu0 %4070  ;;  %9635 = vmatpush3.msra.mxu0 %v11958_v25 }
 0x31f   : > { %v12026_v38 = vpop.permute.xlu1 %4072  ;;  %9522 = vmatprep.subr.mxu1 %v12016_v34  ;;  %9648 = vmatprep.subr.mxu0 %v12016_v34 }
 0x320   : > { %9500 = vmatmul.mubr.msk.f32.gmra.mrb[10].mxu1 %vm3050_vm9, %v11973_v27  ;;  %9626 = vmatmul.mubr.msk.f32.gmra.mrb[10].mxu0 %vm3050_vm9, %v11637_v1 }
 0x321   : > { %9502 = vmatprep.mubr.msk.f32.mxu1 %vm3050_vm9, %v11982_v28  ;;  %9628 = vmatprep.mubr.msk.f32.mxu0 %vm3050_vm9, %v11641_v2 }
 0x322   : > { %v12038_v40 = vpop.permute.xlu0 %3927 }
 0x323   : > { %v12040_v42 = vpop.permute.xlu1 %3929 }
 0x324   : > { %9503 = vmatmul.mubr.msk.f32.gmra.mrb[12].mxu1 %vm3050_vm9, %v11986_v29  ;;  %9629 = vmatmul.mubr.msk.f32.gmra.mrb[12].mxu0 %vm3050_vm9, %v11645_v3 }
 0x325   : > { %9505 = vmatprep.mubr.msk.f32.mxu1 %vm3050_vm9, %v11994_v30  ;;  %9631 = vmatprep.mubr.msk.f32.mxu0 %vm3050_vm9, %v11649_v4 }
 0x326   : > { %v12050_v43 = vpop.permute.xlu0 %4074 }
 0x327   : > { %v12052_v0 = vpop.permute.xlu1 %4076 }
 0x328   : > { %9506 = vmatmul.mubr.msk.f32.gmra.mrb[14].mxu1 %vm3050_vm9, %v11998_v31  ;;  %9632 = vmatmul.mubr.msk.f32.gmra.mrb[14].mxu0 %vm3050_vm9, %v11826_v37 }
 0x329   : > { %9510 = vmatprep.mubr.msk.f32.mxu1 %vm3050_vm9, %v12008_v63  ;;  %9636 = vmatprep.mubr.msk.f32.mxu0 %vm3050_vm9, %v12023_v35 }
 0x32a   : > { %v12062_v50 = vpop.permute.xlu0 %3931 }
 0x32b   : > { %v12064_v52 = vpop.permute.xlu1 %3933 }
 0x32c   : > { %9511 = vmatmul.mubr.msk.f32.vlgmr.msra.gmra.mrb[8].mxu1 %vm3050_vm9, %v12010_v32  ;;  %9637 = vmatmul.mubr.msk.f32.vlgmr.msra.gmra.mrb[8].mxu0 %vm3050_vm9, %v12026_v38 }
 0x32d   : > { %9513 = vmatprep.mubr.msk.f32.mxu1 %vm3050_vm9, %v12038_v40  ;;  %9523 = vmatpush3.msra.mxu1 %v12016_v34 }
 0x32e   : > { %9639 = vmatprep.mubr.msk.f32.mxu0 %vm3050_vm9, %v12050_v43  ;;  %v12077_v54 = vpop.permute.xlu0 %4078  ;;  %9649 = vmatpush3.msra.mxu0 %v12016_v34 }
 0x32f   : > { %v12080_v55 = vpop.permute.xlu1 %4080  ;;  %9536 = vmatprep.subr.mxu1 %v12070_v53  ;;  %9662 = vmatprep.subr.mxu0 %v12070_v53 }
 0x330   : > { %9514 = vmatmul.mubr.msk.f32.gmra.mrb[10].mxu1 %vm3050_vm9, %v12040_v42  ;;  %9640 = vmatmul.mubr.msk.f32.gmra.mrb[10].mxu0 %vm3050_vm9, %v12052_v0 }
 0x331   : > { %9516 = vmatprep.mubr.msk.f32.mxu1 %vm3050_vm9, %v12062_v50  ;;  %9642 = vmatprep.mubr.msk.f32.mxu0 %vm3050_vm9, %v12077_v54 }
 0x332   : > { %v12092_v56 = vpop.permute.xlu0 %3935 }
 0x333   : > { %v12094_v13 = vpop.permute.xlu1 %3937 }
 0x334   : > { %9517 = vmatmul.mubr.msk.f32.gmra.mrb[12].mxu1 %vm3050_vm9, %v12064_v52  ;;  %9643 = vmatmul.mubr.msk.f32.gmra.mrb[12].mxu0 %vm3050_vm9, %v12080_v55 }
 0x335   : > { %9519 = vmatprep.mubr.msk.f32.mxu1 %vm3050_vm9, %v12092_v56 }
 0x336   : > { %v12102_v12 = vpop.permute.xlu0 %4082 }
 0x337   : > { %9645 = vmatprep.mubr.msk.f32.mxu0 %vm3050_vm9, %v12102_v12  ;;  %v12106_v11 = vpop.permute.xlu1 %4084 }
 0x338   : > { %9520 = vmatmul.mubr.msk.f32.gmra.mrb[14].mxu1 %vm3050_vm9, %v12094_v13  ;;  %9646 = vmatmul.mubr.msk.f32.gmra.mrb[14].mxu0 %vm3050_vm9, %v12106_v11 }
 0x339   : > { %9524 = vmatprep.mubr.msk.f32.mxu1 %vm3050_vm9, %v12023_v35 }
 0x33b   : > { %v12114_v10 = vpop.permute.xlu0 %4217  ;;  %v12116_v8 = vpop.permute.xlu1 %4219 }
 0x33c   : > { %12739 = vst [vmem:[#allocation34_spill] sm:$0xff] %v12114_v10  ;;  %9650 = vmatprep.mubr.msk.f32.mxu0 %vm3050_vm9, %v12114_v10  ;;  %9525 = vmatmul.mubr.msk.f32.vlgmr.msra.gmra.mrb[8].mxu1 %vm3050_vm9, %v12026_v38 }
 0x33d   : > { %9651 = vmatmul.mubr.msk.f32.vlgmr.msra.gmra.mrb[8].mxu0 %vm3050_vm9, %v12116_v8  ;;  %9527 = vmatprep.mubr.msk.f32.mxu1 %vm3050_vm9, %v12050_v43 }
 0x33e   : > { %9537 = vmatpush3.msra.mxu1 %v12070_v53  ;;  %9663 = vmatpush3.msra.mxu0 %v12070_v53 }
 0x33f   : > { %v12128_v7 = vpop.permute.xlu0 %4221  ;;  %v12130_v6 = vpop.permute.xlu1 %4223  ;;  %9676 = vmatprep.subr.mxu1 %v11530_v62  ;;  %9802 = vmatprep.subr.mxu0 %v11530_v62 }
 0x340   : > { %9653 = vmatprep.mubr.msk.f32.mxu0 %vm3050_vm9, %v12128_v7  ;;  %9528 = vmatmul.mubr.msk.f32.gmra.mrb[10].mxu1 %vm3050_vm9, %v12052_v0 }
 0x341   : > { %9654 = vmatmul.mubr.msk.f32.gmra.mrb[10].mxu0 %vm3050_vm9, %v12130_v6  ;;  %9530 = vmatprep.mubr.msk.f32.mxu1 %vm3050_vm9, %v12077_v54 }
 0x343   : > { %v12142_v5 = vpop.permute.xlu0 %4225  ;;  %v12144_v47 = vpop.permute.xlu1 %4227 }
 0x344   : > { %9656 = vmatprep.mubr.msk.f32.mxu0 %vm3050_vm9, %v12142_v5  ;;  %9531 = vmatmul.mubr.msk.f32.gmra.mrb[12].mxu1 %vm3050_vm9, %v12080_v55 }
 0x345   : > { %9657 = vmatmul.mubr.msk.f32.gmra.mrb[12].mxu0 %vm3050_vm9, %v12144_v47  ;;  %9533 = vmatprep.mubr.msk.f32.mxu1 %vm3050_vm9, %v12102_v12 }
 0x347   : > { %v12154_v20 = vpop.permute.xlu0 %4229  ;;  %v12156_v53 = vpop.permute.xlu1 %4231 }
 0x348   : > { %9659 = vmatprep.mubr.msk.f32.mxu0 %vm3050_vm9, %v12154_v20  ;;  %9534 = vmatmul.mubr.msk.f32.gmra.mrb[14].mxu1 %vm3050_vm9, %v12106_v11 }
 0x349   : > { %9660 = vmatmul.mubr.msk.f32.gmra.mrb[14].mxu0 %vm3050_vm9, %v12156_v53  ;;  %9538 = vmatprep.mubr.msk.f32.mxu1 %vm3050_vm9, %v12114_v10 }
 0x34b   : > { %v12166_v34 = vpop.permute.xlu0 %5330 }
 0x34c   : > { %12740 = vst [vmem:[#allocation35_spill] sm:$0xff] %v12166_v34  ;;  %9664 = vmatprep.mubr.msk.f32.mxu0 %vm3050_vm9, %v12166_v34  ;;  %v12170_v25 = vpop.permute.xlu1 %5332  ;;  %9539 = vmatmul.mubr.msk.f32.vlgmr.msra.gmra.mrb[8].mxu1 %vm3050_vm9, %v12116_v8 }
 0x34d   : > { %12741 = vst [vmem:[#allocation36_spill] sm:$0xff] %v12170_v25  ;;  %9665 = vmatmul.mubr.msk.f32.vlgmr.msra.gmra.mrb[8].mxu0 %vm3050_vm9, %v12170_v25  ;;  %9541 = vmatprep.mubr.msk.f32.mxu1 %vm3050_vm9, %v12128_v7 }
 0x34e   : > { %9677 = vmatpush3.msra.mxu1 %v11530_v62  ;;  %9803 = vmatpush3.msra.mxu0 %v11530_v62 }
 0x34f   : > { %v12180_v10 = vpop.permute.xlu0 %5334  ;;  %9690 = vmatprep.subr.mxu1 %v11558_v41  ;;  %9816 = vmatprep.subr.mxu0 %v11558_v41 }
 0x350   : > { %12742 = vst [vmem:[#allocation37_spill] sm:$0xff] %v12180_v10  ;;  %9667 = vmatprep.mubr.msk.f32.mxu0 %vm3050_vm9, %v12180_v10  ;;  %v12186_v34 = vpop.permute.xlu1 %5336  ;;  %9542 = vmatmul.mubr.msk.f32.gmra.mrb[10].mxu1 %vm3050_vm9, %v12130_v6 }
 0x351   : > { %12743 = vst [vmem:[#allocation38_spill] sm:$0xff] %v12186_v34  ;;  %9668 = vmatmul.mubr.msk.f32.gmra.mrb[10].mxu0 %vm3050_vm9, %v12186_v34  ;;  %9544 = vmatprep.mubr.msk.f32.mxu1 %vm3050_vm9, %v12142_v5 }
 0x353   : > { %v12194_v62 = vpop.permute.xlu0 %5338 }
 0x354   : > { %9670 = vmatprep.mubr.msk.f32.mxu0 %vm3050_vm9, %v12194_v62  ;;  %v12198_v25 = vpop.permute.xlu1 %5340  ;;  %9545 = vmatmul.mubr.msk.f32.gmra.mrb[12].mxu1 %vm3050_vm9, %v12144_v47 }
 0x355   : > { %9671 = vmatmul.mubr.msk.f32.gmra.mrb[12].mxu0 %vm3050_vm9, %v12198_v25  ;;  %9547 = vmatprep.mubr.msk.f32.mxu1 %vm3050_vm9, %v12154_v20 }
 0x357   : > { %v12206_v34 = vpop.permute.xlu0 %5342 }
 0x358   : > { %9673 = vmatprep.mubr.msk.f32.mxu0 %vm3050_vm9, %v12206_v34  ;;  %v12210_v10 = vpop.permute.xlu1 %5344  ;;  %9548 = vmatmul.mubr.msk.f32.gmra.mrb[14].mxu1 %vm3050_vm9, %v12156_v53 }
 0x359   : > { %9674 = vmatmul.mubr.msk.f32.gmra.mrb[14].mxu0 %vm3050_vm9, %v12210_v10  ;;  %9678 = vmatprep.mubr.msk.f32.mxu1 %vm3050_vm9, %v11553_v39 }
 0x35a   : > { %9804 = vmatprep.mubr.msk.f32.mxu0 %vm3050_vm9, %v11952_v23 }
 0x35c   : > { %9679 = vmatmul.mubr.msk.f32.vlgmr.msra.gmra.mrb[16].mxu1 %vm3050_vm9, %v11548_v36 }
 0x35d   : > { %9805 = vmatmul.mubr.msk.f32.vlgmr.msra.gmra.mrb[16].mxu0 %vm3050_vm9, %v11956_v24  ;;  %9681 = vmatprep.mubr.msk.f32.mxu1 %vm3050_vm9, %v11565_v44 }
 0x35e   : > { %9691 = vmatpush3.msra.mxu1 %v11558_v41  ;;  %9807 = vmatprep.mubr.msk.f32.mxu0 %vm3050_vm9, %v11967_v26 }
 0x35f   : > { %9817 = vmatpush3.msra.mxu0 %v11558_v41  ;;  %9704 = vmatprep.subr.mxu1 %v11729_v17  ;;  %v12746_v41 = vld [vmem:[#allocation35_spill] sm:$0xff] }
 0x360   : > { %9682 = vmatmul.mubr.msk.f32.gmra.mrb[18].mxu1 %vm3050_vm9, %v11574_v45  ;;  %9830 = vmatprep.subr.mxu0 %v11729_v17 }
 0x361   : > { %9808 = vmatmul.mubr.msk.f32.gmra.mrb[18].mxu0 %vm3050_vm9, %v11973_v27  ;;  %9684 = vmatprep.mubr.msk.f32.mxu1 %vm3050_vm9, %v11578_v46 }
 0x362   : > { %9810 = vmatprep.mubr.msk.f32.mxu0 %vm3050_vm9, %v11982_v28 }
 0x364   : > { %9685 = vmatmul.mubr.msk.f32.gmra.mrb[20].mxu1 %vm3050_vm9, %v11586_v48 }
 0x365   : > { %9811 = vmatmul.mubr.msk.f32.gmra.mrb[20].mxu0 %vm3050_vm9, %v11986_v29  ;;  %9687 = vmatprep.mubr.msk.f32.mxu1 %vm3050_vm9, %v11590_v49 }
 0x366   : > { %9813 = vmatprep.mubr.msk.f32.mxu0 %vm3050_vm9, %v11994_v30 }
 0x368   : > { %9688 = vmatmul.mubr.msk.f32.gmra.mrb[22].mxu1 %vm3050_vm9, %v11700_v14 }
 0x369   : > { %9814 = vmatmul.mubr.msk.f32.gmra.mrb[22].mxu0 %vm3050_vm9, %v11998_v31  ;;  %9692 = vmatprep.mubr.msk.f32.mxu1 %vm3050_vm9, %v11884_v57  ;;  %v12752_v57 = vld [vmem:[#allocation30_spill] sm:$0xff] }
 0x36a   : > { %9818 = vmatprep.mubr.msk.f32.mxu0 %vm3050_vm9, %v11553_v39  ;;  %v12745_v39 = vld [vmem:[#allocation31_spill] sm:$0xff] }
 0x36c   : > { %9693 = vmatmul.mubr.msk.f32.vlgmr.msra.gmra.mrb[16].mxu1 %vm3050_vm9, %v11888_v58 }
 0x36d   : > { %9819 = vmatmul.mubr.msk.f32.vlgmr.msra.gmra.mrb[16].mxu0 %vm3050_vm9, %v11548_v36  ;;  %9695 = vmatprep.mubr.msk.f32.mxu1 %vm3050_vm9, %v11901_v9  ;;  %v12744_v36 = vld [vmem:[#allocation34_spill] sm:$0xff] }
 0x36e   : > { %9705 = vmatpush3.msra.mxu1 %v11729_v17  ;;  %9821 = vmatprep.mubr.msk.f32.mxu0 %vm3050_vm9, %v11565_v44  ;;  %v6155_v44 = vpop.permute.xlu0 %6154 }
 0x36f   : > { %9831 = vmatpush3.msra.mxu0 %v11729_v17  ;;  %9718 = vmatprep.subr.mxu1 %v11809_v33  ;;  %v7752_v17 = vld [vmem:[#allocation14] sm:$0xff] }
 0x370   : > { %9696 = vmatmul.mubr.msk.f32.gmra.mrb[18].mxu1 %vm3050_vm9, %v11905_v15  ;;  %9844 = vmatprep.subr.mxu0 %v11809_v33 }
 0x371   : > { %9822 = vmatmul.mubr.msk.f32.gmra.mrb[18].mxu0 %vm3050_vm9, %v11574_v45  ;;  %9698 = vmatprep.mubr.msk.f32.mxu1 %vm3050_vm9, %v11920_v18  ;;  %v12747_v45 = vld [vmem:[#allocation36_spill] sm:$0xff] }
 0x372   : > { %9824 = vmatprep.mubr.msk.f32.mxu0 %vm3050_vm9, %v11578_v46  ;;  %v6157_v46 = vpop.permute.xlu1 %6156 }
 0x374   : > { %9699 = vmatmul.mubr.msk.f32.gmra.mrb[20].mxu1 %vm3050_vm9, %v11925_v19 }
 0x375   : > { %9825 = vmatmul.mubr.msk.f32.gmra.mrb[20].mxu0 %vm3050_vm9, %v11586_v48  ;;  %9701 = vmatprep.mubr.msk.f32.mxu1 %vm3050_vm9, %v11938_v21  ;;  %v12748_v48 = vld [vmem:[#allocation37_spill] sm:$0xff]  ;;  %v7477_v21 = vld [vmem:[#allocation2 + $0x22] sm:$0xff] }
 0x376   : > { %9827 = vmatprep.mubr.msk.f32.mxu0 %vm3050_vm9, %v11590_v49  ;;  %v12749_v49 = vld [vmem:[#allocation32_spill] sm:$0xff] }
 0x378   : > { %9702 = vmatmul.mubr.msk.f32.gmra.mrb[22].mxu1 %vm3050_vm9, %v11944_v22  ;;  %v7478_v22 = vld [vmem:[#allocation2 + $0x32] sm:$0xff] }
 0x379   : > { %9828 = vmatmul.mubr.msk.f32.gmra.mrb[22].mxu0 %vm3050_vm9, %v11700_v14  ;;  %9706 = vmatprep.mubr.msk.f32.mxu1 %vm3050_vm9, %v11952_v23  ;;  %v7480_v23 = vld [vmem:[#allocation2 + $0x52] sm:$0xff] }
 0x37a   : > { %9832 = vmatprep.mubr.msk.f32.mxu0 %vm3050_vm9, %v11625_v59  ;;  %v6159_v59 = vpop.permute.xlu0 %6158 }
 0x37c   : > { %9707 = vmatmul.mubr.msk.f32.vlgmr.msra.gmra.mrb[16].mxu1 %vm3050_vm9, %v11956_v24  ;;  %v7481_v24 = vld [vmem:[#allocation2 + $0x62] sm:$0xff] }
 0x37d   : > { %9833 = vmatmul.mubr.msk.f32.vlgmr.msra.gmra.mrb[16].mxu0 %vm3050_vm9, %v11629_v60  ;;  %9709 = vmatprep.mubr.msk.f32.mxu1 %vm3050_vm9, %v11967_v26  ;;  %v12750_v60 = vld [vmem:[#allocation38_spill] sm:$0xff] }
 0x37e   : > { %9719 = vmatpush3.msra.mxu1 %v11809_v33  ;;  %9835 = vmatprep.mubr.msk.f32.mxu0 %vm3050_vm9, %v11633_v61  ;;  %v6161_v61 = vpop.permute.xlu1 %6160  ;;  %v7484_v26 = vld [vmem:[#allocation2 + $0x92] sm:$0xff] }
 0x37f   : > { %9845 = vmatpush3.msra.mxu0 %v11809_v33  ;;  %9732 = vmatprep.subr.mxu1 %v11852_v51  ;;  %v7753_v33 = vld [vmem:[#allocation14 + $0x8] sm:$0x1] }
 0x380   : > { %9710 = vmatmul.mubr.msk.f32.gmra.mrb[18].mxu1 %vm3050_vm9, %v11973_v27  ;;  %9858 = vmatprep.subr.mxu0 %v11852_v51  ;;  %v9950_v58 = vpack.c.bf16 %v7753_v33, %v7752_v17  ;;  %v7744_v27 = vld [vmem:[#allocation11] sm:$0xff] }
 0x381   : > { %9836 = vmatmul.mubr.msk.f32.gmra.mrb[18].mxu0 %vm3050_vm9, %v11637_v1  ;;  %9712 = vmatprep.mubr.msk.f32.mxu1 %vm3050_vm9, %v11982_v28  ;;  %v6163_v1 = vpop.permute.xlu0 %6162  ;;  %v7745_v28 = vld [vmem:[#allocation11 + $0x8] sm:$0xff] }
 0x382   : > { %9838 = vmatprep.mubr.msk.f32.mxu0 %vm3050_vm9, %v11641_v2  ;;  %v6165_v2 = vpop.permute.xlu1 %6164 }
 0x384   : > { %9713 = vmatmul.mubr.msk.f32.gmra.mrb[20].mxu1 %vm3050_vm9, %v11986_v29  ;;  %v7746_v29 = vld [vmem:[#allocation11 + $0x10] sm:$0xff] }
 0x385   : > { %9839 = vmatmul.mubr.msk.f32.gmra.mrb[20].mxu0 %vm3050_vm9, %v11645_v3  ;;  %9715 = vmatprep.mubr.msk.f32.mxu1 %vm3050_vm9, %v11994_v30  ;;  %v6167_v3 = vpop.permute.xlu0 %6166  ;;  %v7747_v30 = vld [vmem:[#allocation11 + $0x18] sm:$0xff] }
 0x386   : > { %9841 = vmatprep.mubr.msk.f32.mxu0 %vm3050_vm9, %v11649_v4  ;;  %v10472_v4 = vld [vmem:[#allocation2 + $0x31] sm:$0xff] }
 0x388   : > { %9716 = vmatmul.mubr.msk.f32.gmra.mrb[22].mxu1 %vm3050_vm9, %v11998_v31  ;;  %v7748_v31 = vld [vmem:[#allocation11 + $0x20] sm:$0xff] }
 0x389   : > { %9842 = vmatmul.mubr.msk.f32.gmra.mrb[22].mxu0 %vm3050_vm9, %v11826_v37  ;;  %9720 = vmatprep.mubr.msk.f32.mxu1 %vm3050_vm9, %v12008_v63  ;;  %v7750_v63 = vld [vmem:[#allocation11 + $0x30] sm:$0xff] }
 0x38a   : > { %9846 = vmatprep.mubr.msk.f32.mxu0 %vm3050_vm9, %v12023_v35 }
 0x38c   : > { %9721 = vmatmul.mubr.msk.f32.vlgmr.msra.gmra.mrb[16].mxu1 %vm3050_vm9, %v12010_v32  ;;  %v7751_v32 = vld [vmem:[#allocation11 + $0x38] sm:$0xff] }
 0x38d   : > { %9847 = vmatmul.mubr.msk.f32.vlgmr.msra.gmra.mrb[16].mxu0 %vm3050_vm9, %v12026_v38  ;;  %9723 = vmatprep.mubr.msk.f32.mxu1 %vm3050_vm9, %v12038_v40 }
 0x38e   : > { %9733 = vmatpush3.msra.mxu1 %v11852_v51  ;;  %9849 = vmatprep.mubr.msk.f32.mxu0 %vm3050_vm9, %v12050_v43 }
 0x38f   : > { %9859 = vmatpush3.msra.mxu0 %v11852_v51  ;;  %9746 = vmatprep.subr.mxu1 %v11908_v16 }
 0x390   : > { %9724 = vmatmul.mubr.msk.f32.gmra.mrb[18].mxu1 %vm3050_vm9, %v12040_v42  ;;  %9872 = vmatprep.subr.mxu0 %v11908_v16 }
 0x391   : > { %9850 = vmatmul.mubr.msk.f32.gmra.mrb[18].mxu0 %vm3050_vm9, %v12052_v0  ;;  %9726 = vmatprep.mubr.msk.f32.mxu1 %vm3050_vm9, %v12062_v50 }
 0x392   : > { %9852 = vmatprep.mubr.msk.f32.mxu0 %vm3050_vm9, %v12077_v54 }
 0x394   : > { %9727 = vmatmul.mubr.msk.f32.gmra.mrb[20].mxu1 %vm3050_vm9, %v12064_v52 }
 0x395   : > { %9853 = vmatmul.mubr.msk.f32.gmra.mrb[20].mxu0 %vm3050_vm9, %v12080_v55  ;;  %9729 = vmatprep.mubr.msk.f32.mxu1 %vm3050_vm9, %v12092_v56 }
 0x396   : > { %9855 = vmatprep.mubr.msk.f32.mxu0 %vm3050_vm9, %v12102_v12 }
 0x398   : > { %9730 = vmatmul.mubr.msk.f32.gmra.mrb[22].mxu1 %vm3050_vm9, %v12094_v13 }
 0x399   : > { %9856 = vmatmul.mubr.msk.f32.gmra.mrb[22].mxu0 %vm3050_vm9, %v12106_v11  ;;  %9734 = vmatprep.mubr.msk.f32.mxu1 %vm3050_vm9, %v12023_v35 }
 0x39a   : > { %9860 = vmatprep.mubr.msk.f32.mxu0 %vm3050_vm9, %v12744_v36 }
 0x39c   : > { %9735 = vmatmul.mubr.msk.f32.vlgmr.msra.gmra.mrb[16].mxu1 %vm3050_vm9, %v12026_v38 }
 0x39d   : > { %9861 = vmatmul.mubr.msk.f32.vlgmr.msra.gmra.mrb[16].mxu0 %vm3050_vm9, %v12116_v8  ;;  %9737 = vmatprep.mubr.msk.f32.mxu1 %vm3050_vm9, %v12050_v43 }
 0x39e   : > { %9747 = vmatpush3.msra.mxu1 %v11908_v16  ;;  %9863 = vmatprep.mubr.msk.f32.mxu0 %vm3050_vm9, %v12128_v7 }
 0x39f   : > { %9873 = vmatpush3.msra.mxu0 %v11908_v16  ;;  %9760 = vmatprep.subr.mxu1 %v12745_v39 }
 0x3a0   : > { %9738 = vmatmul.mubr.msk.f32.gmra.mrb[18].mxu1 %vm3050_vm9, %v12052_v0  ;;  %9886 = vmatprep.subr.mxu0 %v12745_v39 }
 0x3a1   : > { %9864 = vmatmul.mubr.msk.f32.gmra.mrb[18].mxu0 %vm3050_vm9, %v12130_v6  ;;  %9740 = vmatprep.mubr.msk.f32.mxu1 %vm3050_vm9, %v12077_v54 }
 0x3a2   : > { %9866 = vmatprep.mubr.msk.f32.mxu0 %vm3050_vm9, %v12142_v5 }
 0x3a4   : > { %9741 = vmatmul.mubr.msk.f32.gmra.mrb[20].mxu1 %vm3050_vm9, %v12080_v55 }
 0x3a5   : > { %9867 = vmatmul.mubr.msk.f32.gmra.mrb[20].mxu0 %vm3050_vm9, %v12144_v47  ;;  %9743 = vmatprep.mubr.msk.f32.mxu1 %vm3050_vm9, %v12102_v12  ;;  %v10476_v12 = vld [vmem:[#allocation2 + $0x71] sm:$0xff] }
 0x3a6   : > { %9869 = vmatprep.mubr.msk.f32.mxu0 %vm3050_vm9, %v12154_v20 }
 0x3a8   : > { %9744 = vmatmul.mubr.msk.f32.gmra.mrb[22].mxu1 %vm3050_vm9, %v12106_v11  ;;  %v6445_v11 = vpop.permute.xlu0 %6444 }
 0x3a9   : > { %9870 = vmatmul.mubr.msk.f32.gmra.mrb[22].mxu0 %vm3050_vm9, %v12156_v53  ;;  %9748 = vmatprep.mubr.msk.f32.mxu1 %vm3050_vm9, %v12744_v36 }
 0x3aa   : > { %9874 = vmatprep.mubr.msk.f32.mxu0 %vm3050_vm9, %v12746_v41 }
 0x3ac   : > { %9749 = vmatmul.mubr.msk.f32.vlgmr.msra.gmra.mrb[16].mxu1 %vm3050_vm9, %v12116_v8  ;;  %v10474_v8 = vld [vmem:[#allocation2 + $0x51] sm:$0xff]  ;;  %v6449_v51 = vpop.permute.xlu0 %6448 }
 0x3ad   : > { %9875 = vmatmul.mubr.msk.f32.vlgmr.msra.gmra.mrb[16].mxu0 %vm3050_vm9, %v12747_v45  ;;  %9751 = vmatprep.mubr.msk.f32.mxu1 %vm3050_vm9, %v12128_v7  ;;  %v6169_v7 = vpop.permute.xlu1 %6168 }
 0x3ae   : > { %9761 = vmatpush3.msra.mxu1 %v12745_v39  ;;  %9877 = vmatprep.mubr.msk.f32.mxu0 %vm3050_vm9, %v12748_v48 }
 0x3af   : > { %9887 = vmatpush3.msra.mxu0 %v12745_v39  ;;  %9774 = vmatprep.subr.mxu1 %v12749_v49 }
 0x3b0   : > { %9752 = vmatmul.mubr.msk.f32.gmra.mrb[18].mxu1 %vm3050_vm9, %v12130_v6  ;;  %9900 = vmatprep.subr.mxu0 %v12749_v49  ;;  %v12751_v6 = vld [vmem:[#allocation33_spill] sm:$0xff]  ;;  %v6453_v15 = vpop.permute.xlu0 %6452 }
 0x3b1   : > { %9878 = vmatmul.mubr.msk.f32.gmra.mrb[18].mxu0 %vm3050_vm9, %v12750_v60  ;;  %9754 = vmatprep.mubr.msk.f32.mxu1 %vm3050_vm9, %v12142_v5  ;;  %v10473_v5 = vld [vmem:[#allocation2 + $0x41] sm:$0xff]  ;;  %v6447_v13 = vpop.permute.xlu1 %6446 }
 0x3b2   : > { %9880 = vmatprep.mubr.msk.f32.mxu0 %vm3050_vm9, %v12194_v62 }
 0x3b4   : > { %9755 = vmatmul.mubr.msk.f32.gmra.mrb[20].mxu1 %vm3050_vm9, %v12144_v47  ;;  %v10471_v47 = vld [vmem:[#allocation2 + $0x21] sm:$0xff]  ;;  %v6457_v19 = vpop.permute.xlu0 %6456 }
 0x3b5   : > { %9881 = vmatmul.mubr.msk.f32.gmra.mrb[20].mxu0 %vm3050_vm9, %v12198_v25  ;;  %9757 = vmatprep.mubr.msk.f32.mxu1 %vm3050_vm9, %v12154_v20  ;;  %v6451_v9 = vpop.permute.xlu1 %6450  ;;  %v7482_v25 = vld [vmem:[#allocation2 + $0x72] sm:$0xff] }
 0x3b6   : > { %9883 = vmatprep.mubr.msk.f32.mxu0 %vm3050_vm9, %v12206_v34 }
 0x3b8   : > { %9758 = vmatmul.mubr.msk.f32.gmra.mrb[22].mxu1 %vm3050_vm9, %v12156_v53 }
 0x3b9   : > { %9884 = vmatmul.mubr.msk.f32.gmra.mrb[22].mxu0 %vm3050_vm9, %v12210_v10  ;;  %9762 = vmatprep.mubr.msk.f32.mxu1 %vm3050_vm9, %v6155_v44  ;;  %v10475_v10 = vld [vmem:[#allocation2 + $0x61] sm:$0xff]  ;;  %v6455_v18 = vpop.permute.xlu1 %6454 }
 0x3ba   : > { %9888 = vmatprep.mubr.msk.f32.mxu0 %vm3050_vm9, %v10471_v47 }
 0x3bc   : > { %9763 = vmatmul.mubr.msk.f32.vlgmr.msra.gmra.mrb[16].mxu1 %vm3050_vm9, %v6157_v46 }
 0x3bd   : > { %9889 = vmatmul.mubr.msk.f32.vlgmr.msra.gmra.mrb[16].mxu0 %vm3050_vm9, %v10472_v4  ;;  %9765 = vmatprep.mubr.msk.f32.mxu1 %vm3050_vm9, %v6159_v59  ;;  %v6459_v20 = vpop.permute.xlu1 %6458 }
 0x3be   : > { %9775 = vmatpush3.msra.mxu1 %v12749_v49  ;;  %9891 = vmatprep.mubr.msk.f32.mxu0 %vm3050_vm9, %v10473_v5 }
 0x3bf   : > { %9901 = vmatpush3.msra.mxu0 %v12749_v49  ;;  %9788 = vmatprep.subr.mxu1 %v12751_v6 }
 0x3c0   : > { %9766 = vmatmul.mubr.msk.f32.gmra.mrb[18].mxu1 %vm3050_vm9, %v6161_v61  ;;  %9914 = vmatprep.subr.mxu0 %v12751_v6 }
 0x3c1   : > { %9892 = vmatmul.mubr.msk.f32.gmra.mrb[18].mxu0 %vm3050_vm9, %v10474_v8  ;;  %9768 = vmatprep.mubr.msk.f32.mxu1 %vm3050_vm9, %v6163_v1 }
 0x3c2   : > { %9894 = vmatprep.mubr.msk.f32.mxu0 %vm3050_vm9, %v10475_v10 }
 0x3c4   : > { %9769 = vmatmul.mubr.msk.f32.gmra.mrb[20].mxu1 %vm3050_vm9, %v6165_v2 }
 0x3c5   : > { %9895 = vmatmul.mubr.msk.f32.gmra.mrb[20].mxu0 %vm3050_vm9, %v10476_v12  ;;  %9771 = vmatprep.mubr.msk.f32.mxu1 %vm3050_vm9, %v6167_v3 }
 0x3c6   : > { %9897 = vmatprep.mubr.msk.f32.mxu0 %vm3050_vm9, %v11700_v14 }
 0x3c8   : > { %9772 = vmatmul.mubr.msk.f32.gmra.mrb[22].mxu1 %vm3050_vm9, %v6169_v7 }
 0x3c9   : > { %9898 = vmatmul.mubr.msk.f32.gmra.mrb[22].mxu0 %vm3050_vm9, %v12752_v57  ;;  %9776 = vmatprep.mubr.msk.f32.mxu1 %vm3050_vm9, %v10471_v47 }
 0x3ca   : > { %9902 = vmatprep.mubr.msk.f32.mxu0 %vm3050_vm9, %v6445_v11 }
 0x3cc   : > { %9777 = vmatmul.mubr.msk.f32.vlgmr.msra.gmra.mrb[16].mxu1 %vm3050_vm9, %v10472_v4 }
 0x3cd   : > { %9903 = vmatmul.mubr.msk.f32.vlgmr.msra.gmra.mrb[16].mxu0 %vm3050_vm9, %v6447_v13  ;;  %9779 = vmatprep.mubr.msk.f32.mxu1 %vm3050_vm9, %v10473_v5 }
 0x3ce   : > { %9789 = vmatpush3.msra.mxu1 %v12751_v6  ;;  %9905 = vmatprep.mubr.msk.f32.mxu0 %vm3050_vm9, %v6449_v51 }
 0x3cf   : > { %9915 = vmatpush3.msra.mxu0 %v12751_v6  ;;  %9952 = vmatprep.subr.msk.bf16.mxu1 %vm11399_vm4, %v9950_v58 }
 0x3d0   : > { %9780 = vmatmul.mubr.msk.f32.gmra.mrb[18].mxu1 %vm3050_vm9, %v10474_v8 }
 0x3d1   : > { %9906 = vmatmul.mubr.msk.f32.gmra.mrb[18].mxu0 %vm3050_vm9, %v6451_v9  ;;  %9782 = vmatprep.mubr.msk.f32.mxu1 %vm3050_vm9, %v10475_v10 }
 0x3d2   : > { %9908 = vmatprep.mubr.msk.f32.mxu0 %vm3050_vm9, %v6453_v15 }
 0x3d4   : > { %9783 = vmatmul.mubr.msk.f32.gmra.mrb[20].mxu1 %vm3050_vm9, %v10476_v12 }
 0x3d5   : > { %9909 = vmatmul.mubr.msk.f32.gmra.mrb[20].mxu0 %vm3050_vm9, %v6455_v18  ;;  %9785 = vmatprep.mubr.msk.f32.mxu1 %vm3050_vm9, %v11700_v14  ;;  %v7479_v14 = vld [vmem:[#allocation2 + $0x42] sm:$0xff] }
 0x3d6   : > { %9911 = vmatprep.mubr.msk.f32.mxu0 %vm3050_vm9, %v6457_v19 }
 0x3d8   : > { %9786 = vmatmul.mubr.msk.f32.gmra.mrb[22].mxu1 %vm3050_vm9, %v12752_v57 }
 0x3d9   : > { %9912 = vmatmul.mubr.msk.f32.gmra.mrb[22].mxu0 %vm3050_vm9, %v6459_v20  ;;  %9790 = vmatprep.mubr.msk.f32.mxu1 %vm3050_vm9, %v6445_v11 }
 0x3da   : > { %9916 = vmatprep.mubr.msk.f32.mxu0 %vm3050_vm9, %v7477_v21 }
 0x3dc   : > { %9791 = vmatmul.mubr.msk.f32.vlgmr.msra.gmra.mrb[16].mxu1 %vm3050_vm9, %v6447_v13 }
 0x3dd   : > { %9917 = vmatmul.mubr.msk.f32.vlgmr.msra.gmra.mrb[16].mxu0 %vm3050_vm9, %v7478_v22  ;;  %9793 = vmatprep.mubr.msk.f32.mxu1 %vm3050_vm9, %v6449_v51 }
 0x3de   : > { %9919 = vmatprep.mubr.msk.f32.mxu0 %vm3050_vm9, %v7479_v14  ;;  %9955 = vmatpush3.bf16.msk.msra.mxu1 %vm11399_vm4, %v9950_v58 }
 0x3e0   : > { %9794 = vmatmul.mubr.msk.f32.gmra.mrb[18].mxu1 %vm3050_vm9, %v6451_v9 }
 0x3e1   : > { %9920 = vmatmul.mubr.msk.f32.gmra.mrb[18].mxu0 %vm3050_vm9, %v7480_v23  ;;  %9796 = vmatprep.mubr.msk.f32.mxu1 %vm3050_vm9, %v6453_v15 }
 0x3e2   : > { %9922 = vmatprep.mubr.msk.f32.mxu0 %vm3050_vm9, %v7481_v24 }
 0x3e4   : > { %9797 = vmatmul.mubr.msk.f32.gmra.mrb[20].mxu1 %vm3050_vm9, %v6455_v18 }
 0x3e5   : > { %9923 = vmatmul.mubr.msk.f32.gmra.mrb[20].mxu0 %vm3050_vm9, %v7482_v25  ;;  %9799 = vmatprep.mubr.msk.f32.mxu1 %vm3050_vm9, %v6457_v19 }
 0x3e6   : > { %9925 = vmatprep.mubr.msk.f32.mxu0 %vm3050_vm9, %v11826_v37  ;;  %v7749_v37 = vld [vmem:[#allocation11 + $0x28] sm:$0xff] }
 0x3e8   : > { %9800 = vmatmul.mubr.msk.f32.gmra.mrb[22].mxu1 %vm3050_vm9, %v6459_v20 }
 0x3e9   : > { %9926 = vmatmul.mubr.msk.f32.gmra.mrb[22].mxu0 %vm3050_vm9, %v7484_v26  ;;  %9932 = vmatprep.mubr.msk.f32.mxu1 %vm2776_vm5, %v7744_v27 }
 0x3ec   : > { %9933 = vmatmul.mubr.msk.f32.vlgmr.msra.gmra.mrb[24].mxu1 %vm2776_vm5, %v7745_v28 }
 0x3ed   : > { %9935 = vmatprep.mubr.msk.f32.mxu1 %vm2776_vm5, %v7746_v29 }
 0x3f0   : > { %9936 = vmatmul.mubr.msk.f32.gmra.mrb[26].mxu1 %vm2776_vm5, %v7747_v30 }
 0x3f1   : > { %9938 = vmatprep.mubr.msk.f32.mxu1 %vm2776_vm5, %v7748_v31 }
 0x3f4   : > { %9939 = vmatmul.mubr.msk.f32.gmra.mrb[28].mxu1 %vm2776_vm5, %v7749_v37 }
 0x3f5   : > { %9941 = vmatprep.mubr.msk.f32.mxu1 %vm2776_vm5, %v7750_v63 }
 0x3f8   : > { %9942 = vmatmul.mubr.msk.f32.gmra.mrb[30].mxu1 %vm2776_vm5, %v7751_v32 }
 0x41f   : > { %v12503_v34 = vpop.f32.mrb[8].mxu1 }
 0x420   : > { %v9666_v35 = vpop.f32.mrb[8].mxu0  ;;  %v12505_v38 = vpop.f32.mrb[9].mxu1 }
 0x421   : > { %7632 = vrot.lane.b32.xlu1 %v9666_v35, %s10771_s16  ;;  %v5428_v40 = vpop.f32.mrb[9].mxu0  ;;  %v12754_v35 = vld [vmem:[#allocation22_spill] sm:$0xff] }
 0x422   : > { %7630 = vrot.lane.b32.xlu0 %v5428_v40, %s10771_s16 }
 0x423   : > { %v12509_v42 = vpop.f32.mrb[10].mxu1 }
 0x424   : > { %v9669_v43 = vpop.f32.mrb[10].mxu0  ;;  %v12511_v0 = vpop.f32.mrb[11].mxu1 }
 0x425   : > { %7636 = vrot.lane.b32.xlu1 %v9669_v43, %s10771_s16  ;;  %v5438_v50 = vpop.f32.mrb[11].mxu0 }
 0x426   : > { %7634 = vrot.lane.b32.xlu0 %v5438_v50, %s10771_s16 }
 0x427   : > { %v12515_v52 = vpop.f32.mrb[12].mxu1 }
 0x428   : > { %v9672_v53 = vpop.f32.mrb[12].mxu0  ;;  %v12517_v54 = vpop.f32.mrb[13].mxu1 }
 0x429   : > { %7640 = vrot.lane.b32.xlu1 %v9672_v53, %s10771_s16  ;;  %v5448_v55 = vpop.f32.mrb[13].mxu0  ;;  %v12755_v53 = vld [vmem:[#allocation23_spill] sm:$0xff] }
 0x42a   : > { %7638 = vrot.lane.b32.xlu0 %v5448_v55, %s10771_s16  ;;  %v2966_v55 = vmul.f32 0.70710677, %v12755_v53 }
 0x42b   : > { %v12521_v56 = vpop.f32.mrb[14].mxu1 }
 0x42c   : > { %v9675_v62 = vpop.f32.mrb[14].mxu0  ;;  %v12523_v36 = vpop.f32.mrb[15].mxu1 }
 0x42d   : > { %7644 = vrot.lane.b32.xlu1 %v9675_v62, %s10771_s16  ;;  %v5458_v39 = vpop.f32.mrb[15].mxu0 }
 0x42e   : > { %7642 = vrot.lane.b32.xlu0 %v5458_v39, %s10771_s16 }
 0x493   : > { %v7633_v51 = vpop.permute.xlu1 %7632 }
 0x494   : > { %v7631_v57 = vpop.permute.xlu0 %7630  ;;  %v7719_v22 = vsel %vm3050_vm9, %v12503_v34, %v7633_v51 }
 0x495   : > { %v7718_v14 = vsel %vm3050_vm9, %v12505_v38, %v7631_v57  ;;  %v2967_v38 = vmul.f32 0.70710677, %v12754_v35 }
 0x497   : > { %v7637_v58 = vpop.permute.xlu1 %7636 }
 0x498   : > { %v7635_v9 = vpop.permute.xlu0 %7634  ;;  %v7721_v40 = vsel %vm3050_vm9, %v12509_v42, %v7637_v58 }
 0x499   : > { %v7720_v62 = vsel %vm3050_vm9, %v12511_v0, %v7635_v9 }
 0x49b   : > { %v7641_v15 = vpop.permute.xlu1 %7640 }
 0x49c   : > { %v7639_v16 = vpop.permute.xlu0 %7638 }
 0x49d   : > { %v7722_v51 = vsel %vm3050_vm9, %v12517_v54, %v7639_v16 }
 0x49f   : > { %v12551_v18 = vpop.permute.xlu1 %7644 }
 0x4a0   : > { %v12553_v19 = vpop.permute.xlu0 %7642 }
 0x4af   : > { %v9792_v41 = vpop.f32.mrb[16].mxu1 }
 0x4b0   : > { %v9918_v44 = vpop.f32.mrb[16].mxu0  ;;  %7664 = vrot.lane.b32.xlu1 %v9792_v41, %s10772_s23  ;;  %v6542_v45 = vpop.f32.mrb[17].mxu1 }
 0x4b1   : > { %v7575_v46 = vpop.f32.mrb[17].mxu0  ;;  %7662 = vrot.lane.b32.xlu0 %v6542_v45, %s10772_s23 }
 0x4b3   : > { %v9795_v48 = vpop.f32.mrb[18].mxu1 }
 0x4b4   : > { %v9921_v49 = vpop.f32.mrb[18].mxu0  ;;  %v6552_v59 = vpop.f32.mrb[19].mxu1  ;;  %7696 = vrot.lane.b32.xlu1 %v9918_v44, %s10773_s14 }
 0x4b5   : > { %v7585_v60 = vpop.f32.mrb[19].mxu0  ;;  %7694 = vrot.lane.b32.xlu0 %v7575_v46, %s10773_s14 }
 0x4b7   : > { %v9798_v61 = vpop.f32.mrb[20].mxu1 }
 0x4b8   : > { %v9924_v1 = vpop.f32.mrb[20].mxu0  ;;  %v6562_v2 = vpop.f32.mrb[21].mxu1  ;;  %7668 = vrot.lane.b32.xlu1 %v9795_v48, %s10772_s23 }
 0x4b9   : > { %v7595_v47 = vpop.f32.mrb[21].mxu0  ;;  %7666 = vrot.lane.b32.xlu0 %v6552_v59, %s10772_s23 }
 0x4bb   : > { %v9801_v3 = vpop.f32.mrb[22].mxu1 }
 0x4bc   : > { %v9927_v4 = vpop.f32.mrb[22].mxu0  ;;  %7700 = vrot.lane.b32.xlu1 %v9921_v49, %s10773_s14  ;;  %v6572_v5 = vpop.f32.mrb[23].mxu1 }
 0x4bd   : > { %v7605_v6 = vpop.f32.mrb[23].mxu0  ;;  %7698 = vrot.lane.b32.xlu0 %v7585_v60, %s10773_s14 }
 0x4bf   : > { %v9934_v7 = vpop.f32.mrb[24].mxu1 }
 0x4c0   : > { %7672 = vrot.lane.b32.xlu1 %v9798_v61, %s10772_s23  ;;  %v7847_v8 = vpop.f32.mrb[25].mxu1 }
 0x4c1   : > { %7670 = vrot.lane.b32.xlu0 %v6562_v2, %s10772_s23 }
 0x4c3   : > { %v9937_v10 = vpop.f32.mrb[26].mxu1 }
 0x4c4   : > { %7704 = vrot.lane.b32.xlu1 %v9924_v1, %s10773_s14  ;;  %v7857_v11 = vpop.f32.mrb[27].mxu1 }
 0x4c5   : > { %7702 = vrot.lane.b32.xlu0 %v7595_v47, %s10773_s14 }
 0x4c7   : > { %v12539_v12 = vpop.f32.mrb[28].mxu1 }
 0x4c8   : > { %7676 = vrot.lane.b32.xlu1 %v9801_v3, %s10772_s23  ;;  %v12542_v13 = vpop.f32.mrb[29].mxu1 }
 0x4c9   : > { %7674 = vrot.lane.b32.xlu0 %v6572_v5, %s10772_s23 }
 0x4cb   : > { %v12545_v17 = vpop.f32.mrb[30].mxu1 }
 0x4cc   : > { %7708 = vrot.lane.b32.xlu1 %v9927_v4, %s10773_s14  ;;  %v12548_v33 = vpop.f32.mrb[31].mxu1  ;;  %v12756_v4 = vld [vmem:[#allocation24_spill] sm:$0xff] }
 0x4cd   : > { %7706 = vrot.lane.b32.xlu0 %v7605_v6, %s10773_s14  ;;  %v2969_v5 = vmul.f32 0.70710677, %v12756_v4  ;;  %v7723_v6 = vsel %vm3050_vm9, %v12515_v52, %v7641_v15 }
 0x522   : > { %v7665_v20 = vpop.permute.xlu1 %7664 }
 0x523   : > { %v7663_v21 = vpop.permute.xlu0 %7662  ;;  %v7728_v23 = vsel %vm7726_vm2, %v7719_v22, %v7665_v20 }
 0x524   : > { %v7727_v25 = vsel %vm7726_vm2, %v7718_v14, %v7663_v21 }
 0x526   : > { %v7697_v24 = vpop.permute.xlu1 %7696 }
 0x527   : > { %v7695_v26 = vpop.permute.xlu0 %7694  ;;  %v7737_v27 = vsel %vm7735_vm3, %v7728_v23, %v7697_v24 }
 0x528   : > { %v7887_v28 = vadd.f32 %v9934_v7, %v7737_v27  ;;  %v7736_v29 = vsel %vm7735_vm3, %v7727_v25, %v7695_v26 }
 0x529   : > { %v7886_v30 = vadd.f32 %v7847_v8, %v7736_v29 }
 0x52a   : > { %vm7895_vm4 = vcmp.ge.f32.partialorder %v7887_v28, 0.0  ;;  %v7903_v31 = vmul.f32 0.2, %v7887_v28  ;;  %v7669_v37 = vpop.permute.xlu1 %7668 }
 0x52b   : > { %vm7894_vm5 = vcmp.ge.f32.partialorder %v7886_v30, 0.0  ;;  %v7902_v63 = vmul.f32 0.2, %v7886_v30  ;;  %v7667_v32 = vpop.permute.xlu0 %7666  ;;  %v7730_v41 = vsel %vm7726_vm2, %v7721_v40, %v7669_v37 }
 0x52c   : > { %v7911_v34 = vsel %vm7895_vm4, %v7887_v28, %v7903_v31  ;;  %v7729_v46 = vsel %vm7726_vm2, %v7720_v62, %v7667_v32  ;;  %v12758_v28 = vld [vmem:[#allocation26_spill] sm:$0xff] }
 0x52d   : > { %v8637_v43 = vclamps-f32 %v7911_v34, 181.01933  ;;  %v7910_v50 = vsel %vm7894_vm5, %v7886_v30, %v7902_v63  ;;  %v2971_v29 = vmul.f32 0.70710677, %v12758_v28  ;;  %v7724_v63 = vsel %vm3050_vm9, %v12523_v36, %v12553_v19 }
 0x52e   : > { %v8636_v39 = vclamps-f32 %v7910_v50, 181.01933  ;;  %v7701_v44 = vpop.permute.xlu1 %7700 }
 0x52f   : > { %v7935_v45 = vadd.f32 %v8637_v43, %v2967_v38  ;;  %v7699_v48 = vpop.permute.xlu0 %7698  ;;  %v7739_v49 = vsel %vm7735_vm3, %v7730_v41, %v7701_v44 }
 0x530   : > { %v7934_v59 = vadd.f32 %v8636_v39, %v2966_v55  ;;  %v7889_v60 = vadd.f32 %v9937_v10, %v7739_v49  ;;  %v7738_v42 = vsel %vm7735_vm3, %v7729_v46, %v7699_v48  ;;  %v12757_v10 = vld [vmem:[#allocation25_spill] sm:$0xff]  ;;  %v12760_v39 = vld [vmem:[#allocation28_spill] sm:$0xff] }
 0x531   : > { %7943 = vst.msk [vmem:[%s12574_s11 + $0x8] sm:$0xff] %vm2974_vm6, %v7935_v45  ;;  %v7888_v0 = vadd.f32 %v7857_v11, %v7738_v42  ;;  %v2968_v11 = vmul.f32 0.70710677, %v12757_v10  ;;  %v12761_v45 = vld [vmem:[#allocation29_spill] sm:$0xff] }
 0x532   : > { %7942 = vst.msk [vmem:[%s12574_s11] sm:$0xff] %vm2974_vm6, %v7934_v59  ;;  %vm7897_vm7 = vcmp.ge.f32.partialorder %v7889_v60, 0.0  ;;  %v7905_v61 = vmul.f32 0.2, %v7889_v60  ;;  %v7673_v1 = vpop.permute.xlu1 %7672  ;;  %v2972_v46 = vmul.f32 0.70710677, %v12761_v45 }
 0x533   : > { %vm7896_vm8 = vcmp.ge.f32.partialorder %v7888_v0, 0.0  ;;  %v7904_v2 = vmul.f32 0.2, %v7888_v0  ;;  %v7671_v47 = vpop.permute.xlu0 %7670  ;;  %v7732_v58 = vsel %vm7726_vm2, %v7723_v6, %v7673_v1 }
 0x534   : > { %v7913_v3 = vsel %vm7897_vm7, %v7889_v60, %v7905_v61  ;;  %v7731_v21 = vsel %vm7726_vm2, %v7722_v51, %v7671_v47 }
 0x535   : > { %v8639_v7 = vclamps-f32 %v7913_v3, 181.01933  ;;  %v7912_v8 = vsel %vm7896_vm8, %v7888_v0, %v7904_v2 }
 0x536   : > { %v8638_v57 = vclamps-f32 %v7912_v8, 181.01933  ;;  %v7705_v9 = vpop.permute.xlu1 %7704 }
 0x537   : > { %v7937_v20 = vadd.f32 %v8639_v7, %v2969_v5  ;;  %v7703_v22 = vpop.permute.xlu0 %7702  ;;  %v7741_v14 = vsel %vm7735_vm3, %v7732_v58, %v7705_v9 }
 0x538   : > { %v7936_v23 = vadd.f32 %v8638_v57, %v2968_v11  ;;  %v7891_v52 = vadd.f32 %v12539_v12, %v7741_v14  ;;  %v7740_v15 = vsel %vm7735_vm3, %v7731_v21, %v7703_v22  ;;  %v7725_v12 = vsel %vm3050_vm9, %v12521_v56, %v12551_v18 }
 0x539   : > { %7945 = vst.msk [vmem:[%s12574_s11 + $0x18] sm:$0xff] %vm2974_vm6, %v7937_v20  ;;  %v7890_v24 = vadd.f32 %v12542_v13, %v7740_v15  ;;  %v12759_v13 = vld [vmem:[#allocation27_spill] sm:$0xff] }
 0x53a   : > { %7944 = vst.msk [vmem:[%s12574_s11 + $0x10] sm:$0xff] %vm2974_vm6, %v7936_v23  ;;  %vm7899_vm10 = vcmp.ge.f32.partialorder %v7891_v52, 0.0  ;;  %v7907_v54 = vmul.f32 0.2, %v7891_v52  ;;  %v7677_v16 = vpop.permute.xlu1 %7676  ;;  %v2970_v37 = vmul.f32 0.70710677, %v12759_v13 }
 0x53b   : > { %vm7898_vm11 = vcmp.ge.f32.partialorder %v7890_v24, 0.0  ;;  %v7906_v25 = vmul.f32 0.2, %v7890_v24  ;;  %v7675_v26 = vpop.permute.xlu0 %7674  ;;  %v7734_v34 = vsel %vm7726_vm2, %v7725_v12, %v7677_v16 }
 0x53c   : > { %v7915_v27 = vsel %vm7899_vm10, %v7891_v52, %v7907_v54  ;;  %v7733_v40 = vsel %vm7726_vm2, %v7724_v63, %v7675_v26 }
 0x53d   : > { %v8641_v30 = vclamps-f32 %v7915_v27, 181.01933  ;;  %v7914_v31 = vsel %vm7898_vm11, %v7890_v24, %v7906_v25 }
 0x53e   : > { %v8640_v32 = vclamps-f32 %v7914_v31, 181.01933  ;;  %v7709_v35 = vpop.permute.xlu1 %7708 }
 0x53f   : > { %v7939_v38 = vadd.f32 %v8641_v30, %v2971_v29  ;;  %v7707_v43 = vpop.permute.xlu0 %7706  ;;  %v7743_v56 = vsel %vm7735_vm3, %v7734_v34, %v7709_v35 }
 0x540   : > { %v7938_v18 = vadd.f32 %v8640_v32, %v2970_v37  ;;  %v7893_v50 = vadd.f32 %v12545_v17, %v7743_v56  ;;  %v7742_v53 = vsel %vm7735_vm3, %v7733_v40, %v7707_v43  ;;  %v2973_v17 = vmul.f32 0.70710677, %v12760_v39 }
 0x541   : > { %7947 = vst.msk [vmem:[%s12574_s11 + $0x28] sm:$0xff] %vm2974_vm6, %v7939_v38  ;;  %v7892_v36 = vadd.f32 %v12548_v33, %v7742_v53 }
 0x542   : > { %7946 = vst.msk [vmem:[%s12574_s11 + $0x20] sm:$0xff] %vm2974_vm6, %v7938_v18  ;;  %vm7901_vm9 = vcmp.ge.f32.partialorder %v7893_v50, 0.0  ;;  %v7909_v19 = vmul.f32 0.2, %v7893_v50 }
 0x543   : > { %vm7900_vm12 = vcmp.ge.f32.partialorder %v7892_v36, 0.0  ;;  %v7908_v55 = vmul.f32 0.2, %v7892_v36 }
 0x544   : > { %v7917_v62 = vsel %vm7901_vm9, %v7893_v50, %v7909_v19 }
 0x545   : > { %v8643_v41 = vclamps-f32 %v7917_v62, 181.01933  ;;  %v7916_v44 = vsel %vm7900_vm12, %v7892_v36, %v7908_v55 }
 0x546   : > { %v8642_v33 = vclamps-f32 %v7916_v44, 181.01933 }
 0x547   : > { %v7941_v48 = vadd.f32 %v8643_v41, %v2973_v17 }
 0x548   : > { %v7940_v49 = vadd.f32 %v8642_v33, %v2972_v46 }
 0x549   : > { %7949 = vst.msk [vmem:[%s12574_s11 + $0x38] sm:$0xff] %vm2974_vm6, %v7941_v48 }
 0x54a   : > { %7948 = vst.msk [vmem:[%s12574_s11 + $0x30] sm:$0xff] %vm2974_vm6, %v7940_v49 }
 0x54b   : > { %10688 = shalt.err (!%p10685_p8)
}
 0x54c   : > { %s10689_s23 = scalar_lea.hbm %s12621_s28, 1024  ;;  %s10693_s11 = scalar_lea.hbm %s12679_s7, 2048 }
 0x54d   : > { %p10690_p7 = scmp.ne.s32.totalorder %s12621_s28, %s10689_s23  ;;  %p10694_p3 = scmp.lt.u32.totalorder %s12621_s28, %s12679_s7 }
 0x54e   : > { %p10695_p6 = scmp.lt.u32.totalorder %s10693_s11, %s10689_s23  ;;  %p10697_p0 = scmp.lt.u32.totalorder %s10689_s23, %s12621_s28 }
 0x54f   : > { %p10691_p9 = pnand %p10690_p7, %p12762_p5 }
 0x550   : > { %p10696_p2 = por %p10695_p6, %p10694_p3 }
 0x551   : > { %p10692_p4 = pneg %p10691_p9 }
 0x552   : > { %p10698_p10 = por %p10697_p0, %p10696_p2 }
 0x554   : > { %p10699_p1 = pnand %p10698_p10, %p10692_p4 }
 0x556   : > { %10702 = shalt.err (!%p10699_p1)
}
 0x557   : > { %s10775_s18 = smov 128  }
 0x558   : > { %10377 = dma.vmem_to_hbm [thread:$0]  (%p12762_p5), %s12623_s22, 1024, %s12621_s28, %s7951_s30, %s10775_s18, %s10775_s18, %s10771_s16  }
 0x559 PF: > { %s7979_s15 = sand.u32 1, %s10741_s24   ;;  %p12763_p11 = scmp.ne.s32.totalorder %s12713_s29, 0 }
 0x55a   : > { %p12764_p12 = scmp.ge.s32.totalorder %s10753_s27, 2  ;;  %s7980_s8 = scalar_lea.sflag [#allocation5], %s7979_s15 }
 0x55c   : > { %p10403_p13 = pnand %p12764_p12, %p12763_p11 }
 0x55e   : > { %10736 = dma.done.wait (!%p10403_p13), %s7980_s8, 1024  }
 0x55f   : > { %10738 = vsyncadd (!%p10403_p13), %s7980_s8, 4294966272  ;;  %p23_p8 = scmp.ge.s32.totalorder %s11006_s19, 4   ;;  %s12765_s24 = smov %s10745_s25 }
 0x560   : > { %s12766_s25 = smov %s10749_s26  ;;  %s12767_s26 = smov %s11017_s17 }
 0x561   : > { %s12768_s27 = smov %s11006_s19  ;;  %25 = sbr.rel (!%p23_p8) target bundleno = 10 (0xa), region = 146 }
 0x568   :  { %7985 = vsyncpa [#allocation4], 1 }
 0x569   :  { %7987 = vsyncpa [#allocation4 + $0x1], 1 }
 0x56a   :  { %7988 = vsyncpa [#allocation7], 1 }
 0x56b   :  { %7989 = vsyncpa [#allocation10], 1 }
 0x56c   :  { %7990 = vsyncpa [#allocation13], 1 }
 0x56d   :  { %7991 = vsyncpa [#allocation5], 1 }
 0x56e   :  { %7993 = vsyncpa [#allocation5 + $0x1], 1 }

// kernel: tpu_custom_call.1
= control target key start
LH: loop header
LB: loop body
LE: loop exit
PB: predicated region body
PF: predicated region fallthrough
CT: control target
= control target key end

     0   :  { %s12672_s0 = inlined_call_operand.hbm [shape: f32[2,10,10,4], index: 0, kind: input, shape index: {}]   ;;  %s12673_s1 = inlined_call_operand.hbm [shape: f32[9,4,32], index: 1, kind: input, shape index: {}]   ;;  %s12674_s2 = inlined_call_operand.hbm [shape: f32[9,4,32], index: 2, kind: input, shape index: {}]   ;;  %s12675_s3 = inlined_call_operand.hbm [shape: f32[9,8,8], index: 3, kind: input, shape index: {}]   ;;  %s12676_s4 = inlined_call_operand.hbm [shape: f32[64,9], index: 4, kind: input, shape index: {}]   ;;  %s12677_s5 = inlined_call_operand.hbm [shape: f32[9,32], index: 5, kind: input, shape index: {}]   ;;  %s12678_s6 = inlined_call_operand.hbm [shape: f32[9,32], index: 6, kind: input, shape index: {}]   ;;  %s12679_s7 = inlined_call_operand.hbm [shape: f32[2,64,32], index: 7, kind: output, shape index: {}]  }
   0x1   :  { %12703 = sst [smem:[#allocation39_spill]] %s12673_s1 }
   0x2   :  { %12 = vsyncpa [#allocation4], 0 }
   0x3   :  { %14 = vsyncpa [#allocation4 + $0x1], 0 }
   0x4   :  { %15 = vsyncpa [#allocation7], 0 }
   0x5   :  { %16 = vsyncpa [#allocation10], 0 }
   0x6   :  { %17 = vsyncpa [#allocation13], 0 }
   0x7   :  { %18 = vsyncpa [#allocation5], 0 }
   0x8   :  { %20 = vsyncpa [#allocation5 + $0x1], 0  ;;  %s10816_s24 = smov 0   ;;  %s10818_s25 = smov 0  }
   0x9   :  { %s10820_s26 = smov 0   ;;  %s10822_s27 = smov 0  }
   0xa LB: > { %s10755_s28 = smov [#allocation6]   ;;  %s10837_s30 = sadd.s32 4294967295, %s10753_s27   ;;  %s10753_s27 = sphi %s10822_s27, %s12768_s27   ;;  %s10749_s26 = sphi %s10820_s26, %s12767_s26   ;;  %s10745_s25 = sphi %s10818_s25, %s12766_s25   ;;  %s10741_s24 = sphi %s10816_s24, %s12765_s24  }
   0xb   : > { %s221_s29 = sshll.u32 %s10755_s28, 4  ;;  %p8095_p0 = scmp.ge.s32.totalorder %s10753_s27, 1  ;;  %s10842_s29 = int_to_ptr.vmem [resolvable:$true] %s221_s29 }
   0xc   : > { %p12680_p1 = scmp.eq.s32.totalorder %s10837_s30, 0  ;;  %p209_p2 = scmp.lt.s32.totalorder %s10753_s27, 3 }
   0xd   : > { %s10756_s9 = smov [#allocation9]   ;;  %s10757_s12 = smov [#allocation12]  }
   0xe   : > { %p10844_p3 = pnand %p8095_p0, %p209_p2  ;;  %s247_s10 = sshll.u32 %s10756_s9, 4  ;;  %s10857_s10 = int_to_ptr.vmem [resolvable:$true] %s247_s10 }
   0xf   : > { %s10859_s13 = sshll.u32 %s10757_s12, 4  ;;  %s12706_s1 = sld [smem:[#allocation39_spill]]  ;;  %s274_s13 = int_to_ptr.vmem [resolvable:$true] %s10859_s13 }
  0x10   : > { %s12704_s8 = scalar_select %p10844_p3, 1, 0 }
  0x11   : > { %p10379_p5 = pneg %p10844_p3 }
  0x13   : > { %p10853_p6 = pnand %p10379_p5, %p12680_p1 }
  0x15   : > { %s10477_s16 = scalar_lea.hbm %s12706_s1, 576  ;;  %p10869_p8 = pneg %p10853_p6 }
  0x16   : > { %p10478_p7 = scmp.ne.s32.totalorder %s12706_s1, %s10477_s16  ;;  %p10484_p11 = scmp.lt.u32.totalorder %s10477_s16, %s12706_s1 }
  0x18   : > { %p10480_p9 = pnand %p10869_p8, %p10478_p7 }
  0x1a   : > { %p10481_p10 = pneg %p10480_p9 }
  0x1c   : > { %p10486_p12 = pnand %p10484_p11, %p10481_p10 }
  0x1e   : > { %10489 = shalt.err (!%p10486_p12)
}
  0x1f   : > { %s10490_s22 = scalar_lea.vmem %s10842_s29, 576  ;;  %p10498_p5 = scmp.lt.s32.totalorder %s10842_s29, %s10842_s29 }
  0x20   : > { %p10491_p13 = scmp.ne.s32.totalorder %s10842_s29, %s10490_s22  ;;  %p10499_p4 = scmp.lt.s32.totalorder %s10490_s22, %s10490_s22 }
  0x22   : > { %p10493_p0 = pnand %p10491_p13, %p10869_p8  ;;  %p10500_p7 = por %p10499_p4, %p10498_p5 }
  0x24   : > { %p10494_p2 = pneg %p10493_p0 }
  0x26   : > { %p10501_p9 = pnand %p10500_p7, %p10494_p2 }
  0x28   : > { %10504 = shalt.err (!%p10501_p9)
}
  0x29   : > { %s12682_s23 = smov 64   ;;  %s12683_s28 = smov 4  }
  0x2a   : > { %10382 = dma.hbm_to_vmem [thread:$0]  (!%p10853_p6), %s12706_s1, 576, %s10842_s29, [#allocation7], %s12682_s23, %s12682_s23, %s12683_s28  }
  0x2b   : > { %s10505_s16 = scalar_lea.hbm %s12675_s3, 1152 }
  0x2c   : > { %p10506_p4 = scmp.ne.s32.totalorder %s12675_s3, %s10505_s16  ;;  %p10512_p12 = scmp.lt.u32.totalorder %s10505_s16, %s12675_s3 }
  0x2e   : > { %p10508_p10 = pnand %p10506_p4, %p10869_p8 }
  0x30   : > { %p10509_p11 = pneg %p10508_p10 }
  0x32   : > { %p10514_p13 = pnand %p10512_p12, %p10509_p11 }
  0x34   : > { %10517 = shalt.err (!%p10514_p13)
}
  0x35   : > { %s10518_s29 = scalar_lea.vmem %s10857_s10, 1152  ;;  %p10526_p7 = scmp.lt.s32.totalorder %s10857_s10, %s10857_s10 }
  0x36   : > { %p10519_p0 = scmp.ne.s32.totalorder %s10857_s10, %s10518_s29  ;;  %p10527_p9 = scmp.lt.s32.totalorder %s10518_s29, %s10518_s29 }
  0x38   : > { %p10521_p2 = pnand %p10519_p0, %p10869_p8  ;;  %p10528_p4 = por %p10527_p9, %p10526_p7 }
  0x3a   : > { %p10522_p5 = pneg %p10521_p2 }
  0x3c   : > { %p10529_p10 = pnand %p10528_p4, %p10522_p5 }
  0x3e   : > { %10532 = shalt.err (!%p10529_p10)
}
  0x3f   : > { %s12684_s22 = smov 128   ;;  %s12685_s9 = smov 8  }
  0x40   : > { %10388 = dma.hbm_to_vmem [thread:$0]  (!%p10853_p6), %s12675_s3, 1152, %s10857_s10, [#allocation10], %s12684_s22, %s12684_s22, %s12685_s9  }
  0x41   : > { %s10533_s17 = scalar_lea.hbm %s12677_s5, 256 }
  0x42   : > { %p10534_p11 = scmp.ne.s32.totalorder %s12677_s5, %s10533_s17  ;;  %p10540_p0 = scmp.lt.u32.totalorder %s10533_s17, %s12677_s5 }
  0x44   : > { %p10536_p12 = pnand %p10534_p11, %p10869_p8 }
  0x46   : > { %p10537_p13 = pneg %p10536_p12 }
  0x48   : > { %p10542_p2 = pnand %p10540_p0, %p10537_p13 }
  0x4a   : > { %10545 = shalt.err (!%p10542_p2)
}
  0x4b   : > { %s10546_s12 = scalar_lea.vmem %s274_s13, 256  ;;  %p10554_p4 = scmp.lt.s32.totalorder %s274_s13, %s274_s13 }
  0x4c   : > { %p10547_p5 = scmp.ne.s32.totalorder %s274_s13, %s10546_s12  ;;  %p10555_p10 = scmp.lt.s32.totalorder %s10546_s12, %s10546_s12 }
  0x4e   : > { %p10549_p7 = pnand %p10547_p5, %p10869_p8  ;;  %p10556_p1 = por %p10555_p10, %p10554_p4 }
  0x50   : > { %p10550_p9 = pneg %p10549_p7 }
  0x52   : > { %p10557_p3 = pnand %p10556_p1, %p10550_p9 }
  0x54   : > { %10560 = shalt.err (!%p10557_p3)
}
  0x55   : > { %10394 = dma.hbm_to_vmem [thread:$0]  (!%p10853_p6), %s12677_s5, 256, %s274_s13, [#allocation13], %s12684_s22, %s12684_s22, %s12685_s9  }
  0x56   : > { %s10762_s15 = smov [#allocation8]   ;;  %s10763_s17 = smov [#allocation11]  }
  0x57   : > { %s234_s16 = sshll.u32 %s10762_s15, 4  ;;  %s260_s18 = sshll.u32 %s10763_s17, 4  ;;  %s235_s16 = int_to_ptr.vmem [resolvable:$true] %s234_s16  ;;  %s261_s18 = int_to_ptr.vmem [resolvable:$true] %s260_s18 }
  0x58   : > { %s10561_s29 = scalar_lea.hbm %s12674_s2, 576 }
  0x59   : > { %p10562_p1 = scmp.ne.s32.totalorder %s12674_s2, %s10561_s29  ;;  %p10568_p12 = scmp.lt.u32.totalorder %s10561_s29, %s12674_s2 }
  0x5b   : > { %p10564_p3 = pnand %p10562_p1, %p10869_p8 }
  0x5d   : > { %p10565_p11 = pneg %p10564_p3 }
  0x5f   : > { %p10570_p13 = pnand %p10568_p12, %p10565_p11 }
  0x61   : > { %10573 = shalt.err (!%p10570_p13)
}
  0x62   : > { %s10574_s13 = scalar_lea.vmem %s235_s16, 576  ;;  %p10582_p7 = scmp.lt.s32.totalorder %s235_s16, %s235_s16 }
  0x63   : > { %p10575_p0 = scmp.ne.s32.totalorder %s235_s16, %s10574_s13  ;;  %p10583_p9 = scmp.lt.s32.totalorder %s10574_s13, %s10574_s13 }
  0x65   : > { %p10577_p2 = pnand %p10575_p0, %p10869_p8  ;;  %p10584_p4 = por %p10583_p9, %p10582_p7 }
  0x67   : > { %p10578_p5 = pneg %p10577_p2 }
  0x69   : > { %p10585_p10 = pnand %p10584_p4, %p10578_p5 }
  0x6b   : > { %10588 = shalt.err (!%p10585_p10)
}
  0x6c   : > { %s12708_s23 = smov 4   ;;  %s12709_s14 = smov 64  }
  0x6d   : > { %10385 = dma.hbm_to_vmem [thread:$0]  (!%p10853_p6), %s12674_s2, 576, %s235_s16, [#allocation7], %s12709_s14, %s12709_s14, %s12708_s23  }
  0x6e   : > { %s10589_s21 = scalar_lea.hbm %s12676_s4, 1024 }
  0x6f   : > { %p10590_p1 = scmp.ne.s32.totalorder %s12676_s4, %s10589_s21  ;;  %p10596_p12 = scmp.lt.u32.totalorder %s10589_s21, %s12676_s4 }
  0x71   : > { %p10592_p3 = pnand %p10590_p1, %p10869_p8 }
  0x73   : > { %p10593_p11 = pneg %p10592_p3 }
  0x75   : > { %p10598_p13 = pnand %p10596_p12, %p10593_p11 }
  0x77   : > { %10601 = shalt.err (!%p10598_p13)
}
  0x78   : > { %s10602_s28 = scalar_lea.vmem %s261_s18, 1024  ;;  %p10610_p7 = scmp.lt.s32.totalorder %s261_s18, %s261_s18 }
  0x79   : > { %p10603_p0 = scmp.ne.s32.totalorder %s261_s18, %s10602_s28  ;;  %p10611_p9 = scmp.lt.s32.totalorder %s10602_s28, %s10602_s28 }
  0x7b   : > { %p10605_p2 = pnand %p10603_p0, %p10869_p8  ;;  %p10612_p4 = por %p10611_p9, %p10610_p7 }
  0x7d   : > { %p10606_p5 = pneg %p10605_p2 }
  0x7f   : > { %p10613_p10 = pnand %p10612_p4, %p10606_p5 }
  0x81   : > { %10616 = shalt.err (!%p10613_p10)
}
  0x82   : > { %10391 = dma.hbm_to_vmem [thread:$0]  (!%p10853_p6), %s12676_s4, 1024, %s261_s18, [#allocation10], %s12684_s22, %s12684_s22, %s12685_s9  }
  0x83   : > { %s10764_s14 = smov [#allocation14]   ;;  %s10617_s21 = scalar_lea.hbm %s12678_s6, 256 }
  0x84   : > { %s286_s15 = sshll.u32 %s10764_s14, 4  ;;  %p10618_p1 = scmp.ne.s32.totalorder %s12678_s6, %s10617_s21  ;;  %s287_s15 = int_to_ptr.vmem [resolvable:$true] %s286_s15 }
  0x85   : > { %p10624_p12 = scmp.lt.u32.totalorder %s10617_s21, %s12678_s6 }
  0x86   : > { %p10620_p3 = pnand %p10618_p1, %p10869_p8 }
  0x88   : > { %p10621_p11 = pneg %p10620_p3 }
  0x8a   : > { %p10626_p13 = pnand %p10624_p12, %p10621_p11 }
  0x8c   : > { %10629 = shalt.err (!%p10626_p13)
}
  0x8d   : > { %s10630_s18 = scalar_lea.vmem %s287_s15, 256  ;;  %p10638_p7 = scmp.lt.s32.totalorder %s287_s15, %s287_s15 }
  0x8e   : > { %p10631_p0 = scmp.ne.s32.totalorder %s287_s15, %s10630_s18  ;;  %p10639_p9 = scmp.lt.s32.totalorder %s10630_s18, %s10630_s18 }
  0x90   : > { %p10633_p2 = pnand %p10631_p0, %p10869_p8  ;;  %p10640_p4 = por %p10639_p9, %p10638_p7 }
  0x92   : > { %p10634_p5 = pneg %p10633_p2 }
  0x94   : > { %p10641_p10 = pnand %p10640_p4, %p10634_p5 }
  0x96   : > { %10644 = shalt.err (!%p10641_p10)
}
  0x97   : > { %10397 = dma.hbm_to_vmem [thread:$0]  (!%p10853_p6), %s12678_s6, 256, %s287_s15, [#allocation13], %s12684_s22, %s12684_s22, %s12685_s9  }
  0x98   : > { %s8094_s11 = sadd.s32 4294967294, %s10753_s27   ;;  %s11006_s19 = sadd.s32 1, %s10753_s27  }
  0x99   : > { %s30_s23 = ssub.s32 %s10753_s27, %s11006_s19  ;;  %s33_s14 = sadd.s32 1, %s10749_s26 }
  0x9a   : > { %p31_p8 = scmp.eq.s32.totalorder %s30_s23, 0  ;;  %p40_p1 = scmp.ne.s32.totalorder %s10749_s26, %s10745_s25 }
  0x9b   : > { %p41_p3 = scmp.eq.s32.totalorder %s10753_s27, 0  ;;  %p46_p11 = scmp.ne.s32.totalorder %s10745_s25, %s10741_s24 }
  0x9c   : > { %s11017_s17 = scalar_select %p31_p8, %s10749_s26, %s33_s14  }
  0x9d   : > { %p42_p12 = por %p41_p3, %p40_p1  ;;  %p12710_p13 = scmp.eq.s32.totalorder %s10837_s30, 0 }
  0x9e   : > { %p196_p6 = scmp.eq.s32.totalorder %s10837_s30, 1  ;;  %p202_p2 = scmp.eq.s32.totalorder %s8094_s11, 1 }
  0x9f   : > { %p11021_p0 = por %p12710_p13, %p46_p11  ;;  %p10412_p5 = scmp.lt.s32.totalorder %s10753_s27, 2 }
  0xa0   : > { %s300_s15 = sand.u32 1, %s10749_s26   ;;  %p11028_p7 = por %p196_p6, %p40_p1 }
  0xa1   : > { %p11032_p9 = por %p202_p2, %p46_p11  ;;  %s10348_s12 = smul.u32 160, %s300_s15 }
  0xa2   : > { %s12712_s21 = scalar_select %p11028_p7, 1, 0 }
  0xa3   : > { %s12713_s29 = scalar_select %p11032_p9, 1, 0 }
  0xa4   : > { %s10349_s10 = smul.u32 2560, %s10753_s27  ;;  %p11037_p4 = pnand %p10412_p5, %p42_p12 }
  0xa5   : > { %s304_s11 = scalar_lea.vmem [#allocation3], %s10348_s12  ;;  %s11048_s14 = scalar_lea.sflag [#allocation4], %s300_s15 }
  0xa6   : > { %s11044_s16 = scalar_lea.hbm %s12672_s0, %s10349_s10  ;;  %s311_s23 = sshll.u32 %s304_s11, 4  ;;  %s11046_s23 = int_to_ptr.vmem [resolvable:$true] %s311_s23 }
  0xa7   : > { %s10645_s22 = scalar_lea.hbm %s11044_s16, 2560  ;;  %p10647_p8 = pneg %p11037_p4 }
  0xa8   : > { %p10646_p10 = scmp.ne.s32.totalorder %s11044_s16, %s10645_s22  ;;  %s10650_s28 = scalar_lea.hbm %s12672_s0, 5120 }
  0xa9   : > { %p10651_p11 = scmp.lt.u32.totalorder %s11044_s16, %s12672_s0  ;;  %p10652_p12 = scmp.lt.u32.totalorder %s10650_s28, %s10645_s22 }
  0xaa   : > { %p10648_p1 = pnand %p10647_p8, %p10646_p10  ;;  %p10654_p6 = scmp.lt.u32.totalorder %s10645_s22, %s11044_s16 }
  0xab   : > { %p10653_p13 = por %p10652_p12, %p10651_p11 }
  0xac   : > { %p10649_p3 = pneg %p10648_p1 }
  0xad   : > { %p10655_p2 = por %p10654_p6, %p10653_p13 }
  0xaf   : > { %p10656_p5 = pnand %p10655_p2, %p10649_p3 }
  0xb1   : > { %10659 = shalt.err (!%p10656_p5)
}
  0xb2   : > { %s10660_s15 = scalar_lea.vmem %s11046_s23, 2560  ;;  %s10765_s12 = smov [#allocation3]  }
  0xb3   : > { %p10661_p10 = scmp.ne.s32.totalorder %s11046_s23, %s10660_s15  ;;  %s10665_s11 = sshll.u32 %s10765_s12, 4  ;;  %s10666_s11 = int_to_ptr.vmem [resolvable:$false] %s10665_s11 }
  0xb4   : > { %s10667_s1 = scalar_lea.vmem %s10666_s11, 5120  ;;  %p10668_p7 = scmp.lt.s32.totalorder %s11046_s23, %s10666_s11 }
  0xb5   : > { %p10663_p1 = pnand %p10661_p10, %p10647_p8  ;;  %p10669_p11 = scmp.lt.s32.totalorder %s10667_s1, %s10660_s15 }
  0xb7   : > { %p10664_p9 = pneg %p10663_p1  ;;  %p10670_p12 = por %p10669_p11, %p10668_p7 }
  0xb9   : > { %p10671_p13 = pnand %p10670_p12, %p10664_p9 }
  0xbb   : > { %10674 = shalt.err (!%p10671_p13)
}
  0xbc   : > { %s12715_s22 = smov 8   ;;  %s12716_s9 = smov 128  }
  0xbd   : > { %10401 = dma.hbm_to_vmem [thread:$0]  (!%p11037_p4), %s11044_s16, 2560, %s11046_s23, %s11048_s14, %s12716_s9, %s12716_s9, %s12715_s22  }
  0xbe   : > { %p12717_p8 = scmp.ne.s32.totalorder %s12704_s8, 0 }
  0xc0   : > { %323 = sbr.rel (%p12717_p8) target bundleno = 1369 (0x559), region = 48 }
  0xc7   : > { %s11082_s10 = sand.u32 1, %s10745_s25  }
  0xc8   : > { %s10350_s18 = smul.u32 160, %s11082_s10  ;;  %s326_s28 = scalar_lea.sflag [#allocation4], %s11082_s10 }
  0xca   : > { %s11086_s15 = scalar_lea.vmem [#allocation3], %s10350_s18 }
  0xcb   : > { %10720 = dma.done.wait (%p11021_p0), %s326_s28, 2560  }
  0xcc   : > { %10722 = vsyncadd (%p11021_p0), %s326_s28, 4294964736  ;;  %p12718_p7 = scmp.eq.s32.totalorder %s10837_s30, 0 }
  0xce   : > { %10724 = dma.done.wait (%p12718_p7), [#allocation7], 1152   ;;  %p12719_p9 = pmov %p12718_p7 }
  0xcf   : > { %p12720_p4 = pmov %p12718_p7 }
  0xd0   : > { %10726 = vsyncadd (%p12719_p9), [#allocation7], 4294966144 }
  0xd1   : > { %10728 = dma.done.wait (%p12720_p4), [#allocation10], 2176   ;;  %p12721_p3 = pmov %p12720_p4 }
  0xd3   : > { %10730 = vsyncadd (%p12721_p3), [#allocation10], 4294965120  ;;  %p12722_p6 = pmov %p12721_p3 }
  0xd4   : > { %p12723_p2 = pmov %p12721_p3 }
  0xd5   : > { %10732 = dma.done.wait (%p12722_p6), [#allocation13], 512  }
  0xd6   : > { %10734 = vsyncadd (%p12723_p2), [#allocation13], 4294966784  ;;  %vm429_vm0 = vcmask 1043456   ;;  %vm404_vm1 = vcmask 31744   ;;  %v403_v0 = vld [vmem:[#allocation6 + $0x4] sm:$0xf] }
  0xd7   : > { %v394_v1 = vld [vmem:[%s11086_s15 + $0x1] sm:$0xff]  ;;  %v11106_v2 = vld [vmem:[%s11086_s15 + $0x11] sm:$0xff]  ;;  %9156 = vmatprep.subr.msk.mxu0 %vm429_vm0, %v403_v0  ;;  %v1166_v14 = vld [vmem:[#allocation6 + $0xc] sm:$0xf]  ;;  %vm2801_vm2 = vcmask 1040384   ;;  %vm10766_vm3 = vmmov 1  }
  0xd8   : > { %9158 = vmatprep.mubr.msk.f32.mxu0 %vm404_vm1, %v394_v1  ;;  %v392_v3 = vld [vmem:[#allocation6] sm:$0xf]  ;;  %9157 = vmatpush3.msk.msra.mxu0 %vm429_vm0, %v403_v0  ;;  %v11122_v5 = vld [vmem:[%s11086_s15 + $0x31] sm:$0xff]  ;;  %v897_v6 = vld [vmem:[#allocation6 + $0x8] sm:$0xf]  ;;  %v12724_v47 = vmov 0 }
  0xd9   : > { %v11111_v4 = vld [vmem:[%s11086_s15 + $0x21] sm:$0xff]  ;;  %9186 = vmatprep.mubr.msk.f32.mxu1 %vm404_vm1, %v394_v1  ;;  %9159 = vmatmul.mubr.msk.f32.vlgmr.msra.gmra.mrb[0].mxu0 %vm404_vm1, %v11106_v2  ;;  %v11133_v8 = vld [vmem:[%s11086_s15 + $0x51] sm:$0xff]  ;;  %v1039_v26 = vld [vmem:[#allocation8 + $0x8] sm:$0xf]  ;;  %vm2776_vm5 = vcmask 72704   ;;  %vm2974_vm6 = vcmask 261120  }
  0xda   : > { %9170 = vmatprep.subr.msk.mxu0 %vm429_vm0, %v392_v3  ;;  %9161 = vmatprep.mubr.msk.f32.mxu0 %vm404_vm1, %v11111_v4  ;;  %v11125_v7 = vld [vmem:[%s11086_s15 + $0x41] sm:$0xff]  ;;  %v11143_v10 = vld [vmem:[%s11086_s15 + $0x71] sm:$0xff]  ;;  %v2239_v38 = vld [vmem:[#allocation6 + $0x1c] sm:$0xf]  ;;  %vm2976_vm7 = vcmask 254976   ;;  %v10767_v60 = vmov 0.0  }
  0xdb   : > { %9171 = vmatpush3.msk.msra.mxu0 %vm429_vm0, %v392_v3  ;;  %v11136_v9 = vld [vmem:[%s11086_s15 + $0x61] sm:$0xff]  ;;  %v11150_v12 = vld [vmem:[%s11086_s15 + $0x10] sm:$0xff]  ;;  %v1971_v35 = vld [vmem:[#allocation6 + $0x18] sm:$0xf]  ;;  %2975 = vst.msk [vmem:[#allocation2] sm:$0xff] %vm2974_vm6, %v10767_v60  ;;  %vm2982_vm8 = vcmask 253952  }
  0xdc   : > { %9212 = vmatprep.subr.msk.mxu0 %vm429_vm0, %v897_v6  ;;  %v384_v11 = vld [vmem:[%s11086_s15] sm:$0xff]  ;;  %v11161_v15 = vld [vmem:[%s11086_s15 + $0x30] sm:$0xff]  ;;  %v671_v21 = vld [vmem:[#allocation8 + $0x4] sm:$0xf]  ;;  %2977 = vst.msk [vmem:[#allocation2 + $0x8] sm:$0x3] %vm2976_vm7, %v10767_v60 }
  0xdd   : > { %9162 = vmatmul.mubr.msk.f32.gmra.mrb[2].mxu0 %vm404_vm1, %v11122_v5  ;;  %v11153_v13 = vld [vmem:[%s11086_s15 + $0x20] sm:$0xff]  ;;  %v11172_v17 = vld [vmem:[%s11086_s15 + $0x50] sm:$0xff]  ;;  %9184 = vmatprep.subr.msk.mxu1 %vm429_vm0, %v671_v21  ;;  %v1844_v39 = vld [vmem:[#allocation8 + $0x14] sm:$0xf]  ;;  %2979 = vst.msk [vmem:[#allocation2 + $0x90] sm:$0xff] %vm2974_vm6, %v10767_v60  ;;  %s10768_s8 = smov 112  }
  0xde   : > { %9164 = vmatprep.mubr.msk.f32.mxu0 %vm404_vm1, %v11125_v7  ;;  %v11164_v16 = vld [vmem:[%s11086_s15 + $0x40] sm:$0xff]  ;;  %v11182_v19 = vld [vmem:[%s11086_s15 + $0x70] sm:$0xff]  ;;  %9185 = vmatpush3.msk.msra.mxu1 %vm429_vm0, %v671_v21  ;;  %v2113_v42 = vld [vmem:[#allocation8 + $0x18] sm:$0xf]  ;;  %2980 = vst.msk [vmem:[#allocation2 + $0x98] sm:$0x3] %vm2976_vm7, %v10767_v60 }
  0xdf   : > { %v11175_v18 = vld [vmem:[%s11086_s15 + $0x60] sm:$0xff]  ;;  %v11189_v23 = vld [vmem:[%s11086_s15 + $0x12] sm:$0xff]  ;;  %9187 = vmatmul.mubr.msk.f32.vlgmr.msra.gmra.mrb[0].mxu1 %vm404_vm1, %v11106_v2  ;;  %vm11399_vm4 = vmpackc.low %vm2801_vm2, %vm10766_vm3  ;;  %2983 = vst.msk [vmem:[#allocation2 + $0x10] sm:$0x1] %vm2982_vm8, %v10767_v60  ;;  %s10769_s20 = smov 104   ;;  %vm3050_vm9 = vcmask 64512  }
  0xe0   : > { %v888_v20 = vld [vmem:[%s11086_s15 + $0x2] sm:$0xff]  ;;  %v1434_v25 = vld [vmem:[#allocation6 + $0x10] sm:$0xf]  ;;  %9189 = vmatprep.mubr.msk.f32.mxu1 %vm404_vm1, %v11111_v4  ;;  %v1702_v32 = vld [vmem:[#allocation6 + $0x14] sm:$0xf]  ;;  %v12725_v47 = vsel %vm11399_vm4, 4294967295, %v12724_v47 }
  0xe1   : > { %9165 = vmatmul.mubr.msk.f32.gmra.mrb[4].mxu0 %vm404_vm1, %v11133_v8  ;;  %v393_v22 = vld [vmem:[#allocation8] sm:$0xf]  ;;  %v11207_v27 = vld [vmem:[%s11086_s15 + $0x32] sm:$0xff]  ;;  %v2507_v41 = vld [vmem:[#allocation6 + $0x20] sm:$0xf]  ;;  %12726 = vst [vmem:[#allocation21_spill] sm:$0xff] %v12725_v47 }
  0xe2   : > { %9167 = vmatprep.mubr.msk.f32.mxu0 %vm404_vm1, %v11136_v9  ;;  %v11193_v24 = vld [vmem:[%s11086_s15 + $0x22] sm:$0xff]  ;;  %9198 = vmatprep.subr.msk.mxu1 %vm429_vm0, %v393_v22  ;;  %v11224_v29 = vld [vmem:[%s11086_s15 + $0x52] sm:$0xff]  ;;  %2984 = vst.msk [vmem:[#allocation2 + $0x20] sm:$0x1] %vm2982_vm8, %v10767_v60  ;;  %2985 = vst.msk [vmem:[#allocation2 + $0x30] sm:$0x1] %vm2982_vm8, %v10767_v60 }
  0xe3   : > { %v11210_v28 = vld [vmem:[%s11086_s15 + $0x42] sm:$0xff]  ;;  %9199 = vmatpush3.msk.msra.mxu1 %vm429_vm0, %v393_v22  ;;  %v11238_v31 = vld [vmem:[%s11086_s15 + $0x72] sm:$0xff]  ;;  %2986 = vst.msk [vmem:[#allocation2 + $0x40] sm:$0x1] %vm2982_vm8, %v10767_v60  ;;  %2987 = vst.msk [vmem:[#allocation2 + $0x50] sm:$0x1] %vm2982_vm8, %v10767_v60 }
  0xe4   : > { %9190 = vmatmul.mubr.msk.f32.gmra.mrb[2].mxu1 %vm404_vm1, %v11122_v5  ;;  %9226 = vmatprep.subr.msk.mxu1 %vm429_vm0, %v1039_v26  ;;  %v11227_v30 = vld [vmem:[%s11086_s15 + $0x62] sm:$0xff]  ;;  %v1308_v33 = vld [vmem:[#allocation8 + $0xc] sm:$0xf]  ;;  %v1576_v36 = vld [vmem:[#allocation8 + $0x10] sm:$0xf]  ;;  %s10770_s13 = smov 120  }
  0xe5   : > { %9168 = vmatmul.mubr.msk.f32.gmra.mrb[6].mxu0 %vm404_vm1, %v11143_v10  ;;  %9192 = vmatprep.mubr.msk.f32.mxu1 %vm404_vm1, %v11125_v7  ;;  %v11276_v34 = vld [vmem:[%s11086_s15 + $0x80] sm:$0xff]  ;;  %v8251_v43 = vld [vmem:[%s11086_s15 + $0x90] sm:$0xff]  ;;  %v2775_v45 = vld [vmem:[#allocation12 + $0x8] sm:$0x1]  ;;  %2988 = vst.msk [vmem:[#allocation2 + $0x60] sm:$0x1] %vm2982_vm8, %v10767_v60 }
  0xe6   : > { %9172 = vmatprep.mubr.msk.f32.mxu0 %vm404_vm1, %v384_v11  ;;  %v11314_v37 = vld [vmem:[%s11086_s15 + $0x81] sm:$0xff]  ;;  %v2774_v44 = vld [vmem:[#allocation12] sm:$0xff]  ;;  %v2767_v53 = vld [vmem:[#allocation11 + $0x8] sm:$0xff]  ;;  %2989 = vst.msk [vmem:[#allocation2 + $0x70] sm:$0x1] %vm2982_vm8, %v10767_v60  ;;  %s10771_s16 = smov 8  }
  0xe7   : > { %v11353_v40 = vld [vmem:[%s11086_s15 + $0x82] sm:$0xff]  ;;  %v9944_v46 = vpack.c.bf16 %v2775_v45, %v2774_v44  ;;  %v8277_v49 = vld [vmem:[%s11086_s15 + $0x91] sm:$0xff]  ;;  %2990 = vst.msk [vmem:[#allocation2 + $0x80] sm:$0x1] %vm2982_vm8, %v10767_v60  ;;  %2991 = vst.msk [vmem:[#allocation2 + $0x19] sm:$0x1] %vm2982_vm8, %v10767_v60 }
  0xe8   : > { %9193 = vmatmul.mubr.msk.f32.gmra.mrb[4].mxu1 %vm404_vm1, %v11133_v8  ;;  %v2381_v48 = vld [vmem:[#allocation8 + $0x1c] sm:$0xf]  ;;  %v2649_v50 = vld [vmem:[#allocation8 + $0x20] sm:$0xf]  ;;  %v8303_v51 = vld [vmem:[%s11086_s15 + $0x92] sm:$0xff]  ;;  %s10772_s23 = smov 16  }
  0xe9   : > { %9173 = vmatmul.mubr.msk.f32.vlgmr.msra.gmra.mrb[0].mxu0 %vm404_vm1, %v11150_v12  ;;  %9195 = vmatprep.mubr.msk.f32.mxu1 %vm404_vm1, %v11136_v9  ;;  %v2766_v52 = vld [vmem:[#allocation11] sm:$0xff]  ;;  %v2768_v54 = vld [vmem:[#allocation11 + $0x10] sm:$0xff]  ;;  %v2769_v55 = vld [vmem:[#allocation11 + $0x18] sm:$0xff]  ;;  %2992 = vst.msk [vmem:[#allocation2 + $0x29] sm:$0x1] %vm2982_vm8, %v10767_v60  ;;  %s10773_s14 = smov 24  }
  0xea   : > { %9213 = vmatpush3.msk.msra.mxu0 %vm429_vm0, %v897_v6  ;;  %9175 = vmatprep.mubr.msk.f32.mxu0 %vm404_vm1, %v11153_v13  ;;  %v2770_v56 = vld [vmem:[#allocation11 + $0x20] sm:$0xff]  ;;  %v2771_v57 = vld [vmem:[#allocation11 + $0x28] sm:$0xff]  ;;  %v2772_v58 = vld [vmem:[#allocation11 + $0x30] sm:$0xff]  ;;  %2993 = vst.msk [vmem:[#allocation2 + $0x39] sm:$0x1] %vm2982_vm8, %v10767_v60  ;;  %vm7726_vm2 = vcmask 130048  }
  0xeb   : > { %9240 = vmatprep.subr.msk.mxu0 %vm429_vm0, %v1166_v14  ;;  %v2773_v59 = vld [vmem:[#allocation11 + $0x38] sm:$0xff]  ;;  %2994 = vst.msk [vmem:[#allocation2 + $0x49] sm:$0x1] %vm2982_vm8, %v10767_v60  ;;  %2995 = vst.msk [vmem:[#allocation2 + $0x59] sm:$0x1] %vm2982_vm8, %v10767_v60  ;;  %v11530_v62 = vld [vmem:[#allocation9 + $0x8] sm:$0xff] }
  0xec   : > { %9196 = vmatmul.mubr.msk.f32.gmra.mrb[6].mxu1 %vm404_vm1, %v11143_v10  ;;  %2996 = vst.msk [vmem:[#allocation2 + $0x69] sm:$0x1] %vm2982_vm8, %v10767_v60  ;;  %2997 = vst.msk [vmem:[#allocation2 + $0x79] sm:$0x1] %vm2982_vm8, %v10767_v60  ;;  %v3016_v61 = vld [vmem:[#allocation2 + $0x1] sm:$0xff]  ;;  %vm7735_vm3 = vcmask 195584  }
  0xed   : > { %9176 = vmatmul.mubr.msk.f32.gmra.mrb[2].mxu0 %vm404_vm1, %v11161_v15  ;;  %9200 = vmatprep.mubr.msk.f32.mxu1 %vm404_vm1, %v384_v11  ;;  %2998 = vst.msk [vmem:[#allocation2 + $0x89] sm:$0x1] %vm2982_vm8, %v10767_v60  ;;  %s8111_s12 = sshll.u32 %s11082_s10, 6  ;;  %s8649_s1 = sshll.u32 %s10837_s30, 10 }
  0xee   : > { %9178 = vmatprep.mubr.msk.f32.mxu0 %vm404_vm1, %v11164_v16  ;;  %3034 = vrot.lane.b32.xlu0 %v3016_v61, %s10768_s8  ;;  %s12574_s11 = scalar_lea.vmem [#allocation15], %s8111_s12  ;;  %s12621_s28 = scalar_lea.hbm %s12679_s7, %s8649_s1 }
  0xef   : > { %3319 = vrot.lane.b32.xlu1 %v3016_v61, %s10769_s20  ;;  %s7964_s22 = sshll.u32 %s12574_s11, 4  ;;  %s7951_s30 = scalar_lea.sflag [#allocation5], %s11082_s10  ;;  %s12623_s22 = int_to_ptr.vmem [resolvable:$true] %s7964_s22 }
  0xf0   : > { %9201 = vmatmul.mubr.msk.f32.vlgmr.msra.gmra.mrb[0].mxu1 %vm404_vm1, %v11150_v12  ;;  %s10675_s15 = scalar_lea.vmem %s12623_s22, 1024  ;;  %p12762_p5 = scmp.ne.s32.totalorder %s12712_s21, 0 }
  0xf1   : > { %9179 = vmatmul.mubr.msk.f32.gmra.mrb[4].mxu0 %vm404_vm1, %v11172_v17  ;;  %9203 = vmatprep.mubr.msk.f32.mxu1 %vm404_vm1, %v11153_v13  ;;  %p10676_p0 = scmp.ne.s32.totalorder %s12623_s22, %s10675_s15 }
  0xf2   : > { %9181 = vmatprep.mubr.msk.f32.mxu0 %vm404_vm1, %v11175_v18  ;;  %9227 = vmatpush3.msk.msra.mxu1 %vm429_vm0, %v1039_v26 }
  0xf3   : > { %9254 = vmatprep.subr.msk.mxu1 %vm429_vm0, %v1308_v33  ;;  %p10677_p10 = pnand %p10676_p0, %p12762_p5 }
  0xf4   : > { %9204 = vmatmul.mubr.msk.f32.gmra.mrb[2].mxu1 %vm404_vm1, %v11161_v15 }
  0xf5   : > { %9182 = vmatmul.mubr.msk.f32.gmra.mrb[6].mxu0 %vm404_vm1, %v11182_v19  ;;  %9206 = vmatprep.mubr.msk.f32.mxu1 %vm404_vm1, %v11164_v16  ;;  %p10678_p1 = pneg %p10677_p10 }
  0xf6   : > { %9214 = vmatprep.mubr.msk.f32.mxu0 %vm404_vm1, %v888_v20 }
  0xf8   : > { %9207 = vmatmul.mubr.msk.f32.gmra.mrb[4].mxu1 %vm404_vm1, %v11172_v17 }
  0xf9   : > { %9215 = vmatmul.mubr.msk.f32.vlgmr.msra.gmra.mrb[0].mxu0 %vm404_vm1, %v11189_v23  ;;  %9209 = vmatprep.mubr.msk.f32.mxu1 %vm404_vm1, %v11175_v18 }
  0xfa   : > { %9241 = vmatpush3.msk.msra.mxu0 %vm429_vm0, %v1166_v14  ;;  %9217 = vmatprep.mubr.msk.f32.mxu0 %vm404_vm1, %v11193_v24 }
  0xfb   : > { %9268 = vmatprep.subr.msk.mxu0 %vm429_vm0, %v1434_v25 }
  0xfc   : > { %9210 = vmatmul.mubr.msk.f32.gmra.mrb[6].mxu1 %vm404_vm1, %v11182_v19 }
  0xfd   : > { %9218 = vmatmul.mubr.msk.f32.gmra.mrb[2].mxu0 %vm404_vm1, %v11207_v27  ;;  %9228 = vmatprep.mubr.msk.f32.mxu1 %vm404_vm1, %v888_v20 }
  0xfe   : > { %9220 = vmatprep.mubr.msk.f32.mxu0 %vm404_vm1, %v11210_v28 }
 0x100   : > { %9229 = vmatmul.mubr.msk.f32.vlgmr.msra.gmra.mrb[0].mxu1 %vm404_vm1, %v11189_v23 }
 0x101   : > { %9221 = vmatmul.mubr.msk.f32.gmra.mrb[4].mxu0 %vm404_vm1, %v11224_v29  ;;  %9231 = vmatprep.mubr.msk.f32.mxu1 %vm404_vm1, %v11193_v24 }
 0x102   : > { %9223 = vmatprep.mubr.msk.f32.mxu0 %vm404_vm1, %v11227_v30  ;;  %9255 = vmatpush3.msk.msra.mxu1 %vm429_vm0, %v1308_v33 }
 0x103   : > { %9282 = vmatprep.subr.msk.mxu1 %vm429_vm0, %v1576_v36 }
 0x104   : > { %9232 = vmatmul.mubr.msk.f32.gmra.mrb[2].mxu1 %vm404_vm1, %v11207_v27 }
 0x105   : > { %9224 = vmatmul.mubr.msk.f32.gmra.mrb[6].mxu0 %vm404_vm1, %v11238_v31  ;;  %9234 = vmatprep.mubr.msk.f32.mxu1 %vm404_vm1, %v11210_v28 }
 0x106   : > { %9242 = vmatprep.mubr.msk.f32.mxu0 %vm404_vm1, %v11150_v12 }
 0x108   : > { %9235 = vmatmul.mubr.msk.f32.gmra.mrb[4].mxu1 %vm404_vm1, %v11224_v29 }
 0x109   : > { %9243 = vmatmul.mubr.msk.f32.vlgmr.msra.gmra.mrb[0].mxu0 %vm404_vm1, %v11153_v13  ;;  %9237 = vmatprep.mubr.msk.f32.mxu1 %vm404_vm1, %v11227_v30 }
 0x10a   : > { %9269 = vmatpush3.msk.msra.mxu0 %vm429_vm0, %v1434_v25  ;;  %9245 = vmatprep.mubr.msk.f32.mxu0 %vm404_vm1, %v11161_v15 }
 0x10b   : > { %9296 = vmatprep.subr.msk.mxu0 %vm429_vm0, %v1702_v32 }
 0x10c   : > { %9238 = vmatmul.mubr.msk.f32.gmra.mrb[6].mxu1 %vm404_vm1, %v11238_v31 }
 0x10d   : > { %9246 = vmatmul.mubr.msk.f32.gmra.mrb[2].mxu0 %vm404_vm1, %v11164_v16  ;;  %9256 = vmatprep.mubr.msk.f32.mxu1 %vm404_vm1, %v11150_v12 }
 0x10e   : > { %9248 = vmatprep.mubr.msk.f32.mxu0 %vm404_vm1, %v11172_v17 }
 0x110   : > { %9257 = vmatmul.mubr.msk.f32.vlgmr.msra.gmra.mrb[0].mxu1 %vm404_vm1, %v11153_v13 }
 0x111   : > { %9249 = vmatmul.mubr.msk.f32.gmra.mrb[4].mxu0 %vm404_vm1, %v11175_v18  ;;  %9259 = vmatprep.mubr.msk.f32.mxu1 %vm404_vm1, %v11161_v15 }
 0x112   : > { %9251 = vmatprep.mubr.msk.f32.mxu0 %vm404_vm1, %v11182_v19  ;;  %9283 = vmatpush3.msk.msra.mxu1 %vm429_vm0, %v1576_v36 }
 0x113   : > { %9310 = vmatprep.subr.msk.mxu1 %vm429_vm0, %v1844_v39 }
 0x114   : > { %9260 = vmatmul.mubr.msk.f32.gmra.mrb[2].mxu1 %vm404_vm1, %v11164_v16 }
 0x115   : > { %9252 = vmatmul.mubr.msk.f32.gmra.mrb[6].mxu0 %vm404_vm1, %v11276_v34  ;;  %9262 = vmatprep.mubr.msk.f32.mxu1 %vm404_vm1, %v11172_v17 }
 0x116   : > { %9270 = vmatprep.mubr.msk.f32.mxu0 %vm404_vm1, %v11106_v2 }
 0x118   : > { %9263 = vmatmul.mubr.msk.f32.gmra.mrb[4].mxu1 %vm404_vm1, %v11175_v18 }
 0x119   : > { %9271 = vmatmul.mubr.msk.f32.vlgmr.msra.gmra.mrb[0].mxu0 %vm404_vm1, %v11111_v4  ;;  %9265 = vmatprep.mubr.msk.f32.mxu1 %vm404_vm1, %v11182_v19 }
 0x11a   : > { %9297 = vmatpush3.msk.msra.mxu0 %vm429_vm0, %v1702_v32  ;;  %9273 = vmatprep.mubr.msk.f32.mxu0 %vm404_vm1, %v11122_v5 }
 0x11b   : > { %9324 = vmatprep.subr.msk.mxu0 %vm429_vm0, %v1971_v35 }
 0x11c   : > { %9266 = vmatmul.mubr.msk.f32.gmra.mrb[6].mxu1 %vm404_vm1, %v11276_v34 }
 0x11d   : > { %9274 = vmatmul.mubr.msk.f32.gmra.mrb[2].mxu0 %vm404_vm1, %v11125_v7  ;;  %9284 = vmatprep.mubr.msk.f32.mxu1 %vm404_vm1, %v11106_v2 }
 0x11e   : > { %9276 = vmatprep.mubr.msk.f32.mxu0 %vm404_vm1, %v11133_v8 }
 0x120   : > { %9285 = vmatmul.mubr.msk.f32.vlgmr.msra.gmra.mrb[0].mxu1 %vm404_vm1, %v11111_v4 }
 0x121   : > { %9277 = vmatmul.mubr.msk.f32.gmra.mrb[4].mxu0 %vm404_vm1, %v11136_v9  ;;  %9287 = vmatprep.mubr.msk.f32.mxu1 %vm404_vm1, %v11122_v5 }
 0x122   : > { %9279 = vmatprep.mubr.msk.f32.mxu0 %vm404_vm1, %v11143_v10  ;;  %9311 = vmatpush3.msk.msra.mxu1 %vm429_vm0, %v1844_v39 }
 0x123   : > { %9338 = vmatprep.subr.msk.mxu1 %vm429_vm0, %v2113_v42 }
 0x124   : > { %9288 = vmatmul.mubr.msk.f32.gmra.mrb[2].mxu1 %vm404_vm1, %v11125_v7 }
 0x125   : > { %9280 = vmatmul.mubr.msk.f32.gmra.mrb[6].mxu0 %vm404_vm1, %v11314_v37  ;;  %9290 = vmatprep.mubr.msk.f32.mxu1 %vm404_vm1, %v11133_v8 }
 0x126   : > { %9298 = vmatprep.mubr.msk.f32.mxu0 %vm404_vm1, %v11189_v23 }
 0x128   : > { %9291 = vmatmul.mubr.msk.f32.gmra.mrb[4].mxu1 %vm404_vm1, %v11136_v9 }
 0x129   : > { %9299 = vmatmul.mubr.msk.f32.vlgmr.msra.gmra.mrb[0].mxu0 %vm404_vm1, %v11193_v24  ;;  %9293 = vmatprep.mubr.msk.f32.mxu1 %vm404_vm1, %v11143_v10 }
 0x12a   : > { %9325 = vmatpush3.msk.msra.mxu0 %vm429_vm0, %v1971_v35  ;;  %9301 = vmatprep.mubr.msk.f32.mxu0 %vm404_vm1, %v11207_v27 }
 0x12b   : > { %9352 = vmatprep.subr.msk.mxu0 %vm429_vm0, %v2239_v38 }
 0x12c   : > { %9294 = vmatmul.mubr.msk.f32.gmra.mrb[6].mxu1 %vm404_vm1, %v11314_v37 }
 0x12d   : > { %9302 = vmatmul.mubr.msk.f32.gmra.mrb[2].mxu0 %vm404_vm1, %v11210_v28  ;;  %9312 = vmatprep.mubr.msk.f32.mxu1 %vm404_vm1, %v11189_v23 }
 0x12e   : > { %9304 = vmatprep.mubr.msk.f32.mxu0 %vm404_vm1, %v11224_v29 }
 0x130   : > { %9313 = vmatmul.mubr.msk.f32.vlgmr.msra.gmra.mrb[0].mxu1 %vm404_vm1, %v11193_v24 }
 0x131   : > { %9305 = vmatmul.mubr.msk.f32.gmra.mrb[4].mxu0 %vm404_vm1, %v11227_v30  ;;  %9315 = vmatprep.mubr.msk.f32.mxu1 %vm404_vm1, %v11207_v27 }
 0x132   : > { %9307 = vmatprep.mubr.msk.f32.mxu0 %vm404_vm1, %v11238_v31  ;;  %9339 = vmatpush3.msk.msra.mxu1 %vm429_vm0, %v2113_v42 }
 0x133   : > { %9366 = vmatprep.subr.msk.mxu1 %vm429_vm0, %v2381_v48 }
 0x134   : > { %9316 = vmatmul.mubr.msk.f32.gmra.mrb[2].mxu1 %vm404_vm1, %v11210_v28 }
 0x135   : > { %9308 = vmatmul.mubr.msk.f32.gmra.mrb[6].mxu0 %vm404_vm1, %v11353_v40  ;;  %9318 = vmatprep.mubr.msk.f32.mxu1 %vm404_vm1, %v11224_v29 }
 0x136   : > { %9326 = vmatprep.mubr.msk.f32.mxu0 %vm404_vm1, %v11153_v13 }
 0x138   : > { %9319 = vmatmul.mubr.msk.f32.gmra.mrb[4].mxu1 %vm404_vm1, %v11227_v30 }
 0x139   : > { %9327 = vmatmul.mubr.msk.f32.vlgmr.msra.gmra.mrb[0].mxu0 %vm404_vm1, %v11161_v15  ;;  %9321 = vmatprep.mubr.msk.f32.mxu1 %vm404_vm1, %v11238_v31 }
 0x13a   : > { %9353 = vmatpush3.msk.msra.mxu0 %vm429_vm0, %v2239_v38  ;;  %9329 = vmatprep.mubr.msk.f32.mxu0 %vm404_vm1, %v11164_v16 }
 0x13b   : > { %9380 = vmatprep.subr.msk.mxu0 %vm429_vm0, %v2507_v41 }
 0x13c   : > { %9322 = vmatmul.mubr.msk.f32.gmra.mrb[6].mxu1 %vm404_vm1, %v11353_v40 }
 0x13d   : > { %9330 = vmatmul.mubr.msk.f32.gmra.mrb[2].mxu0 %vm404_vm1, %v11172_v17  ;;  %9340 = vmatprep.mubr.msk.f32.mxu1 %vm404_vm1, %v11153_v13 }
 0x13e   : > { %9332 = vmatprep.mubr.msk.f32.mxu0 %vm404_vm1, %v11175_v18 }
 0x140   : > { %9341 = vmatmul.mubr.msk.f32.vlgmr.msra.gmra.mrb[0].mxu1 %vm404_vm1, %v11161_v15 }
 0x141   : > { %9333 = vmatmul.mubr.msk.f32.gmra.mrb[4].mxu0 %vm404_vm1, %v11182_v19  ;;  %9343 = vmatprep.mubr.msk.f32.mxu1 %vm404_vm1, %v11164_v16 }
 0x142   : > { %9335 = vmatprep.mubr.msk.f32.mxu0 %vm404_vm1, %v11276_v34  ;;  %9367 = vmatpush3.msk.msra.mxu1 %vm429_vm0, %v2381_v48 }
 0x143   : > { %9394 = vmatprep.subr.msk.mxu1 %vm429_vm0, %v2649_v50 }
 0x144   : > { %9344 = vmatmul.mubr.msk.f32.gmra.mrb[2].mxu1 %vm404_vm1, %v11172_v17 }
 0x145   : > { %9336 = vmatmul.mubr.msk.f32.gmra.mrb[6].mxu0 %vm404_vm1, %v8251_v43  ;;  %9346 = vmatprep.mubr.msk.f32.mxu1 %vm404_vm1, %v11175_v18 }
 0x146   : > { %9354 = vmatprep.mubr.msk.f32.mxu0 %vm404_vm1, %v11111_v4 }
 0x148   : > { %9347 = vmatmul.mubr.msk.f32.gmra.mrb[4].mxu1 %vm404_vm1, %v11182_v19 }
 0x149   : > { %9355 = vmatmul.mubr.msk.f32.vlgmr.msra.gmra.mrb[0].mxu0 %vm404_vm1, %v11122_v5  ;;  %9349 = vmatprep.mubr.msk.f32.mxu1 %vm404_vm1, %v11276_v34 }
 0x14a   : > { %9381 = vmatpush3.msk.msra.mxu0 %vm429_vm0, %v2507_v41  ;;  %9357 = vmatprep.mubr.msk.f32.mxu0 %vm404_vm1, %v11125_v7  ;;  %v11558_v41 = vld [vmem:[#allocation9] sm:$0xff] }
 0x14b   : > { %9946 = vmatprep.subr.msk.bf16.mxu0 %vm11399_vm4, %v9944_v46 }
 0x14c   : > { %9350 = vmatmul.mubr.msk.f32.gmra.mrb[6].mxu1 %vm404_vm1, %v8251_v43 }
 0x14d   : > { %9358 = vmatmul.mubr.msk.f32.gmra.mrb[2].mxu0 %vm404_vm1, %v11133_v8  ;;  %9368 = vmatprep.mubr.msk.f32.mxu1 %vm404_vm1, %v11111_v4 }
 0x14e   : > { %9360 = vmatprep.mubr.msk.f32.mxu0 %vm404_vm1, %v11136_v9 }
 0x150   : > { %9369 = vmatmul.mubr.msk.f32.vlgmr.msra.gmra.mrb[0].mxu1 %vm404_vm1, %v11122_v5 }
 0x151   : > { %9361 = vmatmul.mubr.msk.f32.gmra.mrb[4].mxu0 %vm404_vm1, %v11143_v10  ;;  %9371 = vmatprep.mubr.msk.f32.mxu1 %vm404_vm1, %v11125_v7 }
 0x152   : > { %9363 = vmatprep.mubr.msk.f32.mxu0 %vm404_vm1, %v11314_v37  ;;  %9395 = vmatpush3.msk.msra.mxu1 %vm429_vm0, %v2649_v50  ;;  %v3007_v50 = vld [vmem:[#allocation2] sm:$0xff] }
 0x153   : > { %9424 = vmatprep.subr.mxu1 %v11530_v62 }
 0x154   : > { %9372 = vmatmul.mubr.msk.f32.gmra.mrb[2].mxu1 %vm404_vm1, %v11133_v8 }
 0x155   : > { %9364 = vmatmul.mubr.msk.f32.gmra.mrb[6].mxu0 %vm404_vm1, %v8277_v49  ;;  %9374 = vmatprep.mubr.msk.f32.mxu1 %vm404_vm1, %v11136_v9 }
 0x156   : > { %9382 = vmatprep.mubr.msk.f32.mxu0 %vm404_vm1, %v11193_v24 }
 0x158   : > { %9375 = vmatmul.mubr.msk.f32.gmra.mrb[4].mxu1 %vm404_vm1, %v11143_v10 }
 0x159   : > { %9383 = vmatmul.mubr.msk.f32.vlgmr.msra.gmra.mrb[0].mxu0 %vm404_vm1, %v11207_v27  ;;  %9377 = vmatprep.mubr.msk.f32.mxu1 %vm404_vm1, %v11314_v37 }
 0x15a   : > { %9949 = vmatpush3.bf16.msk.msra.mxu0 %vm11399_vm4, %v9944_v46  ;;  %9385 = vmatprep.mubr.msk.f32.mxu0 %vm404_vm1, %v11210_v28 }
 0x15b   : > { %9550 = vmatprep.subr.mxu0 %v11530_v62 }
 0x15c   : > { %9378 = vmatmul.mubr.msk.f32.gmra.mrb[6].mxu1 %vm404_vm1, %v8277_v49 }
 0x15d   : > { %9386 = vmatmul.mubr.msk.f32.gmra.mrb[2].mxu0 %vm404_vm1, %v11224_v29  ;;  %9396 = vmatprep.mubr.msk.f32.mxu1 %vm404_vm1, %v11193_v24 }
 0x15e   : > { %9388 = vmatprep.mubr.msk.f32.mxu0 %vm404_vm1, %v11227_v30 }
 0x160   : > { %9397 = vmatmul.mubr.msk.f32.vlgmr.msra.gmra.mrb[0].mxu1 %vm404_vm1, %v11207_v27  ;;  %v11532_v63 = vpop.permute.xlu0 %3034 }
 0x161   : > { %9389 = vmatmul.mubr.msk.f32.gmra.mrb[4].mxu0 %vm404_vm1, %v11238_v31  ;;  %9399 = vmatprep.mubr.msk.f32.mxu1 %vm404_vm1, %v11210_v28  ;;  %v11536_v0 = vpop.permute.xlu1 %3319 }
 0x162   : > { %9391 = vmatprep.mubr.msk.f32.mxu0 %vm404_vm1, %v11353_v40  ;;  %9425 = vmatpush3.msra.mxu1 %v11530_v62 }
 0x163   : > { %9438 = vmatprep.subr.mxu1 %v11558_v41 }
 0x164   : > { %9400 = vmatmul.mubr.msk.f32.gmra.mrb[2].mxu1 %vm404_vm1, %v11224_v29 }
 0x165   : > { %9392 = vmatmul.mubr.msk.f32.gmra.mrb[6].mxu0 %vm404_vm1, %v8303_v51  ;;  %9402 = vmatprep.mubr.msk.f32.mxu1 %vm404_vm1, %v11227_v30 }
 0x166   : > { %9412 = vmatprep.mubr.msk.f32.mxu0 %vm2776_vm5, %v2766_v52 }
 0x168   : > { %9403 = vmatmul.mubr.msk.f32.gmra.mrb[4].mxu1 %vm404_vm1, %v11238_v31 }
 0x169   : > { %9413 = vmatmul.mubr.msk.f32.vlgmr.msra.gmra.mrb[0].mxu0 %vm2776_vm5, %v2767_v53  ;;  %9405 = vmatprep.mubr.msk.f32.mxu1 %vm404_vm1, %v11353_v40 }
 0x16a   : > { %9415 = vmatprep.mubr.msk.f32.mxu0 %vm2776_vm5, %v2768_v54  ;;  %9551 = vmatpush3.msra.mxu0 %v11530_v62 }
 0x16b   : > { %9564 = vmatprep.subr.mxu0 %v11558_v41 }
 0x16c   : > { %9406 = vmatmul.mubr.msk.f32.gmra.mrb[6].mxu1 %vm404_vm1, %v8303_v51 }
 0x16d   : > { %9416 = vmatmul.mubr.msk.f32.gmra.mrb[2].mxu0 %vm2776_vm5, %v2769_v55  ;;  %9426 = vmatprep.mubr.msk.f32.mxu1 %vm3050_vm9, %v11532_v63 }
 0x16e   : > { %9418 = vmatprep.mubr.msk.f32.mxu0 %vm2776_vm5, %v2770_v56 }
 0x171   : > { %9419 = vmatmul.mubr.msk.f32.gmra.mrb[4].mxu0 %vm2776_vm5, %v2771_v57 }
 0x172   : > { %9421 = vmatprep.mubr.msk.f32.mxu0 %vm2776_vm5, %v2772_v58  ;;  %v4572_v58 = vld [vmem:[#allocation2 + $0x2] sm:$0xff] }
 0x175   : > { %9422 = vmatmul.mubr.msk.f32.gmra.mrb[6].mxu0 %vm2776_vm5, %v2773_v59 }
 0x176   : > { %9552 = vmatprep.mubr.msk.f32.mxu0 %vm3050_vm9, %v11536_v0 }
 0x23c   : > { %v9414_v1 = vpop.f32.mrb[0].mxu0 }
 0x23d   : > { %vm2919_vm10 = vcmp.ge.f32.partialorder %v9414_v1, 0.0  ;;  %v2927_v2 = vmul.f32 0.2, %v9414_v1  ;;  %v2871_v3 = vpop.f32.mrb[1].mxu0 }
 0x23e   : > { %vm2918_vm11 = vcmp.ge.f32.partialorder %v2871_v3, 0.0  ;;  %v2926_v4 = vmul.f32 0.2, %v2871_v3 }
 0x23f   : > { %v2935_v5 = vsel %vm2919_vm10, %v9414_v1, %v2927_v2 }
 0x240   : > { %v2943_v6 = vmul.f32 1.4142135, %v2935_v5  ;;  %v2934_v7 = vsel %vm2918_vm11, %v2871_v3, %v2926_v4  ;;  %v9417_v8 = vpop.f32.mrb[2].mxu0  ;;  %v11660_v5 = vpop.f32.mrb[0].mxu1 }
 0x241   : > { %v2942_v9 = vmul.f32 1.4142135, %v2934_v7  ;;  %vm2921_vm12 = vcmp.ge.f32.partialorder %v9417_v8, 0.0  ;;  %v2929_v10 = vmul.f32 0.2, %v9417_v8  ;;  %v2881_v11 = vpop.f32.mrb[3].mxu0 }
 0x242   : > { %v8332_v12 = vclamps-f32 %v2943_v6, 256.0  ;;  %vm2920_vm13 = vcmp.ge.f32.partialorder %v2881_v11, 0.0  ;;  %v2928_v13 = vmul.f32 0.2, %v2881_v11  ;;  %12727 = vst [vmem:[#allocation22_spill] sm:$0xff] %v11660_v5  ;;  %v11662_v6 = vpop.f32.mrb[1].mxu1 }
 0x243   : > { %v8331_v14 = vclamps-f32 %v2942_v9, 256.0  ;;  %v2937_v15 = vsel %vm2921_vm12, %v9417_v8, %v2929_v10  ;;  %12728 = vst [vmem:[#allocation23_spill] sm:$0xff] %v11662_v6  ;;  %v11668_v7 = vpop.f32.mrb[2].mxu1 }
 0x244   : > { %3000 = vst.msk [vmem:[#allocation2 + $0x21] sm:$0xff] %vm2974_vm6, %v8332_v12  ;;  %v2945_v16 = vmul.f32 1.4142135, %v2937_v15  ;;  %v2936_v17 = vsel %vm2920_vm13, %v2881_v11, %v2928_v13  ;;  %v9420_v18 = vpop.f32.mrb[4].mxu0  ;;  %12729 = vst [vmem:[#allocation24_spill] sm:$0xff] %v11668_v7  ;;  %v11670_v8 = vpop.f32.mrb[3].mxu1 }
 0x245   : > { %2999 = vst.msk [vmem:[#allocation2 + $0x11] sm:$0xff] %vm2974_vm6, %v8331_v14  ;;  %v2944_v19 = vmul.f32 1.4142135, %v2936_v17  ;;  %vm2923_vm14 = vcmp.ge.f32.partialorder %v9420_v18, 0.0  ;;  %v2931_v20 = vmul.f32 0.2, %v9420_v18 }
 0x246   : > { %v2891_v21 = vpop.f32.mrb[5].mxu0  ;;  %v8334_v22 = vclamps-f32 %v2945_v16, 256.0  ;;  %12730 = vst [vmem:[#allocation25_spill] sm:$0xff] %v11670_v8  ;;  %v11678_v10 = vpop.f32.mrb[4].mxu1  ;;  %v11729_v17 = vld [vmem:[#allocation9 + $0x10] sm:$0xff] }
 0x247   : > { %vm2922_vm15 = vcmp.ge.f32.partialorder %v2891_v21, 0.0  ;;  %v2930_v23 = vmul.f32 0.2, %v2891_v21  ;;  %v8333_v24 = vclamps-f32 %v2944_v19, 256.0  ;;  %v2939_v25 = vsel %vm2923_vm14, %v9420_v18, %v2931_v20  ;;  %12731 = vst [vmem:[#allocation26_spill] sm:$0xff] %v11678_v10  ;;  %v11680_v11 = vpop.f32.mrb[5].mxu1 }
 0x248   : > { %3002 = vst.msk [vmem:[#allocation2 + $0x41] sm:$0xff] %vm2974_vm6, %v8334_v22  ;;  %v2947_v26 = vmul.f32 1.4142135, %v2939_v25  ;;  %v9423_v28 = vpop.f32.mrb[6].mxu0  ;;  %12732 = vst [vmem:[#allocation27_spill] sm:$0xff] %v11680_v11  ;;  %v11686_v12 = vpop.f32.mrb[6].mxu1 }
 0x249   : > { %v2938_v27 = vsel %vm2922_vm15, %v2891_v21, %v2930_v23  ;;  %3001 = vst.msk [vmem:[#allocation2 + $0x31] sm:$0xff] %vm2974_vm6, %v8333_v24  ;;  %vm2925_vm0 = vcmp.ge.f32.partialorder %v9423_v28, 0.0  ;;  %v2933_v30 = vmul.f32 0.2, %v9423_v28  ;;  %v2901_v31 = vpop.f32.mrb[7].mxu0  ;;  %12733 = vst [vmem:[#allocation28_spill] sm:$0xff] %v11686_v12 }
 0x24a   : > { %v2946_v29 = vmul.f32 1.4142135, %v2938_v27  ;;  %v8336_v32 = vclamps-f32 %v2947_v26, 256.0  ;;  %vm2924_vm1 = vcmp.ge.f32.partialorder %v2901_v31, 0.0  ;;  %v2932_v33 = vmul.f32 0.2, %v2901_v31 }
 0x24b   : > { %v2941_v35 = vsel %vm2925_vm0, %v9423_v28, %v2933_v30  ;;  %v11548_v36 = vld [vmem:[#allocation2 + $0x21] sm:$0xff]  ;;  %v11688_v13 = vpop.f32.mrb[7].mxu1 }
 0x24c   : > { %v8335_v34 = vclamps-f32 %v2946_v29, 256.0  ;;  %3004 = vst.msk [vmem:[#allocation2 + $0x61] sm:$0xff] %vm2974_vm6, %v8336_v32  ;;  %v2949_v37 = vmul.f32 1.4142135, %v2941_v35  ;;  %v2940_v38 = vsel %vm2924_vm1, %v2901_v31, %v2932_v33  ;;  %3038 = vrot.lane.b32.xlu0 %v11548_v36, %s10768_s8  ;;  %v11553_v39 = vld [vmem:[#allocation2 + $0x11] sm:$0xff]  ;;  %v11600_v52 = vld [vmem:[#allocation2 + $0x20] sm:$0xff] }
 0x24d   : > { %v2948_v40 = vmul.f32 1.4142135, %v2940_v38  ;;  %3321 = vrot.lane.b32.xlu1 %v11553_v39, %s10769_s20  ;;  %v3008_v51 = vld [vmem:[#allocation2 + $0x10] sm:$0xff]  ;;  %v11629_v60 = vld [vmem:[#allocation2 + $0x22] sm:$0xff]  ;;  %12734 = vst [vmem:[#allocation29_spill] sm:$0xff] %v11688_v13 }
 0x24e   : > { %3003 = vst.msk [vmem:[#allocation2 + $0x51] sm:$0xff] %vm2974_vm6, %v8335_v34  ;;  %v8338_v42 = vclamps-f32 %v2949_v37, 256.0  ;;  %v11625_v59 = vld [vmem:[#allocation2 + $0x12] sm:$0xff]  ;;  %v11809_v33 = vld [vmem:[#allocation9 + $0x18] sm:$0xff] }
 0x24f   : > { %v8337_v43 = vclamps-f32 %v2948_v40, 256.0  ;;  %v11574_v45 = vld [vmem:[#allocation2 + $0x41] sm:$0xff] }
 0x250   : > { %3006 = vst.msk [vmem:[#allocation2 + $0x81] sm:$0xff] %vm2974_vm6, %v8338_v42  ;;  %3323 = vrot.lane.b32.xlu0 %v11548_v36, %s10769_s20  ;;  %v11565_v44 = vld [vmem:[#allocation2 + $0x31] sm:$0xff]  ;;  %v11608_v54 = vld [vmem:[#allocation2 + $0x40] sm:$0xff] }
 0x251   : > { %3005 = vst.msk [vmem:[#allocation2 + $0x71] sm:$0xff] %vm2974_vm6, %v8337_v43  ;;  %3040 = vrot.lane.b32.xlu1 %v11565_v44, %s10768_s8  ;;  %v11604_v53 = vld [vmem:[#allocation2 + $0x30] sm:$0xff]  ;;  %v11637_v1 = vld [vmem:[#allocation2 + $0x42] sm:$0xff] }
 0x252   : > { %v11633_v61 = vld [vmem:[#allocation2 + $0x32] sm:$0xff] }
 0x253   : > { %v11586_v48 = vld [vmem:[#allocation2 + $0x61] sm:$0xff] }
 0x254   : > { %3036 = vrot.lane.b32.xlu0 %v11553_v39, %s10768_s8  ;;  %v11616_v56 = vld [vmem:[#allocation2 + $0x60] sm:$0xff] }
 0x255   : > { %3325 = vrot.lane.b32.xlu1 %v11565_v44, %s10769_s20  ;;  %v11578_v46 = vld [vmem:[#allocation2 + $0x51] sm:$0xff]  ;;  %v11645_v3 = vld [vmem:[#allocation2 + $0x62] sm:$0xff] }
 0x256   : > { %v11612_v55 = vld [vmem:[#allocation2 + $0x50] sm:$0xff] }
 0x257   : > { %v11641_v2 = vld [vmem:[#allocation2 + $0x52] sm:$0xff]  ;;  %v11674_v9 = vld [vmem:[#allocation2 + $0x80] sm:$0xff] }
 0x258   : > { %3042 = vrot.lane.b32.xlu0 %v11574_v45, %s10768_s8  ;;  %v11590_v49 = vld [vmem:[#allocation2 + $0x71] sm:$0xff]  ;;  %v11700_v14 = vld [vmem:[#allocation2 + $0x81] sm:$0xff] }
 0x259   : > { %3044 = vrot.lane.b32.xlu1 %v11578_v46, %s10768_s8  ;;  %v11620_v57 = vld [vmem:[#allocation2 + $0x70] sm:$0xff]  ;;  %v11826_v37 = vld [vmem:[#allocation2 + $0x82] sm:$0xff] }
 0x25a   : > { %v11649_v4 = vld [vmem:[#allocation2 + $0x72] sm:$0xff] }
 0x25c   : > { %3327 = vrot.lane.b32.xlu0 %v11574_v45, %s10769_s20 }
 0x25d   : > { %3329 = vrot.lane.b32.xlu1 %v11578_v46, %s10769_s20 }
 0x260   : > { %3046 = vrot.lane.b32.xlu0 %v11586_v48, %s10768_s8 }
 0x261   : > { %3048 = vrot.lane.b32.xlu1 %v11590_v49, %s10768_s8 }
 0x264   : > { %3331 = vrot.lane.b32.xlu0 %v11586_v48, %s10769_s20 }
 0x265   : > { %3333 = vrot.lane.b32.xlu1 %v11590_v49, %s10769_s20 }
 0x268   : > { %3180 = vrot.lane.b32.xlu0 %v3007_v50, %s10769_s20 }
 0x269   : > { %3182 = vrot.lane.b32.xlu1 %v3008_v51, %s10769_s20 }
 0x26c   : > { %3184 = vrot.lane.b32.xlu0 %v11600_v52, %s10769_s20 }
 0x26d   : > { %3186 = vrot.lane.b32.xlu1 %v11604_v53, %s10769_s20 }
 0x270   : > { %3188 = vrot.lane.b32.xlu0 %v11608_v54, %s10769_s20 }
 0x271   : > { %3190 = vrot.lane.b32.xlu1 %v11612_v55, %s10769_s20 }
 0x274   : > { %3192 = vrot.lane.b32.xlu0 %v11616_v56, %s10769_s20 }
 0x275   : > { %3194 = vrot.lane.b32.xlu1 %v11620_v57, %s10769_s20 }
 0x278   : > { %4588 = vrot.lane.b32.xlu0 %v4572_v58, %s10768_s8 }
 0x279   : > { %4590 = vrot.lane.b32.xlu1 %v11625_v59, %s10768_s8 }
 0x27c   : > { %4592 = vrot.lane.b32.xlu0 %v11629_v60, %s10768_s8 }
 0x27d   : > { %4594 = vrot.lane.b32.xlu1 %v11633_v61, %s10768_s8 }
 0x280   : > { %4596 = vrot.lane.b32.xlu0 %v11637_v1, %s10768_s8 }
 0x281   : > { %4598 = vrot.lane.b32.xlu1 %v11641_v2, %s10768_s8 }
 0x284   : > { %4600 = vrot.lane.b32.xlu0 %v11645_v3, %s10768_s8 }
 0x285   : > { %4602 = vrot.lane.b32.xlu1 %v11649_v4, %s10768_s8 }
 0x288   : > { %3482 = vrot.lane.b32.xlu0 %v3008_v51, %s10770_s13 }
 0x289   : > { %3484 = vrot.lane.b32.xlu1 %v11600_v52, %s10770_s13 }
 0x28c   : > { %3486 = vrot.lane.b32.xlu0 %v11604_v53, %s10770_s13 }
 0x28d   : > { %3488 = vrot.lane.b32.xlu1 %v11608_v54, %s10770_s13 }
 0x290   : > { %3490 = vrot.lane.b32.xlu0 %v11612_v55, %s10770_s13 }
 0x291   : > { %3492 = vrot.lane.b32.xlu1 %v11616_v56, %s10770_s13 }
 0x294   : > { %3494 = vrot.lane.b32.xlu0 %v11620_v57, %s10770_s13 }
 0x295   : > { %3496 = vrot.lane.b32.xlu1 %v11674_v9, %s10770_s13 }
 0x298   : > { %3776 = vrot.lane.b32.xlu0 %v11553_v39, %s10770_s13 }
 0x299   : > { %3778 = vrot.lane.b32.xlu1 %v11548_v36, %s10770_s13 }
 0x29c   : > { %3780 = vrot.lane.b32.xlu0 %v11565_v44, %s10770_s13 }
 0x29d   : > { %3782 = vrot.lane.b32.xlu1 %v11574_v45, %s10770_s13 }
 0x2a0   : > { %3784 = vrot.lane.b32.xlu0 %v11578_v46, %s10770_s13 }
 0x2a1   : > { %3786 = vrot.lane.b32.xlu1 %v11586_v48, %s10770_s13 }
 0x2a4   : > { %3788 = vrot.lane.b32.xlu0 %v11590_v49, %s10770_s13 }
 0x2a5   : > { %3790 = vrot.lane.b32.xlu1 %v11700_v14, %s10770_s13 }
 0x2a8   : > { %3923 = vrot.lane.b32.xlu0 %v3008_v51, %s10769_s20  ;;  %v11852_v51 = vld [vmem:[#allocation9 + $0x20] sm:$0xff] }
 0x2a9   : > { %3925 = vrot.lane.b32.xlu1 %v11600_v52, %s10769_s20 }
 0x2ac   : > { %4070 = vrot.lane.b32.xlu0 %v11553_v39, %s10768_s8 }
 0x2ad   : > { %4072 = vrot.lane.b32.xlu1 %v11548_v36, %s10768_s8 }
 0x2b0   : > { %3927 = vrot.lane.b32.xlu0 %v11604_v53, %s10769_s20 }
 0x2b1   : > { %3929 = vrot.lane.b32.xlu1 %v11608_v54, %s10769_s20 }
 0x2b4   : > { %4074 = vrot.lane.b32.xlu0 %v11565_v44, %s10768_s8 }
 0x2b5   : > { %4076 = vrot.lane.b32.xlu1 %v11574_v45, %s10768_s8 }
 0x2b8   : > { %3931 = vrot.lane.b32.xlu0 %v11612_v55, %s10769_s20 }
 0x2b9   : > { %3933 = vrot.lane.b32.xlu1 %v11616_v56, %s10769_s20 }
 0x2bc   : > { %4078 = vrot.lane.b32.xlu0 %v11578_v46, %s10768_s8 }
 0x2bd   : > { %4080 = vrot.lane.b32.xlu1 %v11586_v48, %s10768_s8 }
 0x2be   : > { %v3039_v15 = vpop.permute.xlu0 %3038 }
 0x2bf   : > { %v11727_v16 = vpop.permute.xlu1 %3321 }
 0x2c0   : > { %9553 = vmatmul.mubr.msk.f32.vlgmr.msra.gmra.mrb[8].mxu0 %vm3050_vm9, %v11727_v16  ;;  %3935 = vrot.lane.b32.xlu0 %v11620_v57, %s10769_s20 }
 0x2c1   : > { %3937 = vrot.lane.b32.xlu1 %v11674_v9, %s10769_s20  ;;  %9565 = vmatpush3.msra.mxu0 %v11558_v41 }
 0x2c2   : > { %v11738_v18 = vpop.permute.xlu0 %3323  ;;  %9578 = vmatprep.subr.mxu0 %v11729_v17 }
 0x2c3   : > { %9555 = vmatprep.mubr.msk.f32.mxu0 %vm3050_vm9, %v11738_v18  ;;  %v3041_v19 = vpop.permute.xlu1 %3040 }
 0x2c4   : > { %4082 = vrot.lane.b32.xlu0 %v11590_v49, %s10768_s8 }
 0x2c5   : > { %4084 = vrot.lane.b32.xlu1 %v11700_v14, %s10768_s8 }
 0x2c6   : > { %v3037_v20 = vpop.permute.xlu0 %3036 }
 0x2c7   : > { %9427 = vmatmul.mubr.msk.f32.vlgmr.msra.gmra.mrb[8].mxu1 %vm3050_vm9, %v3037_v20  ;;  %v11748_v21 = vpop.permute.xlu1 %3325 }
 0x2c8   : > { %9429 = vmatprep.mubr.msk.f32.mxu1 %vm3050_vm9, %v3039_v15  ;;  %9556 = vmatmul.mubr.msk.f32.gmra.mrb[10].mxu0 %vm3050_vm9, %v11748_v21 }
 0x2c9   : > { %4217 = vrot.lane.b32.xlu0 %v11553_v39, %s10769_s20  ;;  %4219 = vrot.lane.b32.xlu1 %v11548_v36, %s10769_s20 }
 0x2ca   : > { %v3043_v22 = vpop.permute.xlu0 %3042  ;;  %9439 = vmatpush3.msra.mxu1 %v11558_v41 }
 0x2cb   : > { %9430 = vmatmul.mubr.msk.f32.gmra.mrb[10].mxu1 %vm3050_vm9, %v3041_v19  ;;  %v3045_v23 = vpop.permute.xlu1 %3044  ;;  %9452 = vmatprep.subr.mxu1 %v11729_v17 }
 0x2cc   : > { %9432 = vmatprep.mubr.msk.f32.mxu1 %vm3050_vm9, %v3043_v22 }
 0x2cd   : > { %4221 = vrot.lane.b32.xlu0 %v11565_v44, %s10769_s20  ;;  %4223 = vrot.lane.b32.xlu1 %v11574_v45, %s10769_s20 }
 0x2ce   : > { %v11765_v24 = vpop.permute.xlu0 %3327 }
 0x2cf   : > { %9433 = vmatmul.mubr.msk.f32.gmra.mrb[12].mxu1 %vm3050_vm9, %v3045_v23  ;;  %9558 = vmatprep.mubr.msk.f32.mxu0 %vm3050_vm9, %v11765_v24  ;;  %v11770_v25 = vpop.permute.xlu1 %3329 }
 0x2d0   : > { %9559 = vmatmul.mubr.msk.f32.gmra.mrb[12].mxu0 %vm3050_vm9, %v11770_v25 }
 0x2d1   : > { %4225 = vrot.lane.b32.xlu0 %v11578_v46, %s10769_s20  ;;  %4227 = vrot.lane.b32.xlu1 %v11586_v48, %s10769_s20 }
 0x2d2   : > { %v3047_v26 = vpop.permute.xlu0 %3046 }
 0x2d3   : > { %9435 = vmatprep.mubr.msk.f32.mxu1 %vm3050_vm9, %v3047_v26  ;;  %v3049_v27 = vpop.permute.xlu1 %3048 }
 0x2d4   : > { %9436 = vmatmul.mubr.msk.f32.gmra.mrb[14].mxu1 %vm3050_vm9, %v3049_v27 }
 0x2d5   : > { %4229 = vrot.lane.b32.xlu0 %v11590_v49, %s10769_s20  ;;  %4231 = vrot.lane.b32.xlu1 %v11700_v14, %s10769_s20 }
 0x2d6   : > { %v11784_v28 = vpop.permute.xlu0 %3331 }
 0x2d7   : > { %9561 = vmatprep.mubr.msk.f32.mxu0 %vm3050_vm9, %v11784_v28  ;;  %v11788_v29 = vpop.permute.xlu1 %3333 }
 0x2d8   : > { %9562 = vmatmul.mubr.msk.f32.gmra.mrb[14].mxu0 %vm3050_vm9, %v11788_v29 }
 0x2d9   : > { %5330 = vrot.lane.b32.xlu0 %v11625_v59, %s10768_s8  ;;  %9566 = vmatprep.mubr.msk.f32.mxu0 %vm3050_vm9, %v11532_v63 }
 0x2da   : > { %5332 = vrot.lane.b32.xlu1 %v11629_v60, %s10768_s8  ;;  %v3181_v30 = vpop.permute.xlu0 %3180 }
 0x2db   : > { %9440 = vmatprep.mubr.msk.f32.mxu1 %vm3050_vm9, %v3181_v30  ;;  %v3183_v31 = vpop.permute.xlu1 %3182 }
 0x2dc   : > { %9441 = vmatmul.mubr.msk.f32.vlgmr.msra.gmra.mrb[8].mxu1 %vm3050_vm9, %v3183_v31  ;;  %9567 = vmatmul.mubr.msk.f32.vlgmr.msra.gmra.mrb[8].mxu0 %vm3050_vm9, %v3037_v20  ;;  %v11928_v20 = vld [vmem:[#allocation2 + $0x91] sm:$0xff] }
 0x2dd   : > { %5334 = vrot.lane.b32.xlu0 %v11633_v61, %s10768_s8  ;;  %9453 = vmatpush3.msra.mxu1 %v11729_v17  ;;  %12735 = vst [vmem:[#allocation30_spill] sm:$0xff] %v11928_v20 }
 0x2de   : > { %9569 = vmatprep.mubr.msk.f32.mxu0 %vm3050_vm9, %v3039_v15  ;;  %5336 = vrot.lane.b32.xlu1 %v11637_v1, %s10768_s8  ;;  %v3185_v63 = vpop.permute.xlu0 %3184 }
 0x2df   : > { %9443 = vmatprep.mubr.msk.f32.mxu1 %vm3050_vm9, %v3185_v63  ;;  %v3187_v32 = vpop.permute.xlu1 %3186  ;;  %9579 = vmatpush3.msra.mxu0 %v11729_v17 }
 0x2e0   : > { %9444 = vmatmul.mubr.msk.f32.gmra.mrb[10].mxu1 %vm3050_vm9, %v3187_v32  ;;  %9570 = vmatmul.mubr.msk.f32.gmra.mrb[10].mxu0 %vm3050_vm9, %v3041_v19 }
 0x2e1   : > { %5338 = vrot.lane.b32.xlu0 %v11641_v2, %s10768_s8  ;;  %9572 = vmatprep.mubr.msk.f32.mxu0 %vm3050_vm9, %v3043_v22 }
 0x2e2   : > { %5340 = vrot.lane.b32.xlu1 %v11645_v3, %s10768_s8  ;;  %v3189_v34 = vpop.permute.xlu0 %3188  ;;  %9466 = vmatprep.subr.mxu1 %v11809_v33 }
 0x2e3   : > { %9446 = vmatprep.mubr.msk.f32.mxu1 %vm3050_vm9, %v3189_v34  ;;  %v3191_v35 = vpop.permute.xlu1 %3190  ;;  %9592 = vmatprep.subr.mxu0 %v11809_v33  ;;  %v12016_v34 = vld [vmem:[#allocation9 + $0x38] sm:$0xff] }
 0x2e4   : > { %9447 = vmatmul.mubr.msk.f32.gmra.mrb[12].mxu1 %vm3050_vm9, %v3191_v35  ;;  %9573 = vmatmul.mubr.msk.f32.gmra.mrb[12].mxu0 %vm3050_vm9, %v3045_v23  ;;  %12737 = vst [vmem:[#allocation32_spill] sm:$0xff] %v12016_v34 }
 0x2e5   : > { %5342 = vrot.lane.b32.xlu0 %v11649_v4, %s10768_s8  ;;  %9575 = vmatprep.mubr.msk.f32.mxu0 %vm3050_vm9, %v3047_v26 }
 0x2e6   : > { %5344 = vrot.lane.b32.xlu1 %v11826_v37, %s10768_s8  ;;  %v3193_v38 = vpop.permute.xlu0 %3192  ;;  %s10774_s8 = smov [#allocation15]  }
 0x2e7   : > { %9449 = vmatprep.mubr.msk.f32.mxu1 %vm3050_vm9, %v3193_v38  ;;  %v3195_v40 = vpop.permute.xlu1 %3194  ;;  %s10679_s20 = sshll.u32 %s10774_s8, 4  ;;  %s10680_s20 = int_to_ptr.vmem [resolvable:$false] %s10679_s20 }
 0x2e8   : > { %9450 = vmatmul.mubr.msk.f32.gmra.mrb[14].mxu1 %vm3050_vm9, %v3195_v40  ;;  %9576 = vmatmul.mubr.msk.f32.gmra.mrb[14].mxu0 %vm3050_vm9, %v3049_v27  ;;  %p10682_p11 = scmp.lt.s32.totalorder %s12623_s22, %s10680_s20 }
 0x2e9   : > { %6154 = vrot.lane.b32.xlu0 %v11600_v52, %s10770_s13  ;;  %9454 = vmatprep.mubr.msk.f32.mxu1 %vm3050_vm9, %v11536_v0 }
 0x2ea   : > { %6156 = vrot.lane.b32.xlu1 %v11604_v53, %s10770_s13  ;;  %v4589_v42 = vpop.permute.xlu0 %4588 }
 0x2eb   : > { %9580 = vmatprep.mubr.msk.f32.mxu0 %vm3050_vm9, %v4589_v42  ;;  %v4591_v43 = vpop.permute.xlu1 %4590 }
 0x2ec   : > { %9455 = vmatmul.mubr.msk.f32.vlgmr.msra.gmra.mrb[8].mxu1 %vm3050_vm9, %v11727_v16  ;;  %9581 = vmatmul.mubr.msk.f32.vlgmr.msra.gmra.mrb[8].mxu0 %vm3050_vm9, %v4591_v43  ;;  %v11908_v16 = vld [vmem:[#allocation9 + $0x28] sm:$0xff] }
 0x2ed   : > { %6158 = vrot.lane.b32.xlu0 %v11608_v54, %s10770_s13  ;;  %9457 = vmatprep.mubr.msk.f32.mxu1 %vm3050_vm9, %v11738_v18  ;;  %v6145_v54 = vld [vmem:[#allocation2 + $0x90] sm:$0xff] }
 0x2ee   : > { %6160 = vrot.lane.b32.xlu1 %v11612_v55, %s10770_s13  ;;  %9467 = vmatpush3.msra.mxu1 %v11809_v33  ;;  %v4593_v0 = vpop.permute.xlu0 %4592 }
 0x2ef   : > { %9583 = vmatprep.mubr.msk.f32.mxu0 %vm3050_vm9, %v4593_v0  ;;  %v4595_v50 = vpop.permute.xlu1 %4594  ;;  %9593 = vmatpush3.msra.mxu0 %v11809_v33 }
 0x2f0   : > { %9458 = vmatmul.mubr.msk.f32.gmra.mrb[10].mxu1 %vm3050_vm9, %v11748_v21  ;;  %9584 = vmatmul.mubr.msk.f32.gmra.mrb[10].mxu0 %vm3050_vm9, %v4595_v50 }
 0x2f1   : > { %6162 = vrot.lane.b32.xlu0 %v11616_v56, %s10770_s13  ;;  %9460 = vmatprep.mubr.msk.f32.mxu1 %vm3050_vm9, %v11765_v24 }
 0x2f2   : > { %6164 = vrot.lane.b32.xlu1 %v11620_v57, %s10770_s13  ;;  %v4597_v52 = vpop.permute.xlu0 %4596  ;;  %9480 = vmatprep.subr.mxu1 %v11852_v51 }
 0x2f3   : > { %9586 = vmatprep.mubr.msk.f32.mxu0 %vm3050_vm9, %v4597_v52  ;;  %v4599_v53 = vpop.permute.xlu1 %4598  ;;  %9606 = vmatprep.subr.mxu0 %v11852_v51 }
 0x2f4   : > { %9461 = vmatmul.mubr.msk.f32.gmra.mrb[12].mxu1 %vm3050_vm9, %v11770_v25  ;;  %9587 = vmatmul.mubr.msk.f32.gmra.mrb[12].mxu0 %vm3050_vm9, %v4599_v53  ;;  %v11958_v25 = vld [vmem:[#allocation9 + $0x30] sm:$0xff]  ;;  %v12070_v53 = vld [vmem:[#allocation9 + $0x40] sm:$0xff] }
 0x2f5   : > { %6166 = vrot.lane.b32.xlu0 %v11674_v9, %s10770_s13  ;;  %9463 = vmatprep.mubr.msk.f32.mxu1 %vm3050_vm9, %v11784_v28  ;;  %12736 = vst [vmem:[#allocation31_spill] sm:$0xff] %v11958_v25  ;;  %12738 = vst [vmem:[#allocation33_spill] sm:$0xff] %v12070_v53 }
 0x2f6   : > { %6168 = vrot.lane.b32.xlu1 %v6145_v54, %s10770_s13  ;;  %v4601_v55 = vpop.permute.xlu0 %4600 }
 0x2f7   : > { %9589 = vmatprep.mubr.msk.f32.mxu0 %vm3050_vm9, %v4601_v55  ;;  %v4603_v56 = vpop.permute.xlu1 %4602 }
 0x2f8   : > { %9464 = vmatmul.mubr.msk.f32.gmra.mrb[14].mxu1 %vm3050_vm9, %v11788_v29  ;;  %9590 = vmatmul.mubr.msk.f32.gmra.mrb[14].mxu0 %vm3050_vm9, %v4603_v56 }
 0x2f9   : > { %6444 = vrot.lane.b32.xlu0 %v11548_v36, %s10770_s13  ;;  %9594 = vmatprep.mubr.msk.f32.mxu0 %vm3050_vm9, %v11553_v39 }
 0x2fa   : > { %6446 = vrot.lane.b32.xlu1 %v11565_v44, %s10770_s13  ;;  %v11884_v57 = vpop.permute.xlu0 %3482 }
 0x2fb   : > { %9468 = vmatprep.mubr.msk.f32.mxu1 %vm3050_vm9, %v11884_v57  ;;  %v11888_v58 = vpop.permute.xlu1 %3484 }
 0x2fc   : > { %9469 = vmatmul.mubr.msk.f32.vlgmr.msra.gmra.mrb[8].mxu1 %vm3050_vm9, %v11888_v58  ;;  %9595 = vmatmul.mubr.msk.f32.vlgmr.msra.gmra.mrb[8].mxu0 %vm3050_vm9, %v11548_v36 }
 0x2fd   : > { %6448 = vrot.lane.b32.xlu0 %v11574_v45, %s10770_s13  ;;  %9481 = vmatpush3.msra.mxu1 %v11852_v51 }
 0x2fe   : > { %6450 = vrot.lane.b32.xlu1 %v11578_v46, %s10770_s13  ;;  %9597 = vmatprep.mubr.msk.f32.mxu0 %vm3050_vm9, %v11565_v44  ;;  %v11901_v9 = vpop.permute.xlu0 %3486 }
 0x2ff   : > { %9471 = vmatprep.mubr.msk.f32.mxu1 %vm3050_vm9, %v11901_v9  ;;  %v11905_v15 = vpop.permute.xlu1 %3488  ;;  %9607 = vmatpush3.msra.mxu0 %v11852_v51 }
 0x300   : > { %9472 = vmatmul.mubr.msk.f32.gmra.mrb[10].mxu1 %vm3050_vm9, %v11905_v15  ;;  %9598 = vmatmul.mubr.msk.f32.gmra.mrb[10].mxu0 %vm3050_vm9, %v11574_v45 }
 0x301   : > { %6452 = vrot.lane.b32.xlu0 %v11586_v48, %s10770_s13  ;;  %9600 = vmatprep.mubr.msk.f32.mxu0 %vm3050_vm9, %v11578_v46 }
 0x302   : > { %6454 = vrot.lane.b32.xlu1 %v11590_v49, %s10770_s13  ;;  %v11920_v18 = vpop.permute.xlu0 %3490  ;;  %9494 = vmatprep.subr.mxu1 %v11908_v16 }
 0x303   : > { %9474 = vmatprep.mubr.msk.f32.mxu1 %vm3050_vm9, %v11920_v18  ;;  %v11925_v19 = vpop.permute.xlu1 %3492  ;;  %9620 = vmatprep.subr.mxu0 %v11908_v16 }
 0x304   : > { %9475 = vmatmul.mubr.msk.f32.gmra.mrb[12].mxu1 %vm3050_vm9, %v11925_v19  ;;  %9601 = vmatmul.mubr.msk.f32.gmra.mrb[12].mxu0 %vm3050_vm9, %v11586_v48 }
 0x305   : > { %6456 = vrot.lane.b32.xlu0 %v11700_v14, %s10770_s13  ;;  %9603 = vmatprep.mubr.msk.f32.mxu0 %vm3050_vm9, %v11590_v49 }
 0x306   : > { %v11938_v21 = vpop.permute.xlu0 %3494  ;;  %6458 = vrot.lane.b32.xlu1 %v11928_v20, %s10770_s13  ;;  %s10681_s13 = scalar_lea.vmem %s10680_s20, 2048 }
 0x307   : > { %9477 = vmatprep.mubr.msk.f32.mxu1 %vm3050_vm9, %v11938_v21  ;;  %v11944_v22 = vpop.permute.xlu1 %3496  ;;  %p10683_p12 = scmp.lt.s32.totalorder %s10681_s13, %s10675_s15 }
 0x308   : > { %9478 = vmatmul.mubr.msk.f32.gmra.mrb[14].mxu1 %vm3050_vm9, %v11944_v22  ;;  %9604 = vmatmul.mubr.msk.f32.gmra.mrb[14].mxu0 %vm3050_vm9, %v11700_v14 }
 0x309   : > { %9482 = vmatprep.mubr.msk.f32.mxu1 %vm3050_vm9, %v11553_v39  ;;  %p10684_p13 = por %p10683_p12, %p10682_p11 }
 0x30a   : > { %v11952_v23 = vpop.permute.xlu0 %3776 }
 0x30b   : > { %9608 = vmatprep.mubr.msk.f32.mxu0 %vm3050_vm9, %v11952_v23  ;;  %v11956_v24 = vpop.permute.xlu1 %3778  ;;  %p10685_p8 = pnand %p10684_p13, %p10678_p1 }
 0x30c   : > { %9483 = vmatmul.mubr.msk.f32.vlgmr.msra.gmra.mrb[8].mxu1 %vm3050_vm9, %v11548_v36  ;;  %9609 = vmatmul.mubr.msk.f32.vlgmr.msra.gmra.mrb[8].mxu0 %vm3050_vm9, %v11956_v24 }
 0x30d   : > { %9485 = vmatprep.mubr.msk.f32.mxu1 %vm3050_vm9, %v11565_v44  ;;  %9495 = vmatpush3.msra.mxu1 %v11908_v16 }
 0x30e   : > { %v11967_v26 = vpop.permute.xlu0 %3780  ;;  %9621 = vmatpush3.msra.mxu0 %v11908_v16  ;;  %9508 = vmatprep.subr.mxu1 %v11958_v25 }
 0x30f   : > { %9611 = vmatprep.mubr.msk.f32.mxu0 %vm3050_vm9, %v11967_v26  ;;  %v11973_v27 = vpop.permute.xlu1 %3782  ;;  %9634 = vmatprep.subr.mxu0 %v11958_v25 }
 0x310   : > { %9486 = vmatmul.mubr.msk.f32.gmra.mrb[10].mxu1 %vm3050_vm9, %v11574_v45  ;;  %9612 = vmatmul.mubr.msk.f32.gmra.mrb[10].mxu0 %vm3050_vm9, %v11973_v27 }
 0x311   : > { %9488 = vmatprep.mubr.msk.f32.mxu1 %vm3050_vm9, %v11578_v46 }
 0x312   : > { %v11982_v28 = vpop.permute.xlu0 %3784 }
 0x313   : > { %9614 = vmatprep.mubr.msk.f32.mxu0 %vm3050_vm9, %v11982_v28  ;;  %v11986_v29 = vpop.permute.xlu1 %3786 }
 0x314   : > { %9489 = vmatmul.mubr.msk.f32.gmra.mrb[12].mxu1 %vm3050_vm9, %v11586_v48  ;;  %9615 = vmatmul.mubr.msk.f32.gmra.mrb[12].mxu0 %vm3050_vm9, %v11986_v29 }
 0x315   : > { %9491 = vmatprep.mubr.msk.f32.mxu1 %vm3050_vm9, %v11590_v49 }
 0x316   : > { %v11994_v30 = vpop.permute.xlu0 %3788 }
 0x317   : > { %9617 = vmatprep.mubr.msk.f32.mxu0 %vm3050_vm9, %v11994_v30  ;;  %v11998_v31 = vpop.permute.xlu1 %3790 }
 0x318   : > { %9492 = vmatmul.mubr.msk.f32.gmra.mrb[14].mxu1 %vm3050_vm9, %v11700_v14  ;;  %9618 = vmatmul.mubr.msk.f32.gmra.mrb[14].mxu0 %vm3050_vm9, %v11998_v31 }
 0x319   : > { %9496 = vmatprep.mubr.msk.f32.mxu1 %vm3050_vm9, %v11952_v23  ;;  %9622 = vmatprep.mubr.msk.f32.mxu0 %vm3050_vm9, %v11625_v59 }
 0x31a   : > { %v12008_v63 = vpop.permute.xlu0 %3923 }
 0x31b   : > { %v12010_v32 = vpop.permute.xlu1 %3925 }
 0x31c   : > { %9497 = vmatmul.mubr.msk.f32.vlgmr.msra.gmra.mrb[8].mxu1 %vm3050_vm9, %v11956_v24  ;;  %9623 = vmatmul.mubr.msk.f32.vlgmr.msra.gmra.mrb[8].mxu0 %vm3050_vm9, %v11629_v60 }
 0x31d   : > { %9499 = vmatprep.mubr.msk.f32.mxu1 %vm3050_vm9, %v11967_v26  ;;  %9509 = vmatpush3.msra.mxu1 %v11958_v25 }
 0x31e   : > { %9625 = vmatprep.mubr.msk.f32.mxu0 %vm3050_vm9, %v11633_v61  ;;  %v12023_v35 = vpop.permute.xlu0 %4070  ;;  %9635 = vmatpush3.msra.mxu0 %v11958_v25 }
 0x31f   : > { %v12026_v38 = vpop.permute.xlu1 %4072  ;;  %9522 = vmatprep.subr.mxu1 %v12016_v34  ;;  %9648 = vmatprep.subr.mxu0 %v12016_v34 }
 0x320   : > { %9500 = vmatmul.mubr.msk.f32.gmra.mrb[10].mxu1 %vm3050_vm9, %v11973_v27  ;;  %9626 = vmatmul.mubr.msk.f32.gmra.mrb[10].mxu0 %vm3050_vm9, %v11637_v1 }
 0x321   : > { %9502 = vmatprep.mubr.msk.f32.mxu1 %vm3050_vm9, %v11982_v28  ;;  %9628 = vmatprep.mubr.msk.f32.mxu0 %vm3050_vm9, %v11641_v2 }
 0x322   : > { %v12038_v40 = vpop.permute.xlu0 %3927 }
 0x323   : > { %v12040_v42 = vpop.permute.xlu1 %3929 }
 0x324   : > { %9503 = vmatmul.mubr.msk.f32.gmra.mrb[12].mxu1 %vm3050_vm9, %v11986_v29  ;;  %9629 = vmatmul.mubr.msk.f32.gmra.mrb[12].mxu0 %vm3050_vm9, %v11645_v3 }
 0x325   : > { %9505 = vmatprep.mubr.msk.f32.mxu1 %vm3050_vm9, %v11994_v30  ;;  %9631 = vmatprep.mubr.msk.f32.mxu0 %vm3050_vm9, %v11649_v4 }
 0x326   : > { %v12050_v43 = vpop.permute.xlu0 %4074 }
 0x327   : > { %v12052_v0 = vpop.permute.xlu1 %4076 }
 0x328   : > { %9506 = vmatmul.mubr.msk.f32.gmra.mrb[14].mxu1 %vm3050_vm9, %v11998_v31  ;;  %9632 = vmatmul.mubr.msk.f32.gmra.mrb[14].mxu0 %vm3050_vm9, %v11826_v37 }
 0x329   : > { %9510 = vmatprep.mubr.msk.f32.mxu1 %vm3050_vm9, %v12008_v63  ;;  %9636 = vmatprep.mubr.msk.f32.mxu0 %vm3050_vm9, %v12023_v35 }
 0x32a   : > { %v12062_v50 = vpop.permute.xlu0 %3931 }
 0x32b   : > { %v12064_v52 = vpop.permute.xlu1 %3933 }
 0x32c   : > { %9511 = vmatmul.mubr.msk.f32.vlgmr.msra.gmra.mrb[8].mxu1 %vm3050_vm9, %v12010_v32  ;;  %9637 = vmatmul.mubr.msk.f32.vlgmr.msra.gmra.mrb[8].mxu0 %vm3050_vm9, %v12026_v38 }
 0x32d   : > { %9513 = vmatprep.mubr.msk.f32.mxu1 %vm3050_vm9, %v12038_v40  ;;  %9523 = vmatpush3.msra.mxu1 %v12016_v34 }
 0x32e   : > { %9639 = vmatprep.mubr.msk.f32.mxu0 %vm3050_vm9, %v12050_v43  ;;  %v12077_v54 = vpop.permute.xlu0 %4078  ;;  %9649 = vmatpush3.msra.mxu0 %v12016_v34 }
 0x32f   : > { %v12080_v55 = vpop.permute.xlu1 %4080  ;;  %9536 = vmatprep.subr.mxu1 %v12070_v53  ;;  %9662 = vmatprep.subr.mxu0 %v12070_v53 }
 0x330   : > { %9514 = vmatmul.mubr.msk.f32.gmra.mrb[10].mxu1 %vm3050_vm9, %v12040_v42  ;;  %9640 = vmatmul.mubr.msk.f32.gmra.mrb[10].mxu0 %vm3050_vm9, %v12052_v0 }
 0x331   : > { %9516 = vmatprep.mubr.msk.f32.mxu1 %vm3050_vm9, %v12062_v50  ;;  %9642 = vmatprep.mubr.msk.f32.mxu0 %vm3050_vm9, %v12077_v54 }
 0x332   : > { %v12092_v56 = vpop.permute.xlu0 %3935 }
 0x333   : > { %v12094_v13 = vpop.permute.xlu1 %3937 }
 0x334   : > { %9517 = vmatmul.mubr.msk.f32.gmra.mrb[12].mxu1 %vm3050_vm9, %v12064_v52  ;;  %9643 = vmatmul.mubr.msk.f32.gmra.mrb[12].mxu0 %vm3050_vm9, %v12080_v55 }
 0x335   : > { %9519 = vmatprep.mubr.msk.f32.mxu1 %vm3050_vm9, %v12092_v56 }
 0x336   : > { %v12102_v12 = vpop.permute.xlu0 %4082 }
 0x337   : > { %9645 = vmatprep.mubr.msk.f32.mxu0 %vm3050_vm9, %v12102_v12  ;;  %v12106_v11 = vpop.permute.xlu1 %4084 }
 0x338   : > { %9520 = vmatmul.mubr.msk.f32.gmra.mrb[14].mxu1 %vm3050_vm9, %v12094_v13  ;;  %9646 = vmatmul.mubr.msk.f32.gmra.mrb[14].mxu0 %vm3050_vm9, %v12106_v11 }
 0x339   : > { %9524 = vmatprep.mubr.msk.f32.mxu1 %vm3050_vm9, %v12023_v35 }
 0x33b   : > { %v12114_v10 = vpop.permute.xlu0 %4217  ;;  %v12116_v8 = vpop.permute.xlu1 %4219 }
 0x33c   : > { %12739 = vst [vmem:[#allocation34_spill] sm:$0xff] %v12114_v10  ;;  %9650 = vmatprep.mubr.msk.f32.mxu0 %vm3050_vm9, %v12114_v10  ;;  %9525 = vmatmul.mubr.msk.f32.vlgmr.msra.gmra.mrb[8].mxu1 %vm3050_vm9, %v12026_v38 }
 0x33d   : > { %9651 = vmatmul.mubr.msk.f32.vlgmr.msra.gmra.mrb[8].mxu0 %vm3050_vm9, %v12116_v8  ;;  %9527 = vmatprep.mubr.msk.f32.mxu1 %vm3050_vm9, %v12050_v43 }
 0x33e   : > { %9537 = vmatpush3.msra.mxu1 %v12070_v53  ;;  %9663 = vmatpush3.msra.mxu0 %v12070_v53 }
 0x33f   : > { %v12128_v7 = vpop.permute.xlu0 %4221  ;;  %v12130_v6 = vpop.permute.xlu1 %4223  ;;  %9676 = vmatprep.subr.mxu1 %v11530_v62  ;;  %9802 = vmatprep.subr.mxu0 %v11530_v62 }
 0x340   : > { %9653 = vmatprep.mubr.msk.f32.mxu0 %vm3050_vm9, %v12128_v7  ;;  %9528 = vmatmul.mubr.msk.f32.gmra.mrb[10].mxu1 %vm3050_vm9, %v12052_v0 }
 0x341   : > { %9654 = vmatmul.mubr.msk.f32.gmra.mrb[10].mxu0 %vm3050_vm9, %v12130_v6  ;;  %9530 = vmatprep.mubr.msk.f32.mxu1 %vm3050_vm9, %v12077_v54 }
 0x343   : > { %v12142_v5 = vpop.permute.xlu0 %4225  ;;  %v12144_v47 = vpop.permute.xlu1 %4227 }
 0x344   : > { %9656 = vmatprep.mubr.msk.f32.mxu0 %vm3050_vm9, %v12142_v5  ;;  %9531 = vmatmul.mubr.msk.f32.gmra.mrb[12].mxu1 %vm3050_vm9, %v12080_v55 }
 0x345   : > { %9657 = vmatmul.mubr.msk.f32.gmra.mrb[12].mxu0 %vm3050_vm9, %v12144_v47  ;;  %9533 = vmatprep.mubr.msk.f32.mxu1 %vm3050_vm9, %v12102_v12 }
 0x347   : > { %v12154_v20 = vpop.permute.xlu0 %4229  ;;  %v12156_v53 = vpop.permute.xlu1 %4231 }
 0x348   : > { %9659 = vmatprep.mubr.msk.f32.mxu0 %vm3050_vm9, %v12154_v20  ;;  %9534 = vmatmul.mubr.msk.f32.gmra.mrb[14].mxu1 %vm3050_vm9, %v12106_v11 }
 0x349   : > { %9660 = vmatmul.mubr.msk.f32.gmra.mrb[14].mxu0 %vm3050_vm9, %v12156_v53  ;;  %9538 = vmatprep.mubr.msk.f32.mxu1 %vm3050_vm9, %v12114_v10 }
 0x34b   : > { %v12166_v34 = vpop.permute.xlu0 %5330 }
 0x34c   : > { %12740 = vst [vmem:[#allocation35_spill] sm:$0xff] %v12166_v34  ;;  %9664 = vmatprep.mubr.msk.f32.mxu0 %vm3050_vm9, %v12166_v34  ;;  %v12170_v25 = vpop.permute.xlu1 %5332  ;;  %9539 = vmatmul.mubr.msk.f32.vlgmr.msra.gmra.mrb[8].mxu1 %vm3050_vm9, %v12116_v8 }
 0x34d   : > { %12741 = vst [vmem:[#allocation36_spill] sm:$0xff] %v12170_v25  ;;  %9665 = vmatmul.mubr.msk.f32.vlgmr.msra.gmra.mrb[8].mxu0 %vm3050_vm9, %v12170_v25  ;;  %9541 = vmatprep.mubr.msk.f32.mxu1 %vm3050_vm9, %v12128_v7 }
 0x34e   : > { %9677 = vmatpush3.msra.mxu1 %v11530_v62  ;;  %9803 = vmatpush3.msra.mxu0 %v11530_v62 }
 0x34f   : > { %v12180_v10 = vpop.permute.xlu0 %5334  ;;  %9690 = vmatprep.subr.mxu1 %v11558_v41  ;;  %9816 = vmatprep.subr.mxu0 %v11558_v41 }
 0x350   : > { %12742 = vst [vmem:[#allocation37_spill] sm:$0xff] %v12180_v10  ;;  %9667 = vmatprep.mubr.msk.f32.mxu0 %vm3050_vm9, %v12180_v10  ;;  %v12186_v34 = vpop.permute.xlu1 %5336  ;;  %9542 = vmatmul.mubr.msk.f32.gmra.mrb[10].mxu1 %vm3050_vm9, %v12130_v6 }
 0x351   : > { %12743 = vst [vmem:[#allocation38_spill] sm:$0xff] %v12186_v34  ;;  %9668 = vmatmul.mubr.msk.f32.gmra.mrb[10].mxu0 %vm3050_vm9, %v12186_v34  ;;  %9544 = vmatprep.mubr.msk.f32.mxu1 %vm3050_vm9, %v12142_v5 }
 0x353   : > { %v12194_v62 = vpop.permute.xlu0 %5338 }
 0x354   : > { %9670 = vmatprep.mubr.msk.f32.mxu0 %vm3050_vm9, %v12194_v62  ;;  %v12198_v25 = vpop.permute.xlu1 %5340  ;;  %9545 = vmatmul.mubr.msk.f32.gmra.mrb[12].mxu1 %vm3050_vm9, %v12144_v47 }
 0x355   : > { %9671 = vmatmul.mubr.msk.f32.gmra.mrb[12].mxu0 %vm3050_vm9, %v12198_v25  ;;  %9547 = vmatprep.mubr.msk.f32.mxu1 %vm3050_vm9, %v12154_v20 }
 0x357   : > { %v12206_v34 = vpop.permute.xlu0 %5342 }
 0x358   : > { %9673 = vmatprep.mubr.msk.f32.mxu0 %vm3050_vm9, %v12206_v34  ;;  %v12210_v10 = vpop.permute.xlu1 %5344  ;;  %9548 = vmatmul.mubr.msk.f32.gmra.mrb[14].mxu1 %vm3050_vm9, %v12156_v53 }
 0x359   : > { %9674 = vmatmul.mubr.msk.f32.gmra.mrb[14].mxu0 %vm3050_vm9, %v12210_v10  ;;  %9678 = vmatprep.mubr.msk.f32.mxu1 %vm3050_vm9, %v11553_v39 }
 0x35a   : > { %9804 = vmatprep.mubr.msk.f32.mxu0 %vm3050_vm9, %v11952_v23 }
 0x35c   : > { %9679 = vmatmul.mubr.msk.f32.vlgmr.msra.gmra.mrb[16].mxu1 %vm3050_vm9, %v11548_v36 }
 0x35d   : > { %9805 = vmatmul.mubr.msk.f32.vlgmr.msra.gmra.mrb[16].mxu0 %vm3050_vm9, %v11956_v24  ;;  %9681 = vmatprep.mubr.msk.f32.mxu1 %vm3050_vm9, %v11565_v44 }
 0x35e   : > { %9691 = vmatpush3.msra.mxu1 %v11558_v41  ;;  %9807 = vmatprep.mubr.msk.f32.mxu0 %vm3050_vm9, %v11967_v26 }
 0x35f   : > { %9817 = vmatpush3.msra.mxu0 %v11558_v41  ;;  %9704 = vmatprep.subr.mxu1 %v11729_v17  ;;  %v12746_v41 = vld [vmem:[#allocation35_spill] sm:$0xff] }
 0x360   : > { %9682 = vmatmul.mubr.msk.f32.gmra.mrb[18].mxu1 %vm3050_vm9, %v11574_v45  ;;  %9830 = vmatprep.subr.mxu0 %v11729_v17 }
 0x361   : > { %9808 = vmatmul.mubr.msk.f32.gmra.mrb[18].mxu0 %vm3050_vm9, %v11973_v27  ;;  %9684 = vmatprep.mubr.msk.f32.mxu1 %vm3050_vm9, %v11578_v46 }
 0x362   : > { %9810 = vmatprep.mubr.msk.f32.mxu0 %vm3050_vm9, %v11982_v28 }
 0x364   : > { %9685 = vmatmul.mubr.msk.f32.gmra.mrb[20].mxu1 %vm3050_vm9, %v11586_v48 }
 0x365   : > { %9811 = vmatmul.mubr.msk.f32.gmra.mrb[20].mxu0 %vm3050_vm9, %v11986_v29  ;;  %9687 = vmatprep.mubr.msk.f32.mxu1 %vm3050_vm9, %v11590_v49 }
 0x366   : > { %9813 = vmatprep.mubr.msk.f32.mxu0 %vm3050_vm9, %v11994_v30 }
 0x368   : > { %9688 = vmatmul.mubr.msk.f32.gmra.mrb[22].mxu1 %vm3050_vm9, %v11700_v14 }
 0x369   : > { %9814 = vmatmul.mubr.msk.f32.gmra.mrb[22].mxu0 %vm3050_vm9, %v11998_v31  ;;  %9692 = vmatprep.mubr.msk.f32.mxu1 %vm3050_vm9, %v11884_v57  ;;  %v12752_v57 = vld [vmem:[#allocation30_spill] sm:$0xff] }
 0x36a   : > { %9818 = vmatprep.mubr.msk.f32.mxu0 %vm3050_vm9, %v11553_v39  ;;  %v12745_v39 = vld [vmem:[#allocation31_spill] sm:$0xff] }
 0x36c   : > { %9693 = vmatmul.mubr.msk.f32.vlgmr.msra.gmra.mrb[16].mxu1 %vm3050_vm9, %v11888_v58 }
 0x36d   : > { %9819 = vmatmul.mubr.msk.f32.vlgmr.msra.gmra.mrb[16].mxu0 %vm3050_vm9, %v11548_v36  ;;  %9695 = vmatprep.mubr.msk.f32.mxu1 %vm3050_vm9, %v11901_v9  ;;  %v12744_v36 = vld [vmem:[#allocation34_spill] sm:$0xff] }
 0x36e   : > { %9705 = vmatpush3.msra.mxu1 %v11729_v17  ;;  %9821 = vmatprep.mubr.msk.f32.mxu0 %vm3050_vm9, %v11565_v44  ;;  %v6155_v44 = vpop.permute.xlu0 %6154 }
 0x36f   : > { %9831 = vmatpush3.msra.mxu0 %v11729_v17  ;;  %9718 = vmatprep.subr.mxu1 %v11809_v33  ;;  %v7752_v17 = vld [vmem:[#allocation14] sm:$0xff] }
 0x370   : > { %9696 = vmatmul.mubr.msk.f32.gmra.mrb[18].mxu1 %vm3050_vm9, %v11905_v15  ;;  %9844 = vmatprep.subr.mxu0 %v11809_v33 }
 0x371   : > { %9822 = vmatmul.mubr.msk.f32.gmra.mrb[18].mxu0 %vm3050_vm9, %v11574_v45  ;;  %9698 = vmatprep.mubr.msk.f32.mxu1 %vm3050_vm9, %v11920_v18  ;;  %v12747_v45 = vld [vmem:[#allocation36_spill] sm:$0xff] }
 0x372   : > { %9824 = vmatprep.mubr.msk.f32.mxu0 %vm3050_vm9, %v11578_v46  ;;  %v6157_v46 = vpop.permute.xlu1 %6156 }
 0x374   : > { %9699 = vmatmul.mubr.msk.f32.gmra.mrb[20].mxu1 %vm3050_vm9, %v11925_v19 }
 0x375   : > { %9825 = vmatmul.mubr.msk.f32.gmra.mrb[20].mxu0 %vm3050_vm9, %v11586_v48  ;;  %9701 = vmatprep.mubr.msk.f32.mxu1 %vm3050_vm9, %v11938_v21  ;;  %v12748_v48 = vld [vmem:[#allocation37_spill] sm:$0xff]  ;;  %v7477_v21 = vld [vmem:[#allocation2 + $0x22] sm:$0xff] }
 0x376   : > { %9827 = vmatprep.mubr.msk.f32.mxu0 %vm3050_vm9, %v11590_v49  ;;  %v12749_v49 = vld [vmem:[#allocation32_spill] sm:$0xff] }
 0x378   : > { %9702 = vmatmul.mubr.msk.f32.gmra.mrb[22].mxu1 %vm3050_vm9, %v11944_v22  ;;  %v7478_v22 = vld [vmem:[#allocation2 + $0x32] sm:$0xff] }
 0x379   : > { %9828 = vmatmul.mubr.msk.f32.gmra.mrb[22].mxu0 %vm3050_vm9, %v11700_v14  ;;  %9706 = vmatprep.mubr.msk.f32.mxu1 %vm3050_vm9, %v11952_v23  ;;  %v7480_v23 = vld [vmem:[#allocation2 + $0x52] sm:$0xff] }
 0x37a   : > { %9832 = vmatprep.mubr.msk.f32.mxu0 %vm3050_vm9, %v11625_v59  ;;  %v6159_v59 = vpop.permute.xlu0 %6158 }
 0x37c   : > { %9707 = vmatmul.mubr.msk.f32.vlgmr.msra.gmra.mrb[16].mxu1 %vm3050_vm9, %v11956_v24  ;;  %v7481_v24 = vld [vmem:[#allocation2 + $0x62] sm:$0xff] }
 0x37d   : > { %9833 = vmatmul.mubr.msk.f32.vlgmr.msra.gmra.mrb[16].mxu0 %vm3050_vm9, %v11629_v60  ;;  %9709 = vmatprep.mubr.msk.f32.mxu1 %vm3050_vm9, %v11967_v26  ;;  %v12750_v60 = vld [vmem:[#allocation38_spill] sm:$0xff] }
 0x37e   : > { %9719 = vmatpush3.msra.mxu1 %v11809_v33  ;;  %9835 = vmatprep.mubr.msk.f32.mxu0 %vm3050_vm9, %v11633_v61  ;;  %v6161_v61 = vpop.permute.xlu1 %6160  ;;  %v7484_v26 = vld [vmem:[#allocation2 + $0x92] sm:$0xff] }
 0x37f   : > { %9845 = vmatpush3.msra.mxu0 %v11809_v33  ;;  %9732 = vmatprep.subr.mxu1 %v11852_v51  ;;  %v7753_v33 = vld [vmem:[#allocation14 + $0x8] sm:$0x1] }
 0x380   : > { %9710 = vmatmul.mubr.msk.f32.gmra.mrb[18].mxu1 %vm3050_vm9, %v11973_v27  ;;  %9858 = vmatprep.subr.mxu0 %v11852_v51  ;;  %v9950_v58 = vpack.c.bf16 %v7753_v33, %v7752_v17  ;;  %v7744_v27 = vld [vmem:[#allocation11] sm:$0xff] }
 0x381   : > { %9836 = vmatmul.mubr.msk.f32.gmra.mrb[18].mxu0 %vm3050_vm9, %v11637_v1  ;;  %9712 = vmatprep.mubr.msk.f32.mxu1 %vm3050_vm9, %v11982_v28  ;;  %v6163_v1 = vpop.permute.xlu0 %6162  ;;  %v7745_v28 = vld [vmem:[#allocation11 + $0x8] sm:$0xff] }
 0x382   : > { %9838 = vmatprep.mubr.msk.f32.mxu0 %vm3050_vm9, %v11641_v2  ;;  %v6165_v2 = vpop.permute.xlu1 %6164 }
 0x384   : > { %9713 = vmatmul.mubr.msk.f32.gmra.mrb[20].mxu1 %vm3050_vm9, %v11986_v29  ;;  %v7746_v29 = vld [vmem:[#allocation11 + $0x10] sm:$0xff] }
 0x385   : > { %9839 = vmatmul.mubr.msk.f32.gmra.mrb[20].mxu0 %vm3050_vm9, %v11645_v3  ;;  %9715 = vmatprep.mubr.msk.f32.mxu1 %vm3050_vm9, %v11994_v30  ;;  %v6167_v3 = vpop.permute.xlu0 %6166  ;;  %v7747_v30 = vld [vmem:[#allocation11 + $0x18] sm:$0xff] }
 0x386   : > { %9841 = vmatprep.mubr.msk.f32.mxu0 %vm3050_vm9, %v11649_v4  ;;  %v10472_v4 = vld [vmem:[#allocation2 + $0x31] sm:$0xff] }
 0x388   : > { %9716 = vmatmul.mubr.msk.f32.gmra.mrb[22].mxu1 %vm3050_vm9, %v11998_v31  ;;  %v7748_v31 = vld [vmem:[#allocation11 + $0x20] sm:$0xff] }
 0x389   : > { %9842 = vmatmul.mubr.msk.f32.gmra.mrb[22].mxu0 %vm3050_vm9, %v11826_v37  ;;  %9720 = vmatprep.mubr.msk.f32.mxu1 %vm3050_vm9, %v12008_v63  ;;  %v7750_v63 = vld [vmem:[#allocation11 + $0x30] sm:$0xff] }
 0x38a   : > { %9846 = vmatprep.mubr.msk.f32.mxu0 %vm3050_vm9, %v12023_v35 }
 0x38c   : > { %9721 = vmatmul.mubr.msk.f32.vlgmr.msra.gmra.mrb[16].mxu1 %vm3050_vm9, %v12010_v32  ;;  %v7751_v32 = vld [vmem:[#allocation11 + $0x38] sm:$0xff] }
 0x38d   : > { %9847 = vmatmul.mubr.msk.f32.vlgmr.msra.gmra.mrb[16].mxu0 %vm3050_vm9, %v12026_v38  ;;  %9723 = vmatprep.mubr.msk.f32.mxu1 %vm3050_vm9, %v12038_v40 }
 0x38e   : > { %9733 = vmatpush3.msra.mxu1 %v11852_v51  ;;  %9849 = vmatprep.mubr.msk.f32.mxu0 %vm3050_vm9, %v12050_v43 }
 0x38f   : > { %9859 = vmatpush3.msra.mxu0 %v11852_v51  ;;  %9746 = vmatprep.subr.mxu1 %v11908_v16 }
 0x390   : > { %9724 = vmatmul.mubr.msk.f32.gmra.mrb[18].mxu1 %vm3050_vm9, %v12040_v42  ;;  %9872 = vmatprep.subr.mxu0 %v11908_v16 }
 0x391   : > { %9850 = vmatmul.mubr.msk.f32.gmra.mrb[18].mxu0 %vm3050_vm9, %v12052_v0  ;;  %9726 = vmatprep.mubr.msk.f32.mxu1 %vm3050_vm9, %v12062_v50 }
 0x392   : > { %9852 = vmatprep.mubr.msk.f32.mxu0 %vm3050_vm9, %v12077_v54 }
 0x394   : > { %9727 = vmatmul.mubr.msk.f32.gmra.mrb[20].mxu1 %vm3050_vm9, %v12064_v52 }
 0x395   : > { %9853 = vmatmul.mubr.msk.f32.gmra.mrb[20].mxu0 %vm3050_vm9, %v12080_v55  ;;  %9729 = vmatprep.mubr.msk.f32.mxu1 %vm3050_vm9, %v12092_v56 }
 0x396   : > { %9855 = vmatprep.mubr.msk.f32.mxu0 %vm3050_vm9, %v12102_v12 }
 0x398   : > { %9730 = vmatmul.mubr.msk.f32.gmra.mrb[22].mxu1 %vm3050_vm9, %v12094_v13 }
 0x399   : > { %9856 = vmatmul.mubr.msk.f32.gmra.mrb[22].mxu0 %vm3050_vm9, %v12106_v11  ;;  %9734 = vmatprep.mubr.msk.f32.mxu1 %vm3050_vm9, %v12023_v35 }
 0x39a   : > { %9860 = vmatprep.mubr.msk.f32.mxu0 %vm3050_vm9, %v12744_v36 }
 0x39c   : > { %9735 = vmatmul.mubr.msk.f32.vlgmr.msra.gmra.mrb[16].mxu1 %vm3050_vm9, %v12026_v38 }
 0x39d   : > { %9861 = vmatmul.mubr.msk.f32.vlgmr.msra.gmra.mrb[16].mxu0 %vm3050_vm9, %v12116_v8  ;;  %9737 = vmatprep.mubr.msk.f32.mxu1 %vm3050_vm9, %v12050_v43 }
 0x39e   : > { %9747 = vmatpush3.msra.mxu1 %v11908_v16  ;;  %9863 = vmatprep.mubr.msk.f32.mxu0 %vm3050_vm9, %v12128_v7 }
 0x39f   : > { %9873 = vmatpush3.msra.mxu0 %v11908_v16  ;;  %9760 = vmatprep.subr.mxu1 %v12745_v39 }
 0x3a0   : > { %9738 = vmatmul.mubr.msk.f32.gmra.mrb[18].mxu1 %vm3050_vm9, %v12052_v0  ;;  %9886 = vmatprep.subr.mxu0 %v12745_v39 }
 0x3a1   : > { %9864 = vmatmul.mubr.msk.f32.gmra.mrb[18].mxu0 %vm3050_vm9, %v12130_v6  ;;  %9740 = vmatprep.mubr.msk.f32.mxu1 %vm3050_vm9, %v12077_v54 }
 0x3a2   : > { %9866 = vmatprep.mubr.msk.f32.mxu0 %vm3050_vm9, %v12142_v5 }
 0x3a4   : > { %9741 = vmatmul.mubr.msk.f32.gmra.mrb[20].mxu1 %vm3050_vm9, %v12080_v55 }
 0x3a5   : > { %9867 = vmatmul.mubr.msk.f32.gmra.mrb[20].mxu0 %vm3050_vm9, %v12144_v47  ;;  %9743 = vmatprep.mubr.msk.f32.mxu1 %vm3050_vm9, %v12102_v12  ;;  %v10476_v12 = vld [vmem:[#allocation2 + $0x71] sm:$0xff] }
 0x3a6   : > { %9869 = vmatprep.mubr.msk.f32.mxu0 %vm3050_vm9, %v12154_v20 }
 0x3a8   : > { %9744 = vmatmul.mubr.msk.f32.gmra.mrb[22].mxu1 %vm3050_vm9, %v12106_v11  ;;  %v6445_v11 = vpop.permute.xlu0 %6444 }
 0x3a9   : > { %9870 = vmatmul.mubr.msk.f32.gmra.mrb[22].mxu0 %vm3050_vm9, %v12156_v53  ;;  %9748 = vmatprep.mubr.msk.f32.mxu1 %vm3050_vm9, %v12744_v36 }
 0x3aa   : > { %9874 = vmatprep.mubr.msk.f32.mxu0 %vm3050_vm9, %v12746_v41 }
 0x3ac   : > { %9749 = vmatmul.mubr.msk.f32.vlgmr.msra.gmra.mrb[16].mxu1 %vm3050_vm9, %v12116_v8  ;;  %v10474_v8 = vld [vmem:[#allocation2 + $0x51] sm:$0xff]  ;;  %v6449_v51 = vpop.permute.xlu0 %6448 }
 0x3ad   : > { %9875 = vmatmul.mubr.msk.f32.vlgmr.msra.gmra.mrb[16].mxu0 %vm3050_vm9, %v12747_v45  ;;  %9751 = vmatprep.mubr.msk.f32.mxu1 %vm3050_vm9, %v12128_v7  ;;  %v6169_v7 = vpop.permute.xlu1 %6168 }
 0x3ae   : > { %9761 = vmatpush3.msra.mxu1 %v12745_v39  ;;  %9877 = vmatprep.mubr.msk.f32.mxu0 %vm3050_vm9, %v12748_v48 }
 0x3af   : > { %9887 = vmatpush3.msra.mxu0 %v12745_v39  ;;  %9774 = vmatprep.subr.mxu1 %v12749_v49 }
 0x3b0   : > { %9752 = vmatmul.mubr.msk.f32.gmra.mrb[18].mxu1 %vm3050_vm9, %v12130_v6  ;;  %9900 = vmatprep.subr.mxu0 %v12749_v49  ;;  %v12751_v6 = vld [vmem:[#allocation33_spill] sm:$0xff]  ;;  %v6453_v15 = vpop.permute.xlu0 %6452 }
 0x3b1   : > { %9878 = vmatmul.mubr.msk.f32.gmra.mrb[18].mxu0 %vm3050_vm9, %v12750_v60  ;;  %9754 = vmatprep.mubr.msk.f32.mxu1 %vm3050_vm9, %v12142_v5  ;;  %v10473_v5 = vld [vmem:[#allocation2 + $0x41] sm:$0xff]  ;;  %v6447_v13 = vpop.permute.xlu1 %6446 }
 0x3b2   : > { %9880 = vmatprep.mubr.msk.f32.mxu0 %vm3050_vm9, %v12194_v62 }
 0x3b4   : > { %9755 = vmatmul.mubr.msk.f32.gmra.mrb[20].mxu1 %vm3050_vm9, %v12144_v47  ;;  %v10471_v47 = vld [vmem:[#allocation2 + $0x21] sm:$0xff]  ;;  %v6457_v19 = vpop.permute.xlu0 %6456 }
 0x3b5   : > { %9881 = vmatmul.mubr.msk.f32.gmra.mrb[20].mxu0 %vm3050_vm9, %v12198_v25  ;;  %9757 = vmatprep.mubr.msk.f32.mxu1 %vm3050_vm9, %v12154_v20  ;;  %v6451_v9 = vpop.permute.xlu1 %6450  ;;  %v7482_v25 = vld [vmem:[#allocation2 + $0x72] sm:$0xff] }
 0x3b6   : > { %9883 = vmatprep.mubr.msk.f32.mxu0 %vm3050_vm9, %v12206_v34 }
 0x3b8   : > { %9758 = vmatmul.mubr.msk.f32.gmra.mrb[22].mxu1 %vm3050_vm9, %v12156_v53 }
 0x3b9   : > { %9884 = vmatmul.mubr.msk.f32.gmra.mrb[22].mxu0 %vm3050_vm9, %v12210_v10  ;;  %9762 = vmatprep.mubr.msk.f32.mxu1 %vm3050_vm9, %v6155_v44  ;;  %v10475_v10 = vld [vmem:[#allocation2 + $0x61] sm:$0xff]  ;;  %v6455_v18 = vpop.permute.xlu1 %6454 }
 0x3ba   : > { %9888 = vmatprep.mubr.msk.f32.mxu0 %vm3050_vm9, %v10471_v47 }
 0x3bc   : > { %9763 = vmatmul.mubr.msk.f32.vlgmr.msra.gmra.mrb[16].mxu1 %vm3050_vm9, %v6157_v46 }
 0x3bd   : > { %9889 = vmatmul.mubr.msk.f32.vlgmr.msra.gmra.mrb[16].mxu0 %vm3050_vm9, %v10472_v4  ;;  %9765 = vmatprep.mubr.msk.f32.mxu1 %vm3050_vm9, %v6159_v59  ;;  %v6459_v20 = vpop.permute.xlu1 %6458 }
 0x3be   : > { %9775 = vmatpush3.msra.mxu1 %v12749_v49  ;;  %9891 = vmatprep.mubr.msk.f32.mxu0 %vm3050_vm9, %v10473_v5 }
 0x3bf   : > { %9901 = vmatpush3.msra.mxu0 %v12749_v49  ;;  %9788 = vmatprep.subr.mxu1 %v12751_v6 }
 0x3c0   : > { %9766 = vmatmul.mubr.msk.f32.gmra.mrb[18].mxu1 %vm3050_vm9, %v6161_v61  ;;  %9914 = vmatprep.subr.mxu0 %v12751_v6 }
 0x3c1   : > { %9892 = vmatmul.mubr.msk.f32.gmra.mrb[18].mxu0 %vm3050_vm9, %v10474_v8  ;;  %9768 = vmatprep.mubr.msk.f32.mxu1 %vm3050_vm9, %v6163_v1 }
 0x3c2   : > { %9894 = vmatprep.mubr.msk.f32.mxu0 %vm3050_vm9, %v10475_v10 }
 0x3c4   : > { %9769 = vmatmul.mubr.msk.f32.gmra.mrb[20].mxu1 %vm3050_vm9, %v6165_v2 }
 0x3c5   : > { %9895 = vmatmul.mubr.msk.f32.gmra.mrb[20].mxu0 %vm3050_vm9, %v10476_v12  ;;  %9771 = vmatprep.mubr.msk.f32.mxu1 %vm3050_vm9, %v6167_v3 }
 0x3c6   : > { %9897 = vmatprep.mubr.msk.f32.mxu0 %vm3050_vm9, %v11700_v14 }
 0x3c8   : > { %9772 = vmatmul.mubr.msk.f32.gmra.mrb[22].mxu1 %vm3050_vm9, %v6169_v7 }
 0x3c9   : > { %9898 = vmatmul.mubr.msk.f32.gmra.mrb[22].mxu0 %vm3050_vm9, %v12752_v57  ;;  %9776 = vmatprep.mubr.msk.f32.mxu1 %vm3050_vm9, %v10471_v47 }
 0x3ca   : > { %9902 = vmatprep.mubr.msk.f32.mxu0 %vm3050_vm9, %v6445_v11 }
 0x3cc   : > { %9777 = vmatmul.mubr.msk.f32.vlgmr.msra.gmra.mrb[16].mxu1 %vm3050_vm9, %v10472_v4 }
 0x3cd   : > { %9903 = vmatmul.mubr.msk.f32.vlgmr.msra.gmra.mrb[16].mxu0 %vm3050_vm9, %v6447_v13  ;;  %9779 = vmatprep.mubr.msk.f32.mxu1 %vm3050_vm9, %v10473_v5 }
 0x3ce   : > { %9789 = vmatpush3.msra.mxu1 %v12751_v6  ;;  %9905 = vmatprep.mubr.msk.f32.mxu0 %vm3050_vm9, %v6449_v51 }
 0x3cf   : > { %9915 = vmatpush3.msra.mxu0 %v12751_v6  ;;  %9952 = vmatprep.subr.msk.bf16.mxu1 %vm11399_vm4, %v9950_v58 }
 0x3d0   : > { %9780 = vmatmul.mubr.msk.f32.gmra.mrb[18].mxu1 %vm3050_vm9, %v10474_v8 }
 0x3d1   : > { %9906 = vmatmul.mubr.msk.f32.gmra.mrb[18].mxu0 %vm3050_vm9, %v6451_v9  ;;  %9782 = vmatprep.mubr.msk.f32.mxu1 %vm3050_vm9, %v10475_v10 }
 0x3d2   : > { %9908 = vmatprep.mubr.msk.f32.mxu0 %vm3050_vm9, %v6453_v15 }
 0x3d4   : > { %9783 = vmatmul.mubr.msk.f32.gmra.mrb[20].mxu1 %vm3050_vm9, %v10476_v12 }
 0x3d5   : > { %9909 = vmatmul.mubr.msk.f32.gmra.mrb[20].mxu0 %vm3050_vm9, %v6455_v18  ;;  %9785 = vmatprep.mubr.msk.f32.mxu1 %vm3050_vm9, %v11700_v14  ;;  %v7479_v14 = vld [vmem:[#allocation2 + $0x42] sm:$0xff] }
 0x3d6   : > { %9911 = vmatprep.mubr.msk.f32.mxu0 %vm3050_vm9, %v6457_v19 }
 0x3d8   : > { %9786 = vmatmul.mubr.msk.f32.gmra.mrb[22].mxu1 %vm3050_vm9, %v12752_v57 }
 0x3d9   : > { %9912 = vmatmul.mubr.msk.f32.gmra.mrb[22].mxu0 %vm3050_vm9, %v6459_v20  ;;  %9790 = vmatprep.mubr.msk.f32.mxu1 %vm3050_vm9, %v6445_v11 }
 0x3da   : > { %9916 = vmatprep.mubr.msk.f32.mxu0 %vm3050_vm9, %v7477_v21 }
 0x3dc   : > { %9791 = vmatmul.mubr.msk.f32.vlgmr.msra.gmra.mrb[16].mxu1 %vm3050_vm9, %v6447_v13 }
 0x3dd   : > { %9917 = vmatmul.mubr.msk.f32.vlgmr.msra.gmra.mrb[16].mxu0 %vm3050_vm9, %v7478_v22  ;;  %9793 = vmatprep.mubr.msk.f32.mxu1 %vm3050_vm9, %v6449_v51 }
 0x3de   : > { %9919 = vmatprep.mubr.msk.f32.mxu0 %vm3050_vm9, %v7479_v14  ;;  %9955 = vmatpush3.bf16.msk.msra.mxu1 %vm11399_vm4, %v9950_v58 }
 0x3e0   : > { %9794 = vmatmul.mubr.msk.f32.gmra.mrb[18].mxu1 %vm3050_vm9, %v6451_v9 }
 0x3e1   : > { %9920 = vmatmul.mubr.msk.f32.gmra.mrb[18].mxu0 %vm3050_vm9, %v7480_v23  ;;  %9796 = vmatprep.mubr.msk.f32.mxu1 %vm3050_vm9, %v6453_v15 }
 0x3e2   : > { %9922 = vmatprep.mubr.msk.f32.mxu0 %vm3050_vm9, %v7481_v24 }
 0x3e4   : > { %9797 = vmatmul.mubr.msk.f32.gmra.mrb[20].mxu1 %vm3050_vm9, %v6455_v18 }
 0x3e5   : > { %9923 = vmatmul.mubr.msk.f32.gmra.mrb[20].mxu0 %vm3050_vm9, %v7482_v25  ;;  %9799 = vmatprep.mubr.msk.f32.mxu1 %vm3050_vm9, %v6457_v19 }
 0x3e6   : > { %9925 = vmatprep.mubr.msk.f32.mxu0 %vm3050_vm9, %v11826_v37  ;;  %v7749_v37 = vld [vmem:[#allocation11 + $0x28] sm:$0xff] }
 0x3e8   : > { %9800 = vmatmul.mubr.msk.f32.gmra.mrb[22].mxu1 %vm3050_vm9, %v6459_v20 }
 0x3e9   : > { %9926 = vmatmul.mubr.msk.f32.gmra.mrb[22].mxu0 %vm3050_vm9, %v7484_v26  ;;  %9932 = vmatprep.mubr.msk.f32.mxu1 %vm2776_vm5, %v7744_v27 }
 0x3ec   : > { %9933 = vmatmul.mubr.msk.f32.vlgmr.msra.gmra.mrb[24].mxu1 %vm2776_vm5, %v7745_v28 }
 0x3ed   : > { %9935 = vmatprep.mubr.msk.f32.mxu1 %vm2776_vm5, %v7746_v29 }
 0x3f0   : > { %9936 = vmatmul.mubr.msk.f32.gmra.mrb[26].mxu1 %vm2776_vm5, %v7747_v30 }
 0x3f1   : > { %9938 = vmatprep.mubr.msk.f32.mxu1 %vm2776_vm5, %v7748_v31 }
 0x3f4   : > { %9939 = vmatmul.mubr.msk.f32.gmra.mrb[28].mxu1 %vm2776_vm5, %v7749_v37 }
 0x3f5   : > { %9941 = vmatprep.mubr.msk.f32.mxu1 %vm2776_vm5, %v7750_v63 }
 0x3f8   : > { %9942 = vmatmul.mubr.msk.f32.gmra.mrb[30].mxu1 %vm2776_vm5, %v7751_v32 }
 0x41f   : > { %v12503_v34 = vpop.f32.mrb[8].mxu1 }
 0x420   : > { %v9666_v35 = vpop.f32.mrb[8].mxu0  ;;  %v12505_v38 = vpop.f32.mrb[9].mxu1 }
 0x421   : > { %7632 = vrot.lane.b32.xlu1 %v9666_v35, %s10771_s16  ;;  %v5428_v40 = vpop.f32.mrb[9].mxu0  ;;  %v12754_v35 = vld [vmem:[#allocation22_spill] sm:$0xff] }
 0x422   : > { %7630 = vrot.lane.b32.xlu0 %v5428_v40, %s10771_s16 }
 0x423   : > { %v12509_v42 = vpop.f32.mrb[10].mxu1 }
 0x424   : > { %v9669_v43 = vpop.f32.mrb[10].mxu0  ;;  %v12511_v0 = vpop.f32.mrb[11].mxu1 }
 0x425   : > { %7636 = vrot.lane.b32.xlu1 %v9669_v43, %s10771_s16  ;;  %v5438_v50 = vpop.f32.mrb[11].mxu0 }
 0x426   : > { %7634 = vrot.lane.b32.xlu0 %v5438_v50, %s10771_s16 }
 0x427   : > { %v12515_v52 = vpop.f32.mrb[12].mxu1 }
 0x428   : > { %v9672_v53 = vpop.f32.mrb[12].mxu0  ;;  %v12517_v54 = vpop.f32.mrb[13].mxu1 }
 0x429   : > { %7640 = vrot.lane.b32.xlu1 %v9672_v53, %s10771_s16  ;;  %v5448_v55 = vpop.f32.mrb[13].mxu0  ;;  %v12755_v53 = vld [vmem:[#allocation23_spill] sm:$0xff] }
 0x42a   : > { %7638 = vrot.lane.b32.xlu0 %v5448_v55, %s10771_s16  ;;  %v2966_v55 = vmul.f32 0.70710677, %v12755_v53 }
 0x42b   : > { %v12521_v56 = vpop.f32.mrb[14].mxu1 }
 0x42c   : > { %v9675_v62 = vpop.f32.mrb[14].mxu0  ;;  %v12523_v36 = vpop.f32.mrb[15].mxu1 }
 0x42d   : > { %7644 = vrot.lane.b32.xlu1 %v9675_v62, %s10771_s16  ;;  %v5458_v39 = vpop.f32.mrb[15].mxu0 }
 0x42e   : > { %7642 = vrot.lane.b32.xlu0 %v5458_v39, %s10771_s16 }
 0x493   : > { %v7633_v51 = vpop.permute.xlu1 %7632 }
 0x494   : > { %v7631_v57 = vpop.permute.xlu0 %7630  ;;  %v7719_v22 = vsel %vm3050_vm9, %v12503_v34, %v7633_v51 }
 0x495   : > { %v7718_v14 = vsel %vm3050_vm9, %v12505_v38, %v7631_v57  ;;  %v2967_v38 = vmul.f32 0.70710677, %v12754_v35 }
 0x497   : > { %v7637_v58 = vpop.permute.xlu1 %7636 }
 0x498   : > { %v7635_v9 = vpop.permute.xlu0 %7634  ;;  %v7721_v40 = vsel %vm3050_vm9, %v12509_v42, %v7637_v58 }
 0x499   : > { %v7720_v62 = vsel %vm3050_vm9, %v12511_v0, %v7635_v9 }
 0x49b   : > { %v7641_v15 = vpop.permute.xlu1 %7640 }
 0x49c   : > { %v7639_v16 = vpop.permute.xlu0 %7638 }
 0x49d   : > { %v7722_v51 = vsel %vm3050_vm9, %v12517_v54, %v7639_v16 }
 0x49f   : > { %v12551_v18 = vpop.permute.xlu1 %7644 }
 0x4a0   : > { %v12553_v19 = vpop.permute.xlu0 %7642 }
 0x4af   : > { %v9792_v41 = vpop.f32.mrb[16].mxu1 }
 0x4b0   : > { %v9918_v44 = vpop.f32.mrb[16].mxu0  ;;  %7664 = vrot.lane.b32.xlu1 %v9792_v41, %s10772_s23  ;;  %v6542_v45 = vpop.f32.mrb[17].mxu1 }
 0x4b1   : > { %v7575_v46 = vpop.f32.mrb[17].mxu0  ;;  %7662 = vrot.lane.b32.xlu0 %v6542_v45, %s10772_s23 }
 0x4b3   : > { %v9795_v48 = vpop.f32.mrb[18].mxu1 }
 0x4b4   : > { %v9921_v49 = vpop.f32.mrb[18].mxu0  ;;  %v6552_v59 = vpop.f32.mrb[19].mxu1  ;;  %7696 = vrot.lane.b32.xlu1 %v9918_v44, %s10773_s14 }
 0x4b5   : > { %v7585_v60 = vpop.f32.mrb[19].mxu0  ;;  %7694 = vrot.lane.b32.xlu0 %v7575_v46, %s10773_s14 }
 0x4b7   : > { %v9798_v61 = vpop.f32.mrb[20].mxu1 }
 0x4b8   : > { %v9924_v1 = vpop.f32.mrb[20].mxu0  ;;  %v6562_v2 = vpop.f32.mrb[21].mxu1  ;;  %7668 = vrot.lane.b32.xlu1 %v9795_v48, %s10772_s23 }
 0x4b9   : > { %v7595_v47 = vpop.f32.mrb[21].mxu0  ;;  %7666 = vrot.lane.b32.xlu0 %v6552_v59, %s10772_s23 }
 0x4bb   : > { %v9801_v3 = vpop.f32.mrb[22].mxu1 }
 0x4bc   : > { %v9927_v4 = vpop.f32.mrb[22].mxu0  ;;  %7700 = vrot.lane.b32.xlu1 %v9921_v49, %s10773_s14  ;;  %v6572_v5 = vpop.f32.mrb[23].mxu1 }
 0x4bd   : > { %v7605_v6 = vpop.f32.mrb[23].mxu0  ;;  %7698 = vrot.lane.b32.xlu0 %v7585_v60, %s10773_s14 }
 0x4bf   : > { %v9934_v7 = vpop.f32.mrb[24].mxu1 }
 0x4c0   : > { %7672 = vrot.lane.b32.xlu1 %v9798_v61, %s10772_s23  ;;  %v7847_v8 = vpop.f32.mrb[25].mxu1 }
 0x4c1   : > { %7670 = vrot.lane.b32.xlu0 %v6562_v2, %s10772_s23 }
 0x4c3   : > { %v9937_v10 = vpop.f32.mrb[26].mxu1 }
 0x4c4   : > { %7704 = vrot.lane.b32.xlu1 %v9924_v1, %s10773_s14  ;;  %v7857_v11 = vpop.f32.mrb[27].mxu1 }
 0x4c5   : > { %7702 = vrot.lane.b32.xlu0 %v7595_v47, %s10773_s14 }
 0x4c7   : > { %v12539_v12 = vpop.f32.mrb[28].mxu1 }
 0x4c8   : > { %7676 = vrot.lane.b32.xlu1 %v9801_v3, %s10772_s23  ;;  %v12542_v13 = vpop.f32.mrb[29].mxu1 }
 0x4c9   : > { %7674 = vrot.lane.b32.xlu0 %v6572_v5, %s10772_s23 }
 0x4cb   : > { %v12545_v17 = vpop.f32.mrb[30].mxu1 }
 0x4cc   : > { %7708 = vrot.lane.b32.xlu1 %v9927_v4, %s10773_s14  ;;  %v12548_v33 = vpop.f32.mrb[31].mxu1  ;;  %v12756_v4 = vld [vmem:[#allocation24_spill] sm:$0xff] }
 0x4cd   : > { %7706 = vrot.lane.b32.xlu0 %v7605_v6, %s10773_s14  ;;  %v2969_v5 = vmul.f32 0.70710677, %v12756_v4  ;;  %v7723_v6 = vsel %vm3050_vm9, %v12515_v52, %v7641_v15 }
 0x522   : > { %v7665_v20 = vpop.permute.xlu1 %7664 }
 0x523   : > { %v7663_v21 = vpop.permute.xlu0 %7662  ;;  %v7728_v23 = vsel %vm7726_vm2, %v7719_v22, %v7665_v20 }
 0x524   : > { %v7727_v25 = vsel %vm7726_vm2, %v7718_v14, %v7663_v21 }
 0x526   : > { %v7697_v24 = vpop.permute.xlu1 %7696 }
 0x527   : > { %v7695_v26 = vpop.permute.xlu0 %7694  ;;  %v7737_v27 = vsel %vm7735_vm3, %v7728_v23, %v7697_v24 }
 0x528   : > { %v7887_v28 = vadd.f32 %v9934_v7, %v7737_v27  ;;  %v7736_v29 = vsel %vm7735_vm3, %v7727_v25, %v7695_v26 }
 0x529   : > { %v7886_v30 = vadd.f32 %v7847_v8, %v7736_v29 }
 0x52a   : > { %vm7895_vm4 = vcmp.ge.f32.partialorder %v7887_v28, 0.0  ;;  %v7903_v31 = vmul.f32 0.2, %v7887_v28  ;;  %v7669_v37 = vpop.permute.xlu1 %7668 }
 0x52b   : > { %vm7894_vm5 = vcmp.ge.f32.partialorder %v7886_v30, 0.0  ;;  %v7902_v63 = vmul.f32 0.2, %v7886_v30  ;;  %v7667_v32 = vpop.permute.xlu0 %7666  ;;  %v7730_v41 = vsel %vm7726_vm2, %v7721_v40, %v7669_v37 }
 0x52c   : > { %v7911_v34 = vsel %vm7895_vm4, %v7887_v28, %v7903_v31  ;;  %v7729_v46 = vsel %vm7726_vm2, %v7720_v62, %v7667_v32  ;;  %v12758_v28 = vld [vmem:[#allocation26_spill] sm:$0xff] }
 0x52d   : > { %v8637_v43 = vclamps-f32 %v7911_v34, 181.01933  ;;  %v7910_v50 = vsel %vm7894_vm5, %v7886_v30, %v7902_v63  ;;  %v2971_v29 = vmul.f32 0.70710677, %v12758_v28  ;;  %v7724_v63 = vsel %vm3050_vm9, %v12523_v36, %v12553_v19 }
 0x52e   : > { %v8636_v39 = vclamps-f32 %v7910_v50, 181.01933  ;;  %v7701_v44 = vpop.permute.xlu1 %7700 }
 0x52f   : > { %v7935_v45 = vadd.f32 %v8637_v43, %v2967_v38  ;;  %v7699_v48 = vpop.permute.xlu0 %7698  ;;  %v7739_v49 = vsel %vm7735_vm3, %v7730_v41, %v7701_v44 }
 0x530   : > { %v7934_v59 = vadd.f32 %v8636_v39, %v2966_v55  ;;  %v7889_v60 = vadd.f32 %v9937_v10, %v7739_v49  ;;  %v7738_v42 = vsel %vm7735_vm3, %v7729_v46, %v7699_v48  ;;  %v12757_v10 = vld [vmem:[#allocation25_spill] sm:$0xff]  ;;  %v12760_v39 = vld [vmem:[#allocation28_spill] sm:$0xff] }
 0x531   : > { %7943 = vst.msk [vmem:[%s12574_s11 + $0x8] sm:$0xff] %vm2974_vm6, %v7935_v45  ;;  %v7888_v0 = vadd.f32 %v7857_v11, %v7738_v42  ;;  %v2968_v11 = vmul.f32 0.70710677, %v12757_v10  ;;  %v12761_v45 = vld [vmem:[#allocation29_spill] sm:$0xff] }
 0x532   : > { %7942 = vst.msk [vmem:[%s12574_s11] sm:$0xff] %vm2974_vm6, %v7934_v59  ;;  %vm7897_vm7 = vcmp.ge.f32.partialorder %v7889_v60, 0.0  ;;  %v7905_v61 = vmul.f32 0.2, %v7889_v60  ;;  %v7673_v1 = vpop.permute.xlu1 %7672  ;;  %v2972_v46 = vmul.f32 0.70710677, %v12761_v45 }
 0x533   : > { %vm7896_vm8 = vcmp.ge.f32.partialorder %v7888_v0, 0.0  ;;  %v7904_v2 = vmul.f32 0.2, %v7888_v0  ;;  %v7671_v47 = vpop.permute.xlu0 %7670  ;;  %v7732_v58 = vsel %vm7726_vm2, %v7723_v6, %v7673_v1 }
 0x534   : > { %v7913_v3 = vsel %vm7897_vm7, %v7889_v60, %v7905_v61  ;;  %v7731_v21 = vsel %vm7726_vm2, %v7722_v51, %v7671_v47 }
 0x535   : > { %v8639_v7 = vclamps-f32 %v7913_v3, 181.01933  ;;  %v7912_v8 = vsel %vm7896_vm8, %v7888_v0, %v7904_v2 }
 0x536   : > { %v8638_v57 = vclamps-f32 %v7912_v8, 181.01933  ;;  %v7705_v9 = vpop.permute.xlu1 %7704 }
 0x537   : > { %v7937_v20 = vadd.f32 %v8639_v7, %v2969_v5  ;;  %v7703_v22 = vpop.permute.xlu0 %7702  ;;  %v7741_v14 = vsel %vm7735_vm3, %v7732_v58, %v7705_v9 }
 0x538   : > { %v7936_v23 = vadd.f32 %v8638_v57, %v2968_v11  ;;  %v7891_v52 = vadd.f32 %v12539_v12, %v7741_v14  ;;  %v7740_v15 = vsel %vm7735_vm3, %v7731_v21, %v7703_v22  ;;  %v7725_v12 = vsel %vm3050_vm9, %v12521_v56, %v12551_v18 }
 0x539   : > { %7945 = vst.msk [vmem:[%s12574_s11 + $0x18] sm:$0xff] %vm2974_vm6, %v7937_v20  ;;  %v7890_v24 = vadd.f32 %v12542_v13, %v7740_v15  ;;  %v12759_v13 = vld [vmem:[#allocation27_spill] sm:$0xff] }
 0x53a   : > { %7944 = vst.msk [vmem:[%s12574_s11 + $0x10] sm:$0xff] %vm2974_vm6, %v7936_v23  ;;  %vm7899_vm10 = vcmp.ge.f32.partialorder %v7891_v52, 0.0  ;;  %v7907_v54 = vmul.f32 0.2, %v7891_v52  ;;  %v7677_v16 = vpop.permute.xlu1 %7676  ;;  %v2970_v37 = vmul.f32 0.70710677, %v12759_v13 }
 0x53b   : > { %vm7898_vm11 = vcmp.ge.f32.partialorder %v7890_v24, 0.0  ;;  %v7906_v25 = vmul.f32 0.2, %v7890_v24  ;;  %v7675_v26 = vpop.permute.xlu0 %7674  ;;  %v7734_v34 = vsel %vm7726_vm2, %v7725_v12, %v7677_v16 }
 0x53c   : > { %v7915_v27 = vsel %vm7899_vm10, %v7891_v52, %v7907_v54  ;;  %v7733_v40 = vsel %vm7726_vm2, %v7724_v63, %v7675_v26 }
 0x53d   : > { %v8641_v30 = vclamps-f32 %v7915_v27, 181.01933  ;;  %v7914_v31 = vsel %vm7898_vm11, %v7890_v24, %v7906_v25 }
 0x53e   : > { %v8640_v32 = vclamps-f32 %v7914_v31, 181.01933  ;;  %v7709_v35 = vpop.permute.xlu1 %7708 }
 0x53f   : > { %v7939_v38 = vadd.f32 %v8641_v30, %v2971_v29  ;;  %v7707_v43 = vpop.permute.xlu0 %7706  ;;  %v7743_v56 = vsel %vm7735_vm3, %v7734_v34, %v7709_v35 }
 0x540   : > { %v7938_v18 = vadd.f32 %v8640_v32, %v2970_v37  ;;  %v7893_v50 = vadd.f32 %v12545_v17, %v7743_v56  ;;  %v7742_v53 = vsel %vm7735_vm3, %v7733_v40, %v7707_v43  ;;  %v2973_v17 = vmul.f32 0.70710677, %v12760_v39 }
 0x541   : > { %7947 = vst.msk [vmem:[%s12574_s11 + $0x28] sm:$0xff] %vm2974_vm6, %v7939_v38  ;;  %v7892_v36 = vadd.f32 %v12548_v33, %v7742_v53 }
 0x542   : > { %7946 = vst.msk [vmem:[%s12574_s11 + $0x20] sm:$0xff] %vm2974_vm6, %v7938_v18  ;;  %vm7901_vm9 = vcmp.ge.f32.partialorder %v7893_v50, 0.0  ;;  %v7909_v19 = vmul.f32 0.2, %v7893_v50 }
 0x543   : > { %vm7900_vm12 = vcmp.ge.f32.partialorder %v7892_v36, 0.0  ;;  %v7908_v55 = vmul.f32 0.2, %v7892_v36 }
 0x544   : > { %v7917_v62 = vsel %vm7901_vm9, %v7893_v50, %v7909_v19 }
 0x545   : > { %v8643_v41 = vclamps-f32 %v7917_v62, 181.01933  ;;  %v7916_v44 = vsel %vm7900_vm12, %v7892_v36, %v7908_v55 }
 0x546   : > { %v8642_v33 = vclamps-f32 %v7916_v44, 181.01933 }
 0x547   : > { %v7941_v48 = vadd.f32 %v8643_v41, %v2973_v17 }
 0x548   : > { %v7940_v49 = vadd.f32 %v8642_v33, %v2972_v46 }
 0x549   : > { %7949 = vst.msk [vmem:[%s12574_s11 + $0x38] sm:$0xff] %vm2974_vm6, %v7941_v48 }
 0x54a   : > { %7948 = vst.msk [vmem:[%s12574_s11 + $0x30] sm:$0xff] %vm2974_vm6, %v7940_v49 }
 0x54b   : > { %10688 = shalt.err (!%p10685_p8)
}
 0x54c   : > { %s10689_s23 = scalar_lea.hbm %s12621_s28, 1024  ;;  %s10693_s11 = scalar_lea.hbm %s12679_s7, 2048 }
 0x54d   : > { %p10690_p7 = scmp.ne.s32.totalorder %s12621_s28, %s10689_s23  ;;  %p10694_p3 = scmp.lt.u32.totalorder %s12621_s28, %s12679_s7 }
 0x54e   : > { %p10695_p6 = scmp.lt.u32.totalorder %s10693_s11, %s10689_s23  ;;  %p10697_p0 = scmp.lt.u32.totalorder %s10689_s23, %s12621_s28 }
 0x54f   : > { %p10691_p9 = pnand %p10690_p7, %p12762_p5 }
 0x550   : > { %p10696_p2 = por %p10695_p6, %p10694_p3 }
 0x551   : > { %p10692_p4 = pneg %p10691_p9 }
 0x552   : > { %p10698_p10 = por %p10697_p0, %p10696_p2 }
 0x554   : > { %p10699_p1 = pnand %p10698_p10, %p10692_p4 }
 0x556   : > { %10702 = shalt.err (!%p10699_p1)
}
 0x557   : > { %s10775_s18 = smov 128  }
 0x558   : > { %10377 = dma.vmem_to_hbm [thread:$0]  (%p12762_p5), %s12623_s22, 1024, %s12621_s28, %s7951_s30, %s10775_s18, %s10775_s18, %s10771_s16  }
 0x559 PF: > { %s7979_s15 = sand.u32 1, %s10741_s24   ;;  %p12763_p11 = scmp.ne.s32.totalorder %s12713_s29, 0 }
 0x55a   : > { %p12764_p12 = scmp.ge.s32.totalorder %s10753_s27, 2  ;;  %s7980_s8 = scalar_lea.sflag [#allocation5], %s7979_s15 }
 0x55c   : > { %p10403_p13 = pnand %p12764_p12, %p12763_p11 }
 0x55e   : > { %10736 = dma.done.wait (!%p10403_p13), %s7980_s8, 1024  }
 0x55f   : > { %10738 = vsyncadd (!%p10403_p13), %s7980_s8, 4294966272  ;;  %p23_p8 = scmp.ge.s32.totalorder %s11006_s19, 4   ;;  %s12765_s24 = smov %s10745_s25 }
 0x560   : > { %s12766_s25 = smov %s10749_s26  ;;  %s12767_s26 = smov %s11017_s17 }
 0x561   : > { %s12768_s27 = smov %s11006_s19  ;;  %25 = sbr.rel (!%p23_p8) target bundleno = 10 (0xa), region = 146 }
 0x568   :  { %7985 = vsyncpa [#allocation4], 1 }
 0x569   :  { %7987 = vsyncpa [#allocation4 + $0x1], 1 }
 0x56a   :  { %7988 = vsyncpa [#allocation7], 1 }
 0x56b   :  { %7989 = vsyncpa [#allocation10], 1 }
 0x56c   :  { %7990 = vsyncpa [#allocation13], 1 }
 0x56d   :  { %7991 = vsyncpa [#allocation5], 1 }
 0x56e   :  { %7993 = vsyncpa [#allocation5 + $0x1], 1 }

</bundles_post_ra>
